<compile_context>
chip_gen: v7x
topology: tpu7x:2x2x1
jax: 0.10.0
libtpu: 0.0.40
codegen_flags: <defaults>
</compile_context>

<pallas_src>
import functools

import jax
import jax.numpy as jnp
from jax.experimental import pallas as pl
from jax.experimental.pallas import tpu as pltpu


def decoder_kernel(z_ref, w1_ref, b1_ref, w2_ref, o_ref, *, batch_chunk, hidden_chunk):
    """One batch tile of the fused decoder: ReLU(z @ W1 + b1) @ W2_padded.

    Layer 1 (K = latent, tiny) runs on the VPU as broadcast multiply-adds;
    layer 2 runs on the MXU.  Both are chunked over `hidden` and interleaved
    so the VPU and MXU phases overlap and vreg pressure stays low.
    """
    bb, latent = z_ref.shape
    hidden = w1_ref.shape[1]
    n_pad = w2_ref.shape[1]

    for r in range(0, bb, batch_chunk):
        # Hoist the lane-sparse (bb, latent) column extracts out of the
        # hidden-chunk loop so the cross-lane broadcasts happen once per row-block.
        z_cols = [z_ref[r:r + batch_chunk, k:k + 1] for k in range(latent)]

        acc = jnp.zeros((batch_chunk, n_pad), jnp.float32)
        for c in range(0, hidden, hidden_chunk):
            # ---- Layer 1 chunk on the VPU (skip the MXU for K = 3) ----
            h = z_cols[0] * w1_ref[0:1, c:c + hidden_chunk] + b1_ref[:, c:c + hidden_chunk]
            for k in range(1, latent):
                h = h + z_cols[k] * w1_ref[k:k + 1, c:c + hidden_chunk]
            h = jnp.maximum(h, 0.0)  # ReLU

            # ---- Layer 2 chunk on the MXU, lane-dense output, f32 acc ----
            acc = acc + jnp.dot(h, w2_ref[c:c + hidden_chunk, :],
                                preferred_element_type=jnp.float32)

        o_ref[r:r + batch_chunk, :] = acc.astype(o_ref.dtype)


def _default_grid_steps():
    """1 grid step per TensorCore: v7x has 2 TCs/chip, earlier gens have 1."""
    try:
        kind = jax.devices()[0].device_kind.lower()
    except Exception:  # pragma: no cover - detection is best-effort
        return 1
    return 2 if "v7" in kind else 1


@functools.partial(jax.jit, static_argnames=("out_dims", "grid_steps"))
def _decoder_forward(z, w1, b1, w2_padded, *, out_dims, grid_steps):
    B, latent = z.shape
    hidden = w1.shape[1]

    # W2 should already be lane-padded at init time; guarded fallback only.
    n_pad = w2_padded.shape[1]
    if n_pad % 128 != 0:
        new_n = 128 * pl.cdiv(n_pad, 128)
        w2_padded = jnp.zeros((hidden, new_n), w2_padded.dtype).at[:, :n_pad].set(w2_padded)
        n_pad = new_n

    # One grid step per TensorCore.  Batch tile quantized to the in-kernel
    # row-block size (128) when B is large, else to the 8-row sublane quantum.
    tile_quant = 128 if B >= 128 else 8
    bb = tile_quant * pl.cdiv(pl.cdiv(B, grid_steps), tile_quant)
    b_pad = bb * pl.cdiv(B, bb)
    z_p = z if b_pad == B else jnp.zeros((b_pad, latent), z.dtype).at[:B, :].set(z)

    grid = (b_pad // bb,)
    batch_chunk = min(128, bb)                       # divides bb by construction
    hidden_chunk = 128 if hidden % 128 == 0 else hidden

    flops = 2 * b_pad * hidden * (latent + n_pad)
    bytes_accessed = 4 * (z_p.size + w1.size + b1.size + w2_padded.size + b_pad * n_pad)

    out_padded = pl.pallas_call(
        functools.partial(decoder_kernel,
                          batch_chunk=batch_chunk, hidden_chunk=hidden_chunk),
        out_shape=jax.ShapeDtypeStruct((b_pad, n_pad), jnp.float32),
        grid=grid,
        in_specs=[
            pl.BlockSpec((bb, latent), lambda i: (i, 0)),        # z tile moves per step
            pl.BlockSpec((latent, hidden), lambda i: (0, 0)),    # W1 VMEM-resident
            pl.BlockSpec((1, hidden), lambda i: (0, 0)),         # b1 VMEM-resident
            pl.BlockSpec((hidden, n_pad), lambda i: (0, 0)),     # W2 VMEM-resident
        ],
        out_specs=pl.BlockSpec((bb, n_pad), lambda i: (i, 0)),
        compiler_params=pltpu.CompilerParams(
            dimension_semantics=("parallel",),                   # shards across TCs on v7x
        ),
        cost_estimate=pl.CostEstimate(
            flops=flops, transcendentals=0, bytes_accessed=bytes_accessed
        ),
    )(z_p, w1, b1, w2_padded)

    # Padded batch rows compute ReLU(b1) @ W2 (non-zero) and padded columns are
    # zero; both are stripped here.  A consumer under the same jit could fuse
    # this slice or take the padded slab directly to save the copy.
    return out_padded[:B, :out_dims]


def decoder_forward(z, w1, b1, w2_padded, *, out_dims, grid_steps=None):
    """z: (B, latent), w1: (latent, hidden), b1: (1, hidden),
    w2_padded: (hidden, 128*ceil(out/128)) with the real weights in [:, :out_dims]."""
    if grid_steps is None:
        grid_steps = _default_grid_steps()
    return _decoder_forward(z, w1, b1, w2_padded, out_dims=out_dims, grid_steps=grid_steps)


def init_decoder_params(key, latent_dims=3, hidden_dims=512, out_dims=33):
    """Deterministic init mirroring torch.nn.Linear default (uniform +/- 1/sqrt(fan_in)).

    W2 is stored pre-transposed AND pre-padded to a lane-dense multiple of 128
    so the forward pass does no per-call padding work.
    """
    k1, k2, k3 = jax.random.split(key, 3)
    bound1 = 1.0 / jnp.sqrt(jnp.float32(latent_dims))
    bound2 = 1.0 / jnp.sqrt(jnp.float32(hidden_dims))
    w1 = jax.random.uniform(k1, (latent_dims, hidden_dims), jnp.float32, -bound1, bound1)
    b1 = jax.random.uniform(k2, (1, hidden_dims), jnp.float32, -bound1, bound1)
    w2 = jax.random.uniform(k3, (hidden_dims, out_dims), jnp.float32, -bound2, bound2)
    n_pad = 128 * pl.cdiv(out_dims, 128)
    w2_padded = jnp.zeros((hidden_dims, n_pad), jnp.float32).at[:, :out_dims].set(w2)
    return w1, b1, w2_padded


def reference_forward(z, w1, b1, w2):
    h = jnp.maximum(
        jnp.dot(z, w1, precision=jax.lax.Precision.HIGHEST) + b1, 0.0
    )
    return jnp.dot(h, w2, precision=jax.lax.Precision.HIGHEST)


if __name__ == "__main__":
    key = jax.random.PRNGKey(0)
    kz, kp = jax.random.split(key)

    batch = 512                          # exercises the row-block loop (and 2-TC grid on v7x)
    latent_dims, hidden_dims, out_dims = 3, 512, 33

    z = jax.random.normal(kz, (batch, latent_dims), jnp.float32)
    w1, b1, w2_padded = init_decoder_params(kp, latent_dims, hidden_dims, out_dims)

    out = jax.block_until_ready(decoder_forward(z, w1, b1, w2_padded, out_dims=out_dims))

    ref = reference_forward(z, w1, b1, w2_padded[:, :out_dims])
    assert out.shape == (batch, out_dims)
    assert jnp.allclose(out, ref, atol=2e-3, rtol=2e-3), "mismatch vs reference"

    print("KERNEL_OK")
</pallas_src>

<mosaic_0001>
module attributes {stable_mosaic.version = 11 : i64} {
  func.func @decoder_kernel(%arg0: i32, %arg1: memref<512x3xf32, #tpu.memory_space<vmem>>, %arg2: memref<3x512xf32, #tpu.memory_space<vmem>>, %arg3: memref<1x512xf32, #tpu.memory_space<vmem>>, %arg4: memref<512x128xf32, #tpu.memory_space<vmem>>, %arg5: memref<512x128xf32, #tpu.memory_space<vmem>>) attributes {dimension_semantics = [#tpu.dimension_semantics<parallel>], iteration_bounds = array<i64: 1>, scalar_prefetch = 0 : i64, scratch_operands = 0 : i64, tpu.core_type = #tpu.core_type<tc>, window_params = [{transform_indices = @transform_0, window_bounds = array<i64: 512, 3>}, {pipeline_mode = #tpu.pipeline_mode<synchronous>, transform_indices = @transform_1, window_bounds = array<i64: 3, 512>}, {pipeline_mode = #tpu.pipeline_mode<synchronous>, transform_indices = @transform_2, window_bounds = array<i64: 1, 512>}, {pipeline_mode = #tpu.pipeline_mode<synchronous>, transform_indices = @transform_3, window_bounds = array<i64: 512, 128>}, {transform_indices = @transform_4, window_bounds = array<i64: 512, 128>}]} {
    %c0 = arith.constant 0 : index
    %c0_0 = arith.constant 0 : index
    %0 = vector.load %arg1[%c0, %c0_0] : memref<512x3xf32, #tpu.memory_space<vmem>>, vector<128x1xf32>
    %c0_1 = arith.constant 0 : index
    %c1 = arith.constant 1 : index
    %1 = vector.load %arg1[%c0_1, %c1] : memref<512x3xf32, #tpu.memory_space<vmem>>, vector<128x1xf32>
    %c0_2 = arith.constant 0 : index
    %c2 = arith.constant 2 : index
    %2 = vector.load %arg1[%c0_2, %c2] : memref<512x3xf32, #tpu.memory_space<vmem>>, vector<128x1xf32>
    %cst = arith.constant 0.000000e+00 : f32
    %3 = vector.broadcast %cst : f32 to vector<128x128xf32>
    %c0_3 = arith.constant 0 : index
    %c0_4 = arith.constant 0 : index
    %4 = vector.load %arg2[%c0_3, %c0_4] : memref<3x512xf32, #tpu.memory_space<vmem>>, vector<1x128xf32>
    %5 = vector.broadcast %0 : vector<128x1xf32> to vector<128x128xf32>
    %6 = vector.broadcast %4 : vector<1x128xf32> to vector<128x128xf32>
    %7 = arith.mulf %5, %6 : vector<128x128xf32>
    %c0_5 = arith.constant 0 : index
    %c0_6 = arith.constant 0 : index
    %8 = vector.load %arg3[%c0_5, %c0_6] : memref<1x512xf32, #tpu.memory_space<vmem>>, vector<1x128xf32>
    %9 = vector.broadcast %8 : vector<1x128xf32> to vector<128x128xf32>
    %10 = arith.addf %7, %9 : vector<128x128xf32>
    %c1_7 = arith.constant 1 : index
    %c0_8 = arith.constant 0 : index
    %11 = vector.load %arg2[%c1_7, %c0_8] : memref<3x512xf32, #tpu.memory_space<vmem>>, vector<1x128xf32>
    %12 = vector.broadcast %1 : vector<128x1xf32> to vector<128x128xf32>
    %13 = vector.broadcast %11 : vector<1x128xf32> to vector<128x128xf32>
    %14 = arith.mulf %12, %13 : vector<128x128xf32>
    %15 = arith.addf %10, %14 : vector<128x128xf32>
    %c2_9 = arith.constant 2 : index
    %c0_10 = arith.constant 0 : index
    %16 = vector.load %arg2[%c2_9, %c0_10] : memref<3x512xf32, #tpu.memory_space<vmem>>, vector<1x128xf32>
    %17 = vector.broadcast %2 : vector<128x1xf32> to vector<128x128xf32>
    %18 = vector.broadcast %16 : vector<1x128xf32> to vector<128x128xf32>
    %19 = arith.mulf %17, %18 : vector<128x128xf32>
    %20 = arith.addf %15, %19 : vector<128x128xf32>
    %cst_11 = arith.constant 0.000000e+00 : f32
    %21 = vector.broadcast %cst_11 : f32 to vector<128x128xf32>
    %22 = arith.maximumf %20, %21 : vector<128x128xf32>
    %c0_12 = arith.constant 0 : index
    %c0_13 = arith.constant 0 : index
    %23 = vector.load %arg4[%c0_12, %c0_13] : memref<512x128xf32, #tpu.memory_space<vmem>>, vector<128x128xf32>
    %cst_14 = arith.constant dense<0.000000e+00> : vector<128x128xf32>
    %24 = tpu.matmul %22, %23, %cst_14 {dimension_numbers = #tpu.dot_dimension_numbers<[1], [0], [0], [1], [0, 0, 1, 1], [], []>} : vector<128x128xf32>, vector<128x128xf32>, vector<128x128xf32> -> vector<128x128xf32>
    %25 = arith.addf %3, %24 : vector<128x128xf32>
    %c0_15 = arith.constant 0 : index
    %c128 = arith.constant 128 : index
    %26 = vector.load %arg2[%c0_15, %c128] : memref<3x512xf32, #tpu.memory_space<vmem>>, vector<1x128xf32>
    %27 = vector.broadcast %0 : vector<128x1xf32> to vector<128x128xf32>
    %28 = vector.broadcast %26 : vector<1x128xf32> to vector<128x128xf32>
    %29 = arith.mulf %27, %28 : vector<128x128xf32>
    %c0_16 = arith.constant 0 : index
    %c128_17 = arith.constant 128 : index
    %30 = vector.load %arg3[%c0_16, %c128_17] : memref<1x512xf32, #tpu.memory_space<vmem>>, vector<1x128xf32>
    %31 = vector.broadcast %30 : vector<1x128xf32> to vector<128x128xf32>
    %32 = arith.addf %29, %31 : vector<128x128xf32>
    %c1_18 = arith.constant 1 : index
    %c128_19 = arith.constant 128 : index
    %33 = vector.load %arg2[%c1_18, %c128_19] : memref<3x512xf32, #tpu.memory_space<vmem>>, vector<1x128xf32>
    %34 = vector.broadcast %1 : vector<128x1xf32> to vector<128x128xf32>
    %35 = vector.broadcast %33 : vector<1x128xf32> to vector<128x128xf32>
    %36 = arith.mulf %34, %35 : vector<128x128xf32>
    %37 = arith.addf %32, %36 : vector<128x128xf32>
    %c2_20 = arith.constant 2 : index
    %c128_21 = arith.constant 128 : index
    %38 = vector.load %arg2[%c2_20, %c128_21] : memref<3x512xf32, #tpu.memory_space<vmem>>, vector<1x128xf32>
    %39 = vector.broadcast %2 : vector<128x1xf32> to vector<128x128xf32>
    %40 = vector.broadcast %38 : vector<1x128xf32> to vector<128x128xf32>
    %41 = arith.mulf %39, %40 : vector<128x128xf32>
    %42 = arith.addf %37, %41 : vector<128x128xf32>
    %cst_22 = arith.constant 0.000000e+00 : f32
    %43 = vector.broadcast %cst_22 : f32 to vector<128x128xf32>
    %44 = arith.maximumf %42, %43 : vector<128x128xf32>
    %c128_23 = arith.constant 128 : index
    %c0_24 = arith.constant 0 : index
    %45 = vector.load %arg4[%c128_23, %c0_24] : memref<512x128xf32, #tpu.memory_space<vmem>>, vector<128x128xf32>
    %cst_25 = arith.constant dense<0.000000e+00> : vector<128x128xf32>
    %46 = tpu.matmul %44, %45, %cst_25 {dimension_numbers = #tpu.dot_dimension_numbers<[1], [0], [0], [1], [0, 0, 1, 1], [], []>} : vector<128x128xf32>, vector<128x128xf32>, vector<128x128xf32> -> vector<128x128xf32>
    %47 = arith.addf %25, %46 : vector<128x128xf32>
    %c0_26 = arith.constant 0 : index
    %c256 = arith.constant 256 : index
    %48 = vector.load %arg2[%c0_26, %c256] : memref<3x512xf32, #tpu.memory_space<vmem>>, vector<1x128xf32>
    %49 = vector.broadcast %0 : vector<128x1xf32> to vector<128x128xf32>
    %50 = vector.broadcast %48 : vector<1x128xf32> to vector<128x128xf32>
    %51 = arith.mulf %49, %50 : vector<128x128xf32>
    %c0_27 = arith.constant 0 : index
    %c256_28 = arith.constant 256 : index
    %52 = vector.load %arg3[%c0_27, %c256_28] : memref<1x512xf32, #tpu.memory_space<vmem>>, vector<1x128xf32>
    %53 = vector.broadcast %52 : vector<1x128xf32> to vector<128x128xf32>
    %54 = arith.addf %51, %53 : vector<128x128xf32>
    %c1_29 = arith.constant 1 : index
    %c256_30 = arith.constant 256 : index
    %55 = vector.load %arg2[%c1_29, %c256_30] : memref<3x512xf32, #tpu.memory_space<vmem>>, vector<1x128xf32>
    %56 = vector.broadcast %1 : vector<128x1xf32> to vector<128x128xf32>
    %57 = vector.broadcast %55 : vector<1x128xf32> to vector<128x128xf32>
    %58 = arith.mulf %56, %57 : vector<128x128xf32>
    %59 = arith.addf %54, %58 : vector<128x128xf32>
    %c2_31 = arith.constant 2 : index
    %c256_32 = arith.constant 256 : index
    %60 = vector.load %arg2[%c2_31, %c256_32] : memref<3x512xf32, #tpu.memory_space<vmem>>, vector<1x128xf32>
    %61 = vector.broadcast %2 : vector<128x1xf32> to vector<128x128xf32>
    %62 = vector.broadcast %60 : vector<1x128xf32> to vector<128x128xf32>
    %63 = arith.mulf %61, %62 : vector<128x128xf32>
    %64 = arith.addf %59, %63 : vector<128x128xf32>
    %cst_33 = arith.constant 0.000000e+00 : f32
    %65 = vector.broadcast %cst_33 : f32 to vector<128x128xf32>
    %66 = arith.maximumf %64, %65 : vector<128x128xf32>
    %c256_34 = arith.constant 256 : index
    %c0_35 = arith.constant 0 : index
    %67 = vector.load %arg4[%c256_34, %c0_35] : memref<512x128xf32, #tpu.memory_space<vmem>>, vector<128x128xf32>
    %cst_36 = arith.constant dense<0.000000e+00> : vector<128x128xf32>
    %68 = tpu.matmul %66, %67, %cst_36 {dimension_numbers = #tpu.dot_dimension_numbers<[1], [0], [0], [1], [0, 0, 1, 1], [], []>} : vector<128x128xf32>, vector<128x128xf32>, vector<128x128xf32> -> vector<128x128xf32>
    %69 = arith.addf %47, %68 : vector<128x128xf32>
    %c0_37 = arith.constant 0 : index
    %c384 = arith.constant 384 : index
    %70 = vector.load %arg2[%c0_37, %c384] : memref<3x512xf32, #tpu.memory_space<vmem>>, vector<1x128xf32>
    %71 = vector.broadcast %0 : vector<128x1xf32> to vector<128x128xf32>
    %72 = vector.broadcast %70 : vector<1x128xf32> to vector<128x128xf32>
    %73 = arith.mulf %71, %72 : vector<128x128xf32>
    %c0_38 = arith.constant 0 : index
    %c384_39 = arith.constant 384 : index
    %74 = vector.load %arg3[%c0_38, %c384_39] : memref<1x512xf32, #tpu.memory_space<vmem>>, vector<1x128xf32>
    %75 = vector.broadcast %74 : vector<1x128xf32> to vector<128x128xf32>
    %76 = arith.addf %73, %75 : vector<128x128xf32>
    %c1_40 = arith.constant 1 : index
    %c384_41 = arith.constant 384 : index
    %77 = vector.load %arg2[%c1_40, %c384_41] : memref<3x512xf32, #tpu.memory_space<vmem>>, vector<1x128xf32>
    %78 = vector.broadcast %1 : vector<128x1xf32> to vector<128x128xf32>
    %79 = vector.broadcast %77 : vector<1x128xf32> to vector<128x128xf32>
    %80 = arith.mulf %78, %79 : vector<128x128xf32>
    %81 = arith.addf %76, %80 : vector<128x128xf32>
    %c2_42 = arith.constant 2 : index
    %c384_43 = arith.constant 384 : index
    %82 = vector.load %arg2[%c2_42, %c384_43] : memref<3x512xf32, #tpu.memory_space<vmem>>, vector<1x128xf32>
    %83 = vector.broadcast %2 : vector<128x1xf32> to vector<128x128xf32>
    %84 = vector.broadcast %82 : vector<1x128xf32> to vector<128x128xf32>
    %85 = arith.mulf %83, %84 : vector<128x128xf32>
    %86 = arith.addf %81, %85 : vector<128x128xf32>
    %cst_44 = arith.constant 0.000000e+00 : f32
    %87 = vector.broadcast %cst_44 : f32 to vector<128x128xf32>
    %88 = arith.maximumf %86, %87 : vector<128x128xf32>
    %c384_45 = arith.constant 384 : index
    %c0_46 = arith.constant 0 : index
    %89 = vector.load %arg4[%c384_45, %c0_46] : memref<512x128xf32, #tpu.memory_space<vmem>>, vector<128x128xf32>
    %cst_47 = arith.constant dense<0.000000e+00> : vector<128x128xf32>
    %90 = tpu.matmul %88, %89, %cst_47 {dimension_numbers = #tpu.dot_dimension_numbers<[1], [0], [0], [1], [0, 0, 1, 1], [], []>} : vector<128x128xf32>, vector<128x128xf32>, vector<128x128xf32> -> vector<128x128xf32>
    %91 = arith.addf %69, %90 : vector<128x128xf32>
    %c0_48 = arith.constant 0 : index
    %c0_49 = arith.constant 0 : index
    %92 = vector.load %arg5[%c0_48, %c0_49] : memref<512x128xf32, #tpu.memory_space<vmem>>, vector<128x128xf32>
    tpu.vector_store %arg5[%c0_48, %c0_49], %91 {strides = array<i32>} : memref<512x128xf32, #tpu.memory_space<vmem>>, vector<128x128xf32>,
    %c128_50 = arith.constant 128 : index
    %c0_51 = arith.constant 0 : index
    %93 = vector.load %arg1[%c128_50, %c0_51] : memref<512x3xf32, #tpu.memory_space<vmem>>, vector<128x1xf32>
    %c128_52 = arith.constant 128 : index
    %c1_53 = arith.constant 1 : index
    %94 = vector.load %arg1[%c128_52, %c1_53] : memref<512x3xf32, #tpu.memory_space<vmem>>, vector<128x1xf32>
    %c128_54 = arith.constant 128 : index
    %c2_55 = arith.constant 2 : index
    %95 = vector.load %arg1[%c128_54, %c2_55] : memref<512x3xf32, #tpu.memory_space<vmem>>, vector<128x1xf32>
    %cst_56 = arith.constant 0.000000e+00 : f32
    %96 = vector.broadcast %cst_56 : f32 to vector<128x128xf32>
    %c0_57 = arith.constant 0 : index
    %c0_58 = arith.constant 0 : index
    %97 = vector.load %arg2[%c0_57, %c0_58] : memref<3x512xf32, #tpu.memory_space<vmem>>, vector<1x128xf32>
    %98 = vector.broadcast %93 : vector<128x1xf32> to vector<128x128xf32>
    %99 = vector.broadcast %97 : vector<1x128xf32> to vector<128x128xf32>
    %100 = arith.mulf %98, %99 : vector<128x128xf32>
    %c0_59 = arith.constant 0 : index
    %c0_60 = arith.constant 0 : index
    %101 = vector.load %arg3[%c0_59, %c0_60] : memref<1x512xf32, #tpu.memory_space<vmem>>, vector<1x128xf32>
    %102 = vector.broadcast %101 : vector<1x128xf32> to vector<128x128xf32>
    %103 = arith.addf %100, %102 : vector<128x128xf32>
    %c1_61 = arith.constant 1 : index
    %c0_62 = arith.constant 0 : index
    %104 = vector.load %arg2[%c1_61, %c0_62] : memref<3x512xf32, #tpu.memory_space<vmem>>, vector<1x128xf32>
    %105 = vector.broadcast %94 : vector<128x1xf32> to vector<128x128xf32>
    %106 = vector.broadcast %104 : vector<1x128xf32> to vector<128x128xf32>
    %107 = arith.mulf %105, %106 : vector<128x128xf32>
    %108 = arith.addf %103, %107 : vector<128x128xf32>
    %c2_63 = arith.constant 2 : index
    %c0_64 = arith.constant 0 : index
    %109 = vector.load %arg2[%c2_63, %c0_64] : memref<3x512xf32, #tpu.memory_space<vmem>>, vector<1x128xf32>
    %110 = vector.broadcast %95 : vector<128x1xf32> to vector<128x128xf32>
    %111 = vector.broadcast %109 : vector<1x128xf32> to vector<128x128xf32>
    %112 = arith.mulf %110, %111 : vector<128x128xf32>
    %113 = arith.addf %108, %112 : vector<128x128xf32>
    %cst_65 = arith.constant 0.000000e+00 : f32
    %114 = vector.broadcast %cst_65 : f32 to vector<128x128xf32>
    %115 = arith.maximumf %113, %114 : vector<128x128xf32>
    %c0_66 = arith.constant 0 : index
    %c0_67 = arith.constant 0 : index
    %116 = vector.load %arg4[%c0_66, %c0_67] : memref<512x128xf32, #tpu.memory_space<vmem>>, vector<128x128xf32>
    %cst_68 = arith.constant dense<0.000000e+00> : vector<128x128xf32>
    %117 = tpu.matmul %115, %116, %cst_68 {dimension_numbers = #tpu.dot_dimension_numbers<[1], [0], [0], [1], [0, 0, 1, 1], [], []>} : vector<128x128xf32>, vector<128x128xf32>, vector<128x128xf32> -> vector<128x128xf32>
    %118 = arith.addf %96, %117 : vector<128x128xf32>
    %c0_69 = arith.constant 0 : index
    %c128_70 = arith.constant 128 : index
    %119 = vector.load %arg2[%c0_69, %c128_70] : memref<3x512xf32, #tpu.memory_space<vmem>>, vector<1x128xf32>
    %120 = vector.broadcast %93 : vector<128x1xf32> to vector<128x128xf32>
    %121 = vector.broadcast %119 : vector<1x128xf32> to vector<128x128xf32>
    %122 = arith.mulf %120, %121 : vector<128x128xf32>
    %c0_71 = arith.constant 0 : index
    %c128_72 = arith.constant 128 : index
    %123 = vector.load %arg3[%c0_71, %c128_72] : memref<1x512xf32, #tpu.memory_space<vmem>>, vector<1x128xf32>
    %124 = vector.broadcast %123 : vector<1x128xf32> to vector<128x128xf32>
    %125 = arith.addf %122, %124 : vector<128x128xf32>
    %c1_73 = arith.constant 1 : index
    %c128_74 = arith.constant 128 : index
    %126 = vector.load %arg2[%c1_73, %c128_74] : memref<3x512xf32, #tpu.memory_space<vmem>>, vector<1x128xf32>
    %127 = vector.broadcast %94 : vector<128x1xf32> to vector<128x128xf32>
    %128 = vector.broadcast %126 : vector<1x128xf32> to vector<128x128xf32>
    %129 = arith.mulf %127, %128 : vector<128x128xf32>
    %130 = arith.addf %125, %129 : vector<128x128xf32>
    %c2_75 = arith.constant 2 : index
    %c128_76 = arith.constant 128 : index
    %131 = vector.load %arg2[%c2_75, %c128_76] : memref<3x512xf32, #tpu.memory_space<vmem>>, vector<1x128xf32>
    %132 = vector.broadcast %95 : vector<128x1xf32> to vector<128x128xf32>
    %133 = vector.broadcast %131 : vector<1x128xf32> to vector<128x128xf32>
    %134 = arith.mulf %132, %133 : vector<128x128xf32>
    %135 = arith.addf %130, %134 : vector<128x128xf32>
    %cst_77 = arith.constant 0.000000e+00 : f32
    %136 = vector.broadcast %cst_77 : f32 to vector<128x128xf32>
    %137 = arith.maximumf %135, %136 : vector<128x128xf32>
    %c128_78 = arith.constant 128 : index
    %c0_79 = arith.constant 0 : index
    %138 = vector.load %arg4[%c128_78, %c0_79] : memref<512x128xf32, #tpu.memory_space<vmem>>, vector<128x128xf32>
    %cst_80 = arith.constant dense<0.000000e+00> : vector<128x128xf32>
    %139 = tpu.matmul %137, %138, %cst_80 {dimension_numbers = #tpu.dot_dimension_numbers<[1], [0], [0], [1], [0, 0, 1, 1], [], []>} : vector<128x128xf32>, vector<128x128xf32>, vector<128x128xf32> -> vector<128x128xf32>
    %140 = arith.addf %118, %139 : vector<128x128xf32>
    %c0_81 = arith.constant 0 : index
    %c256_82 = arith.constant 256 : index
    %141 = vector.load %arg2[%c0_81, %c256_82] : memref<3x512xf32, #tpu.memory_space<vmem>>, vector<1x128xf32>
    %142 = vector.broadcast %93 : vector<128x1xf32> to vector<128x128xf32>
    %143 = vector.broadcast %141 : vector<1x128xf32> to vector<128x128xf32>
    %144 = arith.mulf %142, %143 : vector<128x128xf32>
    %c0_83 = arith.constant 0 : index
    %c256_84 = arith.constant 256 : index
    %145 = vector.load %arg3[%c0_83, %c256_84] : memref<1x512xf32, #tpu.memory_space<vmem>>, vector<1x128xf32>
    %146 = vector.broadcast %145 : vector<1x128xf32> to vector<128x128xf32>
    %147 = arith.addf %144, %146 : vector<128x128xf32>
    %c1_85 = arith.constant 1 : index
    %c256_86 = arith.constant 256 : index
    %148 = vector.load %arg2[%c1_85, %c256_86] : memref<3x512xf32, #tpu.memory_space<vmem>>, vector<1x128xf32>
    %149 = vector.broadcast %94 : vector<128x1xf32> to vector<128x128xf32>
    %150 = vector.broadcast %148 : vector<1x128xf32> to vector<128x128xf32>
    %151 = arith.mulf %149, %150 : vector<128x128xf32>
    %152 = arith.addf %147, %151 : vector<128x128xf32>
    %c2_87 = arith.constant 2 : index
    %c256_88 = arith.constant 256 : index
    %153 = vector.load %arg2[%c2_87, %c256_88] : memref<3x512xf32, #tpu.memory_space<vmem>>, vector<1x128xf32>
    %154 = vector.broadcast %95 : vector<128x1xf32> to vector<128x128xf32>
    %155 = vector.broadcast %153 : vector<1x128xf32> to vector<128x128xf32>
    %156 = arith.mulf %154, %155 : vector<128x128xf32>
    %157 = arith.addf %152, %156 : vector<128x128xf32>
    %cst_89 = arith.constant 0.000000e+00 : f32
    %158 = vector.broadcast %cst_89 : f32 to vector<128x128xf32>
    %159 = arith.maximumf %157, %158 : vector<128x128xf32>
    %c256_90 = arith.constant 256 : index
    %c0_91 = arith.constant 0 : index
    %160 = vector.load %arg4[%c256_90, %c0_91] : memref<512x128xf32, #tpu.memory_space<vmem>>, vector<128x128xf32>
    %cst_92 = arith.constant dense<0.000000e+00> : vector<128x128xf32>
    %161 = tpu.matmul %159, %160, %cst_92 {dimension_numbers = #tpu.dot_dimension_numbers<[1], [0], [0], [1], [0, 0, 1, 1], [], []>} : vector<128x128xf32>, vector<128x128xf32>, vector<128x128xf32> -> vector<128x128xf32>
    %162 = arith.addf %140, %161 : vector<128x128xf32>
    %c0_93 = arith.constant 0 : index
    %c384_94 = arith.constant 384 : index
    %163 = vector.load %arg2[%c0_93, %c384_94] : memref<3x512xf32, #tpu.memory_space<vmem>>, vector<1x128xf32>
    %164 = vector.broadcast %93 : vector<128x1xf32> to vector<128x128xf32>
    %165 = vector.broadcast %163 : vector<1x128xf32> to vector<128x128xf32>
    %166 = arith.mulf %164, %165 : vector<128x128xf32>
    %c0_95 = arith.constant 0 : index
    %c384_96 = arith.constant 384 : index
    %167 = vector.load %arg3[%c0_95, %c384_96] : memref<1x512xf32, #tpu.memory_space<vmem>>, vector<1x128xf32>
    %168 = vector.broadcast %167 : vector<1x128xf32> to vector<128x128xf32>
    %169 = arith.addf %166, %168 : vector<128x128xf32>
    %c1_97 = arith.constant 1 : index
    %c384_98 = arith.constant 384 : index
    %170 = vector.load %arg2[%c1_97, %c384_98] : memref<3x512xf32, #tpu.memory_space<vmem>>, vector<1x128xf32>
    %171 = vector.broadcast %94 : vector<128x1xf32> to vector<128x128xf32>
    %172 = vector.broadcast %170 : vector<1x128xf32> to vector<128x128xf32>
    %173 = arith.mulf %171, %172 : vector<128x128xf32>
    %174 = arith.addf %169, %173 : vector<128x128xf32>
    %c2_99 = arith.constant 2 : index
    %c384_100 = arith.constant 384 : index
    %175 = vector.load %arg2[%c2_99, %c384_100] : memref<3x512xf32, #tpu.memory_space<vmem>>, vector<1x128xf32>
    %176 = vector.broadcast %95 : vector<128x1xf32> to vector<128x128xf32>
    %177 = vector.broadcast %175 : vector<1x128xf32> to vector<128x128xf32>
    %178 = arith.mulf %176, %177 : vector<128x128xf32>
    %179 = arith.addf %174, %178 : vector<128x128xf32>
    %cst_101 = arith.constant 0.000000e+00 : f32
    %180 = vector.broadcast %cst_101 : f32 to vector<128x128xf32>
    %181 = arith.maximumf %179, %180 : vector<128x128xf32>
    %c384_102 = arith.constant 384 : index
    %c0_103 = arith.constant 0 : index
    %182 = vector.load %arg4[%c384_102, %c0_103] : memref<512x128xf32, #tpu.memory_space<vmem>>, vector<128x128xf32>
    %cst_104 = arith.constant dense<0.000000e+00> : vector<128x128xf32>
    %183 = tpu.matmul %181, %182, %cst_104 {dimension_numbers = #tpu.dot_dimension_numbers<[1], [0], [0], [1], [0, 0, 1, 1], [], []>} : vector<128x128xf32>, vector<128x128xf32>, vector<128x128xf32> -> vector<128x128xf32>
    %184 = arith.addf %162, %183 : vector<128x128xf32>
    %c128_105 = arith.constant 128 : index
    %c0_106 = arith.constant 0 : index
    %185 = vector.load %arg5[%c128_105, %c0_106] : memref<512x128xf32, #tpu.memory_space<vmem>>, vector<128x128xf32>
    tpu.vector_store %arg5[%c128_105, %c0_106], %184 {strides = array<i32>} : memref<512x128xf32, #tpu.memory_space<vmem>>, vector<128x128xf32>,
    %c256_107 = arith.constant 256 : index
    %c0_108 = arith.constant 0 : index
    %186 = vector.load %arg1[%c256_107, %c0_108] : memref<512x3xf32, #tpu.memory_space<vmem>>, vector<128x1xf32>
    %c256_109 = arith.constant 256 : index
    %c1_110 = arith.constant 1 : index
    %187 = vector.load %arg1[%c256_109, %c1_110] : memref<512x3xf32, #tpu.memory_space<vmem>>, vector<128x1xf32>
    %c256_111 = arith.constant 256 : index
    %c2_112 = arith.constant 2 : index
    %188 = vector.load %arg1[%c256_111, %c2_112] : memref<512x3xf32, #tpu.memory_space<vmem>>, vector<128x1xf32>
    %cst_113 = arith.constant 0.000000e+00 : f32
    %189 = vector.broadcast %cst_113 : f32 to vector<128x128xf32>
    %c0_114 = arith.constant 0 : index
    %c0_115 = arith.constant 0 : index
    %190 = vector.load %arg2[%c0_114, %c0_115] : memref<3x512xf32, #tpu.memory_space<vmem>>, vector<1x128xf32>
    %191 = vector.broadcast %186 : vector<128x1xf32> to vector<128x128xf32>
    %192 = vector.broadcast %190 : vector<1x128xf32> to vector<128x128xf32>
    %193 = arith.mulf %191, %192 : vector<128x128xf32>
    %c0_116 = arith.constant 0 : index
    %c0_117 = arith.constant 0 : index
    %194 = vector.load %arg3[%c0_116, %c0_117] : memref<1x512xf32, #tpu.memory_space<vmem>>, vector<1x128xf32>
    %195 = vector.broadcast %194 : vector<1x128xf32> to vector<128x128xf32>
    %196 = arith.addf %193, %195 : vector<128x128xf32>
    %c1_118 = arith.constant 1 : index
    %c0_119 = arith.constant 0 : index
    %197 = vector.load %arg2[%c1_118, %c0_119] : memref<3x512xf32, #tpu.memory_space<vmem>>, vector<1x128xf32>
    %198 = vector.broadcast %187 : vector<128x1xf32> to vector<128x128xf32>
    %199 = vector.broadcast %197 : vector<1x128xf32> to vector<128x128xf32>
    %200 = arith.mulf %198, %199 : vector<128x128xf32>
    %201 = arith.addf %196, %200 : vector<128x128xf32>
    %c2_120 = arith.constant 2 : index
    %c0_121 = arith.constant 0 : index
    %202 = vector.load %arg2[%c2_120, %c0_121] : memref<3x512xf32, #tpu.memory_space<vmem>>, vector<1x128xf32>
    %203 = vector.broadcast %188 : vector<128x1xf32> to vector<128x128xf32>
    %204 = vector.broadcast %202 : vector<1x128xf32> to vector<128x128xf32>
    %205 = arith.mulf %203, %204 : vector<128x128xf32>
    %206 = arith.addf %201, %205 : vector<128x128xf32>
    %cst_122 = arith.constant 0.000000e+00 : f32
    %207 = vector.broadcast %cst_122 : f32 to vector<128x128xf32>
    %208 = arith.maximumf %206, %207 : vector<128x128xf32>
    %c0_123 = arith.constant 0 : index
    %c0_124 = arith.constant 0 : index
    %209 = vector.load %arg4[%c0_123, %c0_124] : memref<512x128xf32, #tpu.memory_space<vmem>>, vector<128x128xf32>
    %cst_125 = arith.constant dense<0.000000e+00> : vector<128x128xf32>
    %210 = tpu.matmul %208, %209, %cst_125 {dimension_numbers = #tpu.dot_dimension_numbers<[1], [0], [0], [1], [0, 0, 1, 1], [], []>} : vector<128x128xf32>, vector<128x128xf32>, vector<128x128xf32> -> vector<128x128xf32>
    %211 = arith.addf %189, %210 : vector<128x128xf32>
    %c0_126 = arith.constant 0 : index
    %c128_127 = arith.constant 128 : index
    %212 = vector.load %arg2[%c0_126, %c128_127] : memref<3x512xf32, #tpu.memory_space<vmem>>, vector<1x128xf32>
    %213 = vector.broadcast %186 : vector<128x1xf32> to vector<128x128xf32>
    %214 = vector.broadcast %212 : vector<1x128xf32> to vector<128x128xf32>
    %215 = arith.mulf %213, %214 : vector<128x128xf32>
    %c0_128 = arith.constant 0 : index
    %c128_129 = arith.constant 128 : index
    %216 = vector.load %arg3[%c0_128, %c128_129] : memref<1x512xf32, #tpu.memory_space<vmem>>, vector<1x128xf32>
    %217 = vector.broadcast %216 : vector<1x128xf32> to vector<128x128xf32>
    %218 = arith.addf %215, %217 : vector<128x128xf32>
    %c1_130 = arith.constant 1 : index
    %c128_131 = arith.constant 128 : index
    %219 = vector.load %arg2[%c1_130, %c128_131] : memref<3x512xf32, #tpu.memory_space<vmem>>, vector<1x128xf32>
    %220 = vector.broadcast %187 : vector<128x1xf32> to vector<128x128xf32>
    %221 = vector.broadcast %219 : vector<1x128xf32> to vector<128x128xf32>
    %222 = arith.mulf %220, %221 : vector<128x128xf32>
    %223 = arith.addf %218, %222 : vector<128x128xf32>
    %c2_132 = arith.constant 2 : index
    %c128_133 = arith.constant 128 : index
    %224 = vector.load %arg2[%c2_132, %c128_133] : memref<3x512xf32, #tpu.memory_space<vmem>>, vector<1x128xf32>
    %225 = vector.broadcast %188 : vector<128x1xf32> to vector<128x128xf32>
    %226 = vector.broadcast %224 : vector<1x128xf32> to vector<128x128xf32>
    %227 = arith.mulf %225, %226 : vector<128x128xf32>
    %228 = arith.addf %223, %227 : vector<128x128xf32>
    %cst_134 = arith.constant 0.000000e+00 : f32
    %229 = vector.broadcast %cst_134 : f32 to vector<128x128xf32>
    %230 = arith.maximumf %228, %229 : vector<128x128xf32>
    %c128_135 = arith.constant 128 : index
    %c0_136 = arith.constant 0 : index
    %231 = vector.load %arg4[%c128_135, %c0_136] : memref<512x128xf32, #tpu.memory_space<vmem>>, vector<128x128xf32>
    %cst_137 = arith.constant dense<0.000000e+00> : vector<128x128xf32>
    %232 = tpu.matmul %230, %231, %cst_137 {dimension_numbers = #tpu.dot_dimension_numbers<[1], [0], [0], [1], [0, 0, 1, 1], [], []>} : vector<128x128xf32>, vector<128x128xf32>, vector<128x128xf32> -> vector<128x128xf32>
    %233 = arith.addf %211, %232 : vector<128x128xf32>
    %c0_138 = arith.constant 0 : index
    %c256_139 = arith.constant 256 : index
    %234 = vector.load %arg2[%c0_138, %c256_139] : memref<3x512xf32, #tpu.memory_space<vmem>>, vector<1x128xf32>
    %235 = vector.broadcast %186 : vector<128x1xf32> to vector<128x128xf32>
    %236 = vector.broadcast %234 : vector<1x128xf32> to vector<128x128xf32>
    %237 = arith.mulf %235, %236 : vector<128x128xf32>
    %c0_140 = arith.constant 0 : index
    %c256_141 = arith.constant 256 : index
    %238 = vector.load %arg3[%c0_140, %c256_141] : memref<1x512xf32, #tpu.memory_space<vmem>>, vector<1x128xf32>
    %239 = vector.broadcast %238 : vector<1x128xf32> to vector<128x128xf32>
    %240 = arith.addf %237, %239 : vector<128x128xf32>
    %c1_142 = arith.constant 1 : index
    %c256_143 = arith.constant 256 : index
    %241 = vector.load %arg2[%c1_142, %c256_143] : memref<3x512xf32, #tpu.memory_space<vmem>>, vector<1x128xf32>
    %242 = vector.broadcast %187 : vector<128x1xf32> to vector<128x128xf32>
    %243 = vector.broadcast %241 : vector<1x128xf32> to vector<128x128xf32>
    %244 = arith.mulf %242, %243 : vector<128x128xf32>
    %245 = arith.addf %240, %244 : vector<128x128xf32>
    %c2_144 = arith.constant 2 : index
    %c256_145 = arith.constant 256 : index
    %246 = vector.load %arg2[%c2_144, %c256_145] : memref<3x512xf32, #tpu.memory_space<vmem>>, vector<1x128xf32>
    %247 = vector.broadcast %188 : vector<128x1xf32> to vector<128x128xf32>
    %248 = vector.broadcast %246 : vector<1x128xf32> to vector<128x128xf32>
    %249 = arith.mulf %247, %248 : vector<128x128xf32>
    %250 = arith.addf %245, %249 : vector<128x128xf32>
    %cst_146 = arith.constant 0.000000e+00 : f32
    %251 = vector.broadcast %cst_146 : f32 to vector<128x128xf32>
    %252 = arith.maximumf %250, %251 : vector<128x128xf32>
    %c256_147 = arith.constant 256 : index
    %c0_148 = arith.constant 0 : index
    %253 = vector.load %arg4[%c256_147, %c0_148] : memref<512x128xf32, #tpu.memory_space<vmem>>, vector<128x128xf32>
    %cst_149 = arith.constant dense<0.000000e+00> : vector<128x128xf32>
    %254 = tpu.matmul %252, %253, %cst_149 {dimension_numbers = #tpu.dot_dimension_numbers<[1], [0], [0], [1], [0, 0, 1, 1], [], []>} : vector<128x128xf32>, vector<128x128xf32>, vector<128x128xf32> -> vector<128x128xf32>
    %255 = arith.addf %233, %254 : vector<128x128xf32>
    %c0_150 = arith.constant 0 : index
    %c384_151 = arith.constant 384 : index
    %256 = vector.load %arg2[%c0_150, %c384_151] : memref<3x512xf32, #tpu.memory_space<vmem>>, vector<1x128xf32>
    %257 = vector.broadcast %186 : vector<128x1xf32> to vector<128x128xf32>
    %258 = vector.broadcast %256 : vector<1x128xf32> to vector<128x128xf32>
    %259 = arith.mulf %257, %258 : vector<128x128xf32>
    %c0_152 = arith.constant 0 : index
    %c384_153 = arith.constant 384 : index
    %260 = vector.load %arg3[%c0_152, %c384_153] : memref<1x512xf32, #tpu.memory_space<vmem>>, vector<1x128xf32>
    %261 = vector.broadcast %260 : vector<1x128xf32> to vector<128x128xf32>
    %262 = arith.addf %259, %261 : vector<128x128xf32>
    %c1_154 = arith.constant 1 : index
    %c384_155 = arith.constant 384 : index
    %263 = vector.load %arg2[%c1_154, %c384_155] : memref<3x512xf32, #tpu.memory_space<vmem>>, vector<1x128xf32>
    %264 = vector.broadcast %187 : vector<128x1xf32> to vector<128x128xf32>
    %265 = vector.broadcast %263 : vector<1x128xf32> to vector<128x128xf32>
    %266 = arith.mulf %264, %265 : vector<128x128xf32>
    %267 = arith.addf %262, %266 : vector<128x128xf32>
    %c2_156 = arith.constant 2 : index
    %c384_157 = arith.constant 384 : index
    %268 = vector.load %arg2[%c2_156, %c384_157] : memref<3x512xf32, #tpu.memory_space<vmem>>, vector<1x128xf32>
    %269 = vector.broadcast %188 : vector<128x1xf32> to vector<128x128xf32>
    %270 = vector.broadcast %268 : vector<1x128xf32> to vector<128x128xf32>
    %271 = arith.mulf %269, %270 : vector<128x128xf32>
    %272 = arith.addf %267, %271 : vector<128x128xf32>
    %cst_158 = arith.constant 0.000000e+00 : f32
    %273 = vector.broadcast %cst_158 : f32 to vector<128x128xf32>
    %274 = arith.maximumf %272, %273 : vector<128x128xf32>
    %c384_159 = arith.constant 384 : index
    %c0_160 = arith.constant 0 : index
    %275 = vector.load %arg4[%c384_159, %c0_160] : memref<512x128xf32, #tpu.memory_space<vmem>>, vector<128x128xf32>
    %cst_161 = arith.constant dense<0.000000e+00> : vector<128x128xf32>
    %276 = tpu.matmul %274, %275, %cst_161 {dimension_numbers = #tpu.dot_dimension_numbers<[1], [0], [0], [1], [0, 0, 1, 1], [], []>} : vector<128x128xf32>, vector<128x128xf32>, vector<128x128xf32> -> vector<128x128xf32>
    %277 = arith.addf %255, %276 : vector<128x128xf32>
    %c256_162 = arith.constant 256 : index
    %c0_163 = arith.constant 0 : index
    %278 = vector.load %arg5[%c256_162, %c0_163] : memref<512x128xf32, #tpu.memory_space<vmem>>, vector<128x128xf32>
    tpu.vector_store %arg5[%c256_162, %c0_163], %277 {strides = array<i32>} : memref<512x128xf32, #tpu.memory_space<vmem>>, vector<128x128xf32>,
    %c384_164 = arith.constant 384 : index
    %c0_165 = arith.constant 0 : index
    %279 = vector.load %arg1[%c384_164, %c0_165] : memref<512x3xf32, #tpu.memory_space<vmem>>, vector<128x1xf32>
    %c384_166 = arith.constant 384 : index
    %c1_167 = arith.constant 1 : index
    %280 = vector.load %arg1[%c384_166, %c1_167] : memref<512x3xf32, #tpu.memory_space<vmem>>, vector<128x1xf32>
    %c384_168 = arith.constant 384 : index
    %c2_169 = arith.constant 2 : index
    %281 = vector.load %arg1[%c384_168, %c2_169] : memref<512x3xf32, #tpu.memory_space<vmem>>, vector<128x1xf32>
    %cst_170 = arith.constant 0.000000e+00 : f32
    %282 = vector.broadcast %cst_170 : f32 to vector<128x128xf32>
    %c0_171 = arith.constant 0 : index
    %c0_172 = arith.constant 0 : index
    %283 = vector.load %arg2[%c0_171, %c0_172] : memref<3x512xf32, #tpu.memory_space<vmem>>, vector<1x128xf32>
    %284 = vector.broadcast %279 : vector<128x1xf32> to vector<128x128xf32>
    %285 = vector.broadcast %283 : vector<1x128xf32> to vector<128x128xf32>
    %286 = arith.mulf %284, %285 : vector<128x128xf32>
    %c0_173 = arith.constant 0 : index
    %c0_174 = arith.constant 0 : index
    %287 = vector.load %arg3[%c0_173, %c0_174] : memref<1x512xf32, #tpu.memory_space<vmem>>, vector<1x128xf32>
    %288 = vector.broadcast %287 : vector<1x128xf32> to vector<128x128xf32>
    %289 = arith.addf %286, %288 : vector<128x128xf32>
    %c1_175 = arith.constant 1 : index
    %c0_176 = arith.constant 0 : index
    %290 = vector.load %arg2[%c1_175, %c0_176] : memref<3x512xf32, #tpu.memory_space<vmem>>, vector<1x128xf32>
    %291 = vector.broadcast %280 : vector<128x1xf32> to vector<128x128xf32>
    %292 = vector.broadcast %290 : vector<1x128xf32> to vector<128x128xf32>
    %293 = arith.mulf %291, %292 : vector<128x128xf32>
    %294 = arith.addf %289, %293 : vector<128x128xf32>
    %c2_177 = arith.constant 2 : index
    %c0_178 = arith.constant 0 : index
    %295 = vector.load %arg2[%c2_177, %c0_178] : memref<3x512xf32, #tpu.memory_space<vmem>>, vector<1x128xf32>
    %296 = vector.broadcast %281 : vector<128x1xf32> to vector<128x128xf32>
    %297 = vector.broadcast %295 : vector<1x128xf32> to vector<128x128xf32>
    %298 = arith.mulf %296, %297 : vector<128x128xf32>
    %299 = arith.addf %294, %298 : vector<128x128xf32>
    %cst_179 = arith.constant 0.000000e+00 : f32
    %300 = vector.broadcast %cst_179 : f32 to vector<128x128xf32>
    %301 = arith.maximumf %299, %300 : vector<128x128xf32>
    %c0_180 = arith.constant 0 : index
    %c0_181 = arith.constant 0 : index
    %302 = vector.load %arg4[%c0_180, %c0_181] : memref<512x128xf32, #tpu.memory_space<vmem>>, vector<128x128xf32>
    %cst_182 = arith.constant dense<0.000000e+00> : vector<128x128xf32>
    %303 = tpu.matmul %301, %302, %cst_182 {dimension_numbers = #tpu.dot_dimension_numbers<[1], [0], [0], [1], [0, 0, 1, 1], [], []>} : vector<128x128xf32>, vector<128x128xf32>, vector<128x128xf32> -> vector<128x128xf32>
    %304 = arith.addf %282, %303 : vector<128x128xf32>
    %c0_183 = arith.constant 0 : index
    %c128_184 = arith.constant 128 : index
    %305 = vector.load %arg2[%c0_183, %c128_184] : memref<3x512xf32, #tpu.memory_space<vmem>>, vector<1x128xf32>
    %306 = vector.broadcast %279 : vector<128x1xf32> to vector<128x128xf32>
    %307 = vector.broadcast %305 : vector<1x128xf32> to vector<128x128xf32>
    %308 = arith.mulf %306, %307 : vector<128x128xf32>
    %c0_185 = arith.constant 0 : index
    %c128_186 = arith.constant 128 : index
    %309 = vector.load %arg3[%c0_185, %c128_186] : memref<1x512xf32, #tpu.memory_space<vmem>>, vector<1x128xf32>
    %310 = vector.broadcast %309 : vector<1x128xf32> to vector<128x128xf32>
    %311 = arith.addf %308, %310 : vector<128x128xf32>
    %c1_187 = arith.constant 1 : index
    %c128_188 = arith.constant 128 : index
    %312 = vector.load %arg2[%c1_187, %c128_188] : memref<3x512xf32, #tpu.memory_space<vmem>>, vector<1x128xf32>
    %313 = vector.broadcast %280 : vector<128x1xf32> to vector<128x128xf32>
    %314 = vector.broadcast %312 : vector<1x128xf32> to vector<128x128xf32>
    %315 = arith.mulf %313, %314 : vector<128x128xf32>
    %316 = arith.addf %311, %315 : vector<128x128xf32>
    %c2_189 = arith.constant 2 : index
    %c128_190 = arith.constant 128 : index
    %317 = vector.load %arg2[%c2_189, %c128_190] : memref<3x512xf32, #tpu.memory_space<vmem>>, vector<1x128xf32>
    %318 = vector.broadcast %281 : vector<128x1xf32> to vector<128x128xf32>
    %319 = vector.broadcast %317 : vector<1x128xf32> to vector<128x128xf32>
    %320 = arith.mulf %318, %319 : vector<128x128xf32>
    %321 = arith.addf %316, %320 : vector<128x128xf32>
    %cst_191 = arith.constant 0.000000e+00 : f32
    %322 = vector.broadcast %cst_191 : f32 to vector<128x128xf32>
    %323 = arith.maximumf %321, %322 : vector<128x128xf32>
    %c128_192 = arith.constant 128 : index
    %c0_193 = arith.constant 0 : index
    %324 = vector.load %arg4[%c128_192, %c0_193] : memref<512x128xf32, #tpu.memory_space<vmem>>, vector<128x128xf32>
    %cst_194 = arith.constant dense<0.000000e+00> : vector<128x128xf32>
    %325 = tpu.matmul %323, %324, %cst_194 {dimension_numbers = #tpu.dot_dimension_numbers<[1], [0], [0], [1], [0, 0, 1, 1], [], []>} : vector<128x128xf32>, vector<128x128xf32>, vector<128x128xf32> -> vector<128x128xf32>
    %326 = arith.addf %304, %325 : vector<128x128xf32>
    %c0_195 = arith.constant 0 : index
    %c256_196 = arith.constant 256 : index
    %327 = vector.load %arg2[%c0_195, %c256_196] : memref<3x512xf32, #tpu.memory_space<vmem>>, vector<1x128xf32>
    %328 = vector.broadcast %279 : vector<128x1xf32> to vector<128x128xf32>
    %329 = vector.broadcast %327 : vector<1x128xf32> to vector<128x128xf32>
    %330 = arith.mulf %328, %329 : vector<128x128xf32>
    %c0_197 = arith.constant 0 : index
    %c256_198 = arith.constant 256 : index
    %331 = vector.load %arg3[%c0_197, %c256_198] : memref<1x512xf32, #tpu.memory_space<vmem>>, vector<1x128xf32>
    %332 = vector.broadcast %331 : vector<1x128xf32> to vector<128x128xf32>
    %333 = arith.addf %330, %332 : vector<128x128xf32>
    %c1_199 = arith.constant 1 : index
    %c256_200 = arith.constant 256 : index
    %334 = vector.load %arg2[%c1_199, %c256_200] : memref<3x512xf32, #tpu.memory_space<vmem>>, vector<1x128xf32>
    %335 = vector.broadcast %280 : vector<128x1xf32> to vector<128x128xf32>
    %336 = vector.broadcast %334 : vector<1x128xf32> to vector<128x128xf32>
    %337 = arith.mulf %335, %336 : vector<128x128xf32>
    %338 = arith.addf %333, %337 : vector<128x128xf32>
    %c2_201 = arith.constant 2 : index
    %c256_202 = arith.constant 256 : index
    %339 = vector.load %arg2[%c2_201, %c256_202] : memref<3x512xf32, #tpu.memory_space<vmem>>, vector<1x128xf32>
    %340 = vector.broadcast %281 : vector<128x1xf32> to vector<128x128xf32>
    %341 = vector.broadcast %339 : vector<1x128xf32> to vector<128x128xf32>
    %342 = arith.mulf %340, %341 : vector<128x128xf32>
    %343 = arith.addf %338, %342 : vector<128x128xf32>
    %cst_203 = arith.constant 0.000000e+00 : f32
    %344 = vector.broadcast %cst_203 : f32 to vector<128x128xf32>
    %345 = arith.maximumf %343, %344 : vector<128x128xf32>
    %c256_204 = arith.constant 256 : index
    %c0_205 = arith.constant 0 : index
    %346 = vector.load %arg4[%c256_204, %c0_205] : memref<512x128xf32, #tpu.memory_space<vmem>>, vector<128x128xf32>
    %cst_206 = arith.constant dense<0.000000e+00> : vector<128x128xf32>
    %347 = tpu.matmul %345, %346, %cst_206 {dimension_numbers = #tpu.dot_dimension_numbers<[1], [0], [0], [1], [0, 0, 1, 1], [], []>} : vector<128x128xf32>, vector<128x128xf32>, vector<128x128xf32> -> vector<128x128xf32>
    %348 = arith.addf %326, %347 : vector<128x128xf32>
    %c0_207 = arith.constant 0 : index
    %c384_208 = arith.constant 384 : index
    %349 = vector.load %arg2[%c0_207, %c384_208] : memref<3x512xf32, #tpu.memory_space<vmem>>, vector<1x128xf32>
    %350 = vector.broadcast %279 : vector<128x1xf32> to vector<128x128xf32>
    %351 = vector.broadcast %349 : vector<1x128xf32> to vector<128x128xf32>
    %352 = arith.mulf %350, %351 : vector<128x128xf32>
    %c0_209 = arith.constant 0 : index
    %c384_210 = arith.constant 384 : index
    %353 = vector.load %arg3[%c0_209, %c384_210] : memref<1x512xf32, #tpu.memory_space<vmem>>, vector<1x128xf32>
    %354 = vector.broadcast %353 : vector<1x128xf32> to vector<128x128xf32>
    %355 = arith.addf %352, %354 : vector<128x128xf32>
    %c1_211 = arith.constant 1 : index
    %c384_212 = arith.constant 384 : index
    %356 = vector.load %arg2[%c1_211, %c384_212] : memref<3x512xf32, #tpu.memory_space<vmem>>, vector<1x128xf32>
    %357 = vector.broadcast %280 : vector<128x1xf32> to vector<128x128xf32>
    %358 = vector.broadcast %356 : vector<1x128xf32> to vector<128x128xf32>
    %359 = arith.mulf %357, %358 : vector<128x128xf32>
    %360 = arith.addf %355, %359 : vector<128x128xf32>
    %c2_213 = arith.constant 2 : index
    %c384_214 = arith.constant 384 : index
    %361 = vector.load %arg2[%c2_213, %c384_214] : memref<3x512xf32, #tpu.memory_space<vmem>>, vector<1x128xf32>
    %362 = vector.broadcast %281 : vector<128x1xf32> to vector<128x128xf32>
    %363 = vector.broadcast %361 : vector<1x128xf32> to vector<128x128xf32>
    %364 = arith.mulf %362, %363 : vector<128x128xf32>
    %365 = arith.addf %360, %364 : vector<128x128xf32>
    %cst_215 = arith.constant 0.000000e+00 : f32
    %366 = vector.broadcast %cst_215 : f32 to vector<128x128xf32>
    %367 = arith.maximumf %365, %366 : vector<128x128xf32>
    %c384_216 = arith.constant 384 : index
    %c0_217 = arith.constant 0 : index
    %368 = vector.load %arg4[%c384_216, %c0_217] : memref<512x128xf32, #tpu.memory_space<vmem>>, vector<128x128xf32>
    %cst_218 = arith.constant dense<0.000000e+00> : vector<128x128xf32>
    %369 = tpu.matmul %367, %368, %cst_218 {dimension_numbers = #tpu.dot_dimension_numbers<[1], [0], [0], [1], [0, 0, 1, 1], [], []>} : vector<128x128xf32>, vector<128x128xf32>, vector<128x128xf32> -> vector<128x128xf32>
    %370 = arith.addf %348, %369 : vector<128x128xf32>
    %c384_219 = arith.constant 384 : index
    %c0_220 = arith.constant 0 : index
    %371 = vector.load %arg5[%c384_219, %c0_220] : memref<512x128xf32, #tpu.memory_space<vmem>>, vector<128x128xf32>
    tpu.vector_store %arg5[%c384_219, %c0_220], %370 {strides = array<i32>} : memref<512x128xf32, #tpu.memory_space<vmem>>, vector<128x128xf32>,
    return
  }
  func.func @transform_0(%arg0: i32) -> (i32, i32) {
    %c0_i32 = arith.constant 0 : i32
    %c0_i32_0 = arith.constant 0 : i32
    return %arg0, %c0_i32 : i32, i32
  }
  func.func @transform_1(%arg0: i32) -> (i32, i32) {
    %c0_i32 = arith.constant 0 : i32
    %c0_i32_0 = arith.constant 0 : i32
    %c0_i32_1 = arith.constant 0 : i32
    return %c0_i32, %c0_i32_0 : i32, i32
  }
  func.func @transform_2(%arg0: i32) -> (i32, i32) {
    %c0_i32 = arith.constant 0 : i32
    %c0_i32_0 = arith.constant 0 : i32
    %c0_i32_1 = arith.constant 0 : i32
    return %c0_i32, %c0_i32_0 : i32, i32
  }
  func.func @transform_3(%arg0: i32) -> (i32, i32) {
    %c0_i32 = arith.constant 0 : i32
    %c0_i32_0 = arith.constant 0 : i32
    %c0_i32_1 = arith.constant 0 : i32
    return %c0_i32, %c0_i32_0 : i32, i32
  }
  func.func @transform_4(%arg0: i32) -> (i32, i32) {
    %c0_i32 = arith.constant 0 : i32
    %c0_i32_0 = arith.constant 0 : i32
    return %arg0, %c0_i32 : i32, i32
  }
}

</mosaic_0001>

<bundles_post_ra>
// kernel: _decoder_forward.1
= control target key start
LH: loop header
LB: loop body
LE: loop exit
PB: predicated region body
PF: predicated region fallthrough
CT: control target
= control target key end

     0   :  { %v12892_v0 = vmov 2   ;;  %v12894_v1 = vmov 0   ;;  %v12890_v19 = vmov 1   ;;  %s12885_s0 = inlined_call_operand.vmem [shape: f32[512,3], index: 0, kind: input, shape index: {}]   ;;  %s12886_s3 = inlined_call_operand.vmem [shape: f32[512,128], index: 3, kind: input, shape index: {}]   ;;  %s12887_s1 = inlined_call_operand.vmem [shape: f32[3,512], index: 1, kind: input, shape index: {}]   ;;  %s12888_s2 = inlined_call_operand.vmem [shape: f32[1,512], index: 2, kind: input, shape index: {}]   ;;  %s12889_s4 = inlined_call_operand.vmem [shape: f32[512,128], index: 4, kind: output, shape index: {}]  }
   0x1   :  { %8011 = vset.pattern.permute.xlu0 %v12892_v0  ;;  %8008 = vset.pattern.permute.xlu1 %v12894_v1  ;;  %v19_v2 = vld [vmem:[%s12885_s0 + $0x10] sm:$0xff]  ;;  %v8175_v3 = vld [vmem:[%s12885_s0 + $0x8] sm:$0xff]  ;;  %v20_v4 = vld [vmem:[%s12885_s0 + $0x18] sm:$0xff] }
   0x2   :  { %46 = vperm.xlu1 %8008, %v19_v2   ;;  %264 = vperm.xlu0 %8011, %v8175_v3   ;;  %v8184_v5 = vld [vmem:[%s12885_s0 + $0x20] sm:$0xff]  ;;  %v22_v6 = vld [vmem:[%s12885_s0 + $0x28] sm:$0xff]  ;;  %v8193_v7 = vld [vmem:[%s12885_s0 + $0x30] sm:$0xff] }
   0x3   :  { %v24_v8 = vld [vmem:[%s12885_s0 + $0x38] sm:$0xff]  ;;  %v8202_v9 = vld [vmem:[%s12885_s0 + $0x40] sm:$0xff]  ;;  %v26_v10 = vld [vmem:[%s12885_s0 + $0x48] sm:$0xff] }
   0x4   :  { %v8211_v11 = vld [vmem:[%s12885_s0 + $0x50] sm:$0xff]  ;;  %v8217_v12 = vld [vmem:[%s12885_s0 + $0x58] sm:$0xff]  ;;  %v8222_v13 = vld [vmem:[%s12885_s0 + $0x60] sm:$0xff] }
   0x5   :  { %v8229_v14 = vld [vmem:[%s12885_s0 + $0x68] sm:$0xff]  ;;  %v8234_v15 = vld [vmem:[%s12885_s0 + $0x70] sm:$0xff]  ;;  %v8241_v16 = vld [vmem:[%s12885_s0 + $0x78] sm:$0xff] }
   0x6   :  { %51 = vperm.xlu1 %8008, %v20_v4   ;;  %276 = vperm.xlu0 %8011, %v8184_v5   ;;  %v8246_v17 = vld [vmem:[%s12885_s0 + $0x90] sm:$0xff]  ;;  %v8261_v20 = vld [vmem:[%s12885_s0] sm:$0xff]  ;;  %v8279_v21 = vld [vmem:[%s12885_s0 + $0x88] sm:$0xff] }
   0x7   :  { %v8253_v18 = vld [vmem:[%s12885_s0 + $0xb0] sm:$0xff]  ;;  %v8286_v22 = vld [vmem:[%s12885_s0 + $0xa8] sm:$0xff]  ;;  %v525_v23 = vld [vmem:[%s12886_s3 + $0x80] sm:$0xff] }
   0x8   :  { %v526_v24 = vld [vmem:[%s12886_s3 + $0x88] sm:$0xff]  ;;  %v527_v27 = vld [vmem:[%s12886_s3 + $0x90] sm:$0xff]  ;;  %v528_v28 = vld [vmem:[%s12886_s3 + $0x98] sm:$0xff] }
   0x9   :  { %v8299_v25 = vld [vmem:[%s12885_s0 + $0xc8] sm:$0xff]  ;;  %v7301_v26 = vpack.c.bf16 %v526_v24, %v525_v23  ;;  %v8311_v29 = vld [vmem:[%s12885_s0 + $0xd8] sm:$0xff]  ;;  %v7305_v30 = vpack.c.bf16 %v528_v28, %v527_v27  ;;  %v529_v31 = vld [vmem:[%s12886_s3 + $0xa0] sm:$0xff] }
   0xa   :  { %61 = vperm.xlu1 %8008, %v22_v6   ;;  %284 = vperm.xlu0 %8011, %v8193_v7   ;;  %v530_v32 = vld [vmem:[%s12886_s3 + $0xa8] sm:$0xff]  ;;  %v531_v35 = vld [vmem:[%s12886_s3 + $0xb0] sm:$0xff]  ;;  %v532_v36 = vld [vmem:[%s12886_s3 + $0xb8] sm:$0xff] }
   0xb   :  { %7302 = vmatprep.subr.bf16.mxu0 %v7301_v26  ;;  %7430 = vmatprep.subr.bf16.mxu1 %v7301_v26  ;;  %v8324_v33 = vld [vmem:[%s12885_s0 + $0xe8] sm:$0xff]  ;;  %v7309_v34 = vpack.c.bf16 %v530_v32, %v529_v31  ;;  %v8337_v37 = vld [vmem:[%s12885_s0 + $0xf8] sm:$0xff]  ;;  %v7313_v38 = vpack.c.bf16 %v532_v36, %v531_v35  ;;  %v533_v39 = vld [vmem:[%s12886_s3 + $0xc0] sm:$0xff] }
   0xc   :  { %7304 = vmatpush3.bf16.msra.mxu0 %v7301_v26  ;;  %7432 = vmatpush3.bf16.msra.mxu1 %v7301_v26  ;;  %v534_v40 = vld [vmem:[%s12886_s3 + $0xc8] sm:$0xff]  ;;  %v535_v42 = vld [vmem:[%s12886_s3 + $0xd0] sm:$0xff]  ;;  %v536_v43 = vld [vmem:[%s12886_s3 + $0xd8] sm:$0xff] }
   0xd   :  { %7306 = vmatprep.subr.bf16.mxu0 %v7305_v30  ;;  %7434 = vmatprep.subr.bf16.mxu1 %v7305_v30  ;;  %v7317_v41 = vpack.c.bf16 %v534_v40, %v533_v39  ;;  %v7321_v44 = vpack.c.bf16 %v536_v43, %v535_v42  ;;  %v537_v45 = vld [vmem:[%s12886_s3 + $0xe0] sm:$0xff]  ;;  %v538_v46 = vld [vmem:[%s12886_s3 + $0xe8] sm:$0xff]  ;;  %v539_v49 = vld [vmem:[%s12886_s3 + $0xf0] sm:$0xff] }
   0xe   :  { %71 = vperm.xlu1 %8008, %v24_v8   ;;  %292 = vperm.xlu0 %8011, %v8202_v9   ;;  %v7325_v47 = vpack.c.bf16 %v538_v46, %v537_v45  ;;  %v1473_v48 = vld [vmem:[%s12885_s0 + $0xa0] sm:$0xff]  ;;  %v540_v50 = vld [vmem:[%s12886_s3 + $0xf8] sm:$0xff]  ;;  %v376_v55 = vld [vmem:[%s12886_s3 + $0x8] sm:$0xff] }
   0xf   :  { %v7329_v51 = vpack.c.bf16 %v540_v50, %v539_v49  ;;  %v8380_v52 = vld [vmem:[%s12885_s0 + $0xc0] sm:$0xff]  ;;  %v1472_v63 = vld [vmem:[%s12885_s0 + $0x98] sm:$0xff]  ;;  %v1479_v26 = vld [vmem:[%s12885_s0 + $0xd0] sm:$0xff] }
  0x10   :  { %7308 = vmatpush3.bf16.msra.mxu0 %v7305_v30  ;;  %7436 = vmatpush3.bf16.msra.mxu1 %v7305_v30  ;;  %v1469_v53 = vld [vmem:[%s12885_s0 + $0x80] sm:$0xff]  ;;  %v4376_v27 = vld [vmem:[%s12885_s0 + $0x198] sm:$0xff]  ;;  %v4378_v35 = vld [vmem:[%s12885_s0 + $0x1a8] sm:$0xff] }
  0x11   :  { %7310 = vmatprep.subr.bf16.mxu0 %v7309_v34  ;;  %7438 = vmatprep.subr.bf16.mxu1 %v7309_v34  ;;  %v375_v54 = vld [vmem:[%s12886_s3] sm:$0xff]  ;;  %v2927_v39 = vld [vmem:[%s12885_s0 + $0x130] sm:$0xff]  ;;  %v4380_v42 = vld [vmem:[%s12885_s0 + $0x1b8] sm:$0xff] }
  0x12   :  { %81 = vperm.xlu1 %8008, %v26_v10   ;;  %300 = vperm.xlu0 %8011, %v8211_v11   ;;  %v8394_v56 = vpack.c.bf16 %v376_v55, %v375_v54  ;;  %v2925_v31 = vld [vmem:[%s12885_s0 + $0x120] sm:$0xff]  ;;  %v4384_v54 = vld [vmem:[%s12885_s0 + $0x1d8] sm:$0xff] }
  0x13   :  { %v2929_v45 = vld [vmem:[%s12885_s0 + $0x140] sm:$0xff] }
  0x14   :  { %7312 = vmatpush3.bf16.msra.mxu0 %v7309_v34  ;;  %7440 = vmatpush3.bf16.msra.mxu1 %v7309_v34  ;;  %13162 = vst [vmem:[#allocation2_spill] sm:$0xff] %v8394_v56  ;;  %v8564_v55 = vld [vmem:[%s12887_s1 + $0x4] ss:$0 sm:$0xff] }
  0x15   :  { %7314 = vmatprep.subr.bf16.mxu0 %v7313_v38  ;;  %7442 = vmatprep.subr.bf16.mxu1 %v7313_v38 }
  0x16   :  { %91 = vperm.xlu1 %8008, %v8217_v12   ;;  %308 = vperm.xlu0 %8011, %v8222_v13  }
  0x18   :  { %7316 = vmatpush3.bf16.msra.mxu0 %v7313_v38  ;;  %7444 = vmatpush3.bf16.msra.mxu1 %v7313_v38 }
  0x19   :  { %7318 = vmatprep.subr.bf16.mxu0 %v7317_v41  ;;  %7446 = vmatprep.subr.bf16.mxu1 %v7317_v41 }
  0x1a   :  { %101 = vperm.xlu1 %8008, %v8229_v14   ;;  %316 = vperm.xlu0 %8011, %v8234_v15  }
  0x1c   :  { %7320 = vmatpush3.bf16.msra.mxu0 %v7317_v41  ;;  %7448 = vmatpush3.bf16.msra.mxu1 %v7317_v41 }
  0x1d   :  { %7322 = vmatprep.subr.bf16.mxu0 %v7321_v44  ;;  %7450 = vmatprep.subr.bf16.mxu1 %v7321_v44 }
  0x1e   :  { %111 = vperm.xlu1 %8008, %v8241_v16   ;;  %1720 = vperm.xlu0 %8011, %v8246_v17  }
  0x20   :  { %7324 = vmatpush3.bf16.msra.mxu0 %v7321_v44  ;;  %7452 = vmatpush3.bf16.msra.mxu1 %v7321_v44 }
  0x21   :  { %7326 = vmatprep.subr.bf16.mxu0 %v7325_v47  ;;  %7454 = vmatprep.subr.bf16.mxu1 %v7325_v47 }
  0x22   :  { %8009 = vset.pattern.permute.xlu1 %v12890_v19  ;;  %1736 = vperm.xlu0 %8011, %v8253_v18  }
  0x23   :  { %163 = vperm.xlu1 %8009, %v8175_v3  }
  0x24   :  { %7328 = vmatpush3.bf16.msra.mxu0 %v7325_v47  ;;  %7456 = vmatpush3.bf16.msra.mxu1 %v7325_v47 }
  0x25   :  { %7330 = vmatprep.subr.bf16.mxu0 %v7329_v51  ;;  %7458 = vmatprep.subr.bf16.mxu1 %v7329_v51 }
  0x26   :  { %8020 = vset.pattern.permute.xlu0 %v12890_v19 }
  0x27   :  { %167 = vperm.xlu1 %8009, %v19_v2   ;;  %159 = vperm.xlu0 %8020, %v8261_v20  }
  0x28   :  { %7332 = vmatpush3.bf16.msra.mxu0 %v7329_v51  ;;  %7460 = vmatpush3.bf16.msra.mxu1 %v7329_v51  ;;  %v2931_v51 = vld [vmem:[%s12885_s0 + $0x150] sm:$0xff] }
  0x29   :  { %7334 = vmatprep.subr.bf16.mxu0 %v8394_v56 }
  0x2b   :  { %175 = vperm.xlu1 %8009, %v8184_v5   ;;  %171 = vperm.xlu0 %8020, %v20_v4  }
  0x2f   :  { %183 = vperm.xlu1 %8009, %v8193_v7   ;;  %179 = vperm.xlu0 %8020, %v22_v6  }
  0x33   :  { %191 = vperm.xlu1 %8009, %v8202_v9   ;;  %187 = vperm.xlu0 %8020, %v24_v8  }
  0x37   :  { %199 = vperm.xlu1 %8009, %v8211_v11   ;;  %195 = vperm.xlu0 %8020, %v26_v10  }
  0x3b   :  { %207 = vperm.xlu1 %8009, %v8222_v13   ;;  %203 = vperm.xlu0 %8020, %v8217_v12  }
  0x3f   :  { %215 = vperm.xlu1 %8009, %v8234_v15   ;;  %211 = vperm.xlu0 %8020, %v8229_v14  }
  0x43   :  { %8010 = vset.pattern.permute.xlu1 %v12892_v0  ;;  %219 = vperm.xlu0 %8020, %v8241_v16  }
  0x44   :  { %260 = vperm.xlu1 %8010, %v8261_v20  }
  0x47   :  { %1615 = vperm.xlu0 %8020, %v8279_v21  }
  0x48   :  { %268 = vperm.xlu1 %8010, %v19_v2  }
  0x4b   :  { %1619 = vperm.xlu0 %8020, %v8246_v17  }
  0x4c   :  { %272 = vperm.xlu1 %8010, %v20_v4  }
  0x4f   :  { %1631 = vperm.xlu0 %8020, %v8286_v22  }
  0x50   :  { %280 = vperm.xlu1 %8010, %v22_v6   ;;  %v1476_v6 = vld [vmem:[%s12885_s0 + $0xb8] sm:$0xff] }
  0x53   :  { %1635 = vperm.xlu0 %8020, %v8253_v18  }
  0x54   :  { %288 = vperm.xlu1 %8010, %v24_v8  }
  0x57   :  { %1647 = vperm.xlu0 %8020, %v8299_v25  }
  0x58   :  { %296 = vperm.xlu1 %8010, %v26_v10  }
  0x5b   :  { %1655 = vperm.xlu0 %8020, %v8311_v29  }
  0x5c   :  { %304 = vperm.xlu1 %8010, %v8217_v12  }
  0x5f   :  { %1663 = vperm.xlu0 %8020, %v8324_v33  }
  0x60   :  { %312 = vperm.xlu1 %8010, %v8229_v14  }
  0x63   :  { %1671 = vperm.xlu0 %8020, %v8337_v37  }
  0x64   :  { %320 = vperm.xlu1 %8010, %v8241_v16  }
  0x67   :  { %8032 = vset.pattern.permute.xlu0 %v12894_v1 }
  0x68   :  { %36 = vperm.xlu0 %8032, %v8261_v20   ;;  %8012 = vset.pattern.permute.xlu1 %v12894_v1 }
  0x69   :  { %1493 = vperm.xlu1 %8012, %v8279_v21  }
  0x6c   :  { %41 = vperm.xlu0 %8032, %v8175_v3  }
  0x6d   :  { %1498 = vperm.xlu1 %8012, %v8246_v17  }
  0x70   :  { %56 = vperm.xlu0 %8032, %v8184_v5  }
  0x71   :  { %1508 = vperm.xlu1 %8012, %v1473_v48  }
  0x74   :  { %66 = vperm.xlu0 %8032, %v8193_v7  }
  0x75   :  { %1518 = vperm.xlu1 %8012, %v8253_v18   ;;  %v8469_v18 = vld [vmem:[%s12885_s0 + $0x188] sm:$0xff] }
  0x76   :  { %13172 = vst [vmem:[#allocation12_spill] sm:$0xff] %v8469_v18 }
  0x78   :  { %76 = vperm.xlu0 %8032, %v8202_v9  }
  0x79   :  { %1528 = vperm.xlu1 %8012, %v8380_v52  }
  0x7c   :  { %86 = vperm.xlu0 %8032, %v8211_v11  }
  0x7d   :  { %8013 = vset.pattern.permute.xlu1 %v12890_v19 }
  0x7e   :  { %1611 = vperm.xlu1 %8013, %v1469_v53  }
  0x80   :  { %96 = vperm.xlu0 %8032, %v8222_v13  }
  0x81   :  { %v8399_v57 = vpop.permute.xlu1 %46  ;;  %v8401_v58 = vpop.permute.xlu0 %264 }
  0x82   :  { %8014 = vset.pattern.permute.xlu1 %v12892_v0 }
  0x83   :  { %1712 = vperm.xlu1 %8014, %v1469_v53  }
  0x84   :  { %106 = vperm.xlu0 %8032, %v8234_v15   ;;  %v8458_v15 = vld [vmem:[%s12885_s0 + $0x100] sm:$0xff] }
  0x85   :  { %v8405_v59 = vpop.permute.xlu1 %51  ;;  %v8407_v60 = vpop.permute.xlu0 %276  ;;  %13171 = vst [vmem:[#allocation11_spill] sm:$0xff] %v8458_v15 }
  0x86   :  { %13163 = vst [vmem:[#allocation3_spill] sm:$0xff] %v8407_v60 }
  0x87   :  { %1716 = vperm.xlu1 %8014, %v8279_v21  }
  0x88   :  { %1488 = vperm.xlu0 %8032, %v1469_v53  }
  0x89   :  { %v8410_v61 = vpop.permute.xlu1 %61  ;;  %v8412_v62 = vpop.permute.xlu0 %284 }
  0x8a   :  { %13164 = vst [vmem:[#allocation4_spill] sm:$0xff] %v8412_v62 }
  0x8b   :  { %8015 = vset.pattern.permute.xlu1 %v12890_v19 }
  0x8c   :  { %1503 = vperm.xlu0 %8032, %v1472_v63   ;;  %1623 = vperm.xlu1 %8015, %v1472_v63  }
  0x8d   :  { %v8418_v2 = vpop.permute.xlu1 %71  ;;  %v8420_v3 = vpop.permute.xlu0 %292 }
  0x8e   :  { %13165 = vst [vmem:[#allocation5_spill] sm:$0xff] %v8420_v3 }
  0x90   :  { %1513 = vperm.xlu0 %8032, %v8286_v22   ;;  %8016 = vset.pattern.permute.xlu1 %v12892_v0 }
  0x91   :  { %v8424_v4 = vpop.permute.xlu1 %81  ;;  %1724 = vperm.xlu1 %8016, %v1472_v63   ;;  %v8426_v5 = vpop.permute.xlu0 %300 }
  0x92   :  { %13166 = vst [vmem:[#allocation6_spill] sm:$0xff] %v8426_v5 }
  0x94   :  { %1523 = vperm.xlu0 %8032, %v1476_v6  }
  0x95   :  { %v8431_v7 = vpop.permute.xlu1 %91  ;;  %8017 = vset.pattern.permute.xlu1 %v12890_v19  ;;  %v8434_v8 = vpop.permute.xlu0 %308 }
  0x96   :  { %13167 = vst [vmem:[#allocation7_spill] sm:$0xff] %v8434_v8  ;;  %1627 = vperm.xlu1 %8017, %v1473_v48  }
  0x98   :  { %1533 = vperm.xlu0 %8032, %v8299_v25  }
  0x99   :  { %v8437_v9 = vpop.permute.xlu1 %101  ;;  %v8439_v10 = vpop.permute.xlu0 %316 }
  0x9a   :  { %13168 = vst [vmem:[#allocation8_spill] sm:$0xff] %v8439_v10  ;;  %8018 = vset.pattern.permute.xlu1 %v12892_v0 }
  0x9b   :  { %1728 = vperm.xlu1 %8018, %v1473_v48   ;;  %v4382_v48 = vld [vmem:[%s12885_s0 + $0x1c8] sm:$0xff] }
  0x9c   :  { %1543 = vperm.xlu0 %8032, %v8311_v29  }
  0x9d   :  { %v8443_v11 = vpop.permute.xlu1 %111  ;;  %v8445_v12 = vpop.permute.xlu0 %1720 }
  0x9e   :  { %13169 = vst [vmem:[#allocation9_spill] sm:$0xff] %v8445_v12 }
  0x9f   :  { %1732 = vperm.xlu1 %8018, %v8286_v22   ;;  %v2923_v22 = vld [vmem:[%s12885_s0 + $0x110] sm:$0xff] }
  0xa0   :  { %1553 = vperm.xlu0 %8032, %v8324_v33  }
  0xa1   :  { %v8449_v13 = vpop.permute.xlu0 %1736 }
  0xa2   :  { %13170 = vst [vmem:[#allocation10_spill] sm:$0xff] %v8449_v13  ;;  %v8451_v14 = vpop.permute.xlu1 %163 }
  0xa3   :  { %8019 = vset.pattern.permute.xlu1 %v12890_v19 }
  0xa4   :  { %1563 = vperm.xlu0 %8032, %v8337_v37   ;;  %1639 = vperm.xlu1 %8019, %v1476_v6  }
  0xa6   :  { %v8460_v16 = vpop.permute.xlu1 %167  ;;  %v8462_v17 = vpop.permute.xlu0 %159 }
  0xa8   :  { %2940 = vperm.xlu0 %8032, %v8458_v15   ;;  %8021 = vset.pattern.permute.xlu1 %v12892_v0 }
  0xa9   :  { %1740 = vperm.xlu1 %8021, %v1476_v6   ;;  %v8571_v6 = vld [vmem:[%s12887_s1] ss:$0 sm:$0xff] }
  0xaa   :  { %v8471_v20 = vpop.permute.xlu1 %175  ;;  %v8473_v21 = vpop.permute.xlu0 %171 }
  0xac   :  { %4397 = vperm.xlu0 %8032, %v8469_v18  }
  0xad   :  { %8022 = vset.pattern.permute.xlu1 %v12890_v19 }
  0xae   :  { %v8480_v23 = vpop.permute.xlu1 %183  ;;  %v8482_v24 = vpop.permute.xlu0 %179  ;;  %1643 = vperm.xlu1 %8022, %v8380_v52  }
  0xb0   :  { %2950 = vperm.xlu0 %8032, %v2923_v22   ;;  %v8581_v22 = vld [vmem:[%s12887_s1 + $0xc] ss:$0 sm:$0xff] }
  0xb2   :  { %v8491_v28 = vpop.permute.xlu1 %191  ;;  %v8493_v30 = vpop.permute.xlu0 %187  ;;  %8023 = vset.pattern.permute.xlu1 %v12894_v1 }
  0xb3   :  { %13173 = vst [vmem:[#allocation13_spill] sm:$0xff] %v8491_v28  ;;  %13174 = vst [vmem:[#allocation14_spill] sm:$0xff] %v8493_v30  ;;  %1538 = vperm.xlu1 %8023, %v1479_v26   ;;  %v405_v30 = vmul.f32 %v8564_v55, %v8424_v4 }
  0xb4   :  { %4407 = vperm.xlu0 %8032, %v4376_v27   ;;  %v8589_v27 = vld [vmem:[%s12887_s1 + $0x2] ss:$0 sm:$0xff] }
  0xb6   :  { %v8499_v32 = vpop.permute.xlu1 %199  ;;  %v8501_v34 = vpop.permute.xlu0 %195 }
  0xb7   :  { %13175 = vst [vmem:[#allocation15_spill] sm:$0xff] %v8499_v32  ;;  %13176 = vst [vmem:[#allocation16_spill] sm:$0xff] %v8501_v34  ;;  %8024 = vset.pattern.permute.xlu1 %v12892_v0 }
  0xb8   :  { %2960 = vperm.xlu0 %8032, %v2925_v31   ;;  %1744 = vperm.xlu1 %8024, %v8380_v52   ;;  %v5840_v31 = vld [vmem:[%s12887_s1 + $0xa] ss:$0 sm:$0xff] }
  0xba   :  { %v8508_v36 = vpop.permute.xlu1 %207  ;;  %v8510_v38 = vpop.permute.xlu0 %203 }
  0xbb   :  { %13177 = vst [vmem:[#allocation17_spill] sm:$0xff] %v8508_v36  ;;  %13178 = vst [vmem:[#allocation18_spill] sm:$0xff] %v8510_v38  ;;  %v8672_v38 = vld [vmem:[%s12887_s1 + $0x6] ss:$0 sm:$0xff] }
  0xbc   :  { %4417 = vperm.xlu0 %8032, %v4378_v35   ;;  %1748 = vperm.xlu1 %8024, %v8299_v25   ;;  %v8531_v25 = vld [vmem:[%s12885_s0 + $0xe0] sm:$0xff]  ;;  %v377_v35 = vld [vmem:[%s12886_s3 + $0x10] sm:$0xff] }
  0xbe   :  { %v8516_v40 = vpop.permute.xlu1 %215  ;;  %v8518_v41 = vpop.permute.xlu0 %211 }
  0xbf   :  { %13179 = vst [vmem:[#allocation19_spill] sm:$0xff] %v8516_v40  ;;  %13180 = vst [vmem:[#allocation20_spill] sm:$0xff] %v8518_v41  ;;  %v8652_v40 = vld [vmem:[%s12888_s2 + $0x2] ss:$0 sm:$0xff]  ;;  %v121_v41 = vmul.f32 %v8571_v6, %v8405_v59 }
  0xc0   :  { %2970 = vperm.xlu0 %8032, %v2927_v39   ;;  %8025 = vset.pattern.permute.xlu1 %v12890_v19  ;;  %v378_v39 = vld [vmem:[%s12886_s3 + $0x18] sm:$0xff] }
  0xc1   :  { %1651 = vperm.xlu1 %8025, %v1479_v26  }
  0xc2   :  { %v8524_v43 = vpop.permute.xlu0 %219 }
  0xc3   :  { %13181 = vst [vmem:[#allocation21_spill] sm:$0xff] %v8524_v43  ;;  %v8526_v44 = vpop.permute.xlu1 %260  ;;  %v8647_v43 = vld [vmem:[%s12888_s2] ss:$0 sm:$0xff] }
  0xc4   :  { %13182 = vst [vmem:[#allocation22_spill] sm:$0xff] %v8526_v44  ;;  %4427 = vperm.xlu0 %8032, %v4380_v42   ;;  %v398_v42 = vmul.f32 %v8564_v55, %v8399_v57 }
  0xc5   :  { %8026 = vset.pattern.permute.xlu1 %v12894_v1 }
  0xc6   :  { %1548 = vperm.xlu1 %8026, %v8531_v25   ;;  %v8538_v46 = vpop.permute.xlu0 %1615 }
  0xc7   :  { %13183 = vst [vmem:[#allocation23_spill] sm:$0xff] %v8538_v46  ;;  %v8540_v47 = vpop.permute.xlu1 %268  ;;  %v8635_v46 = vmul.f32 %v8589_v27, %v8401_v58 }
  0xc8   :  { %13184 = vst [vmem:[#allocation24_spill] sm:$0xff] %v8540_v47  ;;  %2980 = vperm.xlu0 %8032, %v2929_v45   ;;  %v5844_v45 = vld [vmem:[%s12887_s1 + $0xe] ss:$0 sm:$0xff] }
  0xc9   :  { %13192 = vst [vmem:[#allocation32_spill] sm:$0xff] %v8635_v46  ;;  %v8662_v46 = vmul.f32 %v5844_v45, %v8401_v58  ;;  %v1150_v45 = vmul.f32 %v8581_v22, %v8405_v59 }
  0xca   :  { %8027 = vset.pattern.permute.xlu1 %v12892_v0  ;;  %v8546_v49 = vpop.permute.xlu0 %1619  ;;  %v1149_v0 = vmul.f32 %v8581_v22, %v8399_v57 }
  0xcb   :  { %13185 = vst [vmem:[#allocation25_spill] sm:$0xff] %v8546_v49  ;;  %1752 = vperm.xlu1 %8027, %v1479_v26   ;;  %v8548_v50 = vpop.permute.xlu1 %272  ;;  %v380_v49 = vld [vmem:[%s12886_s3 + $0x28] sm:$0xff]  ;;  %13196 = vst [vmem:[#allocation36_spill] sm:$0xff] %v8662_v46  ;;  %v8688_v46 = vmul.f32 %v8672_v38, %v8401_v58 }
  0xcc   :  { %13186 = vst [vmem:[#allocation26_spill] sm:$0xff] %v8548_v50  ;;  %4437 = vperm.xlu0 %8032, %v4382_v48   ;;  %v2933_v48 = vld [vmem:[%s12885_s0 + $0x160] sm:$0xff] }
  0xcd   :  { %13198 = vst [vmem:[#allocation37_spill] sm:$0xff] %v8688_v46  ;;  %v8785_v46 = vmul.f32 %v8672_v38, %v8420_v3  ;;  %v387_v50 = vld [vmem:[%s12886_s3 + $0x60] sm:$0xff] }
  0xce   :  { %v8553_v52 = vpop.permute.xlu0 %1631 }
  0xcf   :  { %13187 = vst [vmem:[#allocation27_spill] sm:$0xff] %v8553_v52  ;;  %1756 = vperm.xlu1 %8027, %v8311_v29   ;;  %v8556_v53 = vpop.permute.xlu1 %280  ;;  %v8576_v29 = vld [vmem:[%s12887_s1 + $0x8] ss:$0 sm:$0xff]  ;;  %v379_v52 = vld [vmem:[%s12886_s3 + $0x20] sm:$0xff]  ;;  %13211 = vst [vmem:[#allocation49_spill] sm:$0xff] %v8785_v46 }
  0xd0   :  { %13188 = vst [vmem:[#allocation28_spill] sm:$0xff] %v8556_v53  ;;  %2990 = vperm.xlu0 %8032, %v2931_v51   ;;  %v8612_v51 = vld [vmem:[%s12888_s2 + $0x1] ss:$0 sm:$0xff]  ;;  %v839_v36 = vmul.f32 %v8576_v29, %v8405_v59  ;;  %v8693_v32 = vpack.c.bf16 %v380_v49, %v379_v52  ;;  %v8717_v52 = vmul.f32 %v8672_v38, %v8407_v60 }
  0xd1   :  { %v8691_v34 = vadd.f32 %v8612_v51, %v398_v42  ;;  %v8762_v53 = vmul.f32 %v8672_v38, %v8412_v62 }
  0xd2   :  { %v8566_v63 = vpop.permute.xlu0 %1635  ;;  %13199 = vst [vmem:[#allocation38_spill] sm:$0xff] %v8693_v32  ;;  %13202 = vst [vmem:[#allocation41_spill] sm:$0xff] %v8717_v52  ;;  %v2935_v32 = vld [vmem:[%s12885_s0 + $0x170] sm:$0xff] }
  0xd3   :  { %13189 = vst [vmem:[#allocation29_spill] sm:$0xff] %v8566_v63  ;;  %8028 = vset.pattern.permute.xlu1 %v12890_v19  ;;  %v8584_v26 = vpop.permute.xlu1 %288  ;;  %v838_v19 = vmul.f32 %v8576_v29, %v8399_v57  ;;  %v8625_v63 = vld [vmem:[%s12885_s0 + $0xf0] sm:$0xff]  ;;  %13208 = vst [vmem:[#allocation46_spill] sm:$0xff] %v8762_v53 }
  0xd4   :  { %13190 = vst [vmem:[#allocation30_spill] sm:$0xff] %v8584_v26  ;;  %4447 = vperm.xlu0 %8032, %v4384_v54   ;;  %1659 = vperm.xlu1 %8028, %v8531_v25   ;;  %v120_v54 = vmul.f32 %v8571_v6, %v8399_v57  ;;  %v8638_v57 = vmul.f32 %v5840_v31, %v8401_v58  ;;  %v8657_v31 = vld [vmem:[%s12888_s2 + $0x3] ss:$0 sm:$0xff] }
  0xd5   :  { %v401_v26 = vmul.f32 %v8564_v55, %v8410_v61  ;;  %v8706_v56 = vadd.f32 %v8657_v31, %v1149_v0  ;;  %v123_v58 = vmul.f32 %v8571_v6, %v8410_v61  ;;  %v1152_v0 = vmul.f32 %v8581_v22, %v8410_v61 }
  0xd6   :  { %v8620_v1 = vpop.permute.xlu0 %1647  ;;  %13193 = vst [vmem:[#allocation33_spill] sm:$0xff] %v8638_v57  ;;  %v8659_v57 = vpack.c.bf16 %v378_v39, %v377_v35  ;;  %v381_v35 = vld [vmem:[%s12886_s3 + $0x30] sm:$0xff]  ;;  %v382_v39 = vld [vmem:[%s12886_s3 + $0x38] sm:$0xff] }
  0xd7   :  { %13191 = vst [vmem:[#allocation31_spill] sm:$0xff] %v8620_v1  ;;  %v399_v1 = vmul.f32 %v8564_v55, %v8405_v59  ;;  %v8642_v18 = vpop.permute.xlu1 %296  ;;  %v8700_v59 = vadd.f32 %v8647_v43, %v120_v54  ;;  %v8719_v54 = vpack.c.bf16 %v382_v39, %v381_v35  ;;  %v8735_v35 = vadd.f32 %v8652_v40, %v839_v36 }
  0xd8   :  { %13194 = vst [vmem:[#allocation34_spill] sm:$0xff] %v8642_v18  ;;  %13195 = vst [vmem:[#allocation35_spill] sm:$0xff] %v8659_v57  ;;  %3000 = vperm.xlu0 %8032, %v2933_v48   ;;  %v13197_v18 = vmov 0   ;;  %v4386_v48 = vld [vmem:[%s12885_s0 + $0x1e8] sm:$0xff]  ;;  %v8703_v57 = vadd.f32 %v8652_v40, %v838_v19  ;;  %v841_v19 = vmul.f32 %v8576_v29, %v8410_v61  ;;  %v125_v39 = vmul.f32 %v8571_v6, %v8418_v2 }
  0xd9   :  { %8029 = vset.pattern.permute.xlu1 %v13197_v18  ;;  %v8713_v49 = vadd.f32 %v8612_v51, %v399_v1  ;;  %13203 = vst [vmem:[#allocation42_spill] sm:$0xff] %v8719_v54  ;;  %v384_v1 = vld [vmem:[%s12886_s3 + $0x48] sm:$0xff]  ;;  %v403_v61 = vmul.f32 %v8564_v55, %v8418_v2  ;;  %v13204_v54 = vmov 2   ;;  %v1154_v36 = vmul.f32 %v8581_v22, %v8418_v2 }
  0xda   :  { %1558 = vperm.xlu1 %8029, %v8625_v63   ;;  %v8697_v15 = vpop.permute.xlu0 %1655  ;;  %v8758_v52 = vadd.f32 %v8612_v51, %v401_v26  ;;  %v8779_v53 = vadd.f32 %v8647_v43, %v123_v58  ;;  %v8797_v58 = vadd.f32 %v8657_v31, %v1152_v0 }
  0xdb   :  { %13200 = vst [vmem:[#allocation39_spill] sm:$0xff] %v8697_v15  ;;  %v8710_v42 = vpop.permute.xlu1 %304  ;;  %v383_v15 = vld [vmem:[%s12886_s3 + $0x40] sm:$0xff] }
  0xdc   :  { %13201 = vst [vmem:[#allocation40_spill] sm:$0xff] %v8710_v42  ;;  %4457 = vperm.xlu0 %8032, %v4386_v48   ;;  %v8732_v42 = vadd.f32 %v8647_v43, %v121_v41  ;;  %v843_v48 = vmul.f32 %v8576_v29, %v8418_v2  ;;  %v8748_v41 = vadd.f32 %v8657_v31, %v1150_v45  ;;  %13207 = vst [vmem:[#allocation45_spill] sm:$0xff] %v8758_v52  ;;  %v385_v45 = vld [vmem:[%s12886_s3 + $0x50] sm:$0xff]  ;;  %v386_v2 = vld [vmem:[%s12886_s3 + $0x58] sm:$0xff] }
  0xdd   :  { %v1156_v52 = vmul.f32 %v8581_v22, %v8424_v4  ;;  %13212 = vst [vmem:[#allocation50_spill] sm:$0xff] %v8797_v58  ;;  %v8819_v58 = vadd.f32 %v8612_v51, %v405_v30  ;;  %v389_v30 = vld [vmem:[%s12886_s3 + $0x70] sm:$0xff] }
  0xde   :  { %8030 = vset.pattern.permute.xlu1 %v13204_v54  ;;  %13205 = vst [vmem:[#allocation43_spill] sm:$0xff] %v8748_v41  ;;  %v8755_v28 = vpop.permute.xlu0 %1663  ;;  %v8776_v41 = vpack.c.bf16 %v384_v1, %v383_v15  ;;  %v388_v15 = vld [vmem:[%s12886_s3 + $0x68] sm:$0xff]  ;;  %v8794_v1 = vadd.f32 %v8652_v40, %v841_v19  ;;  %v8811_v46 = vadd.f32 %v8652_v40, %v843_v48 }
  0xdf   :  { %1760 = vperm.xlu1 %8030, %v8531_v25   ;;  %13206 = vst [vmem:[#allocation44_spill] sm:$0xff] %v8755_v28  ;;  %v127_v25 = vmul.f32 %v8571_v6, %v8424_v4  ;;  %v845_v28 = vmul.f32 %v8576_v29, %v8424_v4  ;;  %v8774_v26 = vpop.permute.xlu1 %312  ;;  %v4388_v4 = vld [vmem:[%s12885_s0 + $0x1f8] sm:$0xff]  ;;  %v407_v19 = vmul.f32 %v8564_v55, %v8431_v7  ;;  %v1828_v48 = vld [vmem:[%s12886_s3 + $0x8] sm:$0xff] }
  0xe0   :  { %13209 = vst [vmem:[#allocation47_spill] sm:$0xff] %v8774_v26  ;;  %13210 = vst [vmem:[#allocation48_spill] sm:$0xff] %v8776_v41  ;;  %3010 = vperm.xlu0 %8032, %v2935_v32   ;;  %v8803_v32 = vadd.f32 %v8612_v51, %v403_v61  ;;  %v8805_v41 = vpack.c.bf16 %v386_v2, %v385_v45  ;;  %v8808_v26 = vadd.f32 %v8647_v43, %v125_v39  ;;  %v1827_v39 = vld [vmem:[%s12886_s3] sm:$0xff] }
  0xe1   :  { %13215 = vst [vmem:[#allocation53_spill] sm:$0xff] %v8811_v46  ;;  %v8823_v61 = vmul.f32 %v8672_v38, %v8426_v5  ;;  %v8832_v45 = vadd.f32 %v8657_v31, %v1154_v36  ;;  %v8836_v2 = vpack.c.bf16 %v388_v15, %v387_v50  ;;  %v8845_v46 = vadd.f32 %v8647_v43, %v127_v25 }
  0xe2   :  { %13213 = vst [vmem:[#allocation51_spill] sm:$0xff] %v8805_v41  ;;  %13214 = vst [vmem:[#allocation52_spill] sm:$0xff] %v8808_v26  ;;  %v8816_v0 = vpop.permute.xlu0 %1671  ;;  %v8848_v26 = vadd.f32 %v8652_v40, %v845_v28  ;;  %v8850_v36 = vpack.c.bf16 %v1828_v48, %v1827_v39  ;;  %v129_v50 = vmul.f32 %v8571_v6, %v8431_v7  ;;  %v8923_v41 = vld [vmem:[%s12887_s1 + $0x1] ss:$0 sm:$0xff] }
  0xe3   :  { %1764 = vperm.xlu1 %8030, %v8324_v33   ;;  %13216 = vst [vmem:[#allocation54_spill] sm:$0xff] %v8816_v0  ;;  %13217 = vst [vmem:[#allocation55_spill] sm:$0xff] %v8832_v45  ;;  %v8834_v33 = vpop.permute.xlu1 %320  ;;  %v390_v0 = vld [vmem:[%s12886_s3 + $0x78] sm:$0xff]  ;;  %v847_v15 = vmul.f32 %v8576_v29, %v8431_v7  ;;  %v1158_v45 = vmul.f32 %v8581_v22, %v8431_v7  ;;  %v131_v25 = vmul.f32 %v8571_v6, %v8437_v9 }
  0xe4   :  { %13218 = vst [vmem:[#allocation56_spill] sm:$0xff] %v8834_v33  ;;  %13219 = vst [vmem:[#allocation57_spill] sm:$0xff] %v8836_v2  ;;  %4467 = vperm.xlu0 %8032, %v4388_v4   ;;  %v8859_v2 = vadd.f32 %v8657_v31, %v1156_v52  ;;  %v409_v28 = vmul.f32 %v8564_v55, %v8437_v9  ;;  %v8867_v39 = vmul.f32 %v8672_v38, %v8434_v8  ;;  %v13226_v4 = vmov 1  }
  0xe5   :  { %13220 = vst [vmem:[#allocation58_spill] sm:$0xff] %v8845_v46  ;;  %13221 = vst [vmem:[#allocation59_spill] sm:$0xff] %v8848_v26  ;;  %v8871_v48 = vmul.f32 %v8589_v27, %v8407_v60  ;;  %7462 = vmatprep.subr.bf16.mxu1 %v8850_v36  ;;  %v849_v7 = vmul.f32 %v8576_v29, %v8437_v9  ;;  %v1160_v52 = vmul.f32 %v8581_v22, %v8437_v9 }
  0xe6   :  { %13222 = vst [vmem:[#allocation60_spill] sm:$0xff] %v8850_v36  ;;  %13223 = vst [vmem:[#allocation61_spill] sm:$0xff] %v8859_v2  ;;  %v8882_v2 = vld [vmem:[%s12885_s0 + $0x180] sm:$0xff]  ;;  %v8885_v26 = vadd.f32 %v8612_v51, %v407_v19  ;;  %v8887_v60 = vpack.c.bf16 %v390_v0, %v389_v30  ;;  %v133_v46 = vmul.f32 %v8571_v6, %v8443_v11  ;;  %v966_v0 = vld [vmem:[%s12886_s3 + $0x108] sm:$0xff] }
  0xe7   :  { %13224 = vst [vmem:[#allocation62_spill] sm:$0xff] %v8867_v39  ;;  %13225 = vst [vmem:[#allocation63_spill] sm:$0xff] %v8871_v48  ;;  %8031 = vset.pattern.permute.xlu1 %v13226_v4  ;;  %v411_v36 = vmul.f32 %v8564_v55, %v8443_v11  ;;  %v851_v9 = vmul.f32 %v8576_v29, %v8443_v11  ;;  %v1162_v48 = vmul.f32 %v8581_v22, %v8443_v11  ;;  %v8897_v33 = vpop.permute.xlu0 %36  ;;  %v965_v19 = vld [vmem:[%s12886_s3 + $0x100] sm:$0xff] }
  0xe8   :  { %13227 = vst [vmem:[#allocation64_spill] sm:$0xff] %v8887_v60  ;;  %1667 = vperm.xlu1 %8031, %v8625_v63   ;;  %v396_v30 = vmul.f32 %v8564_v55, %v8897_v33  ;;  %8063 = vset.pattern.permute.xlu0 %v13226_v4  ;;  %v8909_v29 = vpop.permute.xlu1 %1493  ;;  %v8912_v11 = vadd.f32 %v8647_v43, %v129_v50 }
  0xe9   :  { %13228 = vst [vmem:[#allocation65_spill] sm:$0xff] %v8909_v29  ;;  %v8915_v22 = vadd.f32 %v8652_v40, %v847_v15  ;;  %v8918_v60 = vadd.f32 %v8657_v31, %v1158_v45  ;;  %4515 = vperm.xlu0 %8063, %v8882_v2   ;;  %v8927_v39 = vadd.f32 %v8612_v51, %v409_v28  ;;  %v8948_v28 = vld [vmem:[%s12887_s1 + $0xd] ss:$0 sm:$0xff] }
  0xea   :  { %13229 = vst [vmem:[#allocation66_spill] sm:$0xff] %v8912_v11  ;;  %v8931_v50 = vmul.f32 %v8672_v38, %v8439_v10  ;;  %v8935_v15 = vmul.f32 %v8589_v27, %v8412_v62  ;;  %v8938_v45 = vadd.f32 %v8647_v43, %v131_v25  ;;  %v8957_v62 = vmul.f32 %v8672_v38, %v8445_v12 }
  0xeb   :  { %13230 = vst [vmem:[#allocation67_spill] sm:$0xff] %v8915_v22  ;;  %13231 = vst [vmem:[#allocation68_spill] sm:$0xff] %v8918_v60  ;;  %v8943_v60 = vld [vmem:[%s12887_s1 + $0x9] ss:$0 sm:$0xff]  ;;  %v8953_v22 = vld [vmem:[%s12885_s0 + $0x190] sm:$0xff]  ;;  %v8959_v25 = vpack.c.bf16 %v966_v0, %v965_v19  ;;  %v8965_v11 = vadd.f32 %v8657_v31, %v1160_v52  ;;  %v8976_v12 = vadd.f32 %v8612_v51, %v411_v36 }
  0xec   :  { %13232 = vst [vmem:[#allocation69_spill] sm:$0xff] %v8931_v50  ;;  %13233 = vst [vmem:[#allocation70_spill] sm:$0xff] %v8935_v15  ;;  %v8967_v15 = vpop.permute.xlu0 %41  ;;  %8033 = vset.pattern.permute.xlu1 %v13204_v54  ;;  %v8973_v50 = vld [vmem:[%s12887_s1 + $0x5] ss:$0 sm:$0xff]  ;;  %v968_v52 = vld [vmem:[%s12886_s3 + $0x118] sm:$0xff]  ;;  %v8985_v19 = vadd.f32 %v8647_v43, %v133_v46  ;;  %v8988_v0 = vadd.f32 %v8652_v40, %v851_v9  ;;  %v8995_v36 = vmul.f32 %v8923_v41, %v8451_v14 }
  0xed   :  { %13234 = vst [vmem:[#allocation71_spill] sm:$0xff] %v8938_v45  ;;  %13235 = vst [vmem:[#allocation72_spill] sm:$0xff] %v8943_v60  ;;  %v8962_v45 = vadd.f32 %v8652_v40, %v849_v7  ;;  %v967_v7 = vld [vmem:[%s12886_s3 + $0x110] sm:$0xff]  ;;  %1768 = vperm.xlu1 %8033, %v8625_v63   ;;  %v440_v46 = vmul.f32 %v8973_v50, %v8462_v17  ;;  %v442_v40 = vmul.f32 %v8973_v50, %v8460_v16 }
  0xee   :  { %13236 = vst [vmem:[#allocation73_spill] sm:$0xff] %v8953_v22  ;;  %13237 = vst [vmem:[#allocation74_spill] sm:$0xff] %v8957_v62  ;;  %v9013_v63 = vmul.f32 %v8943_v60, %v8451_v14  ;;  %v9017_v9 = vmul.f32 %v8948_v28, %v8451_v14  ;;  %4523 = vperm.xlu0 %8063, %v8953_v22   ;;  %v9039_v62 = vmul.f32 %v8672_v38, %v8449_v13 }
  0xef   :  { %13238 = vst [vmem:[#allocation75_spill] sm:$0xff] %v8959_v25  ;;  %13239 = vst [vmem:[#allocation76_spill] sm:$0xff] %v8962_v45  ;;  %v8998_v45 = vpop.permute.xlu1 %1498  ;;  %v419_v25 = vadd.f32 %v8612_v51, %v396_v30  ;;  %v228_v30 = vmul.f32 %v8923_v41, %v8460_v16  ;;  %v443_v22 = vmul.f32 %v8973_v50, %v8473_v21 }
  0xf0   :  { %13240 = vst [vmem:[#allocation77_spill] sm:$0xff] %v8965_v11  ;;  %13241 = vst [vmem:[#allocation78_spill] sm:$0xff] %v8985_v19  ;;  %v8991_v11 = vadd.f32 %v8657_v31, %v1162_v48  ;;  %v969_v31 = vld [vmem:[%s12886_s3 + $0x120] sm:$0xff]  ;;  %v970_v48 = vld [vmem:[%s12886_s3 + $0x128] sm:$0xff]  ;;  %v9031_v19 = vpack.c.bf16 %v968_v52, %v967_v7  ;;  %v9059_v13 = vmul.f32 %v8943_v60, %v8462_v17 }
  0xf1   :  { %13242 = vst [vmem:[#allocation79_spill] sm:$0xff] %v8988_v0  ;;  %13244 = vst [vmem:[#allocation81_spill] sm:$0xff] %v8995_v36  ;;  %v9027_v0 = vld [vmem:[%s12885_s0 + $0x1a0] sm:$0xff]  ;;  %v9041_v36 = vpop.permute.xlu0 %56  ;;  %v971_v7 = vld [vmem:[%s12886_s3 + $0x130] sm:$0xff]  ;;  %1772 = vperm.xlu1 %8033, %v8337_v37   ;;  %v1193_v37 = vmul.f32 %v8948_v28, %v8460_v16 }
  0xf2   :  { %13243 = vst [vmem:[#allocation80_spill] sm:$0xff] %v8991_v11  ;;  %13245 = vst [vmem:[#allocation82_spill] sm:$0xff] %v8998_v45  ;;  %v882_v11 = vmul.f32 %v8943_v60, %v8460_v16  ;;  %v9047_v45 = vmul.f32 %v8923_v41, %v8462_v17  ;;  %v972_v52 = vld [vmem:[%s12886_s3 + $0x138] sm:$0xff]  ;;  %4531 = vperm.xlu0 %8063, %v9027_v0   ;;  %v400_v16 = vmul.f32 %v8564_v55, %v9041_v36 }
  0xf3   :  { %13246 = vst [vmem:[#allocation83_spill] sm:$0xff] %v9013_v63  ;;  %13247 = vst [vmem:[#allocation84_spill] sm:$0xff] %v9017_v9  ;;  %v441_v63 = vmul.f32 %v8973_v50, %v8451_v14  ;;  %v9035_v9 = vmul.f32 %v8589_v27, %v8420_v3  ;;  %v9049_v14 = vpack.c.bf16 %v970_v48, %v969_v31 }
  0xf4   :  { %13248 = vst [vmem:[#allocation85_spill] sm:$0xff] %v9031_v19  ;;  %13250 = vst [vmem:[#allocation87_spill] sm:$0xff] %v9039_v62  ;;  %v397_v3 = vmul.f32 %v8564_v55, %v8967_v15  ;;  %v9064_v62 = vpop.permute.xlu1 %1508  ;;  %v456_v31 = vadd.f32 %v440_v46, %v419_v25  ;;  %v458_v48 = vadd.f32 %v442_v40, %v8691_v34  ;;  %v9085_v25 = vld [vmem:[%s12885_s0 + $0x1b0] sm:$0xff] }
  0xf5   :  { %13249 = vst [vmem:[#allocation86_spill] sm:$0xff] %v9035_v9  ;;  %13251 = vst [vmem:[#allocation88_spill] sm:$0xff] %v9041_v36  ;;  %v229_v9 = vmul.f32 %v8923_v41, %v8473_v21  ;;  %v883_v19 = vmul.f32 %v8943_v60, %v8473_v21  ;;  %v477_v34 = vmul.f32 %v8672_v38, %v8526_v44  ;;  %v9097_v46 = vpop.permute.xlu0 %66  ;;  %8034 = vset.pattern.permute.xlu1 %v13197_v18 }
  0xf6   :  { %13252 = vst [vmem:[#allocation89_spill] sm:$0xff] %v9049_v14  ;;  %13253 = vst [vmem:[#allocation90_spill] sm:$0xff] %v9059_v13  ;;  %v9071_v14 = vadd.f32 %v228_v30, %v8700_v59  ;;  %v9074_v13 = vadd.f32 %v882_v11, %v8703_v57  ;;  %v444_v59 = vmul.f32 %v8973_v50, %v8471_v20  ;;  %4539 = vperm.xlu0 %8063, %v9085_v25  }
  0xf7   :  { %13254 = vst [vmem:[#allocation91_spill] sm:$0xff] %v9064_v62  ;;  %13256 = vst [vmem:[#allocation93_spill] sm:$0xff] %v9085_v25  ;;  %v9091_v57 = vmul.f32 %v8923_v41, %v8471_v20  ;;  %v9093_v11 = vpack.c.bf16 %v972_v52, %v971_v7  ;;  %v459_v40 = vadd.f32 %v443_v22, %v8713_v49  ;;  %4392 = vperm.xlu1 %8034, %v8882_v2  }
  0xf8   :  { %13255 = vst [vmem:[#allocation92_spill] sm:$0xff] %v9074_v13  ;;  %13259 = vst [vmem:[#allocation96_spill] sm:$0xff] %v9097_v46  ;;  %v9102_v30 = vmul.f32 %v8589_v27, %v8426_v5  ;;  %v9106_v13 = vmul.f32 %v8943_v60, %v8471_v20  ;;  %v420_v62 = vadd.f32 %v8612_v51, %v397_v3  ;;  %v9110_v7 = vpop.permute.xlu1 %1518  ;;  %v9155_v5 = vld [vmem:[%s12885_s0 + $0x108] sm:$0xff] }
  0xf9   :  { %13257 = vst [vmem:[#allocation94_spill] sm:$0xff] %v9091_v57  ;;  %13258 = vst [vmem:[#allocation95_spill] sm:$0xff] %v9093_v11  ;;  %v493_v57 = vadd.f32 %v477_v34, %v456_v31  ;;  %v9113_v52 = vadd.f32 %v229_v9, %v8732_v42  ;;  %v9117_v49 = vmul.f32 %v8948_v28, %v8462_v17  ;;  %v9134_v17 = vld [vmem:[%s12885_s0 + $0x1c0] sm:$0xff] }
  0xfa   :  { %13260 = vst [vmem:[#allocation97_spill] sm:$0xff] %v9102_v30  ;;  %13261 = vst [vmem:[#allocation98_spill] sm:$0xff] %v9106_v13  ;;  %v402_v22 = vmul.f32 %v8564_v55, %v9097_v46  ;;  %v479_v3 = vmul.f32 %v8672_v38, %v8540_v47  ;;  %v9125_v31 = vadd.f32 %v883_v19, %v8735_v35  ;;  %v973_v35 = vld [vmem:[%s12886_s3 + $0x140] sm:$0xff]  ;;  %4547 = vperm.xlu0 %8063, %v9134_v17  }
  0xfb   :  { %13262 = vst [vmem:[#allocation99_spill] sm:$0xff] %v9110_v7  ;;  %13263 = vst [vmem:[#allocation100_spill] sm:$0xff] %v9113_v52  ;;  %v9128_v34 = vadd.f32 %v1193_v37, %v8706_v56  ;;  %v509_v42 = vmax.f32 %v493_v57, 0.0  ;;  %v445_v9 = vmul.f32 %v8973_v50, %v8482_v24  ;;  %v974_v56 = vld [vmem:[%s12886_s3 + $0x148] sm:$0xff]  ;;  %v1194_v19 = vmul.f32 %v8948_v28, %v8473_v21  ;;  %v13270_v30 = vld [vmem:[#allocation26_spill] sm:$0xff] }
  0xfc   :  { %13264 = vst [vmem:[#allocation101_spill] sm:$0xff] %v9117_v49  ;;  %13265 = vst [vmem:[#allocation102_spill] sm:$0xff] %v9125_v31  ;;  %v231_v49 = vmul.f32 %v8923_v41, %v8482_v24  ;;  %v423_v37 = vadd.f32 %v8612_v51, %v400_v16  ;;  %v425_v57 = vadd.f32 %v8612_v51, %v402_v22  ;;  %v9165_v22 = vpop.permute.xlu1 %1528  ;;  %2945 = vperm.xlu1 %8034, %v9155_v5  }
  0xfd   :  { %13266 = vst [vmem:[#allocation103_spill] sm:$0xff] %v9128_v34  ;;  %13267 = vst [vmem:[#allocation104_spill] sm:$0xff] %v9134_v17  ;;  %v9150_v34 = vpop.permute.xlu0 %76  ;;  %v446_v31 = vmul.f32 %v8973_v50, %v8480_v23  ;;  %v9161_v13 = vmul.f32 %v8948_v28, %v8471_v20  ;;  %6437 = vmatprep.mubr.f32.mxu0 %v509_v42  ;;  %v457_v21 = vadd.f32 %v441_v63, %v420_v62  ;;  %v13274_v63 = vld [vmem:[#allocation37_spill] sm:$0xff]  ;;  %v13280_v17 = vld [vmem:[#allocation43_spill] sm:$0xff] }
  0xfe   :  { %v404_v16 = vmul.f32 %v8564_v55, %v9150_v34  ;;  %13269 = vst [vmem:[#allocation106_spill] sm:$0xff] %v9165_v22  ;;  %v480_v11 = vmul.f32 %v8672_v38, %v13270_v30  ;;  %v9171_v7 = vmul.f32 %v8923_v41, %v8480_v23  ;;  %v495_v25 = vadd.f32 %v479_v3, %v458_v48  ;;  %v13276_v48 = vld [vmem:[#allocation45_spill] sm:$0xff] }
  0xff   :  { %13268 = vst [vmem:[#allocation105_spill] sm:$0xff] %v9161_v13  ;;  %v9174_v52 = vpack.c.bf16 %v974_v56, %v973_v35  ;;  %v9178_v62 = vmul.f32 %v8589_v27, %v8434_v8  ;;  %v885_v20 = vmul.f32 %v8943_v60, %v8482_v24  ;;  %v494_v42 = vadd.f32 %v13274_v63, %v457_v21  ;;  %v9187_v13 = vld [vmem:[%s12885_s0 + $0x1d0] sm:$0xff] }
 0x100   :  { %13271 = vst [vmem:[#allocation26_spill] sm:$0xff] %v9171_v7  ;;  %13275 = vst [vmem:[#allocation37_spill] sm:$0xff] %v9187_v13  ;;  %v461_v3 = vadd.f32 %v445_v9, %v13276_v48  ;;  %v9191_v35 = vadd.f32 %v231_v49, %v8779_v53  ;;  %v9195_v56 = vmul.f32 %v8943_v60, %v8480_v23  ;;  %v13282_v53 = vld [vmem:[#allocation28_spill] sm:$0xff]  ;;  %v511_v48 = vmax.f32 %v495_v25, 0.0  ;;  %v9221_v25 = vld [vmem:[%s12885_s0 + $0x1e0] sm:$0xff] }
 0x101   :  { %13272 = vst [vmem:[#allocation107_spill] sm:$0xff] %v9174_v52  ;;  %13273 = vst [vmem:[#allocation108_spill] sm:$0xff] %v9178_v62  ;;  %v427_v8 = vadd.f32 %v8612_v51, %v404_v16  ;;  %v9198_v22 = vpop.permute.xlu0 %86  ;;  %v460_v21 = vadd.f32 %v444_v59, %v423_v37  ;;  %v462_v63 = vadd.f32 %v446_v31, %v425_v57  ;;  %v510_v52 = vmax.f32 %v494_v42, 0.0  ;;  %v9209_v16 = vpop.permute.xlu1 %1611  ;;  %v13285_v59 = vld [vmem:[#allocation13_spill] sm:$0xff]  ;;  %v13290_v57 = vld [vmem:[#allocation2_spill] sm:$0xff] }
 0x102   :  { %13277 = vst [vmem:[#allocation45_spill] sm:$0xff] %v9191_v35  ;;  %13278 = vst [vmem:[#allocation109_spill] sm:$0xff] %v9195_v56  ;;  %v9201_v62 = vadd.f32 %v1194_v19, %v13280_v17  ;;  %v496_v7 = vadd.f32 %v480_v11, %v459_v40  ;;  %v406_v9 = vmul.f32 %v8564_v55, %v9198_v22  ;;  %v13283_v35 = vld [vmem:[#allocation41_spill] sm:$0xff]  ;;  %4555 = vperm.xlu0 %8063, %v9187_v13   ;;  %v13287_v11 = vld [vmem:[#allocation14_spill] sm:$0xff] }
 0x103   :  { %13279 = vst [vmem:[#allocation110_spill] sm:$0xff] %v9198_v22  ;;  %v482_v49 = vmul.f32 %v8672_v38, %v13282_v53  ;;  %v497_v56 = vadd.f32 %v13283_v35, %v460_v21  ;;  %13284 = vst [vmem:[#allocation41_spill] sm:$0xff] %v9209_v16  ;;  %v448_v31 = vmul.f32 %v8973_v50, %v13285_v59  ;;  %6438 = vmatmul.mubr.f32.vlgmr.msra.gmra.mrb[0].mxu0 %v510_v52  ;;  %v975_v19 = vld [vmem:[%s12886_s3 + $0x150] sm:$0xff]  ;;  %v13293_v53 = vld [vmem:[#allocation35_spill] sm:$0xff] }
 0x104   :  { %13281 = vst [vmem:[#allocation43_spill] sm:$0xff] %v9201_v62  ;;  %v9215_v17 = vmul.f32 %v8948_v28, %v8482_v24  ;;  %8035 = vset.pattern.permute.xlu1 %v13226_v4  ;;  %13286 = vst [vmem:[#allocation13_spill] sm:$0xff] %v9221_v25  ;;  %v447_v40 = vmul.f32 %v8973_v50, %v13287_v11  ;;  %v976_v24 = vld [vmem:[%s12886_s3 + $0x158] sm:$0xff]  ;;  %v9232_v52 = vadd.f32 %v885_v20, %v8794_v1  ;;  %v13292_v62 = vld [vmem:[#allocation46_spill] sm:$0xff] }
 0x105   :  { %v9236_v37 = vmul.f32 %v8948_v28, %v8480_v23  ;;  %6440 = vmatprep.mubr.f32.mxu0 %v511_v48  ;;  %7336 = vmatpush3.bf16.msra.mxu0 %v13290_v57  ;;  %v429_v42 = vadd.f32 %v8612_v51, %v406_v9  ;;  %v513_v35 = vmax.f32 %v497_v56, 0.0  ;;  %v9240_v21 = vpop.permute.xlu0 %96  ;;  %v499_v13 = vadd.f32 %v13292_v62, %v462_v63  ;;  %v13294_v1 = vld [vmem:[#allocation11_spill] sm:$0xff]  ;;  %v13295_v48 = vld [vmem:[#allocation30_spill] sm:$0xff]  ;;  %v9263_v63 = vpop.permute.xlu1 %1712 }
 0x106   :  { %13288 = vst [vmem:[#allocation14_spill] sm:$0xff] %v9232_v52  ;;  %13291 = vst [vmem:[#allocation2_spill] sm:$0xff] %v9240_v21  ;;  %v464_v4 = vadd.f32 %v448_v31, %v427_v8  ;;  %v512_v22 = vmax.f32 %v496_v7, 0.0  ;;  %7338 = vmatprep.subr.bf16.mxu0 %v13293_v53  ;;  %3063 = vperm.xlu1 %8035, %v13294_v1   ;;  %v498_v20 = vadd.f32 %v482_v49, %v461_v3  ;;  %v13296_v56 = vld [vmem:[#allocation15_spill] sm:$0xff]  ;;  %v4387_v49 = vld [vmem:[%s12885_s0 + $0x1f0] sm:$0xff] }
 0x107   :  { %13289 = vst [vmem:[#allocation111_spill] sm:$0xff] %v9236_v37  ;;  %v408_v23 = vmul.f32 %v8564_v55, %v9240_v21  ;;  %v484_v57 = vmul.f32 %v8672_v38, %v13295_v48  ;;  %4563 = vperm.xlu0 %8063, %v9221_v25   ;;  %v450_v9 = vmul.f32 %v8973_v50, %v13296_v56  ;;  %13299 = vst [vmem:[#allocation11_spill] sm:$0xff] %v9263_v63  ;;  %v13300_v31 = vld [vmem:[#allocation16_spill] sm:$0xff]  ;;  %v13301_v52 = vld [vmem:[#allocation18_spill] sm:$0xff] }
 0x108   :  { %v9254_v8 = vmul.f32 %v8923_v41, %v13287_v11  ;;  %v9258_v7 = vmul.f32 %v8923_v41, %v13285_v59  ;;  %v9260_v62 = vpack.c.bf16 %v976_v24, %v975_v19  ;;  %6441 = vmatmul.mubr.f32.gmra.mrb[2].mxu0 %v512_v22  ;;  %v463_v3 = vadd.f32 %v447_v40, %v8803_v32  ;;  %v13304_v19 = vld [vmem:[#allocation49_spill] sm:$0xff]  ;;  %v13305_v48 = vld [vmem:[#allocation38_spill] sm:$0xff] }
 0x109   :  { %v449_v37 = vmul.f32 %v8973_v50, %v13300_v31  ;;  %v451_v25 = vmul.f32 %v8973_v50, %v13301_v52  ;;  %6443 = vmatprep.mubr.f32.mxu0 %v513_v35  ;;  %7340 = vmatpush3.bf16.msra.mxu0 %v13293_v53  ;;  %v431_v32 = vadd.f32 %v8612_v51, %v408_v23  ;;  %v515_v22 = vmax.f32 %v499_v13, 0.0  ;;  %v9278_v40 = vpop.permute.xlu0 %106  ;;  %v13306_v56 = vld [vmem:[#allocation34_spill] sm:$0xff]  ;;  %v13307_v35 = vld [vmem:[#allocation17_spill] sm:$0xff] }
 0x10a   :  { %13297 = vst [vmem:[#allocation46_spill] sm:$0xff] %v9258_v7  ;;  %13298 = vst [vmem:[#allocation35_spill] sm:$0xff] %v9260_v62  ;;  %v9274_v7 = vmul.f32 %v8589_v27, %v8439_v10  ;;  %v501_v24 = vadd.f32 %v13304_v19, %v464_v4  ;;  %v466_v62 = vadd.f32 %v450_v9, %v429_v42  ;;  %v514_v21 = vmax.f32 %v498_v20, 0.0  ;;  %v13308_v42 = vld [vmem:[#allocation20_spill] sm:$0xff]  ;;  %v9300_v9 = vpop.permute.xlu1 %1716 }
 0x10b   :  { %13303 = vst [vmem:[#allocation112_spill] sm:$0xff] %v9278_v40  ;;  %7342 = vmatprep.subr.bf16.mxu0 %v13305_v48  ;;  %3067 = vperm.xlu1 %8035, %v9155_v5   ;;  %v500_v52 = vadd.f32 %v484_v57, %v463_v3  ;;  %v486_v10 = vmul.f32 %v8672_v38, %v13306_v56  ;;  %13310 = vst [vmem:[#allocation38_spill] sm:$0xff] %v9300_v9  ;;  %v13311_v19 = vld [vmem:[#allocation40_spill] sm:$0xff] }
 0x10c   :  { %13302 = vst [vmem:[#allocation16_spill] sm:$0xff] %v9274_v7  ;;  %v9287_v53 = vmul.f32 %v8943_v60, %v13287_v11  ;;  %v410_v13 = vmul.f32 %v8564_v55, %v9278_v40  ;;  %4571 = vperm.xlu0 %8063, %v4387_v49   ;;  %v452_v4 = vmul.f32 %v8973_v50, %v13307_v35  ;;  %v13312_v7 = vld [vmem:[#allocation19_spill] sm:$0xff] }
 0x10d   :  { %v453_v20 = vmul.f32 %v8973_v50, %v13308_v42  ;;  %v9297_v23 = vmul.f32 %v8943_v60, %v13285_v59  ;;  %6444 = vmatmul.mubr.f32.gmra.mrb[4].mxu0 %v514_v21  ;;  %v465_v57 = vadd.f32 %v449_v37, %v8819_v58  ;;  %v467_v3 = vadd.f32 %v451_v25, %v8885_v26  ;;  %v9308_v40 = vpop.permute.xlu0 %1488  ;;  %v13314_v58 = vld [vmem:[#allocation21_spill] sm:$0xff] }
 0x10e   :  { %v488_v49 = vmul.f32 %v8672_v38, %v13311_v19  ;;  %v454_v35 = vmul.f32 %v8973_v50, %v13312_v7  ;;  %6446 = vmatprep.mubr.f32.mxu0 %v515_v22  ;;  %7344 = vmatpush3.bf16.msra.mxu0 %v13305_v48  ;;  %v517_v42 = vmax.f32 %v501_v24, 0.0  ;;  %13313 = vst [vmem:[#allocation34_spill] sm:$0xff] %v9308_v40  ;;  %v516_v60 = vmax.f32 %v500_v52, 0.0  ;;  %v13315_v7 = vld [vmem:[#allocation42_spill] sm:$0xff]  ;;  %v13316_v22 = vld [vmem:[#allocation12_spill] sm:$0xff] }
 0x10f   :  { %13309 = vst [vmem:[#allocation49_spill] sm:$0xff] %v9297_v23  ;;  %v503_v21 = vadd.f32 %v8823_v61, %v466_v62  ;;  %v468_v23 = vadd.f32 %v452_v4, %v431_v32  ;;  %v455_v37 = vmul.f32 %v8973_v50, %v13314_v58  ;;  %v118_v26 = vmul.f32 %v8571_v6, %v8897_v33  ;;  %v13317_v4 = vld [vmem:[#allocation47_spill] sm:$0xff] }
 0x110   :  { %v1849_v25 = vmul.f32 %v8564_v55, %v8909_v29  ;;  %7346 = vmatprep.subr.bf16.mxu0 %v13315_v7  ;;  %4519 = vperm.xlu1 %8035, %v13316_v22   ;;  %v502_v48 = vadd.f32 %v486_v10, %v465_v57  ;;  %v433_v24 = vadd.f32 %v8612_v51, %v410_v13 }
 0x111   :  { %v1848_v61 = vmul.f32 %v8564_v55, %v9308_v40  ;;  %8065 = vset.pattern.permute.xlu0 %v13204_v54  ;;  %v469_v62 = vadd.f32 %v453_v20, %v8927_v39  ;;  %v9326_v32 = vmul.f32 %v8589_v27, %v8526_v44  ;;  %v119_v52 = vmul.f32 %v8571_v6, %v8967_v15  ;;  %v9334_v22 = vpop.permute.xlu0 %1503  ;;  %v13319_v39 = vld [vmem:[#allocation62_spill] sm:$0xff]  ;;  %v9337_v40 = vpop.permute.xlu1 %1623  ;;  %v13321_v44 = vld [vmem:[#allocation23_spill] sm:$0xff] }
 0x112   :  { %6447 = vmatmul.mubr.f32.gmra.mrb[6].mxu0 %v516_v60  ;;  %4616 = vperm.xlu0 %8065, %v8882_v2   ;;  %v504_v10 = vadd.f32 %v488_v49, %v467_v3  ;;  %v490_v13 = vmul.f32 %v8672_v38, %v13317_v4  ;;  %v519_v57 = vmax.f32 %v503_v21, 0.0  ;;  %13318 = vst [vmem:[#allocation40_spill] sm:$0xff] %v9334_v22  ;;  %13320 = vst [vmem:[#allocation42_spill] sm:$0xff] %v9337_v40  ;;  %v13322_v49 = vld [vmem:[#allocation48_spill] sm:$0xff] }
 0x113   :  { %6449 = vmatprep.mubr.f32.mxu0 %v517_v42  ;;  %7348 = vmatpush3.bf16.msra.mxu0 %v13315_v7  ;;  %v505_v20 = vadd.f32 %v13319_v39, %v468_v23  ;;  %v471_v29 = vadd.f32 %v455_v37, %v8976_v12  ;;  %v1893_v60 = vmul.f32 %v8973_v50, %v13321_v44  ;;  %v518_v3 = vmax.f32 %v502_v48, 0.0  ;;  %v13323_v42 = vld [vmem:[#allocation25_spill] sm:$0xff]  ;;  %v13324_v23 = vld [vmem:[#allocation82_spill] sm:$0xff] }
 0x114   :  { %v141_v2 = vadd.f32 %v8647_v43, %v118_v26  ;;  %7350 = vmatprep.subr.bf16.mxu0 %v13322_v49  ;;  %8036 = vset.pattern.permute.xlu1 %v13204_v54  ;;  %v1872_v7 = vadd.f32 %v8612_v51, %v1849_v25  ;;  %v1894_v21 = vmul.f32 %v8973_v50, %v13323_v42  ;;  %v520_v44 = vmax.f32 %v504_v10, 0.0 }
 0x115   :  { %v1850_v39 = vmul.f32 %v8564_v55, %v13324_v23  ;;  %3164 = vperm.xlu1 %8036, %v13294_v1   ;;  %v470_v12 = vadd.f32 %v454_v35, %v433_v24  ;;  %v1871_v37 = vadd.f32 %v8612_v51, %v1848_v61  ;;  %v1892_v26 = vmul.f32 %v8973_v50, %v9209_v16  ;;  %v13325_v23 = vld [vmem:[#allocation69_spill] sm:$0xff]  ;;  %v9364_v10 = vpop.permute.xlu1 %1724  ;;  %v13363_v16 = vld [vmem:[#allocation46_spill] sm:$0xff] }
 0x116   :  { %v142_v48 = vadd.f32 %v8647_v43, %v119_v52  ;;  %6450 = vmatmul.mubr.f32.gmra.mrb[8].mxu0 %v518_v3  ;;  %v1851_v25 = vmul.f32 %v8564_v55, %v9334_v22  ;;  %v506_v58 = vadd.f32 %v490_v13, %v469_v62  ;;  %v521_v42 = vmax.f32 %v505_v20, 0.0  ;;  %v13326_v52 = vld [vmem:[#allocation51_spill] sm:$0xff]  ;;  %13327 = vst [vmem:[#allocation12_spill] sm:$0xff] %v9364_v10  ;;  %v13328_v3 = vld [vmem:[#allocation56_spill] sm:$0xff] }
 0x117   :  { %6452 = vmatprep.mubr.f32.mxu0 %v519_v57  ;;  %7352 = vmatpush3.bf16.msra.mxu0 %v13322_v49  ;;  %v507_v1 = vadd.f32 %v13325_v23, %v470_v12  ;;  %v1908_v35 = vadd.f32 %v1892_v26, %v1871_v37  ;;  %v1929_v24 = vmul.f32 %v8672_v38, %v9263_v63  ;;  %v13329_v23 = vld [vmem:[#allocation73_spill] sm:$0xff] }
 0x118   :  { %v122_v61 = vmul.f32 %v8571_v6, %v9041_v36  ;;  %7354 = vmatprep.subr.bf16.mxu0 %v13326_v52  ;;  %v492_v62 = vmul.f32 %v8672_v38, %v13328_v3  ;;  %v242_v13 = vadd.f32 %v9047_v45, %v141_v2  ;;  %v1909_v57 = vadd.f32 %v1893_v60, %v1872_v7  ;;  %v13330_v37 = vld [vmem:[#allocation81_spill] sm:$0xff] }
 0x119   :  { %8037 = vset.pattern.permute.xlu1 %v13197_v18  ;;  %v1945_v20 = vadd.f32 %v1929_v24, %v1908_v35  ;;  %v1930_v49 = vmul.f32 %v8672_v38, %v9300_v9  ;;  %4624 = vperm.xlu0 %8065, %v13329_v23   ;;  %v1873_v12 = vadd.f32 %v8612_v51, %v1850_v39  ;;  %v522_v22 = vmax.f32 %v506_v58, 0.0  ;;  %v9383_v39 = vld [vmem:[%s12885_s0 + $0x118] sm:$0xff] }
 0x11a   :  { %v243_v26 = vadd.f32 %v13330_v37, %v142_v48  ;;  %6453 = vmatmul.mubr.f32.gmra.mrb[10].mxu0 %v520_v44  ;;  %v1874_v63 = vadd.f32 %v8612_v51, %v1851_v25  ;;  %4402 = vperm.xlu1 %8037, %v13329_v23   ;;  %v329_v45 = vmul.f32 %v8589_v27, %v8540_v47  ;;  %v523_v60 = vmax.f32 %v507_v1, 0.0  ;;  %v13331_v25 = vld [vmem:[#allocation57_spill] sm:$0xff]  ;;  %v13332_v1 = vld [vmem:[#allocation74_spill] sm:$0xff] }
 0x11b   :  { %6455 = vmatprep.mubr.f32.mxu0 %v521_v42  ;;  %7356 = vmatpush3.bf16.msra.mxu0 %v13326_v52  ;;  %v1961_v2 = vmax.f32 %v1945_v20, 0.0  ;;  %v1946_v7 = vadd.f32 %v1930_v49, %v1909_v57  ;;  %v1910_v44 = vadd.f32 %v1894_v21, %v1873_v12  ;;  %v145_v48 = vadd.f32 %v8647_v43, %v122_v61  ;;  %v9391_v52 = vpop.permute.xlu1 %1627  ;;  %v13337_v49 = vld [vmem:[#allocation32_spill] sm:$0xff]  ;;  %v9410_v12 = vpop.permute.xlu0 %1513 }
 0x11c   :  { %v124_v58 = vmul.f32 %v8571_v6, %v9097_v46  ;;  %7358 = vmatprep.subr.bf16.mxu0 %v13331_v25  ;;  %v508_v35 = vadd.f32 %v492_v62, %v471_v29  ;;  %v343_v42 = vadd.f32 %v9326_v32, %v242_v13  ;;  %13333 = vst [vmem:[#allocation47_spill] sm:$0xff] %v9391_v52  ;;  %v13334_v32 = vld [vmem:[#allocation52_spill] sm:$0xff]  ;;  %v13335_v13 = vld [vmem:[#allocation50_spill] sm:$0xff]  ;;  %13338 = vst [vmem:[#allocation48_spill] sm:$0xff] %v9410_v12 }
 0x11d   :  { %6661 = vmatprep.mubr.f32.mxu1 %v1961_v2  ;;  %v1947_v24 = vadd.f32 %v13332_v1, %v1910_v44  ;;  %v1895_v57 = vmul.f32 %v8973_v50, %v9337_v40  ;;  %v1932_v21 = vmul.f32 %v8672_v38, %v9364_v10  ;;  %4632 = vperm.xlu0 %8065, %v9027_v0   ;;  %v1962_v61 = vmax.f32 %v1946_v7, 0.0  ;;  %v13339_v2 = vld [vmem:[#allocation64_spill] sm:$0xff]  ;;  %v13341_v7 = vld [vmem:[#allocation91_spill] sm:$0xff]  ;;  %v13359_v40 = vld [vmem:[#allocation85_spill] sm:$0xff] }
 0x11e   :  { %6456 = vmatmul.mubr.f32.gmra.mrb[12].mxu0 %v522_v22  ;;  %2955 = vperm.xlu1 %8037, %v9383_v39   ;;  %v345_v29 = vadd.f32 %v329_v45, %v9071_v14  ;;  %v9402_v62 = vadd.f32 %v9254_v8, %v13334_v32  ;;  %v9406_v20 = vadd.f32 %v9215_v17, %v13335_v13  ;;  %v524_v17 = vmax.f32 %v508_v35, 0.0  ;;  %v13347_v32 = vld [vmem:[#allocation28_spill] sm:$0xff] }
 0x11f   :  { %v344_v23 = vadd.f32 %v13337_v49, %v243_v26  ;;  %6458 = vmatprep.mubr.f32.mxu0 %v523_v60  ;;  %7360 = vmatpush3.bf16.msra.mxu0 %v13331_v25  ;;  %v1963_v22 = vmax.f32 %v1947_v24, 0.0  ;;  %v1911_v37 = vadd.f32 %v1895_v57, %v1874_v63  ;;  %v330_v14 = vmul.f32 %v8589_v27, %v13270_v30  ;;  %v13340_v26 = vld [vmem:[#allocation94_spill] sm:$0xff]  ;;  %v9424_v24 = vpop.permute.xlu1 %1728  ;;  %v13343_v57 = vld [vmem:[#allocation53_spill] sm:$0xff]  ;;  %v13348_v49 = vld [vmem:[#allocation27_spill] sm:$0xff] }
 0x120   :  { %13336 = vst [vmem:[#allocation62_spill] sm:$0xff] %v9406_v20  ;;  %v126_v8 = vmul.f32 %v8571_v6, %v9150_v34  ;;  %v1853_v45 = vmul.f32 %v8564_v55, %v9410_v12  ;;  %7362 = vmatprep.subr.bf16.mxu0 %v13339_v2  ;;  %6662 = vmatmul.mubr.f32.vlgmr.msra.gmra.mrb[0].mxu1 %v1962_v61  ;;  %v359_v25 = vmax.f32 %v343_v42, 0.0  ;;  %13342 = vst [vmem:[#allocation69_spill] sm:$0xff] %v9424_v24  ;;  %v13346_v42 = vld [vmem:[#allocation100_spill] sm:$0xff] }
 0x121   :  { %v246_v60 = vadd.f32 %v13340_v26, %v145_v48  ;;  %v1852_v44 = vmul.f32 %v8564_v55, %v13341_v7  ;;  %v147_v63 = vadd.f32 %v8647_v43, %v124_v58  ;;  %6664 = vmatprep.mubr.f32.mxu1 %v1963_v22  ;;  %v1948_v1 = vadd.f32 %v1932_v21, %v1911_v37  ;;  %v13362_v7 = vld [vmem:[#allocation70_spill] sm:$0xff] }
 0x122   :  { %6459 = vmatmul.mubr.f32.gmra.mrb[14].mxu0 %v524_v17  ;;  %8038 = vset.pattern.permute.xlu1 %v13204_v54  ;;  %v9428_v35 = vadd.f32 %v9287_v53, %v13343_v57  ;;  %v9432_v48 = vmul.f32 %v8948_v28, %v13287_v11  ;;  %v9436_v61 = vmul.f32 %v8948_v28, %v13285_v59  ;;  %v360_v37 = vmax.f32 %v344_v23, 0.0  ;;  %v13349_v17 = vld [vmem:[#allocation75_spill] sm:$0xff] }
 0x123   :  { %7364 = vmatpush3.bf16.msra.mxu0 %v13339_v2  ;;  %6493 = vmatprep.mubr.f32.mxu0 %v359_v25  ;;  %v1964_v58 = vmax.f32 %v1948_v1, 0.0  ;;  %v346_v21 = vadd.f32 %v330_v14, %v13346_v42  ;;  %v332_v13 = vmul.f32 %v8589_v27, %v13347_v32  ;;  %v1897_v53 = vmul.f32 %v8973_v50, %v13348_v49  ;;  %v13350_v59 = vld [vmem:[#allocation63_spill] sm:$0xff]  ;;  %v13351_v14 = vld [vmem:[#allocation26_spill] sm:$0xff]  ;;  %v13352_v42 = vld [vmem:[#allocation93_spill] sm:$0xff] }
 0x124   :  { %13344 = vst [vmem:[#allocation51_spill] sm:$0xff] %v9428_v35  ;;  %13345 = vst [vmem:[#allocation56_spill] sm:$0xff] %v9436_v61  ;;  %v149_v22 = vadd.f32 %v8647_v43, %v126_v8  ;;  %v1876_v11 = vadd.f32 %v8612_v51, %v1853_v45  ;;  %7366 = vmatprep.subr.bf16.mxu0 %v13349_v17  ;;  %3168 = vperm.xlu1 %8038, %v9155_v5   ;;  %v361_v26 = vmax.f32 %v345_v29, 0.0  ;;  %v13353_v8 = vld [vmem:[#allocation110_spill] sm:$0xff]  ;;  %v9456_v45 = vpop.permute.xlu1 %1732  ;;  %v978_v49 = vld [vmem:[%s12886_s3 + $0x168] sm:$0xff] }
 0x125   :  { %v347_v2 = vadd.f32 %v13350_v59, %v246_v60  ;;  %6665 = vmatmul.mubr.f32.gmra.mrb[2].mxu1 %v1964_v58  ;;  %v248_v25 = vadd.f32 %v13351_v14, %v147_v63  ;;  %v1875_v1 = vadd.f32 %v8612_v51, %v1852_v44  ;;  %v1896_v57 = vmul.f32 %v8973_v50, %v9391_v52  ;;  %v13355_v60 = vld [vmem:[#allocation15_spill] sm:$0xff]  ;;  %v13358_v52 = vld [vmem:[#allocation2_spill] sm:$0xff]  ;;  %v13364_v35 = vld [vmem:[#allocation60_spill] sm:$0xff] }
 0x126   :  { %4640 = vperm.xlu0 %8065, %v13352_v42   ;;  %v128_v23 = vmul.f32 %v8571_v6, %v13353_v8  ;;  %6494 = vmatmul.mubr.f32.vlgmr.msra.gmra.mrb[0].mxu0 %v360_v37  ;;  %13354 = vst [vmem:[#allocation73_spill] sm:$0xff] %v9456_v45  ;;  %v1933_v5 = vmul.f32 %v8672_v38, %v9424_v24  ;;  %v13356_v63 = vld [vmem:[#allocation99_spill] sm:$0xff]  ;;  %v362_v59 = vmax.f32 %v346_v21, 0.0  ;;  %v13357_v37 = vld [vmem:[#allocation30_spill] sm:$0xff] }
 0x127   :  { %v235_v29 = vmul.f32 %v8923_v41, %v13300_v31  ;;  %v236_v44 = vmul.f32 %v8923_v41, %v13355_v60  ;;  %v1854_v58 = vmul.f32 %v8564_v55, %v13356_v63  ;;  %6496 = vmatprep.mubr.f32.mxu0 %v361_v26  ;;  %7368 = vmatpush3.bf16.msra.mxu0 %v13349_v17  ;;  %v977_v24 = vld [vmem:[%s12886_s3 + $0x160] sm:$0xff]  ;;  %v363_v26 = vmax.f32 %v347_v2, 0.0  ;;  %v8067_v21 = vld [vmem:[%s12885_s0 + $0x188] sm:$0xff]  ;;  %v13360_v17 = vld [vmem:[#allocation45_spill] sm:$0xff] }
 0x128   :  { %v1912_v14 = vadd.f32 %v1896_v57, %v1875_v1  ;;  %v334_v42 = vmul.f32 %v8589_v27, %v13357_v37  ;;  %v130_v10 = vmul.f32 %v8571_v6, %v13358_v52  ;;  %7370 = vmatprep.subr.bf16.mxu0 %v13359_v40  ;;  %4620 = vperm.xlu1 %8038, %v8067_v21   ;;  %v13361_v57 = vld [vmem:[#allocation29_spill] sm:$0xff]  ;;  %v13365_v21 = vld [vmem:[#allocation18_spill] sm:$0xff] }
 0x129   :  { %v348_v1 = vadd.f32 %v332_v13, %v13360_v17  ;;  %v1898_v63 = vmul.f32 %v8973_v50, %v13361_v57  ;;  %v349_v12 = vadd.f32 %v13362_v7, %v248_v25  ;;  %v250_v61 = vadd.f32 %v13363_v16, %v149_v22  ;;  %7464 = vmatpush3.bf16.msra.mxu1 %v13364_v35  ;;  %v9494_v57 = vpop.permute.xlu0 %1523  ;;  %v9498_v35 = vpop.permute.xlu1 %1639 }
 0x12a   :  { %v1949_v9 = vadd.f32 %v1933_v5, %v1912_v14  ;;  %v1913_v20 = vadd.f32 %v1897_v53, %v1876_v11  ;;  %v151_v2 = vadd.f32 %v8647_v43, %v128_v23  ;;  %6497 = vmatmul.mubr.f32.gmra.mrb[2].mxu0 %v362_v59  ;;  %v1934_v52 = vmul.f32 %v8672_v38, %v9456_v45  ;;  %v9519_v5 = vld [vmem:[%s12885_s0 + $0x110] sm:$0xff]  ;;  %v13374_v45 = vld [vmem:[#allocation87_spill] sm:$0xff] }
 0x12b   :  { %v237_v13 = vmul.f32 %v8923_v41, %v13365_v21  ;;  %v9492_v17 = vpack.c.bf16 %v978_v49, %v977_v24  ;;  %13366 = vst [vmem:[#allocation81_spill] sm:$0xff] %v9494_v57  ;;  %6499 = vmatprep.mubr.f32.mxu0 %v363_v26  ;;  %7372 = vmatpush3.bf16.msra.mxu0 %v13359_v40  ;;  %13367 = vst [vmem:[#allocation57_spill] sm:$0xff] %v9498_v35  ;;  %v1829_v24 = vld [vmem:[%s12886_s3 + $0x10] sm:$0xff]  ;;  %v1830_v49 = vld [vmem:[%s12886_s3 + $0x18] sm:$0xff]  ;;  %v364_v11 = vmax.f32 %v348_v1, 0.0  ;;  %v13370_v25 = vmov 1  }
 0x12c   :  { %v1965_v16 = vmax.f32 %v1949_v9, 0.0  ;;  %v350_v7 = vadd.f32 %v334_v42, %v9402_v62  ;;  %v336_v53 = vmul.f32 %v8589_v27, %v13306_v56  ;;  %v1877_v38 = vadd.f32 %v8612_v51, %v1854_v58  ;;  %v13368_v9 = vld [vmem:[#allocation112_spill] sm:$0xff]  ;;  %v13369_v27 = vld [vmem:[#allocation89_spill] sm:$0xff]  ;;  %8039 = vset.pattern.permute.xlu1 %v13370_v25  ;;  %v13375_v25 = vld [vmem:[#allocation66_spill] sm:$0xff] }
 0x12d   :  { %v153_v40 = vadd.f32 %v8647_v43, %v130_v10  ;;  %v132_v62 = vmul.f32 %v8571_v6, %v13368_v9  ;;  %v1855_v22 = vmul.f32 %v8564_v55, %v9494_v57  ;;  %7374 = vmatprep.subr.bf16.mxu0 %v13369_v27  ;;  %v365_v23 = vmax.f32 %v349_v12, 0.0  ;;  %3071 = vperm.xlu1 %8039, %v9519_v5   ;;  %v13371_v10 = vld [vmem:[#allocation86_spill] sm:$0xff]  ;;  %v13373_v26 = vld [vmem:[#allocation17_spill] sm:$0xff] }
 0x12e   :  { %6667 = vmatprep.mubr.f32.mxu1 %v1965_v16  ;;  %v351_v58 = vadd.f32 %v13371_v10, %v250_v61  ;;  %v1950_v6 = vadd.f32 %v1934_v52, %v1913_v20  ;;  %v1914_v59 = vadd.f32 %v1898_v63, %v1877_v38  ;;  %6500 = vmatmul.mubr.f32.gmra.mrb[4].mxu0 %v364_v11  ;;  %v13372_v55 = vld [vmem:[#allocation58_spill] sm:$0xff]  ;;  %v9539_v61 = vld [vmem:[%s12887_s1 + $0x8] ss:$0 sm:$0xff]  ;;  %v13379_v11 = vld [vmem:[#allocation97_spill] sm:$0xff] }
 0x12f   :  { %v251_v14 = vadd.f32 %v235_v29, %v13372_v55  ;;  %v252_v42 = vadd.f32 %v236_v44, %v151_v2  ;;  %v238_v1 = vmul.f32 %v8923_v41, %v13373_v26  ;;  %v7465_v12 = vpack.c.bf16 %v1830_v49, %v1829_v24  ;;  %6502 = vmatprep.mubr.f32.mxu0 %v365_v23  ;;  %v9532_v52 = vld [vmem:[%s12887_s1 + $0x2] ss:$0 sm:$0xff]  ;;  %v9544_v2 = vpop.permute.xlu1 %1740  ;;  %v13380_v23 = vld [vmem:[#allocation20_spill] sm:$0xff]  ;;  %v13381_v10 = vld [vmem:[#allocation19_spill] sm:$0xff] }
 0x130   :  { %7376 = vmatpush3.bf16.msra.mxu0 %v13369_v27  ;;  %v1966_v16 = vmax.f32 %v1950_v6, 0.0  ;;  %v1951_v57 = vadd.f32 %v13374_v45, %v1914_v59  ;;  %v253_v9 = vadd.f32 %v237_v13, %v13375_v25  ;;  %13376 = vst [vmem:[#allocation74_spill] sm:$0xff] %v9532_v52  ;;  %v338_v20 = vmul.f32 %v9532_v52, %v13311_v19  ;;  %v13377_v45 = vld [vmem:[#allocation95_spill] sm:$0xff] }
 0x131   :  { %v836_v29 = vmul.f32 %v9539_v61, %v8897_v33  ;;  %v366_v44 = vmax.f32 %v350_v7, 0.0  ;;  %7378 = vmatprep.subr.bf16.mxu0 %v13377_v45  ;;  %v352_v63 = vadd.f32 %v336_v53, %v251_v14  ;;  %13378 = vst [vmem:[#allocation52_spill] sm:$0xff] %v9544_v2  ;;  %v254_v13 = vadd.f32 %v238_v1, %v153_v40  ;;  %v13382_v40 = vld [vmem:[#allocation72_spill] sm:$0xff]  ;;  %v13383_v55 = vld [vmem:[#allocation107_spill] sm:$0xff] }
 0x132   :  { %v155_v38 = vadd.f32 %v8647_v43, %v132_v62  ;;  %v1878_v24 = vadd.f32 %v8612_v51, %v1855_v22  ;;  %v367_v49 = vmax.f32 %v351_v58, 0.0  ;;  %6668 = vmatmul.mubr.f32.gmra.mrb[4].mxu1 %v1966_v16  ;;  %3075 = vperm.xlu1 %8039, %v9383_v39   ;;  %v353_v27 = vadd.f32 %v13379_v11, %v252_v42  ;;  %v9564_v62 = vld [vmem:[%s12888_s2 + $0x2] ss:$0 sm:$0xff]  ;;  %v9571_v42 = vpop.permute.xlu0 %1533  ;;  %v9576_v16 = vld [vmem:[%s12885_s0 + $0x198] sm:$0xff] }
 0x133   :  { %6503 = vmatmul.mubr.f32.gmra.mrb[6].mxu0 %v366_v44  ;;  %v1967_v25 = vmax.f32 %v1951_v57, 0.0  ;;  %v239_v7 = vmul.f32 %v8923_v41, %v13380_v23  ;;  %v240_v53 = vmul.f32 %v8923_v41, %v13381_v10  ;;  %v889_v6 = vmul.f32 %v13382_v40, %v13300_v31  ;;  %7466 = vmatprep.subr.bf16.mxu1 %v7465_v12  ;;  %v13388_v11 = vld [vmem:[#allocation21_spill] sm:$0xff] }
 0x134   :  { %6505 = vmatprep.mubr.f32.mxu0 %v367_v49  ;;  %7380 = vmatpush3.bf16.msra.mxu0 %v13377_v45  ;;  %v354_v43 = vadd.f32 %v338_v20, %v253_v9  ;;  %v340_v51 = vmul.f32 %v9532_v52, %v13317_v4  ;;  %v1899_v57 = vmul.f32 %v8973_v50, %v9498_v35  ;;  %v368_v59 = vmax.f32 %v352_v63, 0.0  ;;  %v13384_v9 = vld [vmem:[#allocation108_spill] sm:$0xff]  ;;  %v9579_v20 = vpop.permute.xlu1 %1643  ;;  %v9584_v45 = vld [vmem:[%s12887_s1 + $0x6] ss:$0 sm:$0xff] }
 0x135   :  { %v859_v22 = vadd.f32 %v9564_v62, %v836_v29  ;;  %v837_v58 = vmul.f32 %v9539_v61, %v8967_v15  ;;  %7382 = vmatprep.subr.bf16.mxu0 %v13383_v55  ;;  %6670 = vmatprep.mubr.f32.mxu1 %v1967_v25  ;;  %v355_v14 = vadd.f32 %v13384_v9, %v254_v13  ;;  %v369_v1 = vmax.f32 %v353_v27, 0.0  ;;  %v13387_v13 = vld [vmem:[#allocation71_spill] sm:$0xff] }
 0x136   :  { %13385 = vst [vmem:[#allocation50_spill] sm:$0xff] %v9571_v42  ;;  %4527 = vperm.xlu1 %8039, %v9576_v16   ;;  %13386 = vst [vmem:[#allocation32_spill] sm:$0xff] %v9579_v20  ;;  %v256_v29 = vadd.f32 %v240_v53, %v155_v38  ;;  %v1915_v44 = vadd.f32 %v1899_v57, %v1878_v24  ;;  %v1936_v63 = vmul.f32 %v9584_v45, %v9544_v2  ;;  %v9594_v38 = vld [vmem:[%s12887_s1 + $0xa] ss:$0 sm:$0xff]  ;;  %v980_v57 = vld [vmem:[%s12886_s3 + $0x178] sm:$0xff] }
 0x137   :  { %7468 = vmatpush3.bf16.msra.mxu1 %v7465_v12  ;;  %6506 = vmatmul.mubr.f32.gmra.mrb[8].mxu0 %v368_v59  ;;  %v255_v49 = vadd.f32 %v239_v7, %v13387_v13  ;;  %v241_v27 = vmul.f32 %v8923_v41, %v13388_v11  ;;  %v13389_v24 = vld [vmem:[#allocation3_spill] sm:$0xff]  ;;  %v9602_v53 = vmul.f32 %v13382_v40, %v13355_v60  ;;  %v370_v12 = vmax.f32 %v354_v43, 0.0  ;;  %v979_v41 = vld [vmem:[%s12886_s3 + $0x170] sm:$0xff] }
 0x138   :  { %v9598_v25 = vmul.f32 %v9594_v38, %v13389_v24  ;;  %6508 = vmatprep.mubr.f32.mxu0 %v369_v1  ;;  %7384 = vmatpush3.bf16.msra.mxu0 %v13383_v55  ;;  %v1952_v7 = vadd.f32 %v1936_v63, %v1915_v44  ;;  %v13390_v59 = vld [vmem:[#allocation59_spill] sm:$0xff]  ;;  %v860_v1 = vadd.f32 %v9564_v62, %v837_v58  ;;  %v371_v2 = vmax.f32 %v355_v14, 0.0  ;;  %v13395_v24 = vld [vmem:[#allocation90_spill] sm:$0xff] }
 0x139   :  { %v9612_v9 = vadd.f32 %v889_v6, %v13390_v59  ;;  %v13391_v13 = vld [vmem:[#allocation55_spill] sm:$0xff]  ;;  %v840_v43 = vmul.f32 %v9539_v61, %v9041_v36  ;;  %v356_v44 = vadd.f32 %v340_v51, %v255_v49  ;;  %v342_v63 = vmul.f32 %v9532_v52, %v13328_v3  ;;  %v13394_v6 = vld [vmem:[#allocation16_spill] sm:$0xff]  ;;  %v13397_v58 = vld [vmem:[#allocation78_spill] sm:$0xff]  ;;  %v9630_v51 = vpop.permute.xlu1 %1538 }
 0x13a   :  { %v9616_v40 = vadd.f32 %v9432_v48, %v13391_v13  ;;  %v13393_v55 = vld [vmem:[#allocation35_spill] sm:$0xff]  ;;  %8040 = vset.pattern.permute.xlu1 %v13204_v54  ;;  %v357_v59 = vadd.f32 %v13394_v6, %v256_v29  ;;  %v1968_v35 = vmax.f32 %v1952_v7, 0.0  ;;  %v896_v48 = vadd.f32 %v13395_v24, %v859_v22  ;;  %v13396_v13 = vld [vmem:[#allocation104_spill] sm:$0xff]  ;;  %13398 = vst [vmem:[#allocation94_spill] sm:$0xff] %v9630_v51  ;;  %v9637_v29 = vld [vmem:[%s12887_s1 + $0x4] ss:$0 sm:$0xff] }
 0x13b   :  { %7386 = vmatprep.subr.bf16.mxu0 %v13393_v55  ;;  %4648 = vperm.xlu0 %8065, %v13396_v13   ;;  %v7393_v36 = vpack.c.bf16 %v980_v57, %v979_v41  ;;  %v919_v14 = vmul.f32 %v9594_v38, %v8540_v47  ;;  %v13399_v49 = vld [vmem:[#allocation106_spill] sm:$0xff]  ;;  %v1857_v24 = vmul.f32 %v9637_v29, %v9571_v42  ;;  %v1277_v41 = vld [vmem:[%s12886_s3 + $0x188] sm:$0xff]  ;;  %v13403_v47 = vld [vmem:[#allocation37_spill] sm:$0xff] }
 0x13c   :  { %13392 = vst [vmem:[#allocation64_spill] sm:$0xff] %v9616_v40  ;;  %6509 = vmatmul.mubr.f32.gmra.mrb[10].mxu0 %v370_v12  ;;  %3172 = vperm.xlu1 %8040, %v9519_v5   ;;  %v257_v40 = vadd.f32 %v241_v27, %v13397_v58  ;;  %v1856_v22 = vmul.f32 %v9637_v29, %v13399_v49  ;;  %v9643_v5 = vpop.permute.xlu0 %1543  ;;  %v13401_v27 = vld [vmem:[#allocation22_spill] sm:$0xff]  ;;  %v13402_v57 = vld [vmem:[#allocation83_spill] sm:$0xff]  ;;  %v372_v58 = vmax.f32 %v356_v44, 0.0  ;;  %v373_v49 = vmax.f32 %v357_v59, 0.0 }
 0x13d   :  { %13400 = vst [vmem:[#allocation53_spill] sm:$0xff] %v9643_v5  ;;  %6511 = vmatprep.mubr.f32.mxu0 %v371_v2  ;;  %7388 = vmatpush3.bf16.msra.mxu0 %v13393_v55  ;;  %v917_v12 = vmul.f32 %v9594_v38, %v13401_v27  ;;  %v1276_v7 = vld [vmem:[%s12886_s3 + $0x180] sm:$0xff]  ;;  %v897_v6 = vadd.f32 %v13402_v57, %v860_v1  ;;  %v13404_v57 = vld [vmem:[#allocation92_spill] sm:$0xff] }
 0x13e   :  { %v842_v13 = vmul.f32 %v9539_v61, %v9097_v46  ;;  %7390 = vmatprep.subr.bf16.mxu0 %v9492_v17  ;;  %6671 = vmatmul.mubr.f32.gmra.mrb[6].mxu1 %v1968_v35  ;;  %v358_v2 = vadd.f32 %v342_v63, %v257_v40  ;;  %v863_v55 = vadd.f32 %v9564_v62, %v840_v43  ;;  %v9669_v35 = vld [vmem:[%s12888_s2 + $0x1] ss:$0 sm:$0xff]  ;;  %v1278_v43 = vld [vmem:[%s12886_s3 + $0x190] sm:$0xff]  ;;  %v1279_v63 = vld [vmem:[%s12886_s3 + $0x198] sm:$0xff] }
 0x13f   :  { %v933_v42 = vadd.f32 %v917_v12, %v896_v48  ;;  %v1900_v52 = vmul.f32 %v8973_v50, %v9579_v20  ;;  %4656 = vperm.xlu0 %8065, %v13403_v47   ;;  %v7397_v1 = vpack.c.bf16 %v1277_v41, %v1276_v7  ;;  %v935_v46 = vadd.f32 %v919_v14, %v13404_v57  ;;  %v9673_v47 = vpop.permute.xlu1 %1744  ;;  %v13406_v48 = vld [vmem:[#allocation31_spill] sm:$0xff]  ;;  %v13407_v12 = vld [vmem:[#allocation33_spill] sm:$0xff]  ;;  %v13411_v20 = vld [vmem:[#allocation4_spill] sm:$0xff] }
 0x140   :  { %6512 = vmatmul.mubr.f32.gmra.mrb[12].mxu0 %v372_v58  ;;  %8041 = vset.pattern.permute.xlu1 %v13197_v18  ;;  %v920_v44 = vmul.f32 %v9594_v38, %v13270_v30  ;;  %v1880_v40 = vadd.f32 %v9669_v35, %v1857_v24  ;;  %13405 = vst [vmem:[#allocation100_spill] sm:$0xff] %v9673_v47  ;;  %v374_v7 = vmax.f32 %v358_v2, 0.0  ;;  %v9689_v41 = vpop.permute.xlu0 %1553 }
 0x141   :  { %6514 = vmatprep.mubr.f32.mxu0 %v373_v49  ;;  %7392 = vmatpush3.bf16.msra.mxu0 %v9492_v17  ;;  %v1879_v59 = vadd.f32 %v9669_v35, %v1856_v22  ;;  %v1901_v14 = vmul.f32 %v8973_v50, %v13406_v48  ;;  %v934_v24 = vadd.f32 %v13407_v12, %v897_v6  ;;  %v949_v58 = vmax.f32 %v933_v42, 0.0  ;;  %v9694_v22 = vld [vmem:[%s12885_s0 + $0x128] sm:$0xff]  ;;  %v13409_v50 = vld [vmem:[#allocation98_spill] sm:$0xff]  ;;  %v13410_v12 = vld [vmem:[#allocation13_spill] sm:$0xff] }
 0x142   :  { %v865_v49 = vadd.f32 %v9564_v62, %v842_v13  ;;  %v844_v17 = vmul.f32 %v9539_v61, %v9150_v34  ;;  %7394 = vmatprep.subr.bf16.mxu0 %v7393_v36  ;;  %4412 = vperm.xlu1 %8041, %v9027_v0   ;;  %13408 = vst [vmem:[#allocation28_spill] sm:$0xff] %v9689_v41 }
 0x143   :  { %v900_v57 = vadd.f32 %v13409_v50, %v863_v55  ;;  %v1916_v6 = vadd.f32 %v1900_v52, %v1879_v59  ;;  %v1937_v13 = vmul.f32 %v9584_v45, %v9673_v47  ;;  %4664 = vperm.xlu0 %8065, %v13410_v12   ;;  %v7401_v2 = vpack.c.bf16 %v1279_v63, %v1278_v43  ;;  %v13413_v55 = vld [vmem:[#allocation102_spill] sm:$0xff]  ;;  %v9709_v50 = vpop.permute.xlu1 %1748 }
 0x144   :  { %6515 = vmatmul.mubr.f32.gmra.mrb[14].mxu0 %v374_v7  ;;  %v923_v0 = vmul.f32 %v9594_v38, %v13411_v20  ;;  %v1200_v42 = vmul.f32 %v8948_v28, %v13300_v31  ;;  %v9706_v48 = vmul.f32 %v8948_v28, %v13355_v60  ;;  %v951_v52 = vmax.f32 %v935_v46, 0.0  ;;  %13414 = vst [vmem:[#allocation63_spill] sm:$0xff] %v9709_v50  ;;  %v1281_v46 = vld [vmem:[%s12886_s3 + $0x1a8] sm:$0xff] }
 0x145   :  { %7396 = vmatpush3.bf16.msra.mxu0 %v7393_v36  ;;  %6549 = vmatprep.mubr.f32.mxu0 %v949_v58  ;;  %v936_v59 = vadd.f32 %v920_v44, %v13413_v55  ;;  %v1953_v12 = vadd.f32 %v1937_v13, %v1916_v6  ;;  %v1917_v7 = vadd.f32 %v1901_v14, %v1880_v40  ;;  %v950_v47 = vmax.f32 %v934_v24, 0.0  ;;  %v1280_v36 = vld [vmem:[%s12886_s3 + $0x1a0] sm:$0xff]  ;;  %v13415_v44 = vld [vmem:[#allocation109_spill] sm:$0xff]  ;;  %v8077_v24 = vld [vmem:[%s12885_s0 + $0x170] sm:$0xff]  ;;  %v9746_v55 = vpop.permute.xlu0 %1563 }
 0x146   :  { %13412 = vst [vmem:[#allocation75_spill] sm:$0xff] %v9706_v48  ;;  %v867_v43 = vadd.f32 %v9564_v62, %v844_v17  ;;  %v846_v63 = vmul.f32 %v9539_v61, %v13353_v8  ;;  %7398 = vmatprep.subr.bf16.mxu0 %v7397_v1  ;;  %2965 = vperm.xlu1 %8041, %v9694_v22   ;;  %v13416_v17 = vld [vmem:[#allocation5_spill] sm:$0xff]  ;;  %v9735_v6 = vld [vmem:[%s12887_s1 + $0x9] ss:$0 sm:$0xff]  ;;  %13419 = vst [vmem:[#allocation93_spill] sm:$0xff] %v9746_v55 }
 0x147   :  { %v922_v28 = vmul.f32 %v9594_v38, %v13347_v32  ;;  %v937_v31 = vadd.f32 %v9598_v25, %v900_v57  ;;  %v1969_v60 = vmax.f32 %v1953_v12, 0.0  ;;  %v902_v40 = vadd.f32 %v13415_v44, %v865_v49  ;;  %3220 = vperm.xlu0 %8065, %v8077_v24   ;;  %v13417_v57 = vld [vmem:[#allocation61_spill] sm:$0xff] }
 0x148   :  { %v1938_v14 = vmul.f32 %v9584_v45, %v9709_v50  ;;  %6550 = vmatmul.mubr.f32.vlgmr.msra.gmra.mrb[0].mxu0 %v950_v47  ;;  %v925_v58 = vmul.f32 %v9594_v38, %v13416_v17  ;;  %v891_v25 = vmul.f32 %v9735_v6, %v13365_v21  ;;  %v9741_v49 = vmul.f32 %v9735_v6, %v13373_v26  ;;  %v13420_v50 = vld [vmem:[#allocation2_spill] sm:$0xff] }
 0x149   :  { %v9744_v13 = vadd.f32 %v1200_v42, %v13417_v57  ;;  %6552 = vmatprep.mubr.f32.mxu0 %v951_v52  ;;  %7400 = vmatpush3.bf16.msra.mxu0 %v7397_v1  ;;  %v7405_v47 = vpack.c.bf16 %v1281_v46, %v1280_v36  ;;  %v924_v12 = vmul.f32 %v9594_v38, %v13357_v37  ;;  %v952_v17 = vmax.f32 %v936_v59, 0.0  ;;  %v13421_v42 = vld [vmem:[#allocation14_spill] sm:$0xff]  ;;  %v1282_v1 = vld [vmem:[%s12886_s3 + $0x1b0] sm:$0xff]  ;;  %v1283_v52 = vld [vmem:[%s12886_s3 + $0x1b8] sm:$0xff] }
 0x14a   :  { %v1954_v44 = vadd.f32 %v1938_v14, %v1917_v7  ;;  %v869_v24 = vadd.f32 %v9564_v62, %v846_v63  ;;  %v848_v48 = vmul.f32 %v9539_v61, %v13420_v50  ;;  %7402 = vmatprep.subr.bf16.mxu0 %v7401_v2  ;;  %8042 = vset.pattern.permute.xlu1 %v13204_v54  ;;  %v953_v7 = vmax.f32 %v937_v31, 0.0  ;;  %v13423_v36 = vld [vmem:[#allocation49_spill] sm:$0xff]  ;;  %v9771_v50 = vld [vmem:[%s12887_s1 + $0xd] ss:$0 sm:$0xff] }
 0x14b   :  { %13418 = vst [vmem:[#allocation26_spill] sm:$0xff] %v9744_v13  ;;  %v938_v57 = vadd.f32 %v922_v28, %v13421_v42  ;;  %v9755_v13 = vpop.permute.xlu1 %1651  ;;  %3176 = vperm.xlu1 %8042, %v9383_v39   ;;  %6673 = vmatprep.mubr.f32.mxu1 %v1969_v60  ;;  %v939_v59 = vadd.f32 %v923_v0, %v902_v40  ;;  %v13424_v28 = vld [vmem:[#allocation6_spill] sm:$0xff]  ;;  %v13425_v42 = vld [vmem:[#allocation67_spill] sm:$0xff] }
 0x14c   :  { %13422 = vst [vmem:[#allocation110_spill] sm:$0xff] %v9755_v13  ;;  %v1970_v63 = vmax.f32 %v1954_v44, 0.0  ;;  %v904_v46 = vadd.f32 %v13423_v36, %v867_v43  ;;  %6553 = vmatmul.mubr.f32.gmra.mrb[2].mxu0 %v952_v17  ;;  %v927_v14 = vmul.f32 %v9594_v38, %v13424_v28  ;;  %v907_v55 = vadd.f32 %v891_v25, %v13425_v42  ;;  %v13427_v0 = vld [vmem:[#allocation51_spill] sm:$0xff]  ;;  %v13428_v25 = vld [vmem:[#allocation112_spill] sm:$0xff] }
 0x14d   :  { %v9775_v31 = vmul.f32 %v9771_v50, %v13365_v21  ;;  %v9779_v39 = vmul.f32 %v9771_v50, %v13373_v26  ;;  %6555 = vmatprep.mubr.f32.mxu0 %v953_v7  ;;  %7404 = vmatpush3.bf16.msra.mxu0 %v7401_v2  ;;  %v940_v43 = vadd.f32 %v924_v12, %v13427_v0  ;;  %v954_v36 = vmax.f32 %v938_v57, 0.0  ;;  %v1284_v21 = vld [vmem:[%s12886_s3 + $0x1c0] sm:$0xff]  ;;  %v1285_v26 = vld [vmem:[%s12886_s3 + $0x1c8] sm:$0xff]  ;;  %v8080_v7 = vld [vmem:[%s12885_s0 + $0x1f8] sm:$0xff] }
 0x14e   :  { %v7409_v60 = vpack.c.bf16 %v1283_v52, %v1282_v1  ;;  %v926_v40 = vmul.f32 %v9594_v38, %v13306_v56  ;;  %v871_v17 = vadd.f32 %v9564_v62, %v848_v48  ;;  %v850_v44 = vmul.f32 %v9539_v61, %v13428_v25  ;;  %7406 = vmatprep.subr.bf16.mxu0 %v7405_v47  ;;  %v9796_v48 = vpop.permute.xlu0 %2940  ;;  %v1286_v0 = vld [vmem:[%s12886_s3 + $0x1d0] sm:$0xff] }
 0x14f   :  { %13426 = vst [vmem:[#allocation15_spill] sm:$0xff] %v9779_v39  ;;  %6674 = vmatmul.mubr.f32.gmra.mrb[8].mxu1 %v1970_v63  ;;  %v906_v2 = vadd.f32 %v9602_v53, %v869_v24  ;;  %v1859_v12 = vmul.f32 %v9637_v29, %v9643_v5  ;;  %13429 = vst [vmem:[#allocation30_spill] sm:$0xff] %v9796_v48  ;;  %v1858_v61 = vmul.f32 %v9637_v29, %v9630_v51  ;;  %v9801_v52 = vpop.permute.xlu1 %1548  ;;  %v13431_v24 = vld [vmem:[#allocation7_spill] sm:$0xff]  ;;  %v13433_v51 = vmov 1  }
 0x150   :  { %v955_v57 = vmax.f32 %v939_v59, 0.0  ;;  %4628 = vperm.xlu1 %8042, %v9576_v16   ;;  %v941_v1 = vadd.f32 %v925_v58, %v904_v46  ;;  %13430 = vst [vmem:[#allocation85_spill] sm:$0xff] %v9801_v52  ;;  %4676 = vperm.xlu0 %8065, %v8080_v7   ;;  %v928_v53 = vmul.f32 %v9594_v38, %v13311_v19  ;;  %v956_v58 = vmax.f32 %v940_v43, 0.0  ;;  %v9824_v7 = vld [vmem:[%s12887_s1 + $0x5] ss:$0 sm:$0xff] }
 0x151   :  { %6556 = vmatmul.mubr.f32.gmra.mrb[4].mxu0 %v954_v36  ;;  %v929_v63 = vmul.f32 %v9594_v38, %v13431_v24  ;;  %v893_v59 = vmul.f32 %v9735_v6, %v13380_v23  ;;  %v894_v16 = vmul.f32 %v9735_v6, %v13381_v10  ;;  %v942_v46 = vadd.f32 %v926_v40, %v9612_v9  ;;  %v1287_v36 = vld [vmem:[%s12886_s3 + $0x1d8] sm:$0xff]  ;;  %v9831_v9 = vld [vmem:[%s12887_s1 + $0xc] ss:$0 sm:$0xff] }
 0x152   :  { %6558 = vmatprep.mubr.f32.mxu0 %v955_v57  ;;  %7408 = vmatpush3.bf16.msra.mxu0 %v7405_v47  ;;  %v7413_v42 = vpack.c.bf16 %v1285_v26, %v1284_v21  ;;  %v1902_v47 = vmul.f32 %v9824_v7, %v9755_v13  ;;  %v1147_v43 = vmul.f32 %v9831_v9, %v8897_v33  ;;  %v13432_v26 = vld [vmem:[#allocation39_spill] sm:$0xff]  ;;  %v957_v13 = vmax.f32 %v941_v1, 0.0  ;;  %v9845_v33 = vld [vmem:[%s12885_s0 + $0x120] sm:$0xff] }
 0x153   :  { %7410 = vmatprep.subr.bf16.mxu0 %v7409_v60  ;;  %v943_v40 = vadd.f32 %v927_v14, %v906_v2  ;;  %v908_v21 = vadd.f32 %v9741_v49, %v871_v17  ;;  %v1903_v57 = vmul.f32 %v9824_v7, %v13432_v26  ;;  %v873_v48 = vadd.f32 %v9564_v62, %v850_v44  ;;  %v9848_v17 = vpop.permute.xlu1 %1752  ;;  %v13435_v62 = vld [vmem:[#allocation8_spill] sm:$0xff]  ;;  %v1831_v2 = vld [vmem:[%s12886_s3 + $0x20] sm:$0xff] }
 0x154   :  { %v1882_v5 = vadd.f32 %v9669_v35, %v1859_v12  ;;  %8043 = vset.pattern.permute.xlu1 %v13433_v51  ;;  %v1881_v39 = vadd.f32 %v9669_v35, %v1858_v61  ;;  %v944_v49 = vadd.f32 %v928_v53, %v907_v55  ;;  %v7417_v14 = vpack.c.bf16 %v1287_v36, %v1286_v0  ;;  %v1832_v12 = vld [vmem:[%s12886_s3 + $0x28] sm:$0xff]  ;;  %v9858_v61 = vpop.permute.xlu0 %4397  ;;  %v9867_v0 = vld [vmem:[%s12888_s2 + $0x3] ss:$0 sm:$0xff] }
 0x155   :  { %6559 = vmatmul.mubr.f32.gmra.mrb[6].mxu0 %v956_v58  ;;  %3079 = vperm.xlu1 %8043, %v9845_v33   ;;  %13434 = vst [vmem:[#allocation45_spill] sm:$0xff] %v9848_v17  ;;  %v931_v44 = vmul.f32 %v9594_v38, %v13435_v62  ;;  %13436 = vst [vmem:[#allocation70_spill] sm:$0xff] %v9858_v61  ;;  %v958_v1 = vmax.f32 %v942_v46, 0.0  ;;  %v930_v55 = vmul.f32 %v9594_v38, %v13317_v4  ;;  %v1289_v46 = vld [vmem:[%s12886_s3 + $0x1e8] sm:$0xff] }
 0x156   :  { %6561 = vmatprep.mubr.f32.mxu0 %v957_v13  ;;  %7412 = vmatpush3.bf16.msra.mxu0 %v7409_v60  ;;  %v1918_v53 = vadd.f32 %v1902_v47, %v1881_v39  ;;  %v1939_v58 = vmul.f32 %v9584_v45, %v9848_v17  ;;  %v1170_v36 = vadd.f32 %v9867_v0, %v1147_v43  ;;  %v959_v13 = vmax.f32 %v943_v40, 0.0  ;;  %v1288_v39 = vld [vmem:[%s12886_s3 + $0x1e0] sm:$0xff] }
 0x157   :  { %v1148_v61 = vmul.f32 %v9831_v9, %v8967_v15  ;;  %7414 = vmatprep.subr.bf16.mxu0 %v7413_v42  ;;  %v945_v60 = vadd.f32 %v929_v63, %v908_v21  ;;  %v910_v47 = vadd.f32 %v894_v16, %v873_v48  ;;  %v1919_v17 = vadd.f32 %v1903_v57, %v1882_v5  ;;  %v13437_v15 = vld [vmem:[#allocation76_spill] sm:$0xff]  ;;  %v9882_v40 = vpop.permute.xlu1 %1756 }
 0x158   :  { %v1955_v26 = vadd.f32 %v1939_v58, %v1918_v53  ;;  %v9878_v51 = vpack.c.bf16 %v1832_v12, %v1831_v2  ;;  %v909_v43 = vadd.f32 %v893_v59, %v13437_v15  ;;  %v895_v63 = vmul.f32 %v9735_v6, %v13388_v11  ;;  %v13438_v12 = vld [vmem:[#allocation88_spill] sm:$0xff]  ;;  %v13440_v58 = vld [vmem:[#allocation101_spill] sm:$0xff] }
 0x159   :  { %6562 = vmatmul.mubr.f32.gmra.mrb[8].mxu0 %v958_v1  ;;  %3083 = vperm.xlu1 %8043, %v9694_v22   ;;  %v1204_v21 = vmul.f32 %v9771_v50, %v13380_v23  ;;  %v960_v48 = vmax.f32 %v944_v49, 0.0  ;;  %v7421_v16 = vpack.c.bf16 %v1289_v46, %v1288_v39  ;;  %v1940_v57 = vmul.f32 %v9584_v45, %v9882_v40  ;;  %v1290_v23 = vld [vmem:[%s12886_s3 + $0x1f0] sm:$0xff] }
 0x15a   :  { %6564 = vmatprep.mubr.f32.mxu0 %v959_v13  ;;  %7416 = vmatpush3.bf16.msra.mxu0 %v7413_v42  ;;  %v1971_v5 = vmax.f32 %v1955_v26, 0.0  ;;  %v1171_v2 = vadd.f32 %v9867_v0, %v1148_v61  ;;  %v1151_v59 = vmul.f32 %v9831_v9, %v13438_v12  ;;  %v946_v1 = vadd.f32 %v930_v55, %v909_v43  ;;  %v1291_v42 = vld [vmem:[%s12886_s3 + $0x1f8] sm:$0xff]  ;;  %v9901_v26 = vpop.permute.xlu0 %2950  ;;  %v13441_v55 = vld [vmem:[#allocation79_spill] sm:$0xff]  ;;  %v13442_v15 = vld [vmem:[#allocation68_spill] sm:$0xff] }
 0x15b   :  { %7418 = vmatprep.subr.bf16.mxu0 %v7417_v14  ;;  %v932_v53 = vmul.f32 %v9594_v38, %v13328_v3  ;;  %13439 = vst [vmem:[#allocation46_spill] sm:$0xff] %v9901_v26  ;;  %v961_v49 = vmax.f32 %v945_v60, 0.0  ;;  %v947_v61 = vadd.f32 %v931_v44, %v910_v47  ;;  %v1207_v13 = vadd.f32 %v13440_v58, %v1170_v36  ;;  %v9908_v38 = vld [vmem:[%s12885_s0 + $0x1a8] sm:$0xff]  ;;  %v9927_v43 = vpop.permute.xlu1 %1659 }
 0x15c   :  { %6676 = vmatprep.mubr.f32.mxu1 %v1971_v5  ;;  %v1956_v39 = vadd.f32 %v1940_v57, %v1919_v17  ;;  %7470 = vmatprep.subr.bf16.mxu1 %v9878_v51  ;;  %v911_v46 = vadd.f32 %v895_v63, %v13441_v55  ;;  %v9914_v60 = vadd.f32 %v9775_v31, %v13442_v15  ;;  %v9923_v36 = vld [vmem:[%s12887_s1 + $0xe] ss:$0 sm:$0xff]  ;;  %v13443_v31 = vld [vmem:[#allocation24_spill] sm:$0xff] }
 0x15d   :  { %6565 = vmatmul.mubr.f32.gmra.mrb[10].mxu0 %v960_v48  ;;  %4535 = vperm.xlu1 %8043, %v9908_v38   ;;  %v9918_v44 = vmul.f32 %v9771_v50, %v13381_v10  ;;  %v7425_v17 = vpack.c.bf16 %v1291_v42, %v1290_v23  ;;  %v1228_v47 = vmul.f32 %v9923_v36, %v13401_v27  ;;  %v13444_v5 = vld [vmem:[#allocation84_spill] sm:$0xff]  ;;  %v13446_v27 = vld [vmem:[#allocation77_spill] sm:$0xff] }
 0x15e   :  { %6567 = vmatprep.mubr.f32.mxu0 %v961_v49  ;;  %7420 = vmatpush3.bf16.msra.mxu0 %v7417_v14  ;;  %v1972_v63 = vmax.f32 %v1956_v39, 0.0  ;;  %v1230_v48 = vmul.f32 %v9923_v36, %v13443_v31  ;;  %v1208_v10 = vadd.f32 %v13444_v5, %v1171_v2  ;;  %v1174_v57 = vadd.f32 %v9867_v0, %v1151_v59  ;;  %v13445_v23 = vld [vmem:[#allocation96_spill] sm:$0xff]  ;;  %v13449_v39 = vld [vmem:[#allocation3_spill] sm:$0xff] }
 0x15f   :  { %v962_v14 = vmax.f32 %v946_v1, 0.0  ;;  %7422 = vmatprep.subr.bf16.mxu0 %v7421_v16  ;;  %v948_v12 = vadd.f32 %v932_v53, %v911_v46  ;;  %v1153_v42 = vmul.f32 %v9831_v9, %v13445_v23  ;;  %v963_v49 = vmax.f32 %v947_v61, 0.0  ;;  %v1833_v1 = vld [vmem:[%s12886_s3 + $0x30] sm:$0xff]  ;;  %v1834_v53 = vld [vmem:[%s12886_s3 + $0x38] sm:$0xff]  ;;  %7472 = vmatpush3.bf16.msra.mxu1 %v9878_v51  ;;  %v13453_v51 = vld [vmem:[#allocation43_spill] sm:$0xff] }
 0x160   :  { %v1244_v58 = vadd.f32 %v1228_v47, %v1207_v13  ;;  %6677 = vmatmul.mubr.f32.gmra.mrb[10].mxu1 %v1972_v63  ;;  %v9936_v55 = vadd.f32 %v1204_v21, %v13446_v27  ;;  %v1231_v2 = vmul.f32 %v9923_v36, %v13270_v30  ;;  %v1233_v59 = vmul.f32 %v9923_v36, %v13347_v32  ;;  %v9953_v13 = vpop.permute.xlu0 %4407  ;;  %v13448_v30 = vld [vmem:[#allocation103_spill] sm:$0xff]  ;;  %v13450_v15 = vld [vmem:[#allocation36_spill] sm:$0xff] }
 0x161   :  { %6568 = vmatmul.mubr.f32.gmra.mrb[12].mxu0 %v962_v14  ;;  %8044 = vset.pattern.permute.xlu1 %v13204_v54  ;;  %v1206_v21 = vmul.f32 %v9771_v50, %v13388_v11  ;;  %v1155_v61 = vmul.f32 %v9831_v9, %v9150_v34  ;;  %13447 = vst [vmem:[#allocation60_spill] sm:$0xff] %v9953_v13  ;;  %v964_v31 = vmax.f32 %v948_v12, 0.0  ;;  %v9962_v11 = vpop.permute.xlu1 %1558  ;;  %v13451_v34 = vld [vmem:[#allocation105_spill] sm:$0xff]  ;;  %v1835_v14 = vld [vmem:[%s12886_s3 + $0x40] sm:$0xff]  ;;  %v13452_v12 = vld [vmem:[#allocation23_spill] sm:$0xff] }
 0x162   :  { %6570 = vmatprep.mubr.f32.mxu0 %v963_v49  ;;  %7424 = vmatpush3.bf16.msra.mxu0 %v7421_v16  ;;  %v1246_v32 = vadd.f32 %v1230_v48, %v13448_v30  ;;  %v1232_v46 = vmul.f32 %v9923_v36, %v13449_v39  ;;  %v1245_v47 = vadd.f32 %v13450_v15, %v1208_v10  ;;  %v1260_v5 = vmax.f32 %v1244_v58, 0.0  ;;  %v13454_v49 = vld [vmem:[#allocation62_spill] sm:$0xff] }
 0x163   :  { %v1861_v63 = vmul.f32 %v9637_v29, %v9689_v41  ;;  %7426 = vmatprep.subr.bf16.mxu0 %v7425_v17  ;;  %3180 = vperm.xlu1 %8044, %v9845_v33   ;;  %v1211_v50 = vadd.f32 %v13451_v34, %v1174_v57  ;;  %v1176_v16 = vadd.f32 %v9867_v0, %v1153_v42  ;;  %v1836_v33 = vld [vmem:[%s12886_s3 + $0x48] sm:$0xff]  ;;  %v9978_v57 = vld [vmem:[%s12887_s1 + $0x1] ss:$0 sm:$0xff] }
 0x164   :  { %v1860_v48 = vmul.f32 %v9637_v29, %v9801_v52  ;;  %v7473_v10 = vpack.c.bf16 %v1834_v53, %v1833_v1  ;;  %v9982_v23 = vmul.f32 %v9978_v57, %v13452_v12  ;;  %v1247_v42 = vadd.f32 %v1231_v2, %v13453_v51 }
 0x165   :  { %6571 = vmatmul.mubr.f32.gmra.mrb[14].mxu0 %v964_v31  ;;  %v9986_v58 = vadd.f32 %v1233_v59, %v13454_v49  ;;  %v1234_v27 = vmul.f32 %v9923_v36, %v13411_v20  ;;  %v1178_v1 = vadd.f32 %v9867_v0, %v1155_v61  ;;  %v1157_v53 = vmul.f32 %v9831_v9, %v13353_v8  ;;  %v9997_v31 = vpop.permute.xlu0 %2960  ;;  %v8088_v61 = vld [vmem:[%s12885_s0 + $0x1b0] sm:$0xff]  ;;  %v10002_v8 = vpop.permute.xlu1 %1760 }
 0x166   :  { %7428 = vmatpush3.bf16.msra.mxu0 %v7425_v17  ;;  %6605 = vmatprep.mubr.f32.mxu0 %v1260_v5  ;;  %v1904_v30 = vmul.f32 %v9824_v7, %v9927_v43  ;;  %v1884_v39 = vadd.f32 %v9669_v35, %v1861_v63  ;;  %v1261_v15 = vmax.f32 %v1245_v47, 0.0  ;;  %v1248_v2 = vadd.f32 %v1232_v46, %v1211_v50  ;;  %v13457_v17 = vld [vmem:[#allocation111_spill] sm:$0xff]  ;;  %v13458_v47 = vld [vmem:[#allocation44_spill] sm:$0xff]  ;;  %v10017_v50 = vld [vmem:[%s12885_s0 + $0x138] sm:$0xff] }
 0x167   :  { %8045 = vset.pattern.permute.xlu1 %v13197_v18  ;;  %v7477_v59 = vpack.c.bf16 %v1836_v33, %v1835_v14  ;;  %13455 = vst [vmem:[#allocation18_spill] sm:$0xff] %v9997_v31  ;;  %v1262_v20 = vmax.f32 %v1246_v32, 0.0  ;;  %13456 = vst [vmem:[#allocation89_spill] sm:$0xff] %v10002_v8  ;;  %v1213_v34 = vadd.f32 %v13457_v17, %v1176_v16  ;;  %7474 = vmatprep.subr.bf16.mxu1 %v7473_v10  ;;  %v1837_v46 = vld [vmem:[%s12886_s3 + $0x50] sm:$0xff]  ;;  %v1838_v32 = vld [vmem:[%s12886_s3 + $0x58] sm:$0xff] }
 0x168   :  { %4422 = vperm.xlu1 %8045, %v8088_v61   ;;  %v1883_v5 = vadd.f32 %v9669_v35, %v1860_v48  ;;  %v1905_v63 = vmul.f32 %v9824_v7, %v13458_v47  ;;  %v1235_v16 = vmul.f32 %v9923_v36, %v13357_v37  ;;  %v1941_v48 = vmul.f32 %v9584_v45, %v10002_v8  ;;  %v13459_v33 = vld [vmem:[#allocation80_spill] sm:$0xff]  ;;  %v13460_v61 = vld [vmem:[#allocation5_spill] sm:$0xff]  ;;  %v13461_v31 = vld [vmem:[#allocation2_spill] sm:$0xff] }
 0x169   :  { %6606 = vmatmul.mubr.f32.vlgmr.msra.gmra.mrb[0].mxu0 %v1261_v15  ;;  %v1237_v14 = vmul.f32 %v9923_v36, %v13306_v56  ;;  %v10026_v51 = vadd.f32 %v1206_v21, %v13459_v33  ;;  %v1263_v49 = vmax.f32 %v1247_v42, 0.0  ;;  %v1265_v15 = vmax.f32 %v9986_v58, 0.0  ;;  %7476 = vmatpush3.bf16.msra.mxu1 %v7473_v10  ;;  %v13462_v42 = vld [vmem:[#allocation56_spill] sm:$0xff]  ;;  %v1839_v10 = vld [vmem:[%s12886_s3 + $0x60] sm:$0xff] }
 0x16a   :  { %6608 = vmatprep.mubr.f32.mxu0 %v1262_v20  ;;  %v1236_v17 = vmul.f32 %v9923_v36, %v13460_v61  ;;  %v1920_v13 = vadd.f32 %v1904_v30, %v1883_v5  ;;  %v1180_v37 = vadd.f32 %v9867_v0, %v1157_v53  ;;  %v1159_v26 = vmul.f32 %v9831_v9, %v13461_v31  ;;  %v10035_v20 = vpop.permute.xlu1 %1764  ;;  %v1840_v53 = vld [vmem:[%s12886_s3 + $0x68] sm:$0xff]  ;;  %v13463_v30 = vld [vmem:[#allocation64_spill] sm:$0xff]  ;;  %v13464_v31 = vld [vmem:[#allocation26_spill] sm:$0xff] }
 0x16b   :  { %v1264_v47 = vmax.f32 %v1248_v2, 0.0  ;;  %7478 = vmatprep.subr.bf16.mxu1 %v7477_v59  ;;  %v7481_v56 = vpack.c.bf16 %v1838_v32, %v1837_v46  ;;  %v1250_v21 = vadd.f32 %v1234_v27, %v1213_v34  ;;  %v1215_v58 = vadd.f32 %v13462_v42, %v1178_v1  ;;  %v10055_v1 = vld [vmem:[%s12887_s1] ss:$0 sm:$0xff]  ;;  %v13468_v61 = vld [vmem:[#allocation93_spill] sm:$0xff] }
 0x16c   :  { %2975 = vperm.xlu1 %8045, %v10017_v50   ;;  %v1957_v33 = vadd.f32 %v1941_v48, %v1920_v13  ;;  %v1921_v8 = vadd.f32 %v1905_v63, %v1884_v39  ;;  %v1251_v2 = vadd.f32 %v1235_v16, %v13463_v30  ;;  %v10046_v5 = vadd.f32 %v1237_v14, %v13464_v31  ;;  %v13465_v39 = vld [vmem:[#allocation65_spill] sm:$0xff]  ;;  %v10059_v63 = vpop.permute.xlu0 %4417  ;;  %v13467_v48 = vld [vmem:[#allocation75_spill] sm:$0xff] }
 0x16d   :  { %6609 = vmatmul.mubr.f32.gmra.mrb[2].mxu0 %v1263_v49  ;;  %v1238_v27 = vmul.f32 %v9923_v36, %v13424_v28  ;;  %v1239_v13 = vmul.f32 %v9923_v36, %v13311_v19  ;;  %v1571_v34 = vmul.f32 %v10055_v1, %v13465_v39  ;;  %13466 = vst [vmem:[#allocation86_spill] sm:$0xff] %v10059_v63  ;;  %v1266_v42 = vmax.f32 %v1250_v21, 0.0  ;;  %v13470_v30 = vld [vmem:[#allocation15_spill] sm:$0xff] }
 0x16e   :  { %6611 = vmatprep.mubr.f32.mxu0 %v1264_v47  ;;  %v1973_v46 = vmax.f32 %v1957_v33, 0.0  ;;  %v1942_v32 = vmul.f32 %v9584_v45, %v10035_v20  ;;  %7480 = vmatpush3.bf16.msra.mxu1 %v7477_v59  ;;  %v1241_v28 = vmul.f32 %v9923_v36, %v13317_v4  ;;  %v1182_v19 = vadd.f32 %v9867_v0, %v1159_v26  ;;  %v1841_v4 = vld [vmem:[%s12886_s3 + $0x70] sm:$0xff]  ;;  %v10081_v21 = vpop.permute.xlu1 %1667 }
 0x16f   :  { %v1161_v16 = vmul.f32 %v9831_v9, %v13428_v25  ;;  %v1217_v14 = vadd.f32 %v13467_v48, %v1180_v37  ;;  %7482 = vmatprep.subr.bf16.mxu1 %v7481_v56  ;;  %v7485_v49 = vpack.c.bf16 %v1840_v53, %v1839_v10  ;;  %v1863_v47 = vmul.f32 %v9637_v29, %v13468_v61  ;;  %v1842_v25 = vld [vmem:[%s12886_s3 + $0x78] sm:$0xff]  ;;  %v13472_v48 = vld [vmem:[#allocation54_spill] sm:$0xff] }
 0x170   :  { %8046 = vset.pattern.permute.xlu1 %v13204_v54  ;;  %v1252_v33 = vadd.f32 %v1236_v17, %v1215_v58  ;;  %6679 = vmatprep.mubr.f32.mxu1 %v1973_v46  ;;  %v1958_v59 = vadd.f32 %v1942_v32, %v1921_v8  ;;  %v1862_v26 = vmul.f32 %v9637_v29, %v9962_v11  ;;  %v1267_v37 = vmax.f32 %v1251_v2, 0.0  ;;  %v10091_v58 = vld [vmem:[%s12888_s2] ss:$0 sm:$0xff]  ;;  %v10104_v46 = vpop.permute.xlu0 %2970 }
 0x171   :  { %6612 = vmatmul.mubr.f32.gmra.mrb[4].mxu0 %v1265_v15  ;;  %3184 = vperm.xlu1 %8046, %v9694_v22   ;;  %v10084_v17 = vadd.f32 %v1239_v13, %v9914_v60  ;;  %v1240_v8 = vmul.f32 %v9923_v36, %v13431_v24  ;;  %v1594_v10 = vadd.f32 %v10091_v58, %v1571_v34  ;;  %v13469_v29 = vld [vmem:[#allocation34_spill] sm:$0xff] }
 0x172   :  { %v1570_v15 = vmul.f32 %v10055_v1, %v13469_v29  ;;  %6614 = vmatprep.mubr.f32.mxu0 %v1266_v42  ;;  %v1974_v22 = vmax.f32 %v1958_v59, 0.0  ;;  %v10097_v53 = vadd.f32 %v1241_v28, %v9936_v55  ;;  %7484 = vmatpush3.bf16.msra.mxu1 %v7481_v56  ;;  %v1254_v60 = vadd.f32 %v1238_v27, %v1217_v14  ;;  %v13473_v56 = vld [vmem:[#allocation82_spill] sm:$0xff] }
 0x173   :  { %v1219_v2 = vadd.f32 %v13470_v30, %v1182_v19  ;;  %7486 = vmatprep.subr.bf16.mxu1 %v7485_v49  ;;  %v1906_v24 = vmul.f32 %v9824_v7, %v10081_v21  ;;  %v7489_v31 = vpack.c.bf16 %v1842_v25, %v1841_v4  ;;  %v1184_v13 = vadd.f32 %v9867_v0, %v1161_v16  ;;  %v2417_v19 = vld [vmem:[%s12886_s3 + $0x100] sm:$0xff]  ;;  %v2418_v16 = vld [vmem:[%s12886_s3 + $0x108] sm:$0xff]  ;;  %v13474_v25 = vld [vmem:[#allocation41_spill] sm:$0xff] }
 0x174   :  { %v1886_v34 = vadd.f32 %v9669_v35, %v1863_v47  ;;  %13471 = vst [vmem:[#allocation58_spill] sm:$0xff] %v10104_v46  ;;  %v1268_v32 = vmax.f32 %v1252_v33, 0.0  ;;  %6680 = vmatmul.mubr.f32.gmra.mrb[12].mxu1 %v1974_v22  ;;  %v1907_v55 = vmul.f32 %v9824_v7, %v13472_v48  ;;  %v1572_v27 = vmul.f32 %v10055_v1, %v13473_v56  ;;  %v10123_v47 = vpop.permute.xlu1 %1768  ;;  %v10142_v30 = vpop.permute.xlu0 %4427  ;;  %v13485_v46 = vld [vmem:[#allocation91_spill] sm:$0xff] }
 0x175   :  { %6615 = vmatmul.mubr.f32.gmra.mrb[6].mxu0 %v1267_v37  ;;  %4636 = vperm.xlu1 %8046, %v9908_v38   ;;  %v1242_v28 = vmul.f32 %v9923_v36, %v13435_v62  ;;  %v1885_v0 = vadd.f32 %v9669_v35, %v1862_v26  ;;  %v1695_v7 = vadd.f32 %v9982_v23, %v1594_v10  ;;  %v1269_v38 = vmax.f32 %v10046_v5, 0.0  ;;  %v13477_v10 = vld [vmem:[#allocation38_spill] sm:$0xff] }
 0x176   :  { %v1593_v14 = vadd.f32 %v10091_v58, %v1570_v15  ;;  %6617 = vmatprep.mubr.f32.mxu0 %v1268_v32  ;;  %v1243_v35 = vmul.f32 %v9923_v36, %v13328_v3  ;;  %7488 = vmatpush3.bf16.msra.mxu1 %v7485_v49  ;;  %v1270_v62 = vmax.f32 %v1254_v60, 0.0  ;;  %v1256_v42 = vadd.f32 %v1240_v8, %v1219_v2  ;;  %v13476_v49 = vld [vmem:[#allocation25_spill] sm:$0xff]  ;;  %v13478_v15 = vld [vmem:[#allocation74_spill] sm:$0xff]  ;;  %v13479_v60 = vld [vmem:[#allocation40_spill] sm:$0xff] }
 0x177   :  { %v1922_v33 = vadd.f32 %v1906_v24, %v1885_v0  ;;  %v1943_v59 = vmul.f32 %v9584_v45, %v10123_v47  ;;  %7490 = vmatprep.subr.bf16.mxu1 %v7489_v31  ;;  %v1221_v23 = vadd.f32 %v9918_v44, %v1184_v13  ;;  %v1923_v4 = vadd.f32 %v1907_v55, %v1886_v34  ;;  %v10148_v24 = vld [vmem:[%s12885_s0 + $0x130] sm:$0xff]  ;;  %v3429_v32 = vld [vmem:[%s12886_s3 + $0x80] sm:$0xff]  ;;  %v3430_v55 = vld [vmem:[%s12886_s3 + $0x88] sm:$0xff] }
 0x178   :  { %v1678_v26 = vmul.f32 %v9978_v57, %v13474_v25  ;;  %v10132_v5 = vpack.c.bf16 %v2418_v16, %v2417_v19  ;;  %v13475_v37 = vmov 1   ;;  %v1595_v36 = vadd.f32 %v10091_v58, %v1572_v27  ;;  %13480 = vst [vmem:[#allocation17_spill] sm:$0xff] %v10142_v30  ;;  %v10151_v13 = vpop.permute.xlu1 %1772  ;;  %v13481_v27 = vld [vmem:[#allocation48_spill] sm:$0xff] }
 0x179   :  { %6618 = vmatmul.mubr.f32.gmra.mrb[8].mxu0 %v1269_v38  ;;  %8047 = vset.pattern.permute.xlu1 %v13475_v37  ;;  %v1959_v3 = vadd.f32 %v1943_v59, %v1922_v33  ;;  %v1680_v8 = vmul.f32 %v9978_v57, %v13476_v49  ;;  %v1780_v22 = vmul.f32 %v13478_v15, %v13477_v10  ;;  %v1271_v2 = vmax.f32 %v10084_v17, 0.0  ;;  %v13483_v59 = vld [vmem:[#allocation9_spill] sm:$0xff] }
 0x17a   :  { %v1573_v44 = vmul.f32 %v10055_v1, %v13479_v60  ;;  %6620 = vmatprep.mubr.f32.mxu0 %v1270_v62  ;;  %3087 = vperm.xlu1 %8047, %v10148_v24   ;;  %v1694_v34 = vadd.f32 %v1678_v26, %v1593_v14  ;;  %v1575_v17 = vmul.f32 %v10055_v1, %v13481_v27  ;;  %v1272_v0 = vmax.f32 %v1256_v42, 0.0  ;;  %v13482_v62 = vld [vmem:[#allocation11_spill] sm:$0xff] }
 0x17b   :  { %v1975_v19 = vmax.f32 %v1959_v3, 0.0  ;;  %v1944_v16 = vmul.f32 %v9584_v45, %v10151_v13  ;;  %7492 = vmatpush3.bf16.msra.mxu1 %v7489_v31  ;;  %v1258_v38 = vadd.f32 %v1242_v28, %v1221_v23  ;;  %v1259_v14 = vadd.f32 %v1243_v35, %v10026_v51  ;;  %v13486_v28 = vld [vmem:[#allocation99_spill] sm:$0xff] }
 0x17c   :  { %v1779_v33 = vmul.f32 %v13478_v15, %v13482_v62  ;;  %7494 = vmatprep.subr.bf16.mxu1 %v10132_v5  ;;  %v1781_v26 = vmul.f32 %v13478_v15, %v13483_v59  ;;  %v1696_v42 = vadd.f32 %v1680_v8, %v1595_v36  ;;  %v10169_v3 = vpack.c.bf16 %v3430_v55, %v3429_v32  ;;  %v13487_v36 = vld [vmem:[#allocation81_spill] sm:$0xff]  ;;  %v10182_v32 = vpop.permute.xlu0 %2980  ;;  %v10184_v55 = vpop.permute.xlu1 %4392  ;;  %v13498_v59 = vld [vmem:[#allocation50_spill] sm:$0xff] }
 0x17d   :  { %6621 = vmatmul.mubr.f32.gmra.mrb[10].mxu0 %v1271_v2  ;;  %6682 = vmatprep.mubr.f32.mxu1 %v1975_v19  ;;  %v1960_v30 = vadd.f32 %v1944_v16, %v1923_v4  ;;  %v1574_v45 = vmul.f32 %v10055_v1, %v13485_v46  ;;  %v1596_v31 = vadd.f32 %v10091_v58, %v1573_v44  ;;  %v1273_v2 = vmax.f32 %v10097_v53, 0.0  ;;  %v3431_v53 = vld [vmem:[%s12886_s3 + $0x90] sm:$0xff] }
 0x17e   :  { %13484 = vst [vmem:[#allocation87_spill] sm:$0xff] %v10169_v3  ;;  %6623 = vmatprep.mubr.f32.mxu0 %v1272_v0  ;;  %3091 = vperm.xlu1 %8047, %v10017_v50   ;;  %v1795_v51 = vadd.f32 %v1779_v33, %v1694_v34  ;;  %v1576_v35 = vmul.f32 %v10055_v1, %v13486_v28  ;;  %13488 = vst [vmem:[#allocation66_spill] sm:$0xff] %v10182_v32  ;;  %v1274_v44 = vmax.f32 %v1258_v38, 0.0  ;;  %v13490_v34 = vld [vmem:[#allocation42_spill] sm:$0xff]  ;;  %v13492_v38 = vld [vmem:[#allocation47_spill] sm:$0xff] }
 0x17f   :  { %v1796_v23 = vadd.f32 %v1780_v22, %v1695_v7  ;;  %v1976_v19 = vmax.f32 %v1960_v30, 0.0  ;;  %7558 = vmatprep.subr.bf16.mxu0 %v10169_v3  ;;  %v1598_v4 = vadd.f32 %v10091_v58, %v1575_v17  ;;  %v1577_v8 = vmul.f32 %v10055_v1, %v13487_v36  ;;  %13489 = vst [vmem:[#allocation95_spill] sm:$0xff] %v10184_v55  ;;  %v3432_v7 = vld [vmem:[%s12886_s3 + $0x98] sm:$0xff]  ;;  %v13491_v17 = vld [vmem:[#allocation12_spill] sm:$0xff] }
 0x180   :  { %v1681_v0 = vmul.f32 %v9978_v57, %v13490_v34  ;;  %7560 = vmatpush3.bf16.msra.mxu0 %v10169_v3  ;;  %v1275_v22 = vmax.f32 %v1259_v14, 0.0  ;;  %v1797_v30 = vadd.f32 %v1781_v26, %v1696_v42  ;;  %v1782_v16 = vmul.f32 %v13478_v15, %v13491_v17  ;;  %v10202_v32 = vld [vmem:[%s12885_s0 + $0x1b8] sm:$0xff]  ;;  %v2419_v14 = vld [vmem:[%s12886_s3 + $0x110] sm:$0xff]  ;;  %v10221_v28 = vpop.permute.xlu1 %2945 }
 0x181   :  { %6624 = vmatmul.mubr.f32.gmra.mrb[12].mxu0 %v1273_v2  ;;  %v1682_v33 = vmul.f32 %v9978_v57, %v13492_v38  ;;  %v1811_v63 = vmax.f32 %v1795_v51, 0.0  ;;  %v2420_v26 = vld [vmem:[%s12886_s3 + $0x118] sm:$0xff]  ;;  %v1597_v42 = vadd.f32 %v10091_v58, %v1574_v45  ;;  %v13493_v2 = vld [vmem:[#allocation27_spill] sm:$0xff]  ;;  %6683 = vmatmul.mubr.f32.gmra.mrb[14].mxu1 %v1976_v19  ;;  %v1599_v51 = vadd.f32 %v10091_v58, %v1576_v35 }
 0x182   :  { %6626 = vmatprep.mubr.f32.mxu0 %v1274_v44  ;;  %4543 = vperm.xlu1 %8047, %v10202_v32   ;;  %v1697_v55 = vadd.f32 %v1681_v0, %v1596_v31  ;;  %v1683_v44 = vmul.f32 %v9978_v57, %v13493_v2  ;;  %v13494_v3 = vld [vmem:[#allocation69_spill] sm:$0xff]  ;;  %v10219_v17 = vpack.c.bf16 %v3432_v7, %v3431_v53  ;;  %v1812_v34 = vmax.f32 %v1796_v23, 0.0  ;;  %v2421_v7 = vld [vmem:[%s12886_s3 + $0x120] sm:$0xff] }
 0x183   :  { %v1783_v38 = vmul.f32 %v13478_v15, %v13494_v3  ;;  %v13495_v31 = vld [vmem:[#allocation29_spill] sm:$0xff]  ;;  %6717 = vmatprep.mubr.f32.mxu1 %v1811_v63  ;;  %13497 = vst [vmem:[#allocation20_spill] sm:$0xff] %v10221_v28  ;;  %v1600_v45 = vadd.f32 %v10091_v58, %v1577_v8  ;;  %v1579_v2 = vmul.f32 %v10055_v1, %v13498_v59  ;;  %v10226_v15 = vpop.permute.xlu0 %4437  ;;  %v1813_v35 = vmax.f32 %v1797_v30, 0.0  ;;  %v10232_v63 = vld [vmem:[%s12887_s1 + $0x2] ss:$0 sm:$0xff]  ;;  %v13507_v3 = vld [vmem:[#allocation31_spill] sm:$0xff] }
 0x184   :  { %v1684_v0 = vmul.f32 %v9978_v57, %v13495_v31  ;;  %13496 = vst [vmem:[#allocation97_spill] sm:$0xff] %v10219_v17  ;;  %v7497_v19 = vpack.c.bf16 %v2420_v26, %v2419_v14  ;;  %v1698_v36 = vadd.f32 %v1682_v33, %v1597_v42  ;;  %13499 = vst [vmem:[#allocation19_spill] sm:$0xff] %v10226_v15  ;;  %v13500_v23 = vld [vmem:[#allocation73_spill] sm:$0xff]  ;;  %7562 = vmatprep.subr.bf16.mxu0 %v10219_v17  ;;  %v13501_v30 = vld [vmem:[#allocation10_spill] sm:$0xff] }
 0x185   :  { %6627 = vmatmul.mubr.f32.gmra.mrb[14].mxu0 %v1275_v22  ;;  %v1798_v31 = vadd.f32 %v1782_v16, %v1697_v55  ;;  %v1699_v53 = vadd.f32 %v1683_v44, %v1598_v4  ;;  %v1784_v8 = vmul.f32 %v10232_v63, %v13500_v23  ;;  %v2422_v4 = vld [vmem:[%s12886_s3 + $0x128] sm:$0xff]  ;;  %v1785_v16 = vmul.f32 %v10232_v63, %v13501_v30  ;;  %v13502_v33 = vld [vmem:[#allocation57_spill] sm:$0xff]  ;;  %v3433_v26 = vld [vmem:[%s12886_s3 + $0xa0] sm:$0xff] }
 0x186   :  { %8048 = vset.pattern.permute.xlu1 %v13204_v54  ;;  %v1799_v22 = vadd.f32 %v1783_v38, %v1698_v36  ;;  %v1700_v55 = vadd.f32 %v1684_v0, %v1599_v51  ;;  %v1685_v14 = vmul.f32 %v9978_v57, %v13502_v33  ;;  %6718 = vmatmul.mubr.f32.vlgmr.msra.gmra.mrb[0].mxu1 %v1812_v34  ;;  %v13503_v36 = vld [vmem:[#allocation106_spill] sm:$0xff]  ;;  %v13504_v44 = vld [vmem:[#allocation52_spill] sm:$0xff]  ;;  %v10260_v0 = vpop.permute.xlu1 %3063 }
 0x187   :  { %3188 = vperm.xlu1 %8048, %v10148_v24   ;;  %v3434_v24 = vld [vmem:[%s12886_s3 + $0xa8] sm:$0xff]  ;;  %v1578_v38 = vmul.f32 %v10055_v1, %v13503_v36  ;;  %v1602_v42 = vadd.f32 %v10091_v58, %v1579_v2  ;;  %6720 = vmatprep.mubr.f32.mxu1 %v1813_v35  ;;  %v1786_v51 = vmul.f32 %v10232_v63, %v13504_v44  ;;  %v1814_v15 = vmax.f32 %v1798_v31, 0.0  ;;  %v13508_v36 = vld [vmem:[#allocation94_spill] sm:$0xff]  ;;  %v10270_v59 = vpop.permute.xlu0 %2990 }
 0x188   :  { %7496 = vmatpush3.bf16.msra.mxu1 %v10132_v5  ;;  %13505 = vst [vmem:[#allocation72_spill] sm:$0xff] %v10260_v0  ;;  %v1800_v33 = vadd.f32 %v1784_v8, %v1699_v53  ;;  %v7501_v30 = vpack.c.bf16 %v2422_v4, %v2421_v7  ;;  %7564 = vmatpush3.bf16.msra.mxu0 %v10219_v17  ;;  %v1815_v23 = vmax.f32 %v1799_v22, 0.0  ;;  %13509 = vst [vmem:[#allocation108_spill] sm:$0xff] %v10270_v59  ;;  %v8094_v31 = vld [vmem:[%s12885_s0 + $0x1c0] sm:$0xff]  ;;  %v2423_v53 = vld [vmem:[%s12886_s3 + $0x130] sm:$0xff] }
 0x189   :  { %7498 = vmatprep.subr.bf16.mxu1 %v7497_v19  ;;  %v10263_v34 = vpack.c.bf16 %v3434_v24, %v3433_v26  ;;  %v1801_v2 = vadd.f32 %v1785_v16, %v1700_v55  ;;  %v1701_v35 = vadd.f32 %v1685_v14, %v1600_v45  ;;  %v1687_v5 = vmul.f32 %v9978_v57, %v13507_v3  ;;  %v2424_v45 = vld [vmem:[%s12886_s3 + $0x138] sm:$0xff]  ;;  %v13510_v8 = vld [vmem:[#allocation32_spill] sm:$0xff]  ;;  %v10286_v22 = vld [vmem:[%s12885_s0 + $0x148] sm:$0xff] }
 0x18a   :  { %v1580_v44 = vmul.f32 %v10055_v1, %v13508_v36  ;;  %6721 = vmatmul.mubr.f32.gmra.mrb[2].mxu1 %v1814_v15  ;;  %v1686_v7 = vmul.f32 %v9978_v57, %v13510_v8  ;;  %v1601_v15 = vadd.f32 %v10091_v58, %v1578_v38  ;;  %v13511_v55 = vld [vmem:[#allocation100_spill] sm:$0xff]  ;;  %v10291_v14 = vpop.permute.xlu1 %3067  ;;  %v1816_v26 = vmax.f32 %v1800_v33, 0.0  ;;  %v2425_v33 = vld [vmem:[%s12886_s3 + $0x140] sm:$0xff] }
 0x18b   :  { %13506 = vst [vmem:[#allocation107_spill] sm:$0xff] %v10263_v34  ;;  %8049 = vset.pattern.permute.xlu1 %v13197_v18  ;;  %6723 = vmatprep.mubr.f32.mxu1 %v1815_v23  ;;  %v1802_v4 = vadd.f32 %v1786_v51, %v1701_v35  ;;  %v1787_v16 = vmul.f32 %v10232_v63, %v13511_v55  ;;  %13512 = vst [vmem:[#allocation71_spill] sm:$0xff] %v10291_v14  ;;  %v13513_v23 = vld [vmem:[#allocation63_spill] sm:$0xff]  ;;  %v1817_v17 = vmax.f32 %v1801_v2, 0.0  ;;  %v13520_v36 = vld [vmem:[#allocation30_spill] sm:$0xff] }
 0x18c   :  { %4432 = vperm.xlu1 %8049, %v8094_v31   ;;  %7500 = vmatpush3.bf16.msra.mxu1 %v7497_v19  ;;  %v1703_v24 = vadd.f32 %v1687_v5, %v1602_v42  ;;  %v1788_v19 = vmul.f32 %v10232_v63, %v13513_v23  ;;  %v13514_v31 = vld [vmem:[#allocation110_spill] sm:$0xff]  ;;  %v7505_v51 = vpack.c.bf16 %v2424_v45, %v2423_v53  ;;  %v2426_v42 = vld [vmem:[%s12886_s3 + $0x148] sm:$0xff]  ;;  %v13515_v5 = vld [vmem:[#allocation45_spill] sm:$0xff] }
 0x18d   :  { %7502 = vmatprep.subr.bf16.mxu1 %v7501_v30  ;;  %7566 = vmatprep.subr.bf16.mxu0 %v10263_v34  ;;  %v1688_v59 = vmul.f32 %v9978_v57, %v13514_v31  ;;  %v1702_v38 = vadd.f32 %v1686_v7, %v1601_v15  ;;  %v1603_v35 = vadd.f32 %v10091_v58, %v1580_v44  ;;  %v10312_v53 = vld [vmem:[%s12887_s1 + $0x8] ss:$0 sm:$0xff]  ;;  %v13516_v7 = vld [vmem:[#allocation53_spill] sm:$0xff]  ;;  %v3435_v44 = vld [vmem:[%s12886_s3 + $0xb0] sm:$0xff]  ;;  %v10331_v31 = vpop.permute.xlu0 %4447  ;;  %v1818_v3 = vmax.f32 %v1802_v4, 0.0 }
 0x18e   :  { %7568 = vmatpush3.bf16.msra.mxu0 %v10263_v34  ;;  %6724 = vmatmul.mubr.f32.gmra.mrb[4].mxu1 %v1816_v26  ;;  %v1789_v2 = vmul.f32 %v10232_v63, %v13515_v5  ;;  %v2289_v45 = vmul.f32 %v10312_v53, %v13465_v39  ;;  %v1581_v15 = vmul.f32 %v10055_v1, %v13516_v7  ;;  %v3436_v34 = vld [vmem:[%s12886_s3 + $0xb8] sm:$0xff]  ;;  %v10329_v5 = vld [vmem:[%s12887_s1 + $0x4] ss:$0 sm:$0xff] }
 0x18f   :  { %v1583_v26 = vmul.f32 %v10055_v1, %v9689_v41  ;;  %6726 = vmatprep.mubr.f32.mxu1 %v1817_v17  ;;  %13517 = vst [vmem:[#allocation21_spill] sm:$0xff] %v10329_v5  ;;  %13518 = vst [vmem:[#allocation59_spill] sm:$0xff] %v10331_v31  ;;  %v10333_v23 = vpop.permute.xlu1 %4519  ;;  %v1803_v17 = vadd.f32 %v1787_v16, %v1702_v38  ;;  %v1804_v55 = vadd.f32 %v1788_v19, %v1703_v24 }
 0x190   :  { %2985 = vperm.xlu1 %8049, %v10286_v22   ;;  %7504 = vmatpush3.bf16.msra.mxu1 %v7501_v30  ;;  %13519 = vst [vmem:[#allocation55_spill] sm:$0xff] %v10333_v23  ;;  %v1704_v8 = vadd.f32 %v1688_v59, %v1603_v35  ;;  %v10337_v18 = vmul.f32 %v9735_v6, %v13452_v12  ;;  %v10349_v6 = vld [vmem:[%s12888_s2 + $0x2] ss:$0 sm:$0xff]  ;;  %v2430_v23 = vld [vmem:[%s12886_s3 + $0x168] sm:$0xff] }
 0x191   :  { %v3300_v41 = vmul.f32 %v10329_v5, %v13520_v36  ;;  %7506 = vmatprep.subr.bf16.mxu1 %v7505_v51  ;;  %v7509_v7 = vpack.c.bf16 %v2426_v42, %v2425_v33  ;;  %v1582_v49 = vmul.f32 %v10055_v1, %v9801_v52  ;;  %v1819_v30 = vmax.f32 %v1803_v17, 0.0  ;;  %v10381_v33 = vld [vmem:[%s12888_s2 + $0x1] ss:$0 sm:$0xff] }
 0x192   :  { %6727 = vmatmul.mubr.f32.gmra.mrb[6].mxu1 %v1818_v3  ;;  %v1805_v4 = vadd.f32 %v1789_v2, %v1704_v8  ;;  %v10344_v16 = vpack.c.bf16 %v3436_v34, %v3435_v44  ;;  %v2312_v59 = vadd.f32 %v10349_v6, %v2289_v45  ;;  %v10354_v24 = vmul.f32 %v9831_v9, %v13465_v39  ;;  %v2427_v34 = vld [vmem:[%s12886_s3 + $0x150] sm:$0xff]  ;;  %v2428_v8 = vld [vmem:[%s12886_s3 + $0x158] sm:$0xff]  ;;  %v10371_v9 = vld [vmem:[%s12887_s1 + $0xa] ss:$0 sm:$0xff] }
 0x193   :  { %v10358_v19 = vmul.f32 %v10312_v53, %v13473_v56  ;;  %v1604_v3 = vadd.f32 %v10091_v58, %v1581_v15  ;;  %v2370_v39 = vmul.f32 %v10371_v9, %v13477_v10  ;;  %v2288_v38 = vmul.f32 %v10312_v53, %v13469_v29  ;;  %6729 = vmatprep.mubr.f32.mxu1 %v1819_v30  ;;  %v3437_v35 = vld [vmem:[%s12886_s3 + $0xc0] sm:$0xff]  ;;  %v3438_v2 = vld [vmem:[%s12886_s3 + $0xc8] sm:$0xff]  ;;  %v10402_v30 = vpop.permute.xlu0 %3000  ;;  %v13528_v29 = vld [vmem:[#allocation44_spill] sm:$0xff] }
 0x194   :  { %8050 = vset.pattern.permute.xlu1 %v13204_v54  ;;  %13521 = vst [vmem:[#allocation35_spill] sm:$0xff] %v10344_v16  ;;  %13522 = vst [vmem:[#allocation16_spill] sm:$0xff] %v10354_v24  ;;  %7508 = vmatpush3.bf16.msra.mxu1 %v7505_v51  ;;  %v1820_v42 = vmax.f32 %v1804_v55, 0.0  ;;  %v3323_v45 = vadd.f32 %v10381_v33, %v3300_v41  ;;  %v10393_v15 = vld [vmem:[%s12887_s1 + $0x6] ss:$0 sm:$0xff]  ;;  %v1821_v51 = vmax.f32 %v1805_v4, 0.0 }
 0x195   :  { %3192 = vperm.xlu1 %8050, %v10017_v50   ;;  %v1606_v50 = vadd.f32 %v10091_v58, %v1583_v26  ;;  %7510 = vmatprep.subr.bf16.mxu1 %v7509_v7  ;;  %v10395_v26 = vpop.permute.xlu1 %3164  ;;  %v13524_v55 = vld [vmem:[#allocation39_spill] sm:$0xff]  ;;  %v1790_v17 = vmul.f32 %v10232_v63, %v9882_v40  ;;  %13525 = vst [vmem:[#allocation104_spill] sm:$0xff] %v10402_v30  ;;  %v2429_v4 = vld [vmem:[%s12886_s3 + $0x160] sm:$0xff] }
 0x196   :  { %13523 = vst [vmem:[#allocation90_spill] sm:$0xff] %v10395_v26  ;;  %7570 = vmatprep.subr.bf16.mxu0 %v10344_v16  ;;  %v1689_v44 = vmul.f32 %v9978_v57, %v13524_v55  ;;  %6730 = vmatmul.mubr.f32.gmra.mrb[8].mxu1 %v1820_v42  ;;  %v7513_v41 = vpack.c.bf16 %v2428_v8, %v2427_v34  ;;  %v10417_v42 = vld [vmem:[%s12887_s1 + $0x5] ss:$0 sm:$0xff]  ;;  %v13526_v34 = vld [vmem:[#allocation89_spill] sm:$0xff] }
 0x197   :  { %7572 = vmatpush3.bf16.msra.mxu0 %v10344_v16  ;;  %v1605_v36 = vadd.f32 %v10091_v58, %v1582_v49  ;;  %v1690_v31 = vmul.f32 %v9978_v57, %v9927_v43  ;;  %6732 = vmatprep.mubr.f32.mxu1 %v1821_v51  ;;  %v1791_v8 = vmul.f32 %v10232_v63, %v13526_v34 }
 0x198   :  { %v1705_v49 = vadd.f32 %v1689_v44, %v1604_v3  ;;  %v10422_v30 = vpack.c.bf16 %v3438_v2, %v3437_v35  ;;  %7512 = vmatpush3.bf16.msra.mxu1 %v7509_v7  ;;  %v3344_v10 = vmul.f32 %v10417_v42, %v10260_v0  ;;  %v3381_v56 = vmul.f32 %v10393_v15, %v10395_v26  ;;  %v3444_v26 = vld [vmem:[%s12886_s3 + $0xf8] sm:$0xff] }
 0x199   :  { %4644 = vperm.xlu1 %8050, %v10202_v32   ;;  %v1706_v16 = vadd.f32 %v1690_v31, %v1605_v36  ;;  %v1691_v24 = vmul.f32 %v9978_v57, %v13528_v29  ;;  %7514 = vmatprep.subr.bf16.mxu1 %v7513_v41  ;;  %v1792_v32 = vmul.f32 %v10232_v63, %v10035_v20  ;;  %v10435_v7 = vpop.permute.xlu1 %4402 }
 0x19a   :  { %13527 = vst [vmem:[#allocation78_spill] sm:$0xff] %v10422_v30  ;;  %v1806_v12 = vadd.f32 %v1790_v17, %v1705_v49  ;;  %7574 = vmatprep.subr.bf16.mxu0 %v10422_v30  ;;  %v7517_v3 = vpack.c.bf16 %v2430_v23, %v2429_v4  ;;  %v1584_v36 = vmul.f32 %v10055_v1, %v9962_v11  ;;  %13529 = vst [vmem:[#allocation22_spill] sm:$0xff] %v10435_v7  ;;  %v10446_v4 = vpop.permute.xlu0 %4457  ;;  %v13540_v7 = vld [vmem:[#allocation53_spill] sm:$0xff] }
 0x19b   :  { %v1807_v31 = vadd.f32 %v1791_v8, %v1706_v16  ;;  %7576 = vmatpush3.bf16.msra.mxu0 %v10422_v30  ;;  %v3360_v35 = vadd.f32 %v3344_v10, %v3323_v45  ;;  %v1707_v2 = vadd.f32 %v1691_v24, %v1606_v50  ;;  %v10440_v51 = vmul.f32 %v10312_v53, %v13485_v46  ;;  %v10453_v10 = vld [vmem:[%s12885_s0 + $0x140] sm:$0xff] }
 0x19c   :  { %v2349_v44 = vadd.f32 %v10337_v18, %v2312_v59  ;;  %v1585_v17 = vmul.f32 %v10055_v1, %v13468_v61  ;;  %v1822_v23 = vmax.f32 %v1806_v12, 0.0  ;;  %13530 = vst [vmem:[#allocation83_spill] sm:$0xff] %v10446_v4  ;;  %v3301_v16 = vmul.f32 %v10329_v5, %v10221_v28  ;;  %7516 = vmatpush3.bf16.msra.mxu1 %v7513_v41  ;;  %v3439_v12 = vld [vmem:[%s12886_s3 + $0xd0] sm:$0xff]  ;;  %v3440_v1 = vld [vmem:[%s12886_s3 + $0xd8] sm:$0xff] }
 0x19d   :  { %8051 = vset.pattern.permute.xlu1 %v13475_v37  ;;  %v1823_v24 = vmax.f32 %v1807_v31, 0.0  ;;  %v3397_v18 = vadd.f32 %v3381_v56, %v3360_v35  ;;  %v1808_v59 = vadd.f32 %v1792_v32, %v1707_v2  ;;  %v2311_v45 = vadd.f32 %v10349_v6, %v2288_v38  ;;  %7518 = vmatprep.subr.bf16.mxu1 %v7517_v3  ;;  %v2431_v38 = vld [vmem:[%s12886_s3 + $0x170] sm:$0xff]  ;;  %v2432_v31 = vld [vmem:[%s12886_s3 + $0x178] sm:$0xff] }
 0x19e   :  { %3095 = vperm.xlu1 %8051, %v10453_v10   ;;  %v10462_v50 = vadd.f32 %v2370_v39, %v2349_v44  ;;  %v2291_v49 = vmul.f32 %v10312_v53, %v13479_v60  ;;  %6733 = vmatmul.mubr.f32.gmra.mrb[10].mxu1 %v1822_v23  ;;  %v10469_v56 = vmul.f32 %v10312_v53, %v13481_v27  ;;  %v10474_v39 = vpop.permute.xlu1 %2955  ;;  %v3441_v23 = vld [vmem:[%s12886_s3 + $0xe0] sm:$0xff] }
 0x19f   :  { %6735 = vmatprep.mubr.f32.mxu1 %v1823_v24  ;;  %v3413_v41 = vmax.f32 %v3397_v18, 0.0  ;;  %v1607_v8 = vadd.f32 %v10091_v58, %v1584_v36  ;;  %v1692_v32 = vmul.f32 %v9978_v57, %v10081_v21  ;;  %13531 = vst [vmem:[#allocation37_spill] sm:$0xff] %v10474_v39  ;;  %v1608_v35 = vadd.f32 %v10091_v58, %v1585_v17  ;;  %v3442_v24 = vld [vmem:[%s12886_s3 + $0xe8] sm:$0xff]  ;;  %v2728_v18 = vld [vmem:[%s12886_s3 + $0x180] sm:$0xff] }
 0x1a0   :  { %v1824_v2 = vmax.f32 %v1808_v59, 0.0  ;;  %v1793_v44 = vmul.f32 %v10232_v63, %v10123_v47  ;;  %v10485_v36 = vpack.c.bf16 %v3440_v1, %v3439_v12  ;;  %v3324_v58 = vadd.f32 %v10381_v33, %v3301_v16  ;;  %v2729_v12 = vld [vmem:[%s12886_s3 + $0x188] sm:$0xff]  ;;  %v3443_v1 = vld [vmem:[%s12886_s3 + $0xf0] sm:$0xff]  ;;  %7520 = vmatpush3.bf16.msra.mxu1 %v7517_v3 }
 0x1a1   :  { %v3345_v17 = vmul.f32 %v10417_v42, %v10291_v14  ;;  %6885 = vmatprep.mubr.f32.mxu0 %v3413_v41  ;;  %v1708_v59 = vadd.f32 %v1692_v32, %v1607_v8  ;;  %v1693_v16 = vmul.f32 %v9978_v57, %v13472_v48  ;;  %v1794_v41 = vmul.f32 %v10232_v63, %v10151_v13  ;;  %v10514_v32 = vpop.permute.xlu0 %3010  ;;  %v10520_v14 = vld [vmem:[%s12887_s1 + $0x9] ss:$0 sm:$0xff] }
 0x1a2   :  { %13532 = vst [vmem:[#allocation92_spill] sm:$0xff] %v10485_v36  ;;  %3099 = vperm.xlu1 %8051, %v10286_v22   ;;  %6736 = vmatmul.mubr.f32.gmra.mrb[12].mxu1 %v1824_v2  ;;  %v7521_v8 = vpack.c.bf16 %v2432_v31, %v2431_v38  ;;  %13533 = vst [vmem:[#allocation33_spill] sm:$0xff] %v10514_v32  ;;  %v2332_v2 = vmul.f32 %v10520_v14, %v13474_v25 }
 0x1a3   :  { %7578 = vmatprep.subr.bf16.mxu0 %v10485_v36  ;;  %v1809_v0 = vadd.f32 %v1793_v44, %v1708_v59  ;;  %v2369_v57 = vmul.f32 %v10371_v9, %v13482_v62  ;;  %v1709_v28 = vadd.f32 %v1693_v16, %v1608_v35  ;;  %v10526_v63 = vpack.c.bf16 %v3442_v24, %v3441_v23  ;;  %v10535_v44 = vld [vmem:[%s12885_s0 + $0x1c8] sm:$0xff]  ;;  %v10538_v32 = vpop.permute.xlu1 %3168  ;;  %v13537_v23 = vld [vmem:[#allocation25_spill] sm:$0xff]  ;;  %v13539_v16 = vld [vmem:[#allocation50_spill] sm:$0xff] }
 0x1a4   :  { %7580 = vmatpush3.bf16.msra.mxu0 %v10485_v36  ;;  %7522 = vmatprep.subr.bf16.mxu1 %v7521_v8  ;;  %v10528_v38 = vpack.c.bf16 %v2729_v12, %v2728_v18  ;;  %v10530_v3 = vpack.c.bf16 %v3444_v26, %v3443_v1  ;;  %v2348_v59 = vadd.f32 %v2332_v2, %v2311_v45  ;;  %v13538_v18 = vld [vmem:[#allocation81_spill] sm:$0xff] }
 0x1a5   :  { %13534 = vst [vmem:[#allocation98_spill] sm:$0xff] %v10526_v63  ;;  %v1825_v31 = vmax.f32 %v1809_v0, 0.0  ;;  %13536 = vst [vmem:[#allocation4_spill] sm:$0xff] %v10538_v32  ;;  %v2313_v35 = vadd.f32 %v10349_v6, %v10358_v19  ;;  %v2334_v24 = vmul.f32 %v10520_v14, %v13537_v23  ;;  %v2295_v26 = vmul.f32 %v10312_v53, %v13538_v18  ;;  %v13561_v23 = vld [vmem:[#allocation57_spill] sm:$0xff] }
 0x1a6   :  { %13535 = vst [vmem:[#allocation13_spill] sm:$0xff] %v10530_v3  ;;  %4551 = vperm.xlu1 %8051, %v10535_v44   ;;  %v3361_v0 = vadd.f32 %v3345_v17, %v3324_v58  ;;  %v1810_v12 = vadd.f32 %v1794_v41, %v1709_v28  ;;  %7582 = vmatprep.subr.bf16.mxu0 %v10526_v63  ;;  %v13541_v58 = vld [vmem:[#allocation28_spill] sm:$0xff] }
 0x1a7   :  { %v3382_v1 = vmul.f32 %v10393_v15, %v10538_v32  ;;  %v2297_v45 = vmul.f32 %v10312_v53, %v13539_v16  ;;  %6738 = vmatprep.mubr.f32.mxu1 %v1825_v31  ;;  %7524 = vmatpush3.bf16.msra.mxu1 %v7521_v8  ;;  %v2385_v2 = vadd.f32 %v2369_v57, %v2348_v59  ;;  %v10560_v8 = vpop.permute.xlu0 %4467  ;;  %v10566_v59 = vpop.permute.xlu1 %4620 }
 0x1a8   :  { %v2350_v19 = vadd.f32 %v2334_v24, %v2313_v35  ;;  %v2314_v4 = vadd.f32 %v10349_v6, %v2291_v49  ;;  %v2299_v36 = vmul.f32 %v10312_v53, %v13540_v7  ;;  %v1826_v30 = vmax.f32 %v1810_v12, 0.0  ;;  %7584 = vmatpush3.bf16.msra.mxu0 %v10526_v63  ;;  %7526 = vmatprep.subr.bf16.mxu1 %v10528_v38  ;;  %v13543_v49 = vld [vmem:[#allocation9_spill] sm:$0xff]  ;;  %v13545_v35 = vld [vmem:[#allocation99_spill] sm:$0xff] }
 0x1a9   :  { %v3398_v28 = vadd.f32 %v3382_v1, %v3361_v0  ;;  %v2301_v17 = vmul.f32 %v10312_v53, %v13541_v58  ;;  %v2303_v41 = vmul.f32 %v10312_v53, %v13468_v61  ;;  %13542 = vst [vmem:[#allocation102_spill] sm:$0xff] %v10560_v8  ;;  %v2401_v57 = vmax.f32 %v2385_v2, 0.0  ;;  %7586 = vmatprep.subr.bf16.mxu0 %v10530_v3  ;;  %v13546_v0 = vld [vmem:[#allocation106_spill] sm:$0xff]  ;;  %v2730_v8 = vld [vmem:[%s12886_s3 + $0x190] sm:$0xff]  ;;  %v2731_v63 = vld [vmem:[%s12886_s3 + $0x198] sm:$0xff] }
 0x1aa   :  { %8052 = vset.pattern.permute.xlu1 %v13204_v54  ;;  %v2371_v31 = vmul.f32 %v10371_v9, %v13543_v49  ;;  %13544 = vst [vmem:[#allocation109_spill] sm:$0xff] %v10566_v59  ;;  %v2294_v24 = vmul.f32 %v10312_v53, %v13545_v35  ;;  %v2296_v12 = vmul.f32 %v10312_v53, %v13546_v0  ;;  %v2402_v1 = vmax.f32 %v10462_v50, 0.0  ;;  %v13547_v2 = vld [vmem:[#allocation42_spill] sm:$0xff]  ;;  %v13563_v0 = vld [vmem:[#allocation32_spill] sm:$0xff] }
 0x1ab   :  { %6739 = vmatmul.mubr.f32.gmra.mrb[14].mxu1 %v1826_v30  ;;  %3196 = vperm.xlu1 %8052, %v10453_v10   ;;  %v2335_v32 = vmul.f32 %v10520_v14, %v13547_v2  ;;  %v2316_v59 = vadd.f32 %v10349_v6, %v10469_v56  ;;  %v2318_v61 = vadd.f32 %v10349_v6, %v2295_v26  ;;  %v3414_v39 = vmax.f32 %v3398_v28, 0.0  ;;  %v13548_v2 = vld [vmem:[#allocation12_spill] sm:$0xff] }
 0x1ac   :  { %v10586_v30 = vadd.f32 %v10349_v6, %v2297_v45  ;;  %6773 = vmatprep.mubr.f32.mxu1 %v2401_v57  ;;  %v2387_v10 = vadd.f32 %v2371_v31, %v2350_v19  ;;  %v10589_v50 = vadd.f32 %v10349_v6, %v2299_v36  ;;  %7588 = vmatpush3.bf16.msra.mxu0 %v10530_v3  ;;  %v13549_v57 = vld [vmem:[#allocation46_spill] sm:$0xff]  ;;  %v10607_v31 = vpop.permute.xlu1 %3071 }
 0x1ad   :  { %v2351_v58 = vadd.f32 %v2335_v32, %v2314_v4  ;;  %v2372_v49 = vmul.f32 %v10371_v9, %v13548_v2  ;;  %v10595_v7 = vadd.f32 %v10349_v6, %v2301_v17  ;;  %v10598_v56 = vadd.f32 %v10349_v6, %v2303_v41  ;;  %v13550_v36 = vld [vmem:[#allocation94_spill] sm:$0xff]  ;;  %13552 = vst [vmem:[#allocation61_spill] sm:$0xff] %v10607_v31  ;;  %v10615_v41 = vpop.permute.xlu0 %4515 }
 0x1ae   :  { %v2403_v26 = vmax.f32 %v2387_v10, 0.0  ;;  %v7529_v45 = vpack.c.bf16 %v2731_v63, %v2730_v8  ;;  %v10602_v19 = vmul.f32 %v10329_v5, %v13549_v57  ;;  %v2298_v28 = vmul.f32 %v10312_v53, %v13550_v36  ;;  %v2732_v17 = vld [vmem:[%s12886_s3 + $0x1a0] sm:$0xff]  ;;  %v2733_v63 = vld [vmem:[%s12886_s3 + $0x1a8] sm:$0xff]  ;;  %13553 = vst [vmem:[#allocation14_spill] sm:$0xff] %v10615_v41  ;;  %v2735_v36 = vld [vmem:[%s12886_s3 + $0x1b8] sm:$0xff] }
 0x1af   :  { %6774 = vmatmul.mubr.f32.vlgmr.msra.gmra.mrb[0].mxu1 %v2402_v1  ;;  %v2388_v4 = vadd.f32 %v2372_v49, %v2351_v58  ;;  %v13551_v32 = vmov 0   ;;  %v2315_v58 = vadd.f32 %v10349_v6, %v10440_v51  ;;  %v13554_v8 = vld [vmem:[#allocation47_spill] sm:$0xff]  ;;  %v13555_v1 = vld [vmem:[#allocation69_spill] sm:$0xff]  ;;  %v10626_v57 = vmul.f32 %v10312_v53, %v9801_v52  ;;  %6886 = vmatmul.mubr.f32.vlgmr.msra.gmra.mrb[16].mxu0 %v3414_v39  ;;  %v2734_v51 = vld [vmem:[%s12886_s3 + $0x1b0] sm:$0xff] }
 0x1b0   :  { %8053 = vset.pattern.permute.xlu1 %v13551_v32  ;;  %6776 = vmatprep.mubr.f32.mxu1 %v2403_v26  ;;  %v2336_v49 = vmul.f32 %v10520_v14, %v13554_v8  ;;  %v2373_v10 = vmul.f32 %v10371_v9, %v13555_v1  ;;  %v13556_v41 = vld [vmem:[#allocation27_spill] sm:$0xff]  ;;  %v7533_v39 = vpack.c.bf16 %v2733_v63, %v2732_v17  ;;  %v13559_v8 = vld [vmem:[#allocation10_spill] sm:$0xff]  ;;  %v13562_v63 = vld [vmem:[#allocation52_spill] sm:$0xff] }
 0x1b1   :  { %7528 = vmatpush3.bf16.msra.mxu1 %v10528_v38  ;;  %v2404_v3 = vmax.f32 %v2388_v4, 0.0  ;;  %v2337_v26 = vmul.f32 %v10520_v14, %v13556_v41  ;;  %v13557_v38 = vld [vmem:[#allocation73_spill] sm:$0xff]  ;;  %v8101_v4 = vld [vmem:[%s12885_s0 + $0x1d0] sm:$0xff]  ;;  %v2317_v52 = vadd.f32 %v10349_v6, %v2294_v24  ;;  %v2375_v2 = vmul.f32 %v10371_v9, %v13559_v8  ;;  %v2736_v8 = vld [vmem:[%s12886_s3 + $0x1c0] sm:$0xff] }
 0x1b2   :  { %7530 = vmatprep.subr.bf16.mxu1 %v7529_v45  ;;  %v2374_v32 = vmul.f32 %v10371_v9, %v13557_v38  ;;  %v2352_v5 = vadd.f32 %v2336_v49, %v2315_v58  ;;  %4442 = vperm.xlu1 %8053, %v8101_v4   ;;  %v13558_v41 = vld [vmem:[#allocation29_spill] sm:$0xff]  ;;  %v10651_v49 = vpop.permute.xlu1 %3075  ;;  %v2339_v17 = vmul.f32 %v10520_v14, %v13561_v23 }
 0x1b3   :  { %v2338_v38 = vmul.f32 %v10520_v14, %v13558_v41  ;;  %6777 = vmatmul.mubr.f32.gmra.mrb[2].mxu1 %v2404_v3  ;;  %v2353_v1 = vadd.f32 %v2337_v26, %v2316_v59  ;;  %v10649_v58 = vld [vmem:[%s12885_s0 + $0x158] sm:$0xff]  ;;  %13560 = vst [vmem:[#allocation49_spill] sm:$0xff] %v10651_v49  ;;  %v2376_v24 = vmul.f32 %v10371_v9, %v13562_v63  ;;  %v2737_v49 = vld [vmem:[%s12886_s3 + $0x1c8] sm:$0xff] }
 0x1b4   :  { %v2389_v4 = vadd.f32 %v2373_v10, %v2352_v5  ;;  %v7537_v59 = vpack.c.bf16 %v2735_v36, %v2734_v51  ;;  %v2319_v26 = vadd.f32 %v10349_v6, %v2296_v12  ;;  %v2355_v23 = vadd.f32 %v2339_v17, %v2318_v61  ;;  %v13564_v5 = vld [vmem:[#allocation100_spill] sm:$0xff]  ;;  %v13566_v10 = vld [vmem:[#allocation31_spill] sm:$0xff] }
 0x1b5   :  { %7532 = vmatpush3.bf16.msra.mxu1 %v7529_v45  ;;  %v2354_v3 = vadd.f32 %v2338_v38, %v2317_v52  ;;  %v2390_v41 = vadd.f32 %v2374_v32, %v2353_v1  ;;  %v2340_v63 = vmul.f32 %v10520_v14, %v13563_v0  ;;  %v2377_v52 = vmul.f32 %v10371_v9, %v13564_v5  ;;  %v10668_v45 = vpop.permute.xlu0 %4523  ;;  %v13567_v51 = vld [vmem:[#allocation63_spill] sm:$0xff] }
 0x1b6   :  { %7534 = vmatprep.subr.bf16.mxu1 %v7533_v39  ;;  %13565 = vst [vmem:[#allocation6_spill] sm:$0xff] %v10668_v45  ;;  %v2405_v12 = vmax.f32 %v2389_v4, 0.0  ;;  %2995 = vperm.xlu1 %8053, %v10649_v58   ;;  %v2341_v38 = vmul.f32 %v10520_v14, %v13566_v10  ;;  %v2378_v32 = vmul.f32 %v10371_v9, %v13567_v51  ;;  %v10675_v62 = vpop.permute.xlu1 %4527  ;;  %v13569_v51 = vld [vmem:[#allocation45_spill] sm:$0xff] }
 0x1b7   :  { %v2391_v36 = vadd.f32 %v2375_v2, %v2354_v3  ;;  %v2406_v1 = vmax.f32 %v2390_v41, 0.0  ;;  %v2392_v61 = vadd.f32 %v2376_v24, %v2355_v23  ;;  %v2356_v17 = vadd.f32 %v2340_v63, %v2319_v26  ;;  %v13568_v3 = vld [vmem:[#allocation110_spill] sm:$0xff] }
 0x1b8   :  { %v7541_v0 = vpack.c.bf16 %v2737_v49, %v2736_v8  ;;  %6779 = vmatprep.mubr.f32.mxu1 %v2405_v12  ;;  %v2357_v4 = vadd.f32 %v2341_v38, %v10586_v30  ;;  %v2321_v2 = vadd.f32 %v10349_v6, %v2298_v28  ;;  %v2342_v45 = vmul.f32 %v10520_v14, %v13568_v3  ;;  %v2738_v28 = vld [vmem:[%s12886_s3 + $0x1d0] sm:$0xff]  ;;  %v2739_v49 = vld [vmem:[%s12886_s3 + $0x1d8] sm:$0xff] }
 0x1b9   :  { %v2407_v5 = vmax.f32 %v2391_v36, 0.0  ;;  %7536 = vmatpush3.bf16.msra.mxu1 %v7533_v39  ;;  %v2393_v10 = vadd.f32 %v2377_v52, %v2356_v17  ;;  %v2379_v23 = vmul.f32 %v10371_v9, %v13569_v51  ;;  %v2343_v41 = vmul.f32 %v10520_v14, %v13524_v55  ;;  %v10698_v52 = vpop.permute.xlu0 %4531  ;;  %v2740_v17 = vld [vmem:[%s12886_s3 + $0x1e0] sm:$0xff] }
 0x1ba   :  { %6780 = vmatmul.mubr.f32.gmra.mrb[4].mxu1 %v2406_v1  ;;  %7538 = vmatprep.subr.bf16.mxu1 %v7537_v59  ;;  %v2394_v8 = vadd.f32 %v2378_v32, %v2357_v4  ;;  %v2358_v39 = vadd.f32 %v2342_v45, %v2321_v2  ;;  %v2380_v30 = vmul.f32 %v10371_v9, %v9882_v40  ;;  %v2408_v24 = vmax.f32 %v2392_v61, 0.0 }
 0x1bb   :  { %6782 = vmatprep.mubr.f32.mxu1 %v2407_v5  ;;  %8054 = vset.pattern.permute.xlu1 %v13204_v54  ;;  %v2302_v63 = vmul.f32 %v10312_v53, %v9962_v11  ;;  %v2409_v26 = vmax.f32 %v2393_v10, 0.0  ;;  %v2359_v5 = vadd.f32 %v2343_v41, %v10589_v50  ;;  %v10700_v12 = vpop.permute.xlu1 %3172  ;;  %v2323_v36 = vadd.f32 %v10349_v6, %v10626_v57 }
 0x1bc   :  { %3200 = vperm.xlu1 %8054, %v10286_v22   ;;  %v2395_v45 = vadd.f32 %v2379_v23, %v2358_v39  ;;  %13570 = vst [vmem:[#allocation67_spill] sm:$0xff] %v10700_v12  ;;  %v2344_v38 = vmul.f32 %v10520_v14, %v9927_v43  ;;  %v2381_v53 = vmul.f32 %v10371_v9, %v13526_v34  ;;  %v2410_v50 = vmax.f32 %v2394_v8, 0.0 }
 0x1bd   :  { %7540 = vmatpush3.bf16.msra.mxu1 %v7537_v59  ;;  %v3325_v22 = vadd.f32 %v10381_v33, %v10602_v19  ;;  %v7545_v10 = vpack.c.bf16 %v2739_v49, %v2738_v28  ;;  %v2345_v59 = vmul.f32 %v10520_v14, %v13528_v29  ;;  %v2396_v1 = vadd.f32 %v2380_v30, %v2359_v5  ;;  %v2741_v19 = vld [vmem:[%s12886_s3 + $0x1e8] sm:$0xff]  ;;  %v10743_v49 = vld [vmem:[%s12888_s2 + $0x3] ss:$0 sm:$0xff] }
 0x1be   :  { %6783 = vmatmul.mubr.f32.gmra.mrb[6].mxu1 %v2408_v24  ;;  %7542 = vmatprep.subr.bf16.mxu1 %v7541_v0  ;;  %v2411_v32 = vmax.f32 %v2395_v45, 0.0  ;;  %v2360_v57 = vadd.f32 %v2344_v38, %v2323_v36  ;;  %v2382_v61 = vmul.f32 %v10371_v9, %v10035_v20  ;;  %v2325_v2 = vadd.f32 %v10349_v6, %v2302_v63  ;;  %v10736_v6 = vld [vmem:[%s12887_s1 + $0xd] ss:$0 sm:$0xff]  ;;  %v13572_v63 = vld [vmem:[#allocation16_spill] sm:$0xff]  ;;  %v10754_v45 = vpop.permute.xlu0 %4539 }
 0x1bf   :  { %6785 = vmatprep.mubr.f32.mxu1 %v2409_v26  ;;  %v2361_v4 = vadd.f32 %v2345_v59, %v10595_v7  ;;  %v2346_v23 = vmul.f32 %v10520_v14, %v10081_v21  ;;  %v2383_v41 = vmul.f32 %v10371_v9, %v10123_v47  ;;  %v3346_v39 = vmul.f32 %v10417_v42, %v10607_v31  ;;  %v13571_v7 = vld [vmem:[#allocation23_spill] sm:$0xff]  ;;  %v13573_v26 = vld [vmem:[#allocation34_spill] sm:$0xff] }
 0x1c0   :  { %4652 = vperm.xlu1 %8054, %v10535_v44   ;;  %v2397_v8 = vadd.f32 %v2381_v53, %v2360_v57  ;;  %v3383_v30 = vmul.f32 %v10393_v15, %v10700_v12  ;;  %v2347_v44 = vmul.f32 %v10520_v14, %v13472_v48  ;;  %v2644_v28 = vmul.f32 %v10736_v6, %v13571_v7  ;;  %v10750_v14 = vld [vmem:[%s12887_s1 + $0xc] ss:$0 sm:$0xff] }
 0x1c1   :  { %7544 = vmatpush3.bf16.msra.mxu1 %v7541_v0  ;;  %v7549_v0 = vpack.c.bf16 %v2741_v19, %v2740_v17  ;;  %v2623_v24 = vadd.f32 %v10743_v49, %v13572_v63  ;;  %v2599_v5 = vmul.f32 %v10750_v14, %v13573_v26  ;;  %13574 = vst [vmem:[#allocation51_spill] sm:$0xff] %v10754_v45  ;;  %v10756_v38 = vpop.permute.xlu1 %4412  ;;  %v2742_v19 = vld [vmem:[%s12886_s3 + $0x1f0] sm:$0xff] }
 0x1c2   :  { %6786 = vmatmul.mubr.f32.gmra.mrb[8].mxu1 %v2410_v50  ;;  %7546 = vmatprep.subr.bf16.mxu1 %v7545_v10  ;;  %v2362_v36 = vadd.f32 %v2346_v23, %v2325_v2  ;;  %v3362_v53 = vadd.f32 %v3346_v39, %v3325_v22  ;;  %v2412_v50 = vmax.f32 %v2396_v1, 0.0  ;;  %v2398_v59 = vadd.f32 %v2382_v61, %v2361_v4  ;;  %v10771_v22 = vld [vmem:[%s12885_s0 + $0x150] sm:$0xff]  ;;  %v10779_v4 = vld [vmem:[%s12887_s1 + $0xe] ss:$0 sm:$0xff]  ;;  %v13576_v23 = vld [vmem:[#allocation38_spill] sm:$0xff] }
 0x1c3   :  { %6788 = vmatprep.mubr.f32.mxu1 %v2411_v32  ;;  %v2363_v57 = vadd.f32 %v2347_v44, %v10598_v56  ;;  %v2384_v17 = vmul.f32 %v10371_v9, %v10151_v13  ;;  %v2743_v32 = vld [vmem:[%s12886_s3 + $0x1f8] sm:$0xff]  ;;  %v2413_v2 = vmax.f32 %v2397_v8, 0.0  ;;  %v13575_v9 = vld [vmem:[#allocation82_spill] sm:$0xff]  ;;  %v2660_v8 = vadd.f32 %v2644_v28, %v2623_v24  ;;  %v10794_v24 = vpop.permute.xlu0 %4547 }
 0x1c4   :  { %8055 = vset.pattern.permute.xlu1 %v13475_v37  ;;  %v2399_v56 = vadd.f32 %v2383_v41, %v2362_v36  ;;  %v3399_v1 = vadd.f32 %v3383_v30, %v3362_v53  ;;  %v2601_v61 = vmul.f32 %v10750_v14, %v13575_v9  ;;  %v2622_v39 = vadd.f32 %v10743_v49, %v2599_v5 }
 0x1c5   :  { %7548 = vmatpush3.bf16.msra.mxu1 %v7545_v10  ;;  %3103 = vperm.xlu1 %8055, %v10771_v22   ;;  %v2681_v10 = vmul.f32 %v10779_v4, %v13576_v23  ;;  %v7553_v41 = vpack.c.bf16 %v2743_v32, %v2742_v19  ;;  %v10784_v30 = vpop.permute.xlu1 %2965  ;;  %v2603_v7 = vmul.f32 %v10750_v14, %v13485_v46  ;;  %v2414_v26 = vmax.f32 %v2398_v59, 0.0  ;;  %v13580_v32 = vld [vmem:[#allocation25_spill] sm:$0xff] }
 0x1c6   :  { %6789 = vmatmul.mubr.f32.gmra.mrb[10].mxu1 %v2412_v50  ;;  %7550 = vmatprep.subr.bf16.mxu1 %v7549_v0  ;;  %v3415_v44 = vmax.f32 %v3399_v1, 0.0  ;;  %v2602_v63 = vmul.f32 %v10750_v14, %v13479_v60  ;;  %v2400_v36 = vadd.f32 %v2384_v17, %v2363_v57  ;;  %v2605_v53 = vmul.f32 %v10750_v14, %v13545_v35  ;;  %v13578_v35 = vld [vmem:[#allocation11_spill] sm:$0xff]  ;;  %v13579_v17 = vld [vmem:[#allocation106_spill] sm:$0xff]  ;;  %v13582_v1 = vld [vmem:[#allocation53_spill] sm:$0xff] }
 0x1c7   :  { %6791 = vmatprep.mubr.f32.mxu1 %v2413_v2  ;;  %v2604_v28 = vmul.f32 %v10750_v14, %v13481_v27  ;;  %13577 = vst [vmem:[#allocation112_spill] sm:$0xff] %v10794_v24  ;;  %v2415_v5 = vmax.f32 %v2399_v56, 0.0  ;;  %v2643_v50 = vmul.f32 %v10736_v6, %v13474_v25  ;;  %v2697_v46 = vadd.f32 %v2681_v10, %v2660_v8 }
 0x1c8   :  { %6888 = vmatprep.mubr.f32.mxu0 %v3415_v44  ;;  %v2606_v60 = vmul.f32 %v10750_v14, %v13538_v18  ;;  %v2608_v59 = vmul.f32 %v10750_v14, %v13539_v16  ;;  %v2624_v57 = vadd.f32 %v10743_v49, %v2601_v61  ;;  %v10808_v25 = vmul.f32 %v10750_v14, %v13579_v17  ;;  %v13583_v61 = vld [vmem:[#allocation9_spill] sm:$0xff] }
 0x1c9   :  { %7552 = vmatpush3.bf16.msra.mxu1 %v7549_v0  ;;  %3107 = vperm.xlu1 %8055, %v10649_v58   ;;  %v2659_v27 = vadd.f32 %v2643_v50, %v2622_v39  ;;  %v2680_v0 = vmul.f32 %v10779_v4, %v13578_v35  ;;  %v2625_v18 = vadd.f32 %v10743_v49, %v2602_v63  ;;  %v2416_v19 = vmax.f32 %v2400_v36, 0.0  ;;  %v10829_v63 = vld [vmem:[%s12885_s0 + $0x1d8] sm:$0xff]  ;;  %v13588_v35 = vld [vmem:[#allocation47_spill] sm:$0xff] }
 0x1ca   :  { %6792 = vmatmul.mubr.f32.gmra.mrb[12].mxu1 %v2414_v26  ;;  %7554 = vmatprep.subr.bf16.mxu1 %v7553_v41  ;;  %v2645_v16 = vmul.f32 %v10736_v6, %v13580_v32  ;;  %v10813_v2 = vpop.permute.xlu1 %3176  ;;  %v2627_v56 = vadd.f32 %v10743_v49, %v2604_v28  ;;  %v2610_v9 = vmul.f32 %v10750_v14, %v13582_v1  ;;  %v2713_v8 = vmax.f32 %v2697_v46, 0.0  ;;  %v10832_v26 = vpop.permute.xlu0 %4555  ;;  %v13585_v28 = vld [vmem:[#allocation87_spill] sm:$0xff]  ;;  %v13587_v46 = vld [vmem:[#allocation12_spill] sm:$0xff]  ;;  %v13589_v17 = vld [vmem:[#allocation69_spill] sm:$0xff] }
 0x1cb   :  { %6794 = vmatprep.mubr.f32.mxu1 %v2415_v5  ;;  %13581 = vst [vmem:[#allocation7_spill] sm:$0xff] %v10813_v2  ;;  %v2696_v23 = vadd.f32 %v2680_v0, %v2659_v27  ;;  %v2682_v10 = vmul.f32 %v10779_v4, %v13583_v61  ;;  %v10821_v39 = vadd.f32 %v10743_v49, %v2606_v60  ;;  %13584 = vst [vmem:[#allocation8_spill] sm:$0xff] %v10832_v26  ;;  %v13586_v5 = vld [vmem:[#allocation42_spill] sm:$0xff]  ;;  %v13590_v32 = vld [vmem:[#allocation27_spill] sm:$0xff] }
 0x1cc   :  { %v10824_v44 = vadd.f32 %v10743_v49, %v2608_v59  ;;  %v2646_v50 = vmul.f32 %v10736_v6, %v13586_v5  ;;  %v2683_v60 = vmul.f32 %v10779_v4, %v13587_v46  ;;  %v2626_v59 = vadd.f32 %v10743_v49, %v2603_v7  ;;  %v13592_v5 = vld [vmem:[#allocation37_spill] sm:$0xff] }
 0x1cd   :  { %7556 = vmatpush3.bf16.msra.mxu1 %v7553_v41  ;;  %4559 = vperm.xlu1 %8055, %v10829_v63   ;;  %v2661_v41 = vadd.f32 %v2645_v16, %v2624_v57  ;;  %v2712_v36 = vmax.f32 %v2696_v23, 0.0  ;;  %v2647_v0 = vmul.f32 %v10736_v6, %v13588_v35  ;;  %v2684_v57 = vmul.f32 %v10779_v4, %v13589_v17  ;;  %v13591_v23 = vld [vmem:[#allocation28_spill] sm:$0xff]  ;;  %v13593_v7 = vld [vmem:[#allocation21_spill] sm:$0xff] }
 0x1ce   :  { %6795 = vmatmul.mubr.f32.gmra.mrb[14].mxu1 %v2416_v19  ;;  %7686 = vmatprep.subr.bf16.mxu1 %v13585_v28  ;;  %v2648_v16 = vmul.f32 %v10736_v6, %v13590_v32  ;;  %v10849_v1 = vadd.f32 %v10743_v49, %v2610_v9  ;;  %v2612_v61 = vmul.f32 %v10750_v14, %v13591_v23  ;;  %v13594_v23 = vld [vmem:[#allocation73_spill] sm:$0xff] }
 0x1cf   :  { %v2698_v27 = vadd.f32 %v2682_v10, %v2661_v41  ;;  %v10844_v19 = vpop.permute.xlu1 %4628  ;;  %v3303_v10 = vmul.f32 %v13593_v7, %v13592_v5  ;;  %6829 = vmatprep.mubr.f32.mxu1 %v2712_v36  ;;  %v2662_v41 = vadd.f32 %v2646_v50, %v2625_v18  ;;  %v3384_v35 = vmul.f32 %v10393_v15, %v10813_v2  ;;  %v13595_v18 = vld [vmem:[#allocation97_spill] sm:$0xff]  ;;  %v13597_v2 = vld [vmem:[#allocation10_spill] sm:$0xff] }
 0x1d0   :  { %v2663_v17 = vadd.f32 %v2647_v0, %v2626_v59  ;;  %v2664_v32 = vadd.f32 %v2648_v16, %v2627_v56  ;;  %v2685_v12 = vmul.f32 %v10779_v4, %v13594_v23  ;;  %v2628_v36 = vadd.f32 %v10743_v49, %v2605_v53  ;;  %v13596_v50 = vld [vmem:[#allocation29_spill] sm:$0xff]  ;;  %v10868_v59 = vpop.permute.xlu0 %4563 }
 0x1d1   :  { %v2714_v46 = vmax.f32 %v2698_v27, 0.0  ;;  %8056 = vset.pattern.permute.xlu1 %v13204_v54  ;;  %v2699_v9 = vadd.f32 %v2683_v60, %v2662_v41  ;;  %v2649_v27 = vmul.f32 %v10736_v6, %v13596_v50  ;;  %v2686_v56 = vmul.f32 %v10779_v4, %v13597_v2  ;;  %13598 = vst [vmem:[#allocation76_spill] sm:$0xff] %v10868_v59  ;;  %v13599_v0 = vld [vmem:[#allocation49_spill] sm:$0xff]  ;;  %v13601_v2 = vld [vmem:[#allocation70_spill] sm:$0xff] }
 0x1d2   :  { %6830 = vmatmul.mubr.f32.vlgmr.msra.gmra.mrb[0].mxu1 %v2713_v8  ;;  %3204 = vperm.xlu1 %8056, %v10771_v22   ;;  %v2700_v8 = vadd.f32 %v2684_v57, %v2663_v17  ;;  %v2701_v60 = vadd.f32 %v2685_v12, %v2664_v32  ;;  %v3326_v22 = vadd.f32 %v10381_v33, %v3303_v10  ;;  %v13600_v57 = vld [vmem:[#allocation93_spill] sm:$0xff]  ;;  %v13603_v10 = vmov 0  }
 0x1d3   :  { %7688 = vmatpush3.bf16.msra.mxu1 %v13585_v28  ;;  %6832 = vmatprep.mubr.f32.mxu1 %v2714_v46  ;;  %v2715_v28 = vmax.f32 %v2699_v9, 0.0  ;;  %v3347_v16 = vmul.f32 %v10417_v42, %v13599_v0  ;;  %v10876_v41 = vadd.f32 %v10743_v49, %v2612_v61  ;;  %v2614_v46 = vmul.f32 %v10750_v14, %v13600_v57  ;;  %v13602_v9 = vld [vmem:[#allocation94_spill] sm:$0xff]  ;;  %v13604_v0 = vld [vmem:[#allocation57_spill] sm:$0xff]  ;;  %v13605_v57 = vld [vmem:[#allocation52_spill] sm:$0xff] }
 0x1d4   :  { %7690 = vmatprep.subr.bf16.mxu1 %v13595_v18  ;;  %v10873_v53 = vpop.permute.xlu1 %3079  ;;  %v2716_v17 = vmax.f32 %v2700_v8, 0.0  ;;  %v2665_v23 = vadd.f32 %v2649_v27, %v2628_v36  ;;  %v4753_v50 = vmul.f32 %v13593_v7, %v13601_v2  ;;  %v2609_v12 = vmul.f32 %v10750_v14, %v13602_v9  ;;  %v13606_v27 = vld [vmem:[#allocation107_spill] sm:$0xff] }
 0x1d5   :  { %v3363_v32 = vadd.f32 %v3347_v16, %v3326_v22  ;;  %v2650_v31 = vmul.f32 %v10736_v6, %v13604_v0  ;;  %v2687_v36 = vmul.f32 %v10779_v4, %v13605_v57  ;;  %v2717_v8 = vmax.f32 %v2701_v60, 0.0  ;;  %v10911_v57 = vpop.permute.xlu0 %4571  ;;  %v13613_v2 = vld [vmem:[#allocation35_spill] sm:$0xff] }
 0x1d6   :  { %6833 = vmatmul.mubr.f32.gmra.mrb[2].mxu1 %v2715_v28  ;;  %8057 = vset.pattern.permute.xlu1 %v13603_v10  ;;  %v2702_v61 = vadd.f32 %v2686_v56, %v2665_v23  ;;  %v8108_v28 = vld [vmem:[%s12885_s0 + $0x1e0] sm:$0xff]  ;;  %v2630_v22 = vadd.f32 %v10743_v49, %v10808_v25  ;;  %v10901_v0 = vadd.f32 %v10743_v49, %v2614_v46  ;;  %v10916_v46 = vld [vmem:[%s12885_s0 + $0x168] sm:$0xff] }
 0x1d7   :  { %6835 = vmatprep.mubr.f32.mxu1 %v2716_v17  ;;  %7692 = vmatpush3.bf16.msra.mxu1 %v13595_v18  ;;  %v3400_v5 = vadd.f32 %v3384_v35, %v3363_v32  ;;  %v13607_v18 = vld [vmem:[#allocation32_spill] sm:$0xff]  ;;  %v2666_v17 = vadd.f32 %v2650_v31, %v10821_v39  ;;  %v10907_v9 = vadd.f32 %v10381_v33, %v4753_v50  ;;  %v13609_v32 = vld [vmem:[#allocation18_spill] sm:$0xff]  ;;  %v13611_v31 = vld [vmem:[#allocation85_spill] sm:$0xff] }
 0x1d8   :  { %7694 = vmatprep.subr.bf16.mxu1 %v13606_v27  ;;  %4452 = vperm.xlu1 %8057, %v8108_v28   ;;  %v2651_v56 = vmul.f32 %v10736_v6, %v13607_v18  ;;  %v10898_v16 = vpop.permute.xlu1 %3083  ;;  %v2718_v60 = vmax.f32 %v2702_v61, 0.0  ;;  %v13608_v35 = vld [vmem:[#allocation100_spill] sm:$0xff]  ;;  %v3304_v25 = vmul.f32 %v13593_v7, %v13609_v32  ;;  %13610 = vst [vmem:[#allocation88_spill] sm:$0xff] %v10911_v57  ;;  %v13612_v61 = vld [vmem:[#allocation31_spill] sm:$0xff] }
 0x1d9   :  { %v2688_v23 = vmul.f32 %v10779_v4, %v13608_v35  ;;  %v3416_v28 = vmax.f32 %v3400_v5, 0.0  ;;  %v2611_v39 = vmul.f32 %v10750_v14, %v13611_v31  ;;  %v2703_v50 = vadd.f32 %v2687_v36, %v2666_v17  ;;  %v13616_v17 = vld [vmem:[#allocation60_spill] sm:$0xff]  ;;  %v13617_v31 = vld [vmem:[#allocation14_spill] sm:$0xff] }
 0x1da   :  { %6836 = vmatmul.mubr.f32.gmra.mrb[4].mxu1 %v2717_v8  ;;  %v2667_v18 = vadd.f32 %v2651_v56, %v2630_v22  ;;  %v2652_v35 = vmul.f32 %v10736_v6, %v13612_v61  ;;  %v13614_v8 = vld [vmem:[#allocation63_spill] sm:$0xff]  ;;  %v2632_v56 = vadd.f32 %v10743_v49, %v2609_v12  ;;  %v2653_v36 = vmul.f32 %v10736_v6, %v13568_v3 }
 0x1db   :  { %6838 = vmatprep.mubr.f32.mxu1 %v2718_v60  ;;  %7696 = vmatpush3.bf16.msra.mxu1 %v13606_v27  ;;  %v2689_v22 = vmul.f32 %v10779_v4, %v13614_v8  ;;  %v2719_v59 = vmax.f32 %v2703_v50, 0.0  ;;  %v2690_v60 = vmul.f32 %v10779_v4, %v13569_v51  ;;  %v2613_v12 = vmul.f32 %v10750_v14, %v9962_v11  ;;  %v10946_v51 = vpop.permute.xlu0 %4616 }
 0x1dc   :  { %6889 = vmatmul.mubr.f32.gmra.mrb[18].mxu0 %v3416_v28  ;;  %7698 = vmatprep.subr.bf16.mxu1 %v13613_v2  ;;  %v2704_v5 = vadd.f32 %v2688_v23, %v2667_v18  ;;  %v10927_v57 = vpop.permute.xlu1 %4535  ;;  %v2668_v27 = vadd.f32 %v2652_v35, %v10824_v44  ;;  %v10937_v23 = vmul.f32 %v13593_v7, %v13616_v17 }
 0x1dd   :  { %13615 = vst [vmem:[#allocation101_spill] sm:$0xff] %v10927_v57  ;;  %3005 = vperm.xlu1 %8057, %v10916_v46   ;;  %v3327_v28 = vadd.f32 %v10381_v33, %v3304_v25  ;;  %v4796_v50 = vmul.f32 %v10417_v42, %v13617_v31  ;;  %v2669_v61 = vadd.f32 %v2653_v36, %v2632_v56 }
 0x1de   :  { %v2720_v18 = vmax.f32 %v2704_v5, 0.0  ;;  %6839 = vmatmul.mubr.f32.gmra.mrb[6].mxu1 %v2719_v59  ;;  %v2705_v44 = vadd.f32 %v2689_v22, %v2668_v27  ;;  %v2654_v3 = vmul.f32 %v10736_v6, %v13524_v55  ;;  %v2691_v25 = vmul.f32 %v10779_v4, %v9882_v40  ;;  %v13618_v59 = vld [vmem:[#allocation78_spill] sm:$0xff] }
 0x1df   :  { %7700 = vmatpush3.bf16.msra.mxu1 %v13613_v2  ;;  %v2634_v11 = vadd.f32 %v10743_v49, %v2611_v39  ;;  %v2655_v14 = vmul.f32 %v10736_v6, %v9927_v43  ;;  %v2706_v5 = vadd.f32 %v2690_v60, %v2669_v61  ;;  %v2692_v8 = vmul.f32 %v10779_v4, %v13526_v34  ;;  %v13619_v2 = vld [vmem:[#allocation95_spill] sm:$0xff] }
 0x1e0   :  { %6841 = vmatprep.mubr.f32.mxu1 %v2720_v18  ;;  %v2721_v35 = vmax.f32 %v2705_v44, 0.0  ;;  %7702 = vmatprep.subr.bf16.mxu1 %v13618_v59  ;;  %v2670_v55 = vadd.f32 %v2654_v3, %v10849_v1  ;;  %v4752_v22 = vmul.f32 %v13593_v7, %v13619_v2  ;;  %v2656_v43 = vmul.f32 %v10736_v6, %v13528_v29  ;;  %v13621_v44 = vld [vmem:[#allocation92_spill] sm:$0xff] }
 0x1e1   :  { %8058 = vset.pattern.permute.xlu1 %v13204_v54  ;;  %v2671_v40 = vadd.f32 %v2655_v14, %v2634_v11  ;;  %v2693_v39 = vmul.f32 %v10779_v4, %v10035_v20  ;;  %v4833_v1 = vmul.f32 %v10393_v15, %v10946_v51  ;;  %v3348_v34 = vmul.f32 %v10417_v42, %v10873_v53  ;;  %v13622_v14 = vld [vmem:[#allocation55_spill] sm:$0xff] }
 0x1e2   :  { %3208 = vperm.xlu1 %8058, %v10649_v58   ;;  %v10966_v56 = vpop.permute.xlu1 %3180  ;;  %6842 = vmatmul.mubr.f32.gmra.mrb[8].mxu1 %v2721_v35  ;;  %v2722_v27 = vmax.f32 %v2706_v5, 0.0  ;;  %v2707_v36 = vadd.f32 %v2691_v25, %v2670_v55  ;;  %v2672_v60 = vadd.f32 %v2656_v43, %v10876_v41  ;;  %v2636_v20 = vadd.f32 %v10743_v49, %v2613_v12  ;;  %v13625_v55 = vld [vmem:[#allocation109_spill] sm:$0xff] }
 0x1e3   :  { %13620 = vst [vmem:[#allocation79_spill] sm:$0xff] %v10966_v56  ;;  %7704 = vmatpush3.bf16.msra.mxu1 %v13618_v59  ;;  %v2708_v58 = vadd.f32 %v2692_v8, %v2671_v40  ;;  %v3385_v29 = vmul.f32 %v10393_v15, %v10966_v56  ;;  %v2657_v61 = vmul.f32 %v10736_v6, %v10081_v21  ;;  %v10990_v59 = vpop.permute.xlu0 %4624  ;;  %v13626_v40 = vld [vmem:[#allocation98_spill] sm:$0xff] }
 0x1e4   :  { %6844 = vmatprep.mubr.f32.mxu1 %v2722_v27  ;;  %v2723_v18 = vmax.f32 %v2707_v36, 0.0  ;;  %7706 = vmatprep.subr.bf16.mxu1 %v13621_v44  ;;  %v2694_v3 = vmul.f32 %v10779_v4, %v10123_v47  ;;  %v2658_v25 = vmul.f32 %v10736_v6, %v13472_v48  ;;  %v2709_v41 = vadd.f32 %v2693_v39, %v2672_v60  ;;  %v13627_v27 = vld [vmem:[#allocation6_spill] sm:$0xff] }
 0x1e5   :  { %v2724_v11 = vmax.f32 %v2708_v58, 0.0  ;;  %v2695_v49 = vmul.f32 %v10779_v4, %v10151_v13  ;;  %v4775_v12 = vadd.f32 %v10381_v33, %v4752_v22  ;;  %v4797_v35 = vmul.f32 %v10417_v42, %v13622_v14 }
 0x1e6   :  { %4660 = vperm.xlu1 %8058, %v10829_v63   ;;  %v4756_v21 = vmul.f32 %v13593_v7, %v10756_v38  ;;  %6845 = vmatmul.mubr.f32.gmra.mrb[10].mxu1 %v2723_v18  ;;  %v2673_v47 = vadd.f32 %v2657_v61, %v2636_v20  ;;  %v2674_v48 = vadd.f32 %v2658_v25, %v10901_v0  ;;  %v13624_v63 = vld [vmem:[#allocation22_spill] sm:$0xff]  ;;  %v2725_v22 = vmax.f32 %v2709_v41, 0.0 }
 0x1e7   :  { %v10995_v6 = vpop.permute.xlu1 %4422  ;;  %v4754_v5 = vmul.f32 %v13593_v7, %v13624_v63  ;;  %6847 = vmatprep.mubr.f32.mxu1 %v2724_v11  ;;  %7708 = vmatpush3.bf16.msra.mxu1 %v13621_v44  ;;  %v4812_v13 = vadd.f32 %v4796_v50, %v4775_v12  ;;  %v3364_v4 = vadd.f32 %v3348_v34, %v3327_v28  ;;  %v11012_v60 = vpop.permute.xlu0 %4632 }
 0x1e8   :  { %13623 = vst [vmem:[#allocation68_spill] sm:$0xff] %v10995_v6  ;;  %v4834_v8 = vmul.f32 %v10393_v15, %v13625_v55  ;;  %7710 = vmatprep.subr.bf16.mxu1 %v13626_v40  ;;  %v2710_v43 = vadd.f32 %v2694_v3, %v2673_v47  ;;  %v2711_v39 = vadd.f32 %v2695_v49, %v2674_v48  ;;  %v13631_v49 = vld [vmem:[#allocation13_spill] sm:$0xff] }
 0x1e9   :  { %v4778_v0 = vadd.f32 %v10381_v33, %v10937_v23  ;;  %v4798_v36 = vmul.f32 %v10417_v42, %v13627_v27  ;;  %v4849_v7 = vadd.f32 %v4833_v1, %v4812_v13  ;;  %v3401_v58 = vadd.f32 %v3385_v29, %v3364_v4  ;;  %v11017_v23 = vld [vmem:[%s12885_s0 + $0x160] sm:$0xff] }
 0x1ea   :  { %8059 = vset.pattern.permute.xlu1 %v13475_v37  ;;  %v4800_v28 = vmul.f32 %v10417_v42, %v10698_v52  ;;  %v4813_v50 = vadd.f32 %v4797_v35, %v10907_v9  ;;  %v4779_v34 = vadd.f32 %v10381_v33, %v4756_v21  ;;  %6848 = vmatmul.mubr.f32.gmra.mrb[12].mxu1 %v2725_v22  ;;  %v2726_v20 = vmax.f32 %v2710_v43, 0.0  ;;  %v11025_v29 = vld [vmem:[%s12887_s1 + $0x4] ss:$0 sm:$0xff]  ;;  %v11054_v22 = vld [vmem:[%s12888_s2 + $0x1] ss:$0 sm:$0xff] }
 0x1eb   :  { %3111 = vperm.xlu1 %8059, %v11017_v23   ;;  %v11020_v1 = vpop.permute.xlu1 %2975  ;;  %13629 = vst [vmem:[#allocation84_spill] sm:$0xff] %v11025_v29  ;;  %v13630_v9 = vld [vmem:[#allocation86_spill] sm:$0xff]  ;;  %v3305_v44 = vmul.f32 %v11025_v29, %v10784_v30  ;;  %7712 = vmatpush3.bf16.msra.mxu1 %v13626_v40  ;;  %v4758_v61 = vmul.f32 %v11025_v29, %v10995_v6  ;;  %v3417_v3 = vmax.f32 %v3401_v58, 0.0  ;;  %v2727_v41 = vmax.f32 %v2711_v39, 0.0  ;;  %v11047_v4 = vpop.permute.xlu0 %4640 }
 0x1ec   :  { %13628 = vst [vmem:[#allocation24_spill] sm:$0xff] %v11020_v1  ;;  %v4757_v18 = vmul.f32 %v11025_v29, %v13630_v9  ;;  %v4835_v25 = vmul.f32 %v10393_v15, %v10990_v59  ;;  %v4850_v11 = vadd.f32 %v4834_v8, %v4813_v50  ;;  %6850 = vmatprep.mubr.f32.mxu1 %v2726_v20  ;;  %v4865_v47 = vmax.f32 %v4849_v7, 0.0 }
 0x1ed   :  { %7714 = vmatprep.subr.bf16.mxu1 %v13631_v49  ;;  %v4777_v12 = vadd.f32 %v10381_v33, %v4754_v5  ;;  %v4837_v35 = vmul.f32 %v10393_v15, %v11012_v60  ;;  %v3349_v21 = vmul.f32 %v10417_v42, %v10898_v16  ;;  %6891 = vmatprep.mubr.f32.mxu0 %v3417_v3 }
 0x1ee   :  { %v4799_v48 = vmul.f32 %v10417_v42, %v10675_v62  ;;  %v4836_v13 = vmul.f32 %v10393_v15, %v10844_v19  ;;  %6851 = vmatmul.mubr.f32.gmra.mrb[14].mxu1 %v2727_v41  ;;  %13632 = vst [vmem:[#allocation96_spill] sm:$0xff] %v11047_v4  ;;  %v4816_v5 = vadd.f32 %v4800_v28, %v4779_v34  ;;  %v4866_v39 = vmax.f32 %v4850_v11, 0.0  ;;  %v11066_v28 = vld [vmem:[%s12887_s1 + $0x6] ss:$0 sm:$0xff] }
 0x1ef   :  { %3115 = vperm.xlu1 %8059, %v10916_v46   ;;  %v4814_v33 = vadd.f32 %v4798_v36, %v4777_v12  ;;  %v4802_v8 = vmul.f32 %v10417_v42, %v10754_v45  ;;  %v3328_v40 = vadd.f32 %v11054_v22, %v3305_v44  ;;  %7716 = vmatpush3.bf16.msra.mxu1 %v13631_v49  ;;  %v11084_v49 = vld [vmem:[%s12887_s1] ss:$0 sm:$0xff] }
 0x1f0   :  { %7109 = vmatprep.mubr.f32.mxu1 %v4865_v47  ;;  %v4781_v15 = vadd.f32 %v11054_v22, %v4758_v61  ;;  %v11059_v43 = vpop.permute.xlu1 %3184  ;;  %v4801_v36 = vmul.f32 %v10417_v42, %v10927_v57  ;;  %v4815_v58 = vadd.f32 %v4799_v48, %v4778_v0  ;;  %v4839_v50 = vmul.f32 %v11066_v28, %v11047_v4  ;;  %v11076_v42 = vld [vmem:[%s12885_s0 + $0x1e8] sm:$0xff] }
 0x1f1   :  { %13633 = vst [vmem:[#allocation77_spill] sm:$0xff] %v11059_v43  ;;  %v4851_v7 = vadd.f32 %v4835_v25, %v4814_v33  ;;  %v4853_v34 = vadd.f32 %v4837_v35, %v4816_v5  ;;  %v3386_v20 = vmul.f32 %v11066_v28, %v11059_v43  ;;  %v3365_v44 = vadd.f32 %v3349_v21, %v3328_v40  ;;  %v11092_v33 = vld [vmem:[%s12887_s1 + $0x1] ss:$0 sm:$0xff] }
 0x1f2   :  { %v4780_v61 = vadd.f32 %v11054_v22, %v4757_v18  ;;  %7110 = vmatmul.mubr.f32.vlgmr.msra.gmra.mrb[16].mxu1 %v4866_v39  ;;  %v4852_v0 = vadd.f32 %v4836_v13, %v4815_v58  ;;  %v4818_v41 = vadd.f32 %v4802_v8, %v4781_v15  ;;  %v4474_v5 = vmul.f32 %v11084_v49, %v13619_v2  ;;  %v11100_v8 = vld [vmem:[%s12888_s2] ss:$0 sm:$0xff] }
 0x1f3   :  { %v4867_v3 = vmax.f32 %v4851_v7, 0.0  ;;  %4567 = vperm.xlu1 %8059, %v11076_v42   ;;  %v3402_v11 = vadd.f32 %v3386_v20, %v3365_v44  ;;  %v4869_v21 = vmax.f32 %v4853_v34, 0.0  ;;  %v4476_v40 = vmul.f32 %v11084_v49, %v13624_v63  ;;  %v11120_v34 = vld [vmem:[%s12887_s1 + $0x8] ss:$0 sm:$0xff] }
 0x1f4   :  { %v11079_v25 = vpop.permute.xlu1 %4636  ;;  %v4868_v18 = vmax.f32 %v4852_v0, 0.0  ;;  %v4817_v35 = vadd.f32 %v4801_v36, %v4780_v61  ;;  %v4855_v48 = vadd.f32 %v4839_v50, %v4818_v41  ;;  %v11109_v36 = vld [vmem:[%s12887_s1 + $0x2] ss:$0 sm:$0xff]  ;;  %v4584_v58 = vmul.f32 %v11092_v33, %v13627_v27  ;;  %13636 = vst [vmem:[#allocation36_spill] sm:$0xff] %v11120_v34  ;;  %v11129_v61 = vld [vmem:[%s12885_s0 + $0x1f0] sm:$0xff]  ;;  %v11138_v0 = vld [vmem:[%s12885_s0 + $0x178] sm:$0xff] }
 0x1f5   :  { %13634 = vst [vmem:[#allocation103_spill] sm:$0xff] %v11079_v25  ;;  %7112 = vmatprep.mubr.f32.mxu1 %v4867_v3  ;;  %v4838_v12 = vmul.f32 %v11066_v28, %v11079_v25  ;;  %v3418_v47 = vmax.f32 %v3402_v11, 0.0  ;;  %v4497_v50 = vadd.f32 %v11100_v8, %v4474_v5  ;;  %v4683_v20 = vmul.f32 %v11109_v36, %v10946_v51  ;;  %v11143_v11 = vld [vmem:[%s12887_s1 + $0x9] ss:$0 sm:$0xff] }
 0x1f6   :  { %7113 = vmatmul.mubr.f32.gmra.mrb[18].mxu1 %v4868_v18  ;;  %v4871_v7 = vmax.f32 %v4855_v48, 0.0  ;;  %v4685_v44 = vmul.f32 %v11109_v36, %v10990_v59  ;;  %v4499_v3 = vadd.f32 %v11100_v8, %v4476_v40  ;;  %13638 = vst [vmem:[#allocation43_spill] sm:$0xff] %v11143_v11  ;;  %v11157_v48 = vld [vmem:[%s12887_s1 + $0xa] ss:$0 sm:$0xff]  ;;  %v3026_v55 = vmul.f32 %v11084_v49, %v13609_v32 }
 0x1f7   :  { %8060 = vset.pattern.permute.xlu1 %v13204_v54  ;;  %v4854_v13 = vadd.f32 %v4838_v12, %v4817_v35  ;;  %7115 = vmatprep.mubr.f32.mxu1 %v4869_v21  ;;  %v5192_v12 = vmul.f32 %v11120_v34, %v13619_v2  ;;  %v11150_v35 = vld [vmem:[%s12888_s2 + $0x2] ss:$0 sm:$0xff]  ;;  %v3744_v14 = vmul.f32 %v11120_v34, %v13609_v32 }
 0x1f8   :  { %3212 = vperm.xlu1 %8060, %v11017_v23   ;;  %6892 = vmatmul.mubr.f32.gmra.mrb[20].mxu0 %v3418_v47  ;;  %v4582_v23 = vmul.f32 %v11092_v33, %v13617_v31  ;;  %v4600_v18 = vadd.f32 %v4584_v58, %v4499_v3  ;;  %v13639_v21 = vld [vmem:[#allocation58_spill] sm:$0xff]  ;;  %v11185_v3 = vld [vmem:[%s12887_s1 + $0xc] ss:$0 sm:$0xff]  ;;  %v5275_v4 = vmul.f32 %v11157_v48, %v10990_v59 }
 0x1f9   :  { %v11104_v15 = vpop.permute.xlu1 %3087  ;;  %v4870_v39 = vmax.f32 %v4854_v13, 0.0  ;;  %v3306_v47 = vmul.f32 %v11025_v29, %v13639_v21  ;;  %v5194_v13 = vmul.f32 %v11120_v34, %v13624_v63  ;;  %13643 = vst [vmem:[#allocation5_spill] sm:$0xff] %v11185_v3  ;;  %v4479_v26 = vmul.f32 %v11084_v49, %v13630_v9 }
 0x1fa   :  { %13635 = vst [vmem:[#allocation3_spill] sm:$0xff] %v11104_v15  ;;  %v4598_v41 = vadd.f32 %v4582_v23, %v4497_v50  ;;  %v11173_v23 = vld [vmem:[%s12887_s1 + $0x5] ss:$0 sm:$0xff]  ;;  %v4477_v50 = vmul.f32 %v11084_v49, %v13616_v17  ;;  %v5197_v56 = vmul.f32 %v11120_v34, %v13630_v9 }
 0x1fb   :  { %7116 = vmatmul.mubr.f32.gmra.mrb[20].mxu1 %v4870_v39  ;;  %v11166_v39 = vadd.f32 %v4685_v44, %v4600_v18  ;;  %v3350_v58 = vmul.f32 %v11173_v23, %v11104_v15  ;;  %v5215_v44 = vadd.f32 %v11150_v35, %v5192_v12  ;;  %v3329_v18 = vadd.f32 %v11054_v22, %v3306_v47  ;;  %v4731_v47 = vld [vmem:[%s12886_s3] sm:$0xff] }
 0x1fc   :  { %8061 = vset.pattern.permute.xlu1 %v13603_v10  ;;  %7118 = vmatprep.mubr.f32.mxu1 %v4871_v7  ;;  %v11164_v40 = vadd.f32 %v4683_v20, %v4598_v41  ;;  %v5236_v7 = vmul.f32 %v11143_v11, %v13617_v31  ;;  %v5273_v20 = vmul.f32 %v11157_v48, %v10946_v51 }
 0x1fd   :  { %4462 = vperm.xlu1 %8061, %v11129_v61   ;;  %v11132_v10 = vpop.permute.xlu1 %3091  ;;  %13642 = vst [vmem:[#allocation80_spill] sm:$0xff] %v11166_v39  ;;  %v5195_v41 = vmul.f32 %v11120_v34, %v13616_v17  ;;  %v5238_v39 = vmul.f32 %v11143_v11, %v13627_v27  ;;  %v5506_v12 = vmul.f32 %v11185_v3, %v13616_v17 }
 0x1fe   :  { %13637 = vst [vmem:[#allocation105_spill] sm:$0xff] %v11132_v10  ;;  %13641 = vst [vmem:[#allocation111_spill] sm:$0xff] %v11164_v40  ;;  %v5217_v40 = vadd.f32 %v11150_v35, %v5194_v13  ;;  %v4732_v13 = vld [vmem:[%s12886_s3 + $0x8] sm:$0xff]  ;;  %v5252_v43 = vadd.f32 %v5236_v7, %v5215_v44  ;;  %v4055_v17 = vmul.f32 %v11185_v3, %v13609_v32  ;;  %v11224_v32 = vld [vmem:[%s12888_s2 + $0x3] ss:$0 sm:$0xff] }
 0x1ff   :  { %v3366_v25 = vadd.f32 %v3350_v58, %v3329_v18  ;;  %v7717_v45 = vpack.c.bf16 %v4732_v13, %v4731_v47  ;;  %v5508_v7 = vmul.f32 %v11185_v3, %v13630_v9  ;;  %v5503_v58 = vmul.f32 %v11185_v3, %v13619_v2  ;;  %v4733_v2 = vld [vmem:[%s12886_s3 + $0x10] sm:$0xff]  ;;  %v4734_v9 = vld [vmem:[%s12886_s3 + $0x18] sm:$0xff] }
 0x200   :  { %v11219_v6 = vadd.f32 %v5273_v20, %v5252_v43  ;;  %v5254_v18 = vadd.f32 %v5238_v39, %v5217_v40  ;;  %v11234_v47 = vadd.f32 %v11150_v35, %v5195_v41  ;;  %v11237_v43 = vadd.f32 %v11224_v32, %v5506_v12  ;;  %v11242_v20 = vld [vmem:[%s12887_s1 + $0xd] ss:$0 sm:$0xff] }
 0x201   :  { %3015 = vperm.xlu1 %8061, %v11138_v0   ;;  %v11162_v5 = vpop.permute.xlu1 %4543  ;;  %7718 = vmatprep.subr.bf16.mxu1 %v7717_v45  ;;  %v11262_v12 = vadd.f32 %v11224_v32, %v4055_v17  ;;  %v11265_v13 = vadd.f32 %v11100_v8, %v4479_v26  ;;  %v5526_v26 = vadd.f32 %v11224_v32, %v5503_v58 }
 0x202   :  { %13640 = vst [vmem:[#allocation62_spill] sm:$0xff] %v11162_v5  ;;  %13645 = vst [vmem:[#allocation56_spill] sm:$0xff] %v11219_v6  ;;  %7720 = vmatpush3.bf16.msra.mxu1 %v7717_v45  ;;  %7590 = vmatprep.subr.bf16.mxu0 %v7717_v45  ;;  %v11256_v41 = vadd.f32 %v5275_v4, %v5254_v18  ;;  %v11276_v4 = vadd.f32 %v11224_v32, %v5508_v7  ;;  %v8116_v18 = vld [vmem:[%s12885_s0 + $0x170] sm:$0xff] }
 0x203   :  { %13649 = vst [vmem:[#allocation75_spill] sm:$0xff] %v11262_v12  ;;  %13650 = vst [vmem:[#allocation15_spill] sm:$0xff] %v11265_v13  ;;  %7592 = vmatpush3.bf16.msra.mxu0 %v7717_v45  ;;  %v4478_v17 = vmul.f32 %v11084_v49, %v10756_v38  ;;  %v3307_v58 = vmul.f32 %v11025_v29, %v11020_v1  ;;  %v5505_v6 = vmul.f32 %v11185_v3, %v13624_v63  ;;  %v11326_v63 = vpop.permute.xlu0 %4648 }
 0x204   :  { %13647 = vst [vmem:[#allocation26_spill] sm:$0xff] %v11256_v41  ;;  %13652 = vst [vmem:[#allocation41_spill] sm:$0xff] %v11276_v4  ;;  %v5549_v41 = vmul.f32 %v11242_v20, %v13627_v27  ;;  %v4687_v12 = vmul.f32 %v11109_v36, %v11012_v60 }
 0x205   :  { %8062 = vset.pattern.permute.xlu1 %v13204_v54  ;;  %v4501_v27 = vadd.f32 %v11100_v8, %v4478_v17  ;;  %13655 = vst [vmem:[#allocation40_spill] sm:$0xff] %v11326_v63  ;;  %v5277_v17 = vmul.f32 %v11157_v48, %v11012_v60 }
 0x206   :  { %3216 = vperm.xlu1 %8062, %v10916_v46   ;;  %v11201_v15 = vpop.permute.xlu1 %3188 }
 0x207   :  { %13644 = vst [vmem:[#allocation2_spill] sm:$0xff] %v11201_v15  ;;  %v3387_v46 = vmul.f32 %v11066_v28, %v11201_v15  ;;  %v11231_v15 = vadd.f32 %v11100_v8, %v4477_v50  ;;  %v7721_v50 = vpack.c.bf16 %v4734_v9, %v4733_v2  ;;  %v4736_v9 = vld [vmem:[%s12886_s3 + $0x28] sm:$0xff] }
 0x209   :  { %v3403_v44 = vadd.f32 %v3387_v46, %v3366_v25  ;;  %v11252_v25 = vadd.f32 %v11100_v8, %v3026_v55  ;;  %v11268_v55 = vadd.f32 %v11150_v35, %v5197_v56  ;;  %v11273_v46 = vld [vmem:[%s12887_s1 + $0xe] ss:$0 sm:$0xff]  ;;  %7722 = vmatprep.subr.bf16.mxu1 %v7721_v50  ;;  %v3028_v56 = vmul.f32 %v11084_v49, %v13639_v21 }
 0x20a   :  { %4668 = vperm.xlu1 %8062, %v11076_v42   ;;  %v11259_v42 = vadd.f32 %v11150_v35, %v3744_v14  ;;  %v5547_v14 = vmul.f32 %v11242_v20, %v13617_v31  ;;  %v11292_v31 = vmul.f32 %v11120_v34, %v13639_v21  ;;  %v5584_v7 = vmul.f32 %v11273_v46, %v10946_v51  ;;  %v13654_v51 = vld [vmem:[#allocation17_spill] sm:$0xff] }
 0x20b   :  { %v11254_v40 = vpop.permute.xlu1 %4432  ;;  %v3419_v39 = vmax.f32 %v3403_v44, 0.0  ;;  %13651 = vst [vmem:[#allocation54_spill] sm:$0xff] %v11268_v55  ;;  %v5196_v44 = vmul.f32 %v11120_v34, %v10756_v38  ;;  %7724 = vmatpush3.bf16.msra.mxu1 %v7721_v50  ;;  %7594 = vmatprep.subr.bf16.mxu0 %v7721_v50  ;;  %v4804_v55 = vmul.f32 %v11173_v23, %v10794_v24 }
 0x20c   :  { %13646 = vst [vmem:[#allocation64_spill] sm:$0xff] %v11254_v40  ;;  %13648 = vst [vmem:[#allocation65_spill] sm:$0xff] %v11259_v42  ;;  %v4760_v45 = vmul.f32 %v11025_v29, %v11254_v40  ;;  %v3351_v40 = vmul.f32 %v11173_v23, %v11132_v10  ;;  %7596 = vmatpush3.bf16.msra.mxu0 %v7721_v50  ;;  %v5563_v4 = vadd.f32 %v5547_v14, %v5526_v26  ;;  %v4737_v50 = vld [vmem:[%s12886_s3 + $0x30] sm:$0xff]  ;;  %v4738_v14 = vld [vmem:[%s12886_s3 + $0x38] sm:$0xff] }
 0x20d   :  { %6894 = vmatprep.mubr.f32.mxu0 %v3419_v39  ;;  %v4759_v39 = vmul.f32 %v11025_v29, %v13654_v51  ;;  %v5219_v13 = vadd.f32 %v11150_v35, %v5196_v44  ;;  %v3330_v42 = vadd.f32 %v11054_v22, %v3307_v58  ;;  %v5528_v58 = vadd.f32 %v11224_v32, %v5505_v6 }
 0x20e   :  { %8064 = vset.pattern.permute.xlu1 %v13475_v37  ;;  %v4735_v37 = vld [vmem:[%s12886_s3 + $0x20] sm:$0xff]  ;;  %v4783_v57 = vadd.f32 %v11054_v22, %v4760_v45  ;;  %v11338_v26 = vadd.f32 %v5584_v7, %v5563_v4  ;;  %v7729_v45 = vpack.c.bf16 %v4738_v14, %v4737_v50  ;;  %v5586_v6 = vmul.f32 %v11273_v46, %v10990_v59  ;;  %v8117_v14 = vld [vmem:[%s12885_s0 + $0x1f8] sm:$0xff] }
 0x20f   :  { %3119 = vperm.xlu1 %8064, %v8116_v18   ;;  %v11301_v2 = vpop.permute.xlu1 %2985  ;;  %v4586_v18 = vmul.f32 %v11092_v33, %v10698_v52  ;;  %v7725_v1 = vpack.c.bf16 %v4736_v9, %v4735_v37  ;;  %v4803_v37 = vmul.f32 %v11173_v23, %v11162_v5  ;;  %v4841_v9 = vmul.f32 %v11066_v28, %v11326_v63  ;;  %v4739_v59 = vld [vmem:[%s12886_s3 + $0x40] sm:$0xff] }
 0x210   :  { %13653 = vst [vmem:[#allocation74_spill] sm:$0xff] %v11301_v2  ;;  %v5240_v2 = vmul.f32 %v11143_v11, %v10698_v52  ;;  %13656 = vst [vmem:[#allocation48_spill] sm:$0xff] %v11338_v26  ;;  %v3367_v7 = vadd.f32 %v3351_v40, %v3330_v42  ;;  %v4820_v26 = vadd.f32 %v4804_v55, %v4783_v57  ;;  %v4740_v42 = vld [vmem:[%s12886_s3 + $0x48] sm:$0xff] }
 0x211   :  { %7726 = vmatprep.subr.bf16.mxu1 %v7725_v1  ;;  %7598 = vmatprep.subr.bf16.mxu0 %v7725_v1  ;;  %v4602_v10 = vadd.f32 %v4586_v18, %v4501_v27  ;;  %v4782_v50 = vadd.f32 %v11054_v22, %v4759_v39  ;;  %v5565_v63 = vadd.f32 %v5549_v41, %v5528_v58 }
 0x212   :  { %7728 = vmatpush3.bf16.msra.mxu1 %v7725_v1  ;;  %7600 = vmatpush3.bf16.msra.mxu0 %v7725_v1  ;;  %v5256_v24 = vadd.f32 %v5240_v2, %v5219_v13  ;;  %v11358_v40 = vadd.f32 %v11100_v8, %v3028_v56  ;;  %v4057_v57 = vmul.f32 %v11185_v3, %v13639_v21 }
 0x213   :  { %3123 = vperm.xlu1 %8064, %v11138_v0   ;;  %7730 = vmatprep.subr.bf16.mxu1 %v7729_v45  ;;  %v11370_v13 = vadd.f32 %v4687_v12, %v4602_v10  ;;  %v5507_v55 = vmul.f32 %v11185_v3, %v10756_v38  ;;  %v4819_v56 = vadd.f32 %v4803_v37, %v4782_v50  ;;  %v4741_v10 = vld [vmem:[%s12886_s3 + $0x50] sm:$0xff] }
 0x214   :  { %v11342_v44 = vpop.permute.xlu1 %3192  ;;  %7602 = vmatprep.subr.bf16.mxu0 %v7729_v45  ;;  %v11372_v41 = vadd.f32 %v5277_v17, %v5256_v24  ;;  %v4585_v2 = vmul.f32 %v11092_v33, %v10675_v62  ;;  %v4857_v18 = vadd.f32 %v4841_v9, %v4820_v26  ;;  %v7733_v27 = vpack.c.bf16 %v4740_v42, %v4739_v59  ;;  %v4742_v24 = vld [vmem:[%s12886_s3 + $0x58] sm:$0xff] }
 0x215   :  { %13657 = vst [vmem:[#allocation91_spill] sm:$0xff] %v11342_v44  ;;  %v3388_v4 = vmul.f32 %v11066_v28, %v11342_v44  ;;  %13659 = vst [vmem:[#allocation89_spill] sm:$0xff] %v11370_v13  ;;  %v5239_v38 = vmul.f32 %v11143_v11, %v10675_v62  ;;  %v4481_v12 = vmul.f32 %v11084_v49, %v13654_v51  ;;  %v13689_v13 = vld [vmem:[#allocation51_spill] sm:$0xff] }
 0x216   :  { %7732 = vmatpush3.bf16.msra.mxu1 %v7729_v45  ;;  %13660 = vst [vmem:[#allocation44_spill] sm:$0xff] %v11372_v41  ;;  %7604 = vmatpush3.bf16.msra.mxu0 %v7729_v45  ;;  %v5550_v26 = vmul.f32 %v11242_v20, %v10675_v62  ;;  %v5551_v45 = vmul.f32 %v11242_v20, %v10698_v52  ;;  %v4744_v62 = vld [vmem:[%s12886_s3 + $0x68] sm:$0xff]  ;;  %v4873_v50 = vmax.f32 %v4857_v18, 0.0  ;;  %v13669_v18 = vld [vmem:[#allocation66_spill] sm:$0xff] }
 0x217   :  { %4575 = vperm.xlu1 %8064, %v8117_v14   ;;  %v3404_v5 = vadd.f32 %v3388_v4, %v3367_v7  ;;  %v4686_v58 = vmul.f32 %v11109_v36, %v10844_v19  ;;  %v5276_v37 = vmul.f32 %v11157_v48, %v10844_v19  ;;  %v5587_v52 = vmul.f32 %v11273_v46, %v10844_v19 }
 0x218   :  { %v11362_v1 = vpop.permute.xlu1 %4644  ;;  %7734 = vmatprep.subr.bf16.mxu1 %v7733_v27  ;;  %7606 = vmatprep.subr.bf16.mxu0 %v7733_v27  ;;  %v5588_v7 = vmul.f32 %v11273_v46, %v11012_v60  ;;  %v5255_v14 = vadd.f32 %v5239_v38, %v11234_v47  ;;  %v3134_v59 = vmul.f32 %v11092_v33, %v10873_v53 }
 0x219   :  { %13658 = vst [vmem:[#allocation39_spill] sm:$0xff] %v11362_v1  ;;  %v4840_v21 = vmul.f32 %v11066_v28, %v11362_v1  ;;  %v3420_v39 = vmax.f32 %v3404_v5, 0.0  ;;  %v11391_v5 = vadd.f32 %v5586_v6, %v5565_v63  ;;  %v5530_v63 = vadd.f32 %v11224_v32, %v5507_v55 }
 0x21a   :  { %7736 = vmatpush3.bf16.msra.mxu1 %v7733_v27  ;;  %v4601_v6 = vadd.f32 %v4585_v2, %v11231_v15  ;;  %7608 = vmatpush3.bf16.msra.mxu0 %v7733_v27  ;;  %v5566_v42 = vadd.f32 %v5550_v26, %v11237_v43  ;;  %v3788_v55 = vmul.f32 %v11143_v11, %v10873_v53 }
 0x21b   :  { %8066 = vset.pattern.permute.xlu1 %v13204_v54  ;;  %v4856_v17 = vadd.f32 %v4840_v21, %v4819_v56  ;;  %13661 = vst [vmem:[#allocation81_spill] sm:$0xff] %v11391_v5  ;;  %6895 = vmatmul.mubr.f32.gmra.mrb[22].mxu0 %v3420_v39  ;;  %v4743_v54 = vld [vmem:[%s12886_s3 + $0x60] sm:$0xff]  ;;  %v11425_v21 = vadd.f32 %v5276_v37, %v5255_v14  ;;  %v13675_v14 = vld [vmem:[#allocation19_spill] sm:$0xff]  ;;  %v13686_v5 = vld [vmem:[#allocation41_spill] sm:$0xff] }
 0x21c   :  { %4672 = vperm.xlu1 %8066, %v11129_v61   ;;  %v7737_v61 = vpack.c.bf16 %v4742_v24, %v4741_v10  ;;  %v7741_v19 = vpack.c.bf16 %v4744_v62, %v4743_v54  ;;  %v11423_v60 = vadd.f32 %v4686_v58, %v4601_v6  ;;  %v4099_v15 = vmul.f32 %v11242_v20, %v10873_v53  ;;  %v13673_v54 = vld [vmem:[#allocation75_spill] sm:$0xff] }
 0x21d   :  { %v11411_v9 = vpop.permute.xlu1 %3095  ;;  %v4872_v4 = vmax.f32 %v4856_v17, 0.0  ;;  %13664 = vst [vmem:[#allocation110_spill] sm:$0xff] %v11425_v21  ;;  %v11431_v56 = vadd.f32 %v5587_v52, %v5566_v42  ;;  %v5567_v43 = vadd.f32 %v5551_v45, %v5530_v63  ;;  %v11435_v2 = vadd.f32 %v11150_v35, %v11292_v31  ;;  %v13676_v42 = vld [vmem:[#allocation101_spill] sm:$0xff] }
 0x21e   :  { %13662 = vst [vmem:[#allocation50_spill] sm:$0xff] %v11411_v9  ;;  %13663 = vst [vmem:[#allocation99_spill] sm:$0xff] %v11423_v60  ;;  %7738 = vmatprep.subr.bf16.mxu1 %v7737_v61  ;;  %7610 = vmatprep.subr.bf16.mxu0 %v7737_v61  ;;  %v5199_v39 = vmul.f32 %v11120_v34, %v13654_v51  ;;  %v3308_v53 = vmul.f32 %v11025_v29, %v13669_v18 }
 0x21f   :  { %7119 = vmatmul.mubr.f32.gmra.mrb[22].mxu1 %v4872_v4  ;;  %13666 = vst [vmem:[#allocation23_spill] sm:$0xff] %v11431_v56  ;;  %13667 = vst [vmem:[#allocation16_spill] sm:$0xff] %v11435_v2  ;;  %v3027_v27 = vmul.f32 %v11084_v49, %v10784_v30  ;;  %v3745_v10 = vmul.f32 %v11120_v34, %v10784_v30  ;;  %7612 = vmatpush3.bf16.msra.mxu0 %v7737_v61  ;;  %v4746_v4 = vld [vmem:[%s12886_s3 + $0x78] sm:$0xff] }
 0x220   :  { %3224 = vperm.xlu1 %8066, %v11138_v0   ;;  %7121 = vmatprep.mubr.f32.mxu1 %v4873_v50  ;;  %v11438_v0 = vadd.f32 %v11224_v32, %v4057_v57  ;;  %v11448_v31 = vadd.f32 %v5588_v7, %v5567_v43  ;;  %v11451_v57 = vadd.f32 %v11100_v8, %v4481_v12  ;;  %v13672_v12 = vld [vmem:[#allocation65_spill] sm:$0xff] }
 0x221   :  { %v11429_v47 = vpop.permute.xlu1 %3099  ;;  %7740 = vmatpush3.bf16.msra.mxu1 %v7737_v61  ;;  %v5510_v24 = vmul.f32 %v11185_v3, %v13654_v51  ;;  %v4056_v38 = vmul.f32 %v11185_v3, %v10784_v30  ;;  %v3135_v17 = vmul.f32 %v11092_v33, %v10898_v16  ;;  %7614 = vmatprep.subr.bf16.mxu0 %v7741_v19  ;;  %v13697_v2 = vld [vmem:[#allocation77_spill] sm:$0xff] }
 0x222   :  { %13665 = vst [vmem:[#allocation45_spill] sm:$0xff] %v11429_v47  ;;  %13668 = vst [vmem:[#allocation34_spill] sm:$0xff] %v11438_v0  ;;  %7742 = vmatprep.subr.bf16.mxu1 %v7741_v19  ;;  %v3789_v26 = vmul.f32 %v11143_v11, %v10898_v16  ;;  %v11464_v58 = vadd.f32 %v3134_v59, %v11252_v25  ;;  %v11467_v37 = vadd.f32 %v3788_v55, %v13672_v12  ;;  %v4745_v25 = vld [vmem:[%s12886_s3 + $0x70] sm:$0xff] }
 0x223   :  { %13670 = vst [vmem:[#allocation82_spill] sm:$0xff] %v11448_v31  ;;  %v11470_v51 = vadd.f32 %v4099_v15, %v13673_v54  ;;  %v11473_v30 = vadd.f32 %v11150_v35, %v5199_v39  ;;  %v3030_v62 = vmul.f32 %v11084_v49, %v13669_v18  ;;  %v3331_v63 = vadd.f32 %v11054_v22, %v3308_v53  ;;  %v13684_v31 = vld [vmem:[#allocation54_spill] sm:$0xff] }
 0x224   :  { %v4100_v52 = vmul.f32 %v11242_v20, %v10898_v16  ;;  %v3050_v61 = vadd.f32 %v11100_v8, %v3027_v27  ;;  %v3768_v7 = vadd.f32 %v11150_v35, %v3745_v10  ;;  %v3352_v50 = vmul.f32 %v11173_v23, %v11411_v9  ;;  %7616 = vmatpush3.bf16.msra.mxu0 %v7741_v19  ;;  %v13678_v10 = vld [vmem:[#allocation108_spill] sm:$0xff] }
 0x225   :  { %v11461_v45 = vpop.permute.xlu1 %4551  ;;  %13674 = vst [vmem:[#allocation11_spill] sm:$0xff] %v11473_v30  ;;  %7744 = vmatpush3.bf16.msra.mxu1 %v7741_v19  ;;  %v7745_v6 = vpack.c.bf16 %v4746_v4, %v4745_v25  ;;  %v4483_v16 = vmul.f32 %v11084_v49, %v13675_v14  ;;  %v4079_v59 = vadd.f32 %v11224_v32, %v4056_v38  ;;  %v5321_v4 = vld [vmem:[%s12886_s3 + $0x100] sm:$0xff] }
 0x226   :  { %13671 = vst [vmem:[#allocation38_spill] sm:$0xff] %v11461_v45  ;;  %v4587_v55 = vmul.f32 %v11092_v33, %v13676_v42  ;;  %v5241_v15 = vmul.f32 %v11143_v11, %v13676_v42  ;;  %v5552_v43 = vmul.f32 %v11242_v20, %v13676_v42  ;;  %v11499_v39 = vadd.f32 %v3135_v17, %v3050_v61 }
 0x227   :  { %7746 = vmatprep.subr.bf16.mxu1 %v7745_v6  ;;  %7618 = vmatprep.subr.bf16.mxu0 %v7745_v6  ;;  %v11501_v19 = vadd.f32 %v3789_v26, %v3768_v7  ;;  %v11504_v53 = vadd.f32 %v11224_v32, %v5510_v24  ;;  %v4761_v27 = vmul.f32 %v11025_v29, %v13675_v14  ;;  %v13681_v7 = vld [vmem:[#allocation68_spill] sm:$0xff] }
 0x228   :  { %v3032_v38 = vmul.f32 %v11084_v49, %v13678_v10  ;;  %v11512_v54 = vadd.f32 %v4100_v52, %v4079_v59  ;;  %v11515_v25 = vadd.f32 %v11100_v8, %v3030_v62  ;;  %v11519_v17 = vmul.f32 %v11120_v34, %v13669_v18  ;;  %7620 = vmatpush3.bf16.msra.mxu0 %v7745_v6  ;;  %v5322_v52 = vld [vmem:[%s12886_s3 + $0x108] sm:$0xff] }
 0x229   :  { %13677 = vst [vmem:[#allocation106_spill] sm:$0xff] %v11504_v53  ;;  %7748 = vmatpush3.bf16.msra.mxu1 %v7745_v6  ;;  %v3368_v26 = vadd.f32 %v3352_v50, %v3331_v63  ;;  %v11530_v62 = vadd.f32 %v11100_v8, %v4483_v16  ;;  %v11534_v61 = vmul.f32 %v11120_v34, %v13675_v14  ;;  %v13683_v6 = vld [vmem:[#allocation15_spill] sm:$0xff] }
 0x22a   :  { %v11510_v12 = vpop.permute.xlu1 %3196  ;;  %13679 = vst [vmem:[#allocation25_spill] sm:$0xff] %v11512_v54  ;;  %v4480_v59 = vmul.f32 %v11084_v49, %v13681_v7  ;;  %v11538_v63 = vpack.c.bf16 %v5322_v52, %v5321_v4  ;;  %v4603_v42 = vadd.f32 %v4587_v55, %v13683_v6  ;;  %v11542_v56 = vadd.f32 %v5241_v15, %v13684_v31  ;;  %v13690_v55 = vld [vmem:[#allocation79_spill] sm:$0xff]  ;;  %v13692_v4 = vld [vmem:[#allocation24_spill] sm:$0xff] }
 0x22b   :  { %v3389_v24 = vmul.f32 %v11066_v28, %v11510_v12  ;;  %13680 = vst [vmem:[#allocation53_spill] sm:$0xff] %v11534_v61  ;;  %v11545_v41 = vadd.f32 %v5552_v43, %v13686_v5  ;;  %v11548_v16 = vadd.f32 %v11054_v22, %v4761_v27  ;;  %v11551_v21 = vadd.f32 %v11100_v8, %v3032_v38  ;;  %v13691_v38 = vld [vmem:[#allocation112_spill] sm:$0xff]  ;;  %v13694_v14 = vld [vmem:[#allocation103_spill] sm:$0xff] }
 0x22c   :  { %13682 = vst [vmem:[#allocation9_spill] sm:$0xff] %v11538_v63  ;;  %13685 = vst [vmem:[#allocation87_spill] sm:$0xff] %v11542_v56  ;;  %v4588_v60 = vmul.f32 %v11092_v33, %v13689_v13  ;;  %7750 = vmatprep.subr.bf16.mxu1 %v11538_v63  ;;  %7622 = vmatprep.subr.bf16.mxu0 %v11538_v63  ;;  %v3235_v31 = vmul.f32 %v11109_v36, %v13690_v55  ;;  %v13693_v6 = vld [vmem:[#allocation8_spill] sm:$0xff]  ;;  %v13704_v61 = vld [vmem:[#allocation3_spill] sm:$0xff] }
 0x22d   :  { %v3405_v50 = vadd.f32 %v3389_v24, %v3368_v26  ;;  %13687 = vst [vmem:[#allocation42_spill] sm:$0xff] %v11545_v41  ;;  %13688 = vst [vmem:[#allocation12_spill] sm:$0xff] %v11551_v21  ;;  %v3825_v5 = vmul.f32 %v11157_v48, %v13690_v55  ;;  %v4136_v15 = vmul.f32 %v11273_v46, %v13690_v55 }
 0x22e   :  { %v11565_v27 = vmul.f32 %v11143_v11, %v13689_v13  ;;  %v4590_v24 = vmul.f32 %v11092_v33, %v13691_v38  ;;  %v5198_v26 = vmul.f32 %v11120_v34, %v13681_v7  ;;  %v3029_v52 = vmul.f32 %v11084_v49, %v13692_v4  ;;  %v13696_v38 = vld [vmem:[#allocation96_spill] sm:$0xff]  ;;  %v13703_v11 = vld [vmem:[#allocation74_spill] sm:$0xff] }
 0x22f   :  { %v3421_v43 = vmax.f32 %v3405_v50, 0.0  ;;  %v11575_v63 = vmul.f32 %v11092_v33, %v13693_v6  ;;  %v4806_v50 = vmul.f32 %v11173_v23, %v13693_v6  ;;  %v4503_v55 = vadd.f32 %v11100_v8, %v4480_v59  ;;  %v13698_v4 = vld [vmem:[#allocation64_spill] sm:$0xff]  ;;  %v11594_v59 = vpop.permute.xlu0 %4656 }
 0x230   :  { %v4688_v18 = vmul.f32 %v11109_v36, %v13694_v14  ;;  %v11586_v30 = vmul.f32 %v11185_v3, %v13681_v7  ;;  %v4689_v0 = vmul.f32 %v11109_v36, %v13696_v38  ;;  %v3236_v54 = vmul.f32 %v11109_v36, %v13697_v2 }
 0x231   :  { %v11582_v53 = vpop.permute.xlu1 %4442  ;;  %6897 = vmatprep.mubr.f32.mxu0 %v3421_v43  ;;  %v4482_v6 = vmul.f32 %v11084_v49, %v13698_v4  ;;  %v11599_v43 = vadd.f32 %v3235_v31, %v11464_v58  ;;  %v11602_v7 = vadd.f32 %v3825_v5, %v11467_v37  ;;  %v11605_v3 = vadd.f32 %v4136_v15, %v11470_v51  ;;  %v13702_v4 = vld [vmem:[#allocation40_spill] sm:$0xff]  ;;  %v13707_v15 = vld [vmem:[#allocation105_spill] sm:$0xff] }
 0x232   :  { %13695 = vst [vmem:[#allocation47_spill] sm:$0xff] %v11582_v53  ;;  %v4762_v41 = vmul.f32 %v11025_v29, %v11582_v53  ;;  %v11608_v34 = vadd.f32 %v11150_v35, %v5198_v26  ;;  %v3052_v10 = vadd.f32 %v11100_v8, %v3029_v52  ;;  %v4691_v21 = vmul.f32 %v11109_v36, %v13702_v4  ;;  %v13708_v52 = vld [vmem:[#allocation62_spill] sm:$0xff] }
 0x233   :  { %13699 = vst [vmem:[#allocation69_spill] sm:$0xff] %v11599_v43  ;;  %13700 = vst [vmem:[#allocation27_spill] sm:$0xff] %v11602_v7  ;;  %v3309_v56 = vmul.f32 %v11025_v29, %v13703_v11  ;;  %v3136_v58 = vmul.f32 %v11092_v33, %v13704_v61  ;;  %v4843_v37 = vmul.f32 %v11066_v28, %v11594_v59  ;;  %v13709_v7 = vld [vmem:[#allocation2_spill] sm:$0xff] }
 0x234   :  { %13701 = vst [vmem:[#allocation28_spill] sm:$0xff] %v11605_v3  ;;  %v11621_v51 = vadd.f32 %v4688_v18, %v4603_v42  ;;  %v4604_v5 = vadd.f32 %v4588_v60, %v4503_v55  ;;  %v3137_v26 = vmul.f32 %v11092_v33, %v13707_v15  ;;  %v4589_v3 = vmul.f32 %v11092_v33, %v13708_v52 }
 0x235   :  { %v11619_v31 = vpop.permute.xlu1 %2995  ;;  %v3237_v43 = vmul.f32 %v11109_v36, %v13709_v7  ;;  %v4505_v4 = vadd.f32 %v11100_v8, %v4482_v6  ;;  %v3353_v29 = vmul.f32 %v11173_v23, %v11429_v47  ;;  %v4785_v61 = vadd.f32 %v11054_v22, %v4762_v41 }
 0x236   :  { %13705 = vst [vmem:[#allocation21_spill] sm:$0xff] %v11619_v31  ;;  %13706 = vst [vmem:[#allocation73_spill] sm:$0xff] %v11621_v51  ;;  %v11633_v31 = vadd.f32 %v4689_v0, %v4604_v5  ;;  %v11636_v60 = vadd.f32 %v3236_v54, %v11499_v39  ;;  %v3031_v18 = vmul.f32 %v11084_v49, %v13703_v11 }
 0x237   :  { %v3332_v42 = vadd.f32 %v11054_v22, %v3309_v56  ;;  %v4690_v55 = vmul.f32 %v11109_v36, %v11362_v1  ;;  %v4484_v6 = vmul.f32 %v11084_v49, %v11582_v53  ;;  %v3238_v51 = vmul.f32 %v11109_v36, %v11342_v44 }
 0x238   :  { %13710 = vst [vmem:[#allocation97_spill] sm:$0xff] %v11633_v31  ;;  %13711 = vst [vmem:[#allocation29_spill] sm:$0xff] %v11636_v60  ;;  %v3138_v41 = vmul.f32 %v11092_v33, %v11411_v9  ;;  %v4591_v0 = vmul.f32 %v11092_v33, %v11461_v45  ;;  %v3152_v39 = vadd.f32 %v3136_v58, %v11358_v40 }
 0x239   :  { %v3139_v56 = vmul.f32 %v11092_v33, %v11429_v47  ;;  %v4805_v54 = vmul.f32 %v11173_v23, %v11461_v45  ;;  %v4605_v60 = vadd.f32 %v4589_v3, %v11451_v57  ;;  %v4606_v31 = vadd.f32 %v4590_v24, %v4505_v4 }
 0x23a   :  { %v3239_v11 = vmul.f32 %v11109_v36, %v11510_v12  ;;  %v3369_v9 = vadd.f32 %v3353_v29, %v3332_v42  ;;  %v4822_v44 = vadd.f32 %v4806_v50, %v4785_v61  ;;  %v4507_v40 = vadd.f32 %v11100_v8, %v4484_v6 }
 0x23b   :  { %v11656_v5 = vpop.permute.xlu1 %3200  ;;  %v11664_v47 = vadd.f32 %v3237_v43, %v3152_v39  ;;  %v11666_v1 = vadd.f32 %v4690_v55, %v4605_v60  ;;  %v11668_v45 = vadd.f32 %v4691_v21, %v4606_v31  ;;  %v3153_v24 = vadd.f32 %v3137_v26, %v3052_v10 }
 0x23c   :  { %v3390_v53 = vmul.f32 %v11066_v28, %v11656_v5  ;;  %v6607_v58 = vpop.f32.mrb[0].mxu0  ;;  %v3154_v4 = vadd.f32 %v3138_v41, %v11515_v25  ;;  %v4607_v29 = vadd.f32 %v4591_v0, %v11530_v62  ;;  %v3826_v61 = vmul.f32 %v11157_v48, %v13697_v2 }
 0x23d   :  { %13712 = vst [vmem:[#allocation10_spill] sm:$0xff] %v11664_v47  ;;  %13713 = vst [vmem:[#allocation93_spill] sm:$0xff] %v11666_v1  ;;  %v1358_v3 = vpop.f32.mrb[1].mxu0  ;;  %v3054_v50 = vadd.f32 %v11100_v8, %v3031_v18  ;;  %v4693_v21 = vmul.f32 %v11109_v36, %v11594_v59  ;;  %v4859_v62 = vadd.f32 %v4843_v37, %v4822_v44  ;;  %v13753_v1 = vld [vmem:[#allocation50_spill] sm:$0xff] }
 0x23e   :  { %13714 = vst [vmem:[#allocation94_spill] sm:$0xff] %v11668_v45  ;;  %1454 = vst [vmem:[%s12889_s4 + $0x8] sm:$0xff] %v6607_v58  ;;  %v3406_v57 = vadd.f32 %v3390_v53, %v3369_v9  ;;  %v4821_v9 = vadd.f32 %v4805_v54, %v11548_v16  ;;  %v3240_v53 = vmul.f32 %v11109_v36, %v11656_v5 }
 0x23f   :  { %1453 = vst [vmem:[%s12889_s4] sm:$0xff] %v1358_v3  ;;  %v11683_v43 = vpop.permute.xlu1 %4652  ;;  %v11692_v60 = vadd.f32 %v3238_v51, %v3153_v24  ;;  %v11694_v18 = vadd.f32 %v3239_v11, %v3154_v4  ;;  %v4608_v42 = vadd.f32 %v11575_v63, %v4507_v40  ;;  %v5278_v16 = vmul.f32 %v11157_v48, %v13694_v14 }
 0x240   :  { %v4692_v10 = vmul.f32 %v11109_v36, %v11683_v43  ;;  %v4842_v25 = vmul.f32 %v11066_v28, %v11683_v43  ;;  %v6610_v31 = vpop.f32.mrb[2].mxu0  ;;  %v3422_v26 = vmax.f32 %v3406_v57, 0.0  ;;  %v3155_v44 = vadd.f32 %v3139_v56, %v3054_v50  ;;  %v13721_v57 = vld [vmem:[#allocation53_spill] sm:$0xff]  ;;  %v13726_v50 = vld [vmem:[#allocation43_spill] sm:$0xff] }
 0x241   :  { %13715 = vst [vmem:[#allocation57_spill] sm:$0xff] %v11692_v60  ;;  %13716 = vst [vmem:[#allocation52_spill] sm:$0xff] %v11694_v18  ;;  %v1368_v55 = vpop.f32.mrb[3].mxu0  ;;  %v5553_v37 = vmul.f32 %v11242_v20, %v13689_v13  ;;  %v5279_v11 = vmul.f32 %v11157_v48, %v13696_v38  ;;  %v11711_v63 = vadd.f32 %v4693_v21, %v4608_v42  ;;  %v13750_v18 = vld [vmem:[#allocation11_spill] sm:$0xff] }
 0x242   :  { %1456 = vst [vmem:[%s12889_s4 + $0x18] sm:$0xff] %v6610_v31  ;;  %v4858_v6 = vadd.f32 %v4842_v25, %v4821_v9  ;;  %v11702_v41 = vadd.f32 %v4692_v10, %v4607_v29  ;;  %1455 = vst [vmem:[%s12889_s4 + $0x10] sm:$0xff] %v1368_v55  ;;  %6898 = vmatmul.mubr.f32.gmra.mrb[24].mxu0 %v3422_v26  ;;  %v5258_v51 = vadd.f32 %v11565_v27, %v11608_v34  ;;  %v13727_v9 = vld [vmem:[#allocation12_spill] sm:$0xff] }
 0x243   :  { %13718 = vst [vmem:[#allocation32_spill] sm:$0xff] %v11711_v63  ;;  %v5589_v0 = vmul.f32 %v11273_v46, %v13694_v14  ;;  %v11719_v13 = vadd.f32 %v3240_v53, %v3155_v44  ;;  %v11722_v54 = vadd.f32 %v3826_v61, %v11501_v19  ;;  %v5532_v40 = vadd.f32 %v11224_v32, %v11586_v30  ;;  %v13722_v19 = vld [vmem:[#allocation21_spill] sm:$0xff]  ;;  %v13723_v30 = vld [vmem:[#allocation87_spill] sm:$0xff]  ;;  %v13729_v25 = vld [vmem:[#allocation108_spill] sm:$0xff] }
 0x244   :  { %13717 = vst [vmem:[#allocation107_spill] sm:$0xff] %v11702_v41  ;;  %v11717_v39 = vpop.permute.xlu1 %3103  ;;  %v4874_v56 = vmax.f32 %v4858_v6, 0.0  ;;  %v4137_v58 = vmul.f32 %v11273_v46, %v13697_v2  ;;  %v6613_v3 = vpop.f32.mrb[4].mxu0  ;;  %v4875_v27 = vmax.f32 %v4859_v62, 0.0  ;;  %v11732_v14 = vadd.f32 %v11150_v35, %v11519_v17  ;;  %v13725_v61 = vld [vmem:[#allocation3_spill] sm:$0xff]  ;;  %v13730_v62 = vld [vmem:[#allocation84_spill] sm:$0xff] }
 0x245   :  { %13719 = vst [vmem:[#allocation100_spill] sm:$0xff] %v11719_v13  ;;  %13720 = vst [vmem:[#allocation18_spill] sm:$0xff] %v11722_v54  ;;  %v3140_v34 = vmul.f32 %v11092_v33, %v11717_v39  ;;  %v11736_v24 = vadd.f32 %v11150_v35, %v13721_v57  ;;  %v3033_v4 = vmul.f32 %v11084_v49, %v13722_v19  ;;  %v1378_v2 = vpop.f32.mrb[5].mxu0  ;;  %v13731_v26 = vld [vmem:[#allocation36_spill] sm:$0xff]  ;;  %v13749_v63 = vld [vmem:[#allocation91_spill] sm:$0xff] }
 0x246   :  { %1458 = vst [vmem:[%s12889_s4 + $0x28] sm:$0xff] %v6613_v3  ;;  %7122 = vmatmul.mubr.f32.gmra.mrb[24].mxu1 %v4874_v56  ;;  %v11744_v29 = vadd.f32 %v5278_v16, %v13723_v30  ;;  %v5590_v17 = vmul.f32 %v11273_v46, %v13696_v38  ;;  %v3790_v21 = vmul.f32 %v13726_v50, %v13725_v61  ;;  %1457 = vst [vmem:[%s12889_s4 + $0x20] sm:$0xff] %v1378_v2  ;;  %v13732_v16 = vld [vmem:[#allocation42_spill] sm:$0xff]  ;;  %v13734_v6 = vld [vmem:[#allocation24_spill] sm:$0xff] }
 0x247   :  { %7124 = vmatprep.mubr.f32.mxu1 %v4875_v27  ;;  %v11754_v53 = vadd.f32 %v3140_v34, %v13727_v9  ;;  %v11756_v10 = vadd.f32 %v5279_v11, %v5258_v51  ;;  %v3310_v31 = vmul.f32 %v13730_v62, %v13729_v25  ;;  %v3750_v42 = vmul.f32 %v13731_v26, %v13729_v25  ;;  %v13735_v56 = vld [vmem:[#allocation5_spill] sm:$0xff]  ;;  %v13738_v2 = vld [vmem:[#allocation59_spill] sm:$0xff]  ;;  %v13747_v13 = vld [vmem:[#allocation8_spill] sm:$0xff] }
 0x248   :  { %13724 = vst [vmem:[#allocation85_spill] sm:$0xff] %v11744_v29  ;;  %v4101_v38 = vmul.f32 %v11242_v20, %v13725_v61  ;;  %v11765_v55 = vadd.f32 %v5589_v0, %v13732_v16  ;;  %v3747_v44 = vmul.f32 %v13731_v26, %v13734_v6  ;;  %v4058_v3 = vmul.f32 %v13735_v56, %v13734_v6  ;;  %v6616_v11 = vpop.f32.mrb[6].mxu0  ;;  %v11771_v51 = vpop.permute.xlu1 %3107  ;;  %v13736_v27 = vld [vmem:[#allocation25_spill] sm:$0xff] }
 0x249   :  { %13728 = vst [vmem:[#allocation31_spill] sm:$0xff] %v11756_v10  ;;  %v5569_v34 = vadd.f32 %v5553_v37, %v5532_v40  ;;  %v11774_v57 = vadd.f32 %v4137_v58, %v13736_v27  ;;  %v4485_v30 = vmul.f32 %v11084_v49, %v13738_v2  ;;  %v4763_v0 = vmul.f32 %v13730_v62, %v13738_v2  ;;  %v1388_v16 = vpop.f32.mrb[7].mxu0  ;;  %v13739_v58 = vld [vmem:[#allocation16_spill] sm:$0xff] }
 0x24a   :  { %13733 = vst [vmem:[#allocation35_spill] sm:$0xff] %v11765_v55  ;;  %v3056_v61 = vadd.f32 %v11100_v8, %v3033_v4  ;;  %1460 = vst [vmem:[%s12889_s4 + $0x38] sm:$0xff] %v6616_v11  ;;  %v3141_v9 = vmul.f32 %v11092_v33, %v11771_v51  ;;  %v3791_v37 = vmul.f32 %v13726_v50, %v13707_v15  ;;  %v13742_v10 = vld [vmem:[#allocation64_spill] sm:$0xff] }
 0x24b   :  { %13737 = vst [vmem:[#allocation63_spill] sm:$0xff] %v11774_v57  ;;  %v4102_v40 = vmul.f32 %v11242_v20, %v13707_v15  ;;  %1459 = vst [vmem:[%s12889_s4 + $0x30] sm:$0xff] %v1388_v16  ;;  %v3806_v4 = vadd.f32 %v3790_v21, %v13739_v58  ;;  %v11794_v62 = vadd.f32 %v5590_v17, %v5569_v34  ;;  %v13741_v57 = vld [vmem:[#allocation34_spill] sm:$0xff] }
 0x24c   :  { %v3333_v6 = vadd.f32 %v11054_v22, %v3310_v31  ;;  %v5203_v11 = vmul.f32 %v13731_v26, %v13738_v2  ;;  %v11799_v27 = vadd.f32 %v3141_v9, %v3056_v61  ;;  %v4117_v55 = vadd.f32 %v4101_v38, %v13741_v57  ;;  %v6619_v21 = vpop.f32.mrb[8].mxu0  ;;  %v11809_v34 = vpop.permute.xlu1 %4559  ;;  %v13754_v2 = vld [vmem:[#allocation38_spill] sm:$0xff] }
 0x24d   :  { %13740 = vst [vmem:[#allocation60_spill] sm:$0xff] %v11794_v62  ;;  %v11803_v54 = vadd.f32 %v11150_v35, %v3750_v42  ;;  %v3770_v15 = vadd.f32 %v11150_v35, %v3747_v44  ;;  %v4081_v16 = vadd.f32 %v11224_v32, %v4058_v3  ;;  %v5200_v17 = vmul.f32 %v13731_v26, %v13742_v10  ;;  %v1398_v44 = vpop.f32.mrb[9].mxu0  ;;  %v13746_v62 = vld [vmem:[#allocation112_spill] sm:$0xff] }
 0x24e   :  { %v4508_v31 = vadd.f32 %v11100_v8, %v4485_v30  ;;  %v5243_v61 = vmul.f32 %v13726_v50, %v13708_v52  ;;  %v5554_v38 = vmul.f32 %v11242_v20, %v13708_v52  ;;  %1462 = vst [vmem:[%s12889_s4 + $0x48] sm:$0xff] %v6619_v21  ;;  %v4593_v42 = vmul.f32 %v11092_v33, %v11809_v34  ;;  %v13744_v21 = vld [vmem:[#allocation39_spill] sm:$0xff] }
 0x24f   :  { %v11822_v3 = vadd.f32 %v11054_v22, %v4763_v0  ;;  %v3354_v57 = vmul.f32 %v11173_v23, %v11717_v39  ;;  %1461 = vst [vmem:[%s12889_s4 + $0x40] sm:$0xff] %v1398_v44  ;;  %v3807_v30 = vadd.f32 %v3791_v37, %v3770_v15  ;;  %v11829_v52 = vadd.f32 %v4102_v40, %v4081_v16  ;;  %v13748_v40 = vld [vmem:[#allocation40_spill] sm:$0xff] }
 0x250   :  { %v11832_v9 = vadd.f32 %v11150_v35, %v5203_v11  ;;  %v3827_v58 = vmul.f32 %v11157_v48, %v13709_v7  ;;  %v5280_v22 = vmul.f32 %v11157_v48, %v13744_v21  ;;  %v11838_v0 = vadd.f32 %v4593_v42, %v4508_v31  ;;  %v6622_v15 = vpop.f32.mrb[10].mxu0 }
 0x251   :  { %13743 = vst [vmem:[#allocation14_spill] sm:$0xff] %v11822_v3  ;;  %v5244_v29 = vmul.f32 %v13726_v50, %v13746_v62  ;;  %v5246_v44 = vmul.f32 %v13726_v50, %v13747_v13  ;;  %v5223_v37 = vadd.f32 %v11150_v35, %v5200_v17  ;;  %v5281_v11 = vmul.f32 %v11157_v48, %v13748_v40  ;;  %v1408_v31 = vpop.f32.mrb[11].mxu0  ;;  %v11854_v42 = vpop.permute.xlu1 %3204  ;;  %v13751_v17 = vld [vmem:[#allocation106_spill] sm:$0xff] }
 0x252   :  { %13745 = vst [vmem:[#allocation78_spill] sm:$0xff] %v11838_v0  ;;  %v4138_v16 = vmul.f32 %v11273_v46, %v13709_v7  ;;  %v3828_v41 = vmul.f32 %v11157_v48, %v13749_v63  ;;  %1464 = vst [vmem:[%s12889_s4 + $0x58] sm:$0xff] %v6622_v15  ;;  %v5259_v60 = vadd.f32 %v5243_v61, %v13750_v18  ;;  %v13755_v61 = vld [vmem:[#allocation47_spill] sm:$0xff] }
 0x253   :  { %v11858_v45 = vadd.f32 %v5554_v38, %v13751_v17  ;;  %v3792_v47 = vmul.f32 %v13726_v50, %v13753_v1  ;;  %1463 = vst [vmem:[%s12889_s4 + $0x50] sm:$0xff] %v1408_v31  ;;  %v3241_v7 = vmul.f32 %v11109_v36, %v11854_v42  ;;  %v3391_v15 = vmul.f32 %v11066_v28, %v11854_v42  ;;  %v13758_v1 = vld [vmem:[#allocation76_spill] sm:$0xff] }
 0x254   :  { %v3370_v13 = vadd.f32 %v3354_v57, %v3333_v6  ;;  %v5245_v18 = vmul.f32 %v13726_v50, %v13754_v2  ;;  %v5202_v38 = vmul.f32 %v13731_v26, %v13755_v61  ;;  %v11873_v17 = vadd.f32 %v3827_v58, %v3806_v4  ;;  %v13759_v6 = vld [vmem:[#allocation74_spill] sm:$0xff] }
 0x255   :  { %13752 = vst [vmem:[#allocation95_spill] sm:$0xff] %v11858_v45  ;;  %v11875_v25 = vadd.f32 %v5280_v22, %v5259_v60  ;;  %v4594_v31 = vmul.f32 %v11092_v33, %v13758_v1  ;;  %v6625_v45 = vpop.f32.mrb[12].mxu0  ;;  %v11880_v3 = vadd.f32 %v3241_v7, %v11754_v53  ;;  %v5260_v28 = vadd.f32 %v5244_v29, %v5223_v37  ;;  %v13763_v22 = vld [vmem:[#allocation45_spill] sm:$0xff] }
 0x256   :  { %13756 = vst [vmem:[#allocation92_spill] sm:$0xff] %v11873_v17  ;;  %v3407_v0 = vadd.f32 %v3391_v15, %v3370_v13  ;;  %v3749_v57 = vmul.f32 %v13731_v26, %v13759_v6  ;;  %v3829_v2 = vmul.f32 %v11157_v48, %v11510_v12  ;;  %v5282_v4 = vmul.f32 %v11157_v48, %v11683_v43  ;;  %v1418_v33 = vpop.f32.mrb[13].mxu0 }
 0x257   :  { %13757 = vst [vmem:[#allocation22_spill] sm:$0xff] %v11875_v25  ;;  %1466 = vst [vmem:[%s12889_s4 + $0x68] sm:$0xff] %v6625_v45  ;;  %v11891_v60 = vadd.f32 %v3828_v41, %v3807_v30  ;;  %v5248_v13 = vmul.f32 %v13726_v50, %v13758_v1  ;;  %v11898_v53 = vadd.f32 %v5281_v11, %v5260_v28  ;;  %v11905_v7 = vpop.permute.xlu1 %4452  ;;  %v11907_v41 = vpop.permute.xlu0 %4664 }
 0x258   :  { %1465 = vst [vmem:[%s12889_s4 + $0x60] sm:$0xff] %v1418_v33  ;;  %v3423_v29 = vmax.f32 %v3407_v0, 0.0  ;;  %v11900_v58 = vadd.f32 %v4138_v16, %v4117_v55  ;;  %v3793_v37 = vmul.f32 %v13726_v50, %v13763_v22  ;;  %v5225_v45 = vadd.f32 %v11150_v35, %v5202_v38  ;;  %v6628_v38 = vpop.f32.mrb[14].mxu0 }
 0x259   :  { %13760 = vst [vmem:[#allocation98_spill] sm:$0xff] %v11891_v60  ;;  %13761 = vst [vmem:[#allocation6_spill] sm:$0xff] %v11898_v53  ;;  %v3808_v30 = vadd.f32 %v3792_v47, %v11732_v14  ;;  %v5261_v15 = vadd.f32 %v5245_v18, %v11736_v24  ;;  %v5283_v0 = vmul.f32 %v11157_v48, %v11594_v59  ;;  %v1428_v14 = vpop.f32.mrb[15].mxu0  ;;  %v12158_v53 = vld [vmem:[%s12887_s1 + $0xe] ss:$0 sm:$0xff] }
 0x25a   :  { %13762 = vst [vmem:[#allocation86_spill] sm:$0xff] %v11900_v58  ;;  %v3794_v55 = vmul.f32 %v13726_v50, %v11717_v39  ;;  %v5247_v11 = vmul.f32 %v13726_v50, %v11809_v34  ;;  %v4486_v16 = vmul.f32 %v11084_v49, %v11905_v7  ;;  %6900 = vmatprep.mubr.f32.mxu0 %v3423_v29  ;;  %1468 = vst [vmem:[%s12889_s4 + $0x78] sm:$0xff] %v6628_v38  ;;  %v11932_v49 = vld [vmem:[%s12887_s1 + $0x4] ss:$0 sm:$0xff] }
 0x25b   :  { %v3772_v28 = vadd.f32 %v11150_v35, %v3749_v57  ;;  %v5204_v47 = vmul.f32 %v13731_v26, %v11905_v7  ;;  %v11925_v24 = vadd.f32 %v3829_v2, %v3808_v30  ;;  %v11927_v18 = vadd.f32 %v5282_v4, %v5261_v15  ;;  %1467 = vst [vmem:[%s12889_s4 + $0x70] sm:$0xff] %v1428_v14 }
 0x25c   :  { %v3311_v57 = vmul.f32 %v11932_v49, %v13722_v19  ;;  %v3830_v33 = vmul.f32 %v11157_v48, %v11656_v5  ;;  %v4509_v29 = vadd.f32 %v11100_v8, %v4486_v16  ;;  %v4695_v2 = vmul.f32 %v11109_v36, %v11907_v41 }
 0x25d   :  { %13764 = vst [vmem:[#allocation13_spill] sm:$0xff] %v11925_v24  ;;  %13765 = vst [vmem:[#allocation58_spill] sm:$0xff] %v11927_v18  ;;  %v3751_v4 = vmul.f32 %v13731_v26, %v13722_v19  ;;  %v4764_v30 = vmul.f32 %v11932_v49, %v11905_v7  ;;  %v5262_v15 = vadd.f32 %v5246_v44, %v5225_v45  ;;  %v11950_v18 = vpop.permute.xlu1 %3005 }
 0x25e   :  { %v3809_v38 = vadd.f32 %v3793_v37, %v3772_v28  ;;  %v5511_v58 = vmul.f32 %v13735_v56, %v13742_v10  ;;  %v4610_v8 = vadd.f32 %v4594_v31, %v4509_v29  ;;  %v3810_v16 = vadd.f32 %v3794_v55, %v11803_v54 }
 0x25f   :  { %v5263_v14 = vadd.f32 %v5247_v11, %v11832_v9  ;;  %v3355_v36 = vmul.f32 %v11173_v23, %v11771_v51  ;;  %v3795_v26 = vmul.f32 %v13726_v50, %v11771_v51  ;;  %v3831_v44 = vmul.f32 %v11157_v48, %v11854_v42  ;;  %v11972_v9 = vld [vmem:[%s12888_s2 + $0x1] ss:$0 sm:$0xff] }
 0x260   :  { %v5227_v37 = vadd.f32 %v11150_v35, %v5204_v47  ;;  %v4808_v10 = vmul.f32 %v11173_v23, %v13758_v1  ;;  %v11963_v45 = vadd.f32 %v4695_v2, %v4610_v8  ;;  %v11965_v31 = vadd.f32 %v5283_v0, %v5262_v15 }
 0x261   :  { %v11967_v54 = vadd.f32 %v3830_v33, %v3809_v38  ;;  %v3334_v50 = vadd.f32 %v11972_v9, %v3311_v57  ;;  %v3774_v55 = vadd.f32 %v11150_v35, %v3751_v4  ;;  %v4787_v11 = vadd.f32 %v11972_v9, %v4764_v30  ;;  %v11986_v2 = vpop.permute.xlu1 %3208 }
 0x262   :  { %13766 = vst [vmem:[#allocation17_spill] sm:$0xff] %v11963_v45  ;;  %13767 = vst [vmem:[#allocation65_spill] sm:$0xff] %v11965_v31  ;;  %v5285_v28 = vmul.f32 %v11157_v48, %v11907_v41  ;;  %v5555_v0 = vmul.f32 %v11242_v20, %v13746_v62  ;;  %v5534_v47 = vadd.f32 %v11224_v32, %v5511_v58  ;;  %v11995_v62 = vld [vmem:[%s12887_s1 + $0x2] ss:$0 sm:$0xff]  ;;  %v13786_v31 = vld [vmem:[#allocation83_spill] sm:$0xff] }
 0x263   :  { %13768 = vst [vmem:[#allocation75_spill] sm:$0xff] %v11967_v54  ;;  %v5592_v33 = vmul.f32 %v11273_v46, %v13748_v40  ;;  %v4139_v29 = vmul.f32 %v11273_v46, %v13749_v63  ;;  %v3371_v57 = vadd.f32 %v3355_v36, %v3334_v50  ;;  %v11988_v35 = vadd.f32 %v3831_v44, %v3810_v16  ;;  %v12002_v63 = vld [vmem:[%s12887_s1 + $0x6] ss:$0 sm:$0xff]  ;;  %v12066_v54 = vld [vmem:[%s12888_s2] ss:$0 sm:$0xff] }
 0x264   :  { %v5264_v4 = vadd.f32 %v5248_v13, %v5227_v37  ;;  %v3811_v30 = vadd.f32 %v3795_v26, %v3774_v55  ;;  %v4807_v15 = vmul.f32 %v11173_v23, %v11809_v34  ;;  %v3242_v40 = vmul.f32 %v11995_v62, %v11986_v2  ;;  %v13773_v50 = vld [vmem:[#allocation66_spill] sm:$0xff] }
 0x265   :  { %13769 = vst [vmem:[#allocation101_spill] sm:$0xff] %v11988_v35  ;;  %v3392_v13 = vmul.f32 %v12002_v63, %v11986_v2  ;;  %v3832_v58 = vmul.f32 %v11157_v48, %v11986_v2  ;;  %v5591_v23 = vmul.f32 %v11273_v46, %v13744_v21  ;;  %v4845_v38 = vmul.f32 %v12002_v63, %v11907_v41  ;;  %v12024_v48 = vld [vmem:[%s12887_s1] ss:$0 sm:$0xff]  ;;  %v13774_v46 = vld [vmem:[#allocation104_spill] sm:$0xff] }
 0x266   :  { %v4824_v8 = vadd.f32 %v4808_v10, %v4787_v11  ;;  %v12012_v16 = vadd.f32 %v5285_v28, %v5264_v4  ;;  %v12015_v26 = vadd.f32 %v3242_v40, %v11799_v27  ;;  %v5571_v37 = vadd.f32 %v5555_v0, %v5534_v47  ;;  %v12031_v10 = vld [vmem:[%s12887_s1 + $0x8] ss:$0 sm:$0xff]  ;;  %v12035_v11 = vpop.permute.xlu1 %4660  ;;  %v12047_v47 = vld [vmem:[%s12887_s1 + $0xa] ss:$0 sm:$0xff]  ;;  %v13776_v4 = vld [vmem:[#allocation14_spill] sm:$0xff] }
 0x267   :  { %v3408_v36 = vadd.f32 %v3392_v13, %v3371_v57  ;;  %v12017_v44 = vadd.f32 %v3832_v58, %v3811_v30  ;;  %v4059_v55 = vmul.f32 %v13735_v56, %v13773_v50  ;;  %v3034_v21 = vmul.f32 %v12024_v48, %v13774_v46  ;;  %v13778_v58 = vld [vmem:[#allocation78_spill] sm:$0xff] }
 0x268   :  { %13770 = vst [vmem:[#allocation68_spill] sm:$0xff] %v12012_v16  ;;  %13771 = vst [vmem:[#allocation15_spill] sm:$0xff] %v12015_v26  ;;  %v3752_v27 = vmul.f32 %v12031_v10, %v13774_v46  ;;  %v12038_v56 = vadd.f32 %v4139_v29, %v11829_v52  ;;  %v4694_v28 = vmul.f32 %v11995_v62, %v12035_v11 }
 0x269   :  { %13772 = vst [vmem:[#allocation54_spill] sm:$0xff] %v12017_v44  ;;  %v4844_v0 = vmul.f32 %v12002_v63, %v12035_v11  ;;  %v5284_v57 = vmul.f32 %v12047_v47, %v12035_v11  ;;  %v4823_v30 = vadd.f32 %v4807_v15, %v13776_v4  ;;  %v3424_v40 = vmax.f32 %v3408_v36, 0.0  ;;  %v13780_v44 = vld [vmem:[#allocation95_spill] sm:$0xff] }
 0x26a   :  { %13775 = vst [vmem:[#allocation41_spill] sm:$0xff] %v12038_v56  ;;  %v4861_v13 = vadd.f32 %v4845_v38, %v4824_v8  ;;  %v12052_v52 = vadd.f32 %v5592_v33, %v5571_v37  ;;  %v12055_v50 = vadd.f32 %v4694_v28, %v13778_v58  ;;  %v12060_v16 = vadd.f32 %v5591_v23, %v13780_v44  ;;  %v13782_v33 = vld [vmem:[#allocation50_spill] sm:$0xff]  ;;  %v12086_v44 = vpop.permute.xlu1 %3111 }
 0x26b   :  { %v4860_v29 = vadd.f32 %v4844_v0, %v4823_v30  ;;  %v12057_v56 = vadd.f32 %v5284_v57, %v5263_v14  ;;  %v4082_v35 = vadd.f32 %v11224_v32, %v4059_v55  ;;  %v3057_v15 = vadd.f32 %v12066_v54, %v3034_v21  ;;  %6901 = vmatmul.mubr.f32.gmra.mrb[26].mxu0 %v3424_v40  ;;  %v12074_v14 = vld [vmem:[%s12888_s2 + $0x2] ss:$0 sm:$0xff]  ;;  %v12080_v32 = vld [vmem:[%s12887_s1 + $0xc] ss:$0 sm:$0xff]  ;;  %v12093_v21 = vld [vmem:[%s12887_s1 + $0x1] ss:$0 sm:$0xff] }
 0x26c   :  { %13777 = vst [vmem:[#allocation51_spill] sm:$0xff] %v12052_v52  ;;  %13781 = vst [vmem:[#allocation103_spill] sm:$0xff] %v12060_v16  ;;  %v4103_v38 = vmul.f32 %v11242_v20, %v13782_v33  ;;  %v3775_v23 = vadd.f32 %v12074_v14, %v3752_v27  ;;  %v4060_v8 = vmul.f32 %v12080_v32, %v13759_v6  ;;  %v12100_v6 = vld [vmem:[%s12887_s1 + $0x9] ss:$0 sm:$0xff]  ;;  %v4877_v0 = vmax.f32 %v4861_v13, 0.0  ;;  %v13784_v30 = vld [vmem:[#allocation108_spill] sm:$0xff] }
 0x26d   :  { %13779 = vst [vmem:[#allocation79_spill] sm:$0xff] %v12057_v56  ;;  %v3035_v36 = vmul.f32 %v12024_v48, %v11950_v18  ;;  %v4876_v37 = vmax.f32 %v4860_v29, 0.0  ;;  %v3753_v55 = vmul.f32 %v12031_v10, %v11950_v18  ;;  %v3142_v27 = vmul.f32 %v12093_v21, %v12086_v44  ;;  %v13783_v57 = vld [vmem:[#allocation19_spill] sm:$0xff] }
 0x26e   :  { %v3796_v28 = vmul.f32 %v12100_v6, %v12086_v44  ;;  %v5512_v4 = vmul.f32 %v12080_v32, %v13783_v57  ;;  %v4061_v40 = vmul.f32 %v12080_v32, %v13784_v30  ;;  %v13785_v29 = vld [vmem:[#allocation59_spill] sm:$0xff]  ;;  %v3312_v33 = vmul.f32 %v11932_v49, %v13774_v46 }
 0x26f   :  { %v5514_v58 = vmul.f32 %v12080_v32, %v13785_v29  ;;  %7125 = vmatmul.mubr.f32.gmra.mrb[26].mxu1 %v4876_v37  ;;  %v4104_v52 = vmul.f32 %v11242_v20, %v13763_v22  ;;  %v3158_v16 = vadd.f32 %v3142_v27, %v3057_v15  ;;  %v4119_v13 = vadd.f32 %v4103_v38, %v4082_v35  ;;  %v12123_v37 = vld [vmem:[%s12888_s2 + $0x3] ss:$0 sm:$0xff]  ;;  %v12126_v22 = vpop.permute.xlu1 %3115 }
 0x270   :  { %7127 = vmatprep.mubr.f32.mxu1 %v4877_v0  ;;  %v3812_v56 = vadd.f32 %v3796_v28, %v3775_v23  ;;  %v4063_v57 = vmul.f32 %v12080_v32, %v13774_v46  ;;  %v4487_v30 = vmul.f32 %v12024_v48, %v13786_v31  ;;  %v5205_v29 = vmul.f32 %v12031_v10, %v13786_v31 }
 0x271   :  { %13787 = vst [vmem:[#allocation96_spill] sm:$0xff] %v12123_v37  ;;  %v4083_v20 = vadd.f32 %v12123_v37, %v4060_v8  ;;  %v3058_v35 = vadd.f32 %v12066_v54, %v3035_v36  ;;  %v3776_v15 = vadd.f32 %v12074_v14, %v3753_v55  ;;  %v3143_v46 = vmul.f32 %v12093_v21, %v12126_v22  ;;  %v12142_v36 = vld [vmem:[%s12887_s1 + $0xd] ss:$0 sm:$0xff]  ;;  %v13788_v55 = vld [vmem:[#allocation38_spill] sm:$0xff] }
 0x272   :  { %v3797_v38 = vmul.f32 %v12100_v6, %v12126_v22  ;;  %v5535_v23 = vadd.f32 %v12123_v37, %v5512_v4  ;;  %v4084_v27 = vadd.f32 %v12123_v37, %v4061_v40  ;;  %v5537_v28 = vadd.f32 %v12123_v37, %v5514_v58 }
 0x273   :  { %v5513_v8 = vmul.f32 %v12080_v32, %v13755_v61  ;;  %v5556_v0 = vmul.f32 %v12142_v36, %v13788_v55  ;;  %v12146_v24 = vadd.f32 %v3143_v46, %v3058_v35  ;;  %v4120_v4 = vadd.f32 %v4104_v52, %v4083_v20  ;;  %v12162_v35 = vpop.permute.xlu1 %4567 }
 0x274   :  { %v12148_v60 = vadd.f32 %v3797_v38, %v3776_v15  ;;  %v3335_v40 = vadd.f32 %v11972_v9, %v3312_v33  ;;  %v12152_v58 = vadd.f32 %v12123_v37, %v4063_v57  ;;  %v4510_v61 = vadd.f32 %v12066_v54, %v4487_v30  ;;  %v13790_v30 = vld [vmem:[#allocation8_spill] sm:$0xff] }
 0x275   :  { %13789 = vst [vmem:[#allocation77_spill] sm:$0xff] %v12146_v24  ;;  %v4140_v55 = vmul.f32 %v12158_v53, %v11510_v12  ;;  %v5228_v15 = vadd.f32 %v12074_v14, %v5205_v29  ;;  %v5593_v52 = vmul.f32 %v12158_v53, %v11683_v43  ;;  %v4595_v33 = vmul.f32 %v12093_v21, %v12162_v35  ;;  %v12179_v29 = vld [vmem:[%s12887_s1 + $0x5] ss:$0 sm:$0xff] }
 0x276   :  { %v5249_v57 = vmul.f32 %v12100_v6, %v12162_v35  ;;  %v5557_v20 = vmul.f32 %v12142_v36, %v13790_v30  ;;  %v5536_v46 = vadd.f32 %v12123_v37, %v5513_v8  ;;  %v4141_v12 = vmul.f32 %v12158_v53, %v11656_v5 }
 0x277   :  { %v3356_v43 = vmul.f32 %v12179_v29, %v12086_v44  ;;  %v5515_v38 = vmul.f32 %v12080_v32, %v11905_v7  ;;  %v12185_v25 = vadd.f32 %v4595_v33, %v4510_v61  ;;  %v5572_v30 = vadd.f32 %v5556_v0, %v5535_v23  ;;  %v3213_v0 = vpop.permute.xlu1 %3212 }
 0x278   :  { %v12187_v17 = vadd.f32 %v5249_v57, %v5228_v15  ;;  %v5559_v8 = vmul.f32 %v12142_v36, %v13758_v1  ;;  %v5594_v5 = vmul.f32 %v12158_v53, %v11594_v59  ;;  %v4105_v24 = vmul.f32 %v12142_v36, %v11717_v39 }
 0x279   :  { %13791 = vst [vmem:[#allocation105_spill] sm:$0xff] %v12185_v25  ;;  %v12195_v26 = vadd.f32 %v4140_v55, %v4119_v13  ;;  %v4062_v45 = vmul.f32 %v12080_v32, %v13722_v19  ;;  %v5558_v7 = vmul.f32 %v12142_v36, %v11809_v34  ;;  %v4142_v23 = vmul.f32 %v12158_v53, %v11854_v42 }
 0x27a   :  { %v12203_v61 = vadd.f32 %v5593_v52, %v5572_v30  ;;  %v3243_v1 = vmul.f32 %v11995_v62, %v3213_v0  ;;  %v3393_v59 = vmul.f32 %v12002_v63, %v3213_v0  ;;  %v3833_v39 = vmul.f32 %v12047_v47, %v3213_v0 }
 0x27b   :  { %13792 = vst [vmem:[#allocation62_spill] sm:$0xff] %v12195_v26  ;;  %v3372_v13 = vadd.f32 %v3356_v43, %v3335_v40  ;;  %v5538_v55 = vadd.f32 %v12123_v37, %v5515_v38  ;;  %v5595_v19 = vmul.f32 %v12158_v53, %v12035_v11  ;;  %v5573_v15 = vadd.f32 %v5557_v20, %v5536_v46 }
 0x27c   :  { %13793 = vst [vmem:[#allocation2_spill] sm:$0xff] %v12203_v61  ;;  %v12211_v34 = vadd.f32 %v4141_v12, %v4120_v4  ;;  %v12213_v42 = vadd.f32 %v3243_v1, %v3158_v16  ;;  %v12215_v52 = vadd.f32 %v3833_v39, %v3812_v56  ;;  %v4121_v57 = vadd.f32 %v4105_v24, %v4084_v27  ;;  %v12227_v16 = vpop.permute.xlu1 %4462  ;;  %v13799_v24 = vld [vmem:[#allocation88_spill] sm:$0xff] }
 0x27d   :  { %v3409_v33 = vadd.f32 %v3393_v59, %v3372_v13  ;;  %v5516_v30 = vmul.f32 %v12080_v32, %v13786_v31  ;;  %v5596_v40 = vmul.f32 %v12158_v53, %v11907_v41  ;;  %v12221_v43 = vadd.f32 %v5594_v5, %v5573_v15 }
 0x27e   :  { %13794 = vst [vmem:[#allocation53_spill] sm:$0xff] %v12211_v34  ;;  %13795 = vst [vmem:[#allocation21_spill] sm:$0xff] %v12213_v42  ;;  %v5574_v38 = vadd.f32 %v5558_v7, %v5537_v28  ;;  %v4106_v11 = vmul.f32 %v12142_v36, %v11771_v51  ;;  %v4107_v4 = vmul.f32 %v12142_v36, %v12086_v44 }
 0x27f   :  { %13796 = vst [vmem:[#allocation87_spill] sm:$0xff] %v12215_v52  ;;  %13797 = vst [vmem:[#allocation3_spill] sm:$0xff] %v12221_v43  ;;  %v3425_v56 = vmax.f32 %v3409_v33, 0.0  ;;  %v12229_v20 = vadd.f32 %v4142_v23, %v4121_v57  ;;  %v5250_v27 = vmul.f32 %v12100_v6, %v13799_v24  ;;  %v4085_v46 = vadd.f32 %v12123_v37, %v4062_v45 }
 0x280   :  { %v5206_v41 = vmul.f32 %v12031_v10, %v12227_v16  ;;  %v5517_v28 = vmul.f32 %v12080_v32, %v12227_v16  ;;  %v3313_v51 = vmul.f32 %v11932_v49, %v11950_v18  ;;  %v4064_v44 = vmul.f32 %v12080_v32, %v11950_v18  ;;  %v12251_v39 = vpop.permute.xlu1 %3015 }
 0x281   :  { %13798 = vst [vmem:[#allocation43_spill] sm:$0xff] %v12229_v20  ;;  %6903 = vmatprep.mubr.f32.mxu0 %v3425_v56  ;;  %v12242_v12 = vadd.f32 %v5595_v19, %v5574_v38  ;;  %v5575_v5 = vadd.f32 %v5559_v8, %v5538_v55  ;;  %v4143_v7 = vmul.f32 %v12158_v53, %v11986_v2 }
 0x282   :  { %v5560_v45 = vmul.f32 %v12142_v36, %v12162_v35  ;;  %v4144_v23 = vmul.f32 %v12158_v53, %v3213_v0  ;;  %v5229_v1 = vadd.f32 %v12074_v14, %v5206_v41  ;;  %v5540_v59 = vadd.f32 %v12123_v37, %v5517_v28 }
 0x283   :  { %13800 = vst [vmem:[#allocation12_spill] sm:$0xff] %v12242_v12  ;;  %v12253_v13 = vadd.f32 %v5596_v40, %v5575_v5  ;;  %v4122_v18 = vadd.f32 %v4106_v11, %v4085_v46  ;;  %v4123_v19 = vadd.f32 %v4107_v4, %v12152_v58  ;;  %v3357_v8 = vmul.f32 %v12179_v29, %v12126_v22 }
 0x284   :  { %v4108_v2 = vmul.f32 %v12142_v36, %v12126_v22  ;;  %v5539_v55 = vadd.f32 %v12123_v37, %v5516_v30  ;;  %v5561_v0 = vmul.f32 %v12142_v36, %v13799_v24  ;;  %v12263_v15 = vadd.f32 %v5250_v27, %v5229_v1 }
 0x285   :  { %13801 = vst [vmem:[#allocation84_spill] sm:$0xff] %v12253_v13  ;;  %v4765_v33 = vmul.f32 %v11932_v49, %v13786_v31  ;;  %v3336_v57 = vadd.f32 %v11972_v9, %v3313_v51  ;;  %v4087_v58 = vadd.f32 %v12123_v37, %v4064_v44  ;;  %v12269_v40 = vadd.f32 %v4143_v7, %v4122_v18  ;;  %v12275_v30 = vpop.permute.xlu1 %3216  ;;  %v13807_v7 = vld [vmem:[#allocation33_spill] sm:$0xff] }
 0x286   :  { %13802 = vst [vmem:[#allocation36_spill] sm:$0xff] %v12263_v15  ;;  %v12271_v38 = vadd.f32 %v4144_v23, %v4123_v19  ;;  %v5576_v11 = vadd.f32 %v5560_v45, %v5539_v55  ;;  %v12273_v22 = vadd.f32 %v5561_v0, %v5540_v59  ;;  %v4809_v27 = vmul.f32 %v12179_v29, %v12162_v35 }
 0x287   :  { %13803 = vst [vmem:[#allocation42_spill] sm:$0xff] %v12269_v40  ;;  %v3373_v4 = vadd.f32 %v3357_v8, %v3336_v57  ;;  %v4124_v56 = vadd.f32 %v4108_v2, %v4087_v58  ;;  %v3394_v31 = vmul.f32 %v12002_v63, %v12275_v30  ;;  %v3834_v46 = vmul.f32 %v12047_v47, %v12275_v30 }
 0x288   :  { %13804 = vst [vmem:[#allocation24_spill] sm:$0xff] %v12271_v38  ;;  %v4145_v41 = vmul.f32 %v12158_v53, %v12275_v30  ;;  %v4788_v28 = vadd.f32 %v11972_v9, %v4765_v33  ;;  %v3314_v35 = vmul.f32 %v11932_v49, %v13807_v7  ;;  %v3754_v45 = vmul.f32 %v12031_v10, %v13807_v7  ;;  %v13810_v33 = vld [vmem:[#allocation30_spill] sm:$0xff]  ;;  %v13814_v38 = vld [vmem:[#allocation20_spill] sm:$0xff] }
 0x289   :  { %v3410_v51 = vadd.f32 %v3394_v31, %v3373_v4  ;;  %v12287_v44 = vadd.f32 %v3834_v46, %v12148_v60  ;;  %v4065_v23 = vmul.f32 %v12080_v32, %v13807_v7  ;;  %v12297_v1 = vpop.permute.xlu1 %4668  ;;  %v3022_v57 = vmul.f32 %v12024_v48, %v13810_v33 }
 0x28a   :  { %v12289_v5 = vadd.f32 %v4145_v41, %v4124_v56  ;;  %v4846_v59 = vmul.f32 %v12002_v63, %v12297_v1  ;;  %v5286_v60 = vmul.f32 %v12047_v47, %v12297_v1  ;;  %v5597_v18 = vmul.f32 %v12158_v53, %v12297_v1 }
 0x28b   :  { %13805 = vst [vmem:[#allocation5_spill] sm:$0xff] %v12287_v44  ;;  %v4825_v19 = vadd.f32 %v4809_v27, %v4788_v28  ;;  %v3426_v8 = vmax.f32 %v3410_v51, 0.0  ;;  %v3337_v58 = vadd.f32 %v11972_v9, %v3314_v35  ;;  %v3777_v4 = vadd.f32 %v12074_v14, %v3754_v45  ;;  %v13811_v51 = vld [vmem:[#allocation70_spill] sm:$0xff] }
 0x28c   :  { %13806 = vst [vmem:[#allocation25_spill] sm:$0xff] %v12289_v5  ;;  %v12306_v55 = vadd.f32 %v5286_v60, %v12187_v17  ;;  %v12308_v0 = vadd.f32 %v5597_v18, %v5576_v11  ;;  %v4088_v56 = vadd.f32 %v12123_v37, %v4065_v23  ;;  %v3755_v27 = vmul.f32 %v12031_v10, %v12251_v39  ;;  %v13812_v45 = vld [vmem:[#allocation46_spill] sm:$0xff] }
 0x28d   :  { %v4862_v2 = vadd.f32 %v4846_v59, %v4825_v19  ;;  %6904 = vmatmul.mubr.f32.gmra.mrb[28].mxu0 %v3426_v8  ;;  %v4066_v17 = vmul.f32 %v12080_v32, %v12251_v39  ;;  %v4475_v35 = vmul.f32 %v12024_v48, %v13811_v51  ;;  %v3024_v23 = vmul.f32 %v12024_v48, %v13812_v45  ;;  %v13813_v59 = vld [vmem:[#allocation102_spill] sm:$0xff]  ;;  %v12335_v19 = vpop.permute.xlu0 %3220 }
 0x28e   :  { %13808 = vst [vmem:[#allocation16_spill] sm:$0xff] %v12306_v55  ;;  %13809 = vst [vmem:[#allocation34_spill] sm:$0xff] %v12308_v0  ;;  %v12317_v31 = vpop.permute.xlu1 %3119  ;;  %v4767_v60 = vmul.f32 %v11932_v49, %v13813_v59  ;;  %v5207_v18 = vmul.f32 %v12031_v10, %v13813_v59  ;;  %v5518_v8 = vmul.f32 %v12080_v32, %v13813_v59 }
 0x28f   :  { %v4878_v46 = vmax.f32 %v4862_v2, 0.0  ;;  %v3358_v11 = vmul.f32 %v12179_v29, %v12317_v31  ;;  %v3798_v41 = vmul.f32 %v12100_v6, %v12317_v31  ;;  %v4109_v28 = vmul.f32 %v12142_v36, %v12317_v31 }
 0x290   :  { %v3023_v40 = vmul.f32 %v12024_v48, %v13814_v38  ;;  %v3395_v13 = vmul.f32 %v12002_v63, %v12335_v19  ;;  %v3835_v12 = vmul.f32 %v12047_v47, %v12335_v19  ;;  %v4146_v20 = vmul.f32 %v12158_v53, %v12335_v19 }
 0x291   :  { %7128 = vmatmul.mubr.f32.gmra.mrb[28].mxu1 %v4878_v46  ;;  %v3374_v2 = vadd.f32 %v3358_v11, %v3337_v58  ;;  %v3814_v5 = vadd.f32 %v3798_v41, %v3777_v4  ;;  %v4125_v0 = vadd.f32 %v4109_v28, %v4088_v56  ;;  %v3778_v46 = vadd.f32 %v12074_v14, %v3755_v27  ;;  %v12366_v52 = vpop.permute.xlu0 %4676 }
 0x292   :  { %v12347_v34 = vpop.permute.xlu1 %3123  ;;  %v4089_v32 = vadd.f32 %v12123_v37, %v4066_v17  ;;  %v4766_v56 = vmul.f32 %v11932_v49, %v12227_v16  ;;  %v3045_v43 = vadd.f32 %v12066_v54, %v3022_v57  ;;  %v4498_v27 = vadd.f32 %v12066_v54, %v4475_v35  ;;  %13817 = vst [vmem:[#allocation112_spill] sm:$0xff] %v12366_v52  ;;  %v13818_v35 = vld [vmem:[#allocation71_spill] sm:$0xff] }
 0x293   :  { %v3799_v58 = vmul.f32 %v12100_v6, %v12347_v34  ;;  %v4110_v4 = vmul.f32 %v12142_v36, %v12347_v34  ;;  %v3411_v11 = vadd.f32 %v3395_v13, %v3374_v2  ;;  %v12357_v41 = vadd.f32 %v3835_v12, %v3814_v5 }
 0x294   :  { %v12359_v28 = vadd.f32 %v4146_v20, %v4125_v0  ;;  %v3047_v26 = vadd.f32 %v12066_v54, %v3024_v23  ;;  %v4790_v44 = vadd.f32 %v11972_v9, %v4767_v60  ;;  %v5230_v55 = vadd.f32 %v12074_v14, %v5207_v18  ;;  %v13819_v60 = vld [vmem:[#allocation55_spill] sm:$0xff] }
 0x295   :  { %13815 = vst [vmem:[#allocation64_spill] sm:$0xff] %v12357_v41  ;;  %v3815_v61 = vadd.f32 %v3799_v58, %v3778_v46  ;;  %v4126_v17 = vadd.f32 %v4110_v4, %v4089_v32  ;;  %v3427_v12 = vmax.f32 %v3411_v11, 0.0  ;;  %v5541_v20 = vadd.f32 %v12123_v37, %v5518_v8  ;;  %v13821_v41 = vld [vmem:[#allocation72_spill] sm:$0xff] }
 0x296   :  { %13816 = vst [vmem:[#allocation39_spill] sm:$0xff] %v12359_v28  ;;  %v12368_v15 = vpop.permute.xlu1 %4575  ;;  %v3046_v57 = vadd.f32 %v12066_v54, %v3023_v40  ;;  %v3131_v23 = vmul.f32 %v12093_v21, %v13818_v35  ;;  %v4583_v18 = vmul.f32 %v12093_v21, %v13819_v60  ;;  %v4789_v2 = vadd.f32 %v11972_v9, %v4766_v56  ;;  %v13820_v40 = vld [vmem:[#allocation109_spill] sm:$0xff] }
 0x297   :  { %v4811_v13 = vmul.f32 %v12179_v29, %v12368_v15  ;;  %v5251_v5 = vmul.f32 %v12100_v6, %v12368_v15  ;;  %v5562_v0 = vmul.f32 %v12142_v36, %v12368_v15  ;;  %6906 = vmatprep.mubr.f32.mxu0 %v3427_v12  ;;  %v5288_v8 = vmul.f32 %v12047_v47, %v12366_v52 }
 0x298   :  { %v5599_v46 = vmul.f32 %v12158_v53, %v12366_v52  ;;  %v4810_v36 = vmul.f32 %v12179_v29, %v13799_v24  ;;  %v4684_v4 = vmul.f32 %v11995_v62, %v13820_v40  ;;  %v3315_v11 = vmul.f32 %v11932_v49, %v12251_v39  ;;  %v13824_v40 = vld [vmem:[#allocation37_spill] sm:$0xff] }
 0x299   :  { %v5267_v32 = vadd.f32 %v5251_v5, %v5230_v55  ;;  %v5578_v58 = vadd.f32 %v5562_v0, %v5541_v20  ;;  %v4827_v28 = vadd.f32 %v4811_v13, %v4790_v44  ;;  %v4848_v56 = vmul.f32 %v12002_v63, %v12366_v52 }
 0x29a   :  { %v3130_v37 = vmul.f32 %v12093_v21, %v13821_v41  ;;  %v3359_v5 = vmul.f32 %v12179_v29, %v12347_v34  ;;  %v4826_v44 = vadd.f32 %v4810_v36, %v4789_v2  ;;  %v3147_v13 = vadd.f32 %v3131_v23, %v3046_v57  ;;  %v13825_v41 = vld [vmem:[#allocation90_spill] sm:$0xff]  ;;  %v13828_v57 = vld [vmem:[#allocation61_spill] sm:$0xff] }
 0x29b   :  { %v12395_v12 = vpop.permute.xlu1 %4672  ;;  %v12399_v55 = vadd.f32 %v5288_v8, %v5267_v32  ;;  %v12401_v20 = vadd.f32 %v5599_v46, %v5578_v58  ;;  %v4599_v42 = vadd.f32 %v4583_v18, %v4498_v27  ;;  %v3025_v52 = vmul.f32 %v12024_v48, %v13824_v40 }
 0x29c   :  { %v4847_v0 = vmul.f32 %v12002_v63, %v12395_v12  ;;  %v5598_v49 = vmul.f32 %v12158_v53, %v12395_v12  ;;  %v3231_v8 = vmul.f32 %v11995_v62, %v13825_v41  ;;  %v3338_v46 = vadd.f32 %v11972_v9, %v3315_v11 }
 0x29d   :  { %13822 = vst [vmem:[#allocation40_spill] sm:$0xff] %v12399_v55  ;;  %13823 = vst [vmem:[#allocation91_spill] sm:$0xff] %v12401_v20  ;;  %v4864_v58 = vadd.f32 %v4848_v56, %v4827_v28  ;;  %v13827_v20 = vld [vmem:[#allocation4_spill] sm:$0xff]  ;;  %v4700_v25 = vadd.f32 %v4684_v4, %v4599_v42  ;;  %v3146_v27 = vadd.f32 %v3130_v37, %v3045_v43  ;;  %v13829_v56 = vld [vmem:[#allocation67_spill] sm:$0xff] }
 0x29e   :  { %v4863_v32 = vadd.f32 %v4847_v0, %v4826_v44  ;;  %v12415_v29 = vadd.f32 %v5598_v49, %v12273_v22  ;;  %v3232_v55 = vmul.f32 %v11995_v62, %v13827_v20  ;;  %v3132_v23 = vmul.f32 %v12093_v21, %v13828_v57  ;;  %v13830_v4 = vld [vmem:[#allocation49_spill] sm:$0xff]  ;;  %v13831_v44 = vld [vmem:[#allocation111_spill] sm:$0xff] }
 0x29f   :  { %v12419_v2 = vpop.permute.xlu1 %3224  ;;  %v3375_v28 = vadd.f32 %v3359_v5, %v3338_v46  ;;  %v3247_v11 = vadd.f32 %v3231_v8, %v3146_v27  ;;  %v3233_v42 = vmul.f32 %v11995_v62, %v13829_v56  ;;  %v3133_v37 = vmul.f32 %v12093_v21, %v13830_v4  ;;  %v5324_v5 = vld [vmem:[%s12886_s3 + $0x118] sm:$0xff]  ;;  %v13832_v46 = vld [vmem:[#allocation7_spill] sm:$0xff] }
 0x2a0   :  { %13826 = vst [vmem:[#allocation11_spill] sm:$0xff] %v12415_v29  ;;  %v3396_v18 = vmul.f32 %v12002_v63, %v12419_v2  ;;  %v3836_v9 = vmul.f32 %v12047_v47, %v12419_v2  ;;  %v4147_v22 = vmul.f32 %v12158_v53, %v12419_v2  ;;  %v4879_v36 = vmax.f32 %v4863_v32, 0.0  ;;  %v5323_v53 = vld [vmem:[%s12886_s3 + $0x110] sm:$0xff] }
 0x2a1   :  { %v4880_v43 = vmax.f32 %v4864_v58, 0.0  ;;  %v4715_v29 = vmax.f32 %v13831_v44, 0.0  ;;  %v3148_v20 = vadd.f32 %v3132_v23, %v3047_v26  ;;  %v3248_v8 = vadd.f32 %v3232_v55, %v3147_v13  ;;  %v13836_v44 = vld [vmem:[#allocation89_spill] sm:$0xff] }
 0x2a2   :  { %v3412_v0 = vadd.f32 %v3396_v18, %v3375_v28  ;;  %v12433_v49 = vadd.f32 %v3836_v9, %v3815_v61  ;;  %v12435_v63 = vadd.f32 %v4147_v22, %v4126_v17  ;;  %7130 = vmatprep.mubr.f32.mxu1 %v4879_v36  ;;  %v3234_v32 = vmul.f32 %v11995_v62, %v13832_v46  ;;  %v13833_v9 = vld [vmem:[#allocation80_spill] sm:$0xff]  ;;  %v13834_v36 = vld [vmem:[#allocation9_spill] sm:$0xff] }
 0x2a3   :  { %7131 = vmatmul.mubr.f32.gmra.mrb[30].mxu1 %v4880_v43  ;;  %v3048_v58 = vadd.f32 %v12066_v54, %v3025_v52  ;;  %v3263_v27 = vmax.f32 %v3247_v11, 0.0  ;;  %v3249_v23 = vadd.f32 %v3233_v42, %v3148_v20  ;;  %v4716_v18 = vmax.f32 %v4700_v25, 0.0  ;;  %v5325_v52 = vld [vmem:[%s12886_s3 + $0x120] sm:$0xff] }
 0x2a4   :  { %v3428_v17 = vmax.f32 %v3412_v0, 0.0  ;;  %7165 = vmatprep.mubr.f32.mxu1 %v4715_v29  ;;  %v7753_v55 = vpack.c.bf16 %v5324_v5, %v5323_v53  ;;  %v4717_v22 = vmax.f32 %v13833_v9, 0.0  ;;  %v5326_v29 = vld [vmem:[%s12886_s3 + $0x128] sm:$0xff]  ;;  %v3264_v20 = vmax.f32 %v3248_v8, 0.0  ;;  %v5327_v5 = vld [vmem:[%s12886_s3 + $0x130] sm:$0xff]  ;;  %v5328_v8 = vld [vmem:[%s12886_s3 + $0x138] sm:$0xff] }
 0x2a5   :  { %v6831_v61 = vpop.f32.mrb[0].mxu1  ;;  %v3149_v13 = vadd.f32 %v3133_v37, %v3048_v58  ;;  %v3265_v11 = vmax.f32 %v3249_v23, 0.0  ;;  %v13835_v37 = vld [vmem:[#allocation99_spill] sm:$0xff]  ;;  %v7757_v0 = vpack.c.bf16 %v5326_v29, %v5325_v52  ;;  %v4719_v53 = vmax.f32 %v13836_v44, 0.0  ;;  %v13839_v52 = vld [vmem:[#allocation97_spill] sm:$0xff] }
 0x2a6   :  { %2906 = vst [vmem:[%s12889_s4 + $0x88] sm:$0xff] %v6831_v61  ;;  %v2810_v26 = vpop.f32.mrb[1].mxu1  ;;  %6907 = vmatmul.mubr.f32.gmra.mrb[30].mxu0 %v3428_v17  ;;  %v4718_v43 = vmax.f32 %v13835_v37, 0.0  ;;  %v13837_v17 = vld [vmem:[#allocation69_spill] sm:$0xff]  ;;  %v5193_v9 = vmul.f32 %v12031_v10, %v13811_v51  ;;  %v4721_v29 = vmax.f32 %v13839_v52, 0.0  ;;  %v4488_v37 = vmul.f32 %v12024_v48, %v12227_v16 }
 0x2a7   :  { %2905 = vst [vmem:[%s12889_s4 + $0x80] sm:$0xff] %v2810_v26  ;;  %6941 = vmatprep.mubr.f32.mxu0 %v3263_v27  ;;  %7166 = vmatmul.mubr.f32.vlgmr.msra.gmra.mrb[16].mxu1 %v4716_v18  ;;  %v3250_v25 = vadd.f32 %v3234_v32, %v3149_v13  ;;  %v3267_v58 = vmax.f32 %v13837_v17, 0.0  ;;  %v13838_v27 = vld [vmem:[#allocation73_spill] sm:$0xff]  ;;  %v7761_v18 = vpack.c.bf16 %v5328_v8, %v5327_v5  ;;  %v13843_v17 = vld [vmem:[#allocation94_spill] sm:$0xff] }
 0x2a8   :  { %7168 = vmatprep.mubr.f32.mxu1 %v4717_v22  ;;  %7752 = vmatpush3.bf16.msra.mxu1 %v13834_v36  ;;  %v4720_v23 = vmax.f32 %v13838_v27, 0.0  ;;  %v3740_v13 = vmul.f32 %v12031_v10, %v13810_v33  ;;  %v3742_v22 = vmul.f32 %v12031_v10, %v13812_v45  ;;  %v5332_v27 = vld [vmem:[%s12886_s3 + $0x158] sm:$0xff]  ;;  %v12540_v52 = vmul.f32 %v12100_v6, %v13818_v35 }
 0x2a9   :  { %v6834_v28 = vpop.f32.mrb[2].mxu1  ;;  %7754 = vmatprep.subr.bf16.mxu1 %v7753_v55  ;;  %v3266_v32 = vmax.f32 %v3250_v25, 0.0  ;;  %v5330_v25 = vld [vmem:[%s12886_s3 + $0x148] sm:$0xff] }
 0x2aa   :  { %2908 = vst [vmem:[%s12889_s4 + $0x98] sm:$0xff] %v6834_v28  ;;  %v2820_v42 = vpop.f32.mrb[3].mxu1  ;;  %6942 = vmatmul.mubr.f32.vlgmr.msra.gmra.mrb[16].mxu0 %v3264_v20  ;;  %v5329_v20 = vld [vmem:[%s12886_s3 + $0x140] sm:$0xff]  ;;  %v3036_v28 = vmul.f32 %v12024_v48, %v13807_v7  ;;  %v13842_v7 = vld [vmem:[#allocation93_spill] sm:$0xff]  ;;  %v12511_v8 = vadd.f32 %v12074_v14, %v3740_v13 }
 0x2ab   :  { %2907 = vst [vmem:[%s12889_s4 + $0x90] sm:$0xff] %v2820_v42  ;;  %7624 = vmatpush3.bf16.msra.mxu0 %v13834_v36  ;;  %6944 = vmatprep.mubr.f32.mxu0 %v3265_v11  ;;  %v4489_v36 = vmul.f32 %v12024_v48, %v13813_v59  ;;  %v13840_v11 = vld [vmem:[#allocation29_spill] sm:$0xff]  ;;  %v4722_v5 = vmax.f32 %v13842_v7, 0.0  ;;  %v12508_v59 = vpack.c.bf16 %v5330_v25, %v5329_v20  ;;  %v13845_v25 = vld [vmem:[#allocation52_spill] sm:$0xff] }
 0x2ac   :  { %7169 = vmatmul.mubr.f32.gmra.mrb[18].mxu1 %v4718_v43  ;;  %7626 = vmatprep.subr.bf16.mxu0 %v7753_v55  ;;  %v3268_v42 = vmax.f32 %v13840_v11, 0.0  ;;  %v13841_v43 = vld [vmem:[#allocation10_spill] sm:$0xff]  ;;  %v3144_v20 = vmul.f32 %v12093_v21, %v12317_v31 }
 0x2ad   :  { %v6837_v61 = vpop.f32.mrb[4].mxu1  ;;  %7171 = vmatprep.mubr.f32.mxu1 %v4719_v53  ;;  %7756 = vmatpush3.bf16.msra.mxu1 %v7753_v55  ;;  %v3269_v44 = vmax.f32 %v13841_v43, 0.0  ;;  %v4512_v13 = vadd.f32 %v12066_v54, %v4489_v36  ;;  %v4696_v36 = vmul.f32 %v11995_v62, %v12297_v1  ;;  %v5333_v31 = vld [vmem:[%s12886_s3 + $0x160] sm:$0xff]  ;;  %v4596_v1 = vmul.f32 %v12093_v21, %v13799_v24 }
 0x2ae   :  { %2910 = vst [vmem:[%s12889_s4 + $0xa8] sm:$0xff] %v6837_v61  ;;  %v2830_v26 = vpop.f32.mrb[5].mxu1  ;;  %6945 = vmatmul.mubr.f32.gmra.mrb[18].mxu0 %v3266_v32  ;;  %7758 = vmatprep.subr.bf16.mxu1 %v7757_v0  ;;  %v12514_v32 = vadd.f32 %v12074_v14, %v5193_v9  ;;  %v12517_v61 = vadd.f32 %v12074_v14, %v3742_v22 }
 0x2af   :  { %2909 = vst [vmem:[%s12889_s4 + $0xa0] sm:$0xff] %v2830_v26  ;;  %7628 = vmatpush3.bf16.msra.mxu0 %v7753_v55  ;;  %6947 = vmatprep.mubr.f32.mxu0 %v3267_v58  ;;  %v3741_v55 = vmul.f32 %v12031_v10, %v13814_v38  ;;  %v4723_v58 = vmax.f32 %v13843_v17, 0.0  ;;  %v5331_v26 = vld [vmem:[%s12886_s3 + $0x150] sm:$0xff]  ;;  %v3245_v17 = vmul.f32 %v11995_v62, %v12335_v19  ;;  %v3273_v19 = vmax.f32 %v11880_v3, 0.0 }
 0x2b0   :  { %7172 = vmatmul.mubr.f32.gmra.mrb[20].mxu1 %v4720_v23  ;;  %7630 = vmatprep.subr.bf16.mxu0 %v7757_v0  ;;  %v3059_v23 = vadd.f32 %v12066_v54, %v3036_v28  ;;  %v3271_v28 = vmax.f32 %v13845_v25, 0.0  ;;  %v3037_v24 = vmul.f32 %v12024_v48, %v12251_v39  ;;  %v13849_v25 = vld [vmem:[#allocation105_spill] sm:$0xff] }
 0x2b1   :  { %7174 = vmatprep.mubr.f32.mxu1 %v4721_v29  ;;  %7760 = vmatpush3.bf16.msra.mxu1 %v7757_v0  ;;  %v6840_v53 = vpop.f32.mrb[6].mxu1  ;;  %v12532_v9 = vadd.f32 %v12074_v14, %v3741_v55  ;;  %v4511_v29 = vadd.f32 %v12066_v54, %v4488_v37  ;;  %v4597_v55 = vmul.f32 %v12093_v21, %v12368_v15 }
 0x2b2   :  { %6948 = vmatmul.mubr.f32.gmra.mrb[20].mxu0 %v3268_v42  ;;  %7762 = vmatprep.subr.bf16.mxu1 %v7761_v18  ;;  %2912 = vst [vmem:[%s12889_s4 + $0xb8] sm:$0xff] %v6840_v53  ;;  %v2840_v16 = vpop.f32.mrb[7].mxu1  ;;  %v13846_v42 = vld [vmem:[#allocation107_spill] sm:$0xff]  ;;  %v12552_v37 = vpack.c.bf16 %v5332_v27, %v5331_v26  ;;  %v5237_v15 = vmul.f32 %v12100_v6, %v13819_v60 }
 0x2b3   :  { %7632 = vmatpush3.bf16.msra.mxu0 %v7757_v0  ;;  %6950 = vmatprep.mubr.f32.mxu0 %v3269_v44  ;;  %2911 = vst [vmem:[%s12889_s4 + $0xb0] sm:$0xff] %v2840_v16  ;;  %v13844_v0 = vld [vmem:[#allocation57_spill] sm:$0xff]  ;;  %v4724_v43 = vmax.f32 %v13846_v42, 0.0  ;;  %v5334_v44 = vld [vmem:[%s12886_s3 + $0x168] sm:$0xff]  ;;  %v4697_v53 = vmul.f32 %v11995_v62, %v12395_v12  ;;  %v4612_v48 = vadd.f32 %v4596_v1, %v4511_v29  ;;  %v13850_v42 = vld [vmem:[#allocation112_spill] sm:$0xff] }
 0x2b4   :  { %7175 = vmatmul.mubr.f32.gmra.mrb[22].mxu1 %v4722_v5  ;;  %7634 = vmatprep.subr.bf16.mxu0 %v7761_v18  ;;  %v3270_v22 = vmax.f32 %v13844_v0, 0.0  ;;  %v13847_v5 = vld [vmem:[#allocation32_spill] sm:$0xff]  ;;  %v12583_v27 = vpack.c.bf16 %v5334_v44, %v5333_v31  ;;  %v3160_v39 = vadd.f32 %v3144_v20, %v3059_v23  ;;  %v13854_v44 = vld [vmem:[#allocation77_spill] sm:$0xff] }
 0x2b5   :  { %7177 = vmatprep.mubr.f32.mxu1 %v4723_v58  ;;  %7764 = vmatpush3.bf16.msra.mxu1 %v7761_v18  ;;  %v6843_v11 = vpop.f32.mrb[8].mxu1  ;;  %v4725_v16 = vmax.f32 %v13847_v5, 0.0  ;;  %v3244_v58 = vmul.f32 %v11995_v62, %v12275_v30  ;;  %v3145_v30 = vmul.f32 %v12093_v21, %v12347_v34  ;;  %v13851_v21 = vld [vmem:[#allocation17_spill] sm:$0xff]  ;;  %v4713_v23 = vadd.f32 %v4697_v53, %v4612_v48  ;;  %v13852_v29 = vld [vmem:[#allocation72_spill] sm:$0xff] }
 0x2b6   :  { %6951 = vmatmul.mubr.f32.gmra.mrb[22].mxu0 %v3270_v22  ;;  %7766 = vmatprep.subr.bf16.mxu1 %v12508_v59  ;;  %2914 = vst [vmem:[%s12889_s4 + $0xc8] sm:$0xff] %v6843_v11  ;;  %v2850_v7 = vpop.f32.mrb[9].mxu1  ;;  %v4726_v22 = vmax.f32 %v12055_v50, 0.0  ;;  %v4613_v11 = vadd.f32 %v4597_v55, %v4512_v13  ;;  %v4727_v34 = vmax.f32 %v13851_v21, 0.0  ;;  %v5335_v50 = vld [vmem:[%s12886_s3 + $0x170] sm:$0xff]  ;;  %v5336_v13 = vld [vmem:[%s12886_s3 + $0x178] sm:$0xff]  ;;  %v3784_v20 = vmul.f32 %v12100_v6, %v13852_v29 }
 0x2b7   :  { %7636 = vmatpush3.bf16.msra.mxu0 %v7761_v18  ;;  %6953 = vmatprep.mubr.f32.mxu0 %v3271_v28  ;;  %2913 = vst [vmem:[%s12889_s4 + $0xc0] sm:$0xff] %v2850_v7  ;;  %v13848_v18 = vld [vmem:[#allocation100_spill] sm:$0xff]  ;;  %v4712_v28 = vadd.f32 %v4696_v36, %v13849_v25  ;;  %v3060_v36 = vadd.f32 %v12066_v54, %v3037_v24  ;;  %v13853_v55 = vld [vmem:[#allocation15_spill] sm:$0xff]  ;;  %v13855_v53 = vld [vmem:[#allocation109_spill] sm:$0xff] }
 0x2b8   :  { %7178 = vmatmul.mubr.f32.gmra.mrb[24].mxu1 %v4724_v43  ;;  %7638 = vmatprep.subr.bf16.mxu0 %v12508_v59  ;;  %v3272_v26 = vmax.f32 %v13848_v18, 0.0  ;;  %v4698_v43 = vmul.f32 %v11995_v62, %v13850_v42  ;;  %v3274_v31 = vmax.f32 %v13853_v55, 0.0  ;;  %v3260_v1 = vadd.f32 %v3244_v58, %v13854_v44  ;;  %v13856_v54 = vld [vmem:[#allocation21_spill] sm:$0xff] }
 0x2b9   :  { %7180 = vmatprep.mubr.f32.mxu1 %v4725_v16  ;;  %7768 = vmatpush3.bf16.msra.mxu1 %v12508_v59  ;;  %v6846_v0 = vpop.f32.mrb[10].mxu1  ;;  %v5274_v7 = vmul.f32 %v12047_v47, %v13855_v53  ;;  %v3275_v5 = vmax.f32 %v13856_v54, 0.0  ;;  %v4728_v24 = vmax.f32 %v4712_v28, 0.0  ;;  %v3161_v58 = vadd.f32 %v3145_v30, %v3060_v36  ;;  %v5633_v30 = vld [vmem:[%s12886_s3 + $0x188] sm:$0xff] }
 0x2ba   :  { %6954 = vmatmul.mubr.f32.gmra.mrb[24].mxu0 %v3272_v26  ;;  %7770 = vmatprep.subr.bf16.mxu1 %v12552_v37  ;;  %2916 = vst [vmem:[%s12889_s4 + $0xd8] sm:$0xff] %v6846_v0  ;;  %v2860_v3 = vpop.f32.mrb[11].mxu1  ;;  %v4714_v18 = vadd.f32 %v4698_v43, %v4613_v11  ;;  %v7777_v26 = vpack.c.bf16 %v5336_v13, %v5335_v50  ;;  %v5632_v0 = vld [vmem:[%s12886_s3 + $0x180] sm:$0xff] }
 0x2bb   :  { %7640 = vmatpush3.bf16.msra.mxu0 %v12508_v59  ;;  %6956 = vmatprep.mubr.f32.mxu0 %v3273_v19  ;;  %v3246_v59 = vmul.f32 %v11995_v62, %v12419_v2  ;;  %2915 = vst [vmem:[%s12889_s4 + $0xd0] sm:$0xff] %v2860_v3  ;;  %v3261_v62 = vadd.f32 %v3245_v17, %v3160_v39  ;;  %v4729_v17 = vmax.f32 %v4713_v23, 0.0 }
 0x2bc   :  { %7181 = vmatmul.mubr.f32.gmra.mrb[26].mxu1 %v4726_v22  ;;  %7642 = vmatprep.subr.bf16.mxu0 %v12552_v37  ;;  %v3821_v2 = vmul.f32 %v12047_v47, %v13825_v41  ;;  %v5253_v19 = vadd.f32 %v5237_v15, %v12514_v32  ;;  %v3800_v39 = vadd.f32 %v3784_v20, %v12511_v8  ;;  %v13857_v22 = vld [vmem:[#allocation4_spill] sm:$0xff]  ;;  %v3276_v8 = vmax.f32 %v3260_v1, 0.0 }
 0x2bd   :  { %7183 = vmatprep.mubr.f32.mxu1 %v4727_v34  ;;  %7772 = vmatpush3.bf16.msra.mxu1 %v12552_v37  ;;  %v6849_v16 = vpop.f32.mrb[12].mxu1  ;;  %v3786_v32 = vmul.f32 %v12100_v6, %v13828_v57  ;;  %v3743_v15 = vmul.f32 %v12031_v10, %v13824_v40  ;;  %v3262_v25 = vadd.f32 %v3246_v59, %v3161_v58  ;;  %v3277_v11 = vmax.f32 %v3261_v62, 0.0  ;;  %v5634_v20 = vld [vmem:[%s12886_s3 + $0x190] sm:$0xff] }
 0x2be   :  { %6957 = vmatmul.mubr.f32.gmra.mrb[26].mxu0 %v3274_v31  ;;  %7774 = vmatprep.subr.bf16.mxu1 %v12583_v27  ;;  %2918 = vst [vmem:[%s12889_s4 + $0xe8] sm:$0xff] %v6849_v16  ;;  %v2870_v48 = vpop.f32.mrb[13].mxu1  ;;  %v3801_v28 = vadd.f32 %v12540_v52, %v12532_v9  ;;  %v3837_v10 = vadd.f32 %v3821_v2, %v3800_v39  ;;  %v4730_v21 = vmax.f32 %v4714_v18, 0.0  ;;  %v13858_v52 = vld [vmem:[#allocation56_spill] sm:$0xff] }
 0x2bf   :  { %7644 = vmatpush3.bf16.msra.mxu0 %v12552_v37  ;;  %6959 = vmatprep.mubr.f32.mxu0 %v3275_v5  ;;  %v3822_v37 = vmul.f32 %v12047_v47, %v13857_v22  ;;  %2917 = vst [vmem:[%s12889_s4 + $0xe0] sm:$0xff] %v2870_v48  ;;  %v3823_v42 = vmul.f32 %v12047_v47, %v13829_v56  ;;  %v5305_v50 = vmax.f32 %v13858_v52, 0.0  ;;  %v5636_v5 = vld [vmem:[%s12886_s3 + $0x1a0] sm:$0xff]  ;;  %v13861_v58 = vld [vmem:[#allocation44_spill] sm:$0xff] }
 0x2c0   :  { %7184 = vmatmul.mubr.f32.gmra.mrb[28].mxu1 %v4728_v24  ;;  %7646 = vmatprep.subr.bf16.mxu0 %v12583_v27  ;;  %v5290_v43 = vadd.f32 %v5274_v7, %v5253_v19  ;;  %v7781_v34 = vpack.c.bf16 %v5633_v30, %v5632_v0  ;;  %v3787_v23 = vmul.f32 %v12100_v6, %v13830_v4  ;;  %v5635_v6 = vld [vmem:[%s12886_s3 + $0x198] sm:$0xff]  ;;  %v3853_v55 = vmax.f32 %v3837_v10, 0.0  ;;  %v13860_v24 = vld [vmem:[#allocation110_spill] sm:$0xff]  ;;  %v5638_v48 = vld [vmem:[%s12886_s3 + $0x1b0] sm:$0xff] }
 0x2c1   :  { %7186 = vmatprep.mubr.f32.mxu1 %v4729_v17  ;;  %7776 = vmatpush3.bf16.msra.mxu1 %v12583_v27  ;;  %v6852_v3 = vpop.f32.mrb[14].mxu1  ;;  %v3802_v13 = vadd.f32 %v3786_v32, %v12517_v61  ;;  %v3838_v36 = vadd.f32 %v3822_v37, %v3801_v28  ;;  %v3824_v59 = vmul.f32 %v12047_v47, %v13832_v46  ;;  %v13859_v47 = vld [vmem:[#allocation26_spill] sm:$0xff]  ;;  %v5308_v18 = vmax.f32 %v13860_v24, 0.0  ;;  %v5639_v17 = vld [vmem:[%s12886_s3 + $0x1b8] sm:$0xff]  ;;  %v13862_v0 = vld [vmem:[#allocation27_spill] sm:$0xff] }
 0x2c2   :  { %6960 = vmatmul.mubr.f32.gmra.mrb[28].mxu0 %v3276_v8  ;;  %7778 = vmatprep.subr.bf16.mxu1 %v7777_v26  ;;  %2920 = vst [vmem:[%s12889_s4 + $0xf8] sm:$0xff] %v6852_v3  ;;  %v2880_v9 = vpop.f32.mrb[15].mxu1  ;;  %v3766_v61 = vadd.f32 %v12074_v14, %v3743_v15  ;;  %v5306_v44 = vmax.f32 %v5290_v43, 0.0  ;;  %v7785_v1 = vpack.c.bf16 %v5635_v6, %v5634_v20  ;;  %v5307_v54 = vmax.f32 %v13859_v47, 0.0  ;;  %v5637_v14 = vld [vmem:[%s12886_s3 + $0x1a8] sm:$0xff]  ;;  %v13863_v32 = vld [vmem:[#allocation85_spill] sm:$0xff] }
 0x2c3   :  { %7648 = vmatpush3.bf16.msra.mxu0 %v12583_v27  ;;  %6962 = vmatprep.mubr.f32.mxu0 %v3277_v11  ;;  %2919 = vst [vmem:[%s12889_s4 + $0xf0] sm:$0xff] %v2880_v9  ;;  %v3278_v27 = vmax.f32 %v3262_v25, 0.0  ;;  %v3839_v31 = vadd.f32 %v3823_v42, %v3802_v13  ;;  %v3854_v62 = vmax.f32 %v3838_v36, 0.0  ;;  %v5309_v19 = vmax.f32 %v13861_v58, 0.0  ;;  %v13864_v8 = vld [vmem:[#allocation31_spill] sm:$0xff]  ;;  %v5640_v28 = vld [vmem:[%s12886_s3 + $0x1c0] sm:$0xff] }
 0x2c4   :  { %7187 = vmatmul.mubr.f32.gmra.mrb[30].mxu1 %v4730_v21  ;;  %7650 = vmatprep.subr.bf16.mxu0 %v7777_v26  ;;  %v3803_v7 = vadd.f32 %v3787_v23, %v3766_v61  ;;  %v3857_v30 = vmax.f32 %v13862_v0, 0.0  ;;  %v5310_v15 = vmax.f32 %v13863_v32, 0.0  ;;  %v7793_v37 = vpack.c.bf16 %v5639_v17, %v5638_v48  ;;  %v5641_v11 = vld [vmem:[%s12886_s3 + $0x1c8] sm:$0xff]  ;;  %v13865_v10 = vld [vmem:[#allocation18_spill] sm:$0xff]  ;;  %v13866_v43 = vld [vmem:[#allocation92_spill] sm:$0xff] }
 0x2c5   :  { %7780 = vmatpush3.bf16.msra.mxu1 %v7777_v26  ;;  %7221 = vmatprep.mubr.f32.mxu1 %v5305_v50  ;;  %v3855_v16 = vmax.f32 %v3839_v31, 0.0  ;;  %v5311_v25 = vmax.f32 %v13864_v8, 0.0  ;;  %v3858_v42 = vmax.f32 %v13865_v10, 0.0  ;;  %v3859_v3 = vmax.f32 %v13866_v43, 0.0  ;;  %v13867_v21 = vld [vmem:[#allocation22_spill] sm:$0xff]  ;;  %v5642_v50 = vld [vmem:[%s12886_s3 + $0x1d0] sm:$0xff] }
 0x2c6   :  { %6963 = vmatmul.mubr.f32.gmra.mrb[30].mxu0 %v3278_v27  ;;  %7782 = vmatprep.subr.bf16.mxu1 %v7781_v34  ;;  %v3840_v2 = vadd.f32 %v3824_v59, %v3803_v7  ;;  %v7797_v23 = vpack.c.bf16 %v5641_v11, %v5640_v28  ;;  %v13868_v9 = vld [vmem:[#allocation6_spill] sm:$0xff]  ;;  %v5643_v13 = vld [vmem:[%s12886_s3 + $0x1d8] sm:$0xff]  ;;  %v8134_v27 = vld [vmem:[%s12887_s1 + $0xc] ss:$0 sm:$0xff] }
 0x2c7   :  { %7652 = vmatpush3.bf16.msra.mxu0 %v7777_v26  ;;  %6997 = vmatprep.mubr.f32.mxu0 %v3853_v55  ;;  %v7789_v26 = vpack.c.bf16 %v5637_v14, %v5636_v5  ;;  %v5313_v52 = vmax.f32 %v13868_v9, 0.0  ;;  %v13869_v20 = vld [vmem:[#allocation98_spill] sm:$0xff]  ;;  %v13870_v36 = vld [vmem:[#allocation13_spill] sm:$0xff]  ;;  %v4051_v61 = vmul.f32 %v8134_v27, %v13810_v33  ;;  %v5645_v33 = vld [vmem:[%s12886_s3 + $0x1e8] sm:$0xff]  ;;  %v5504_v14 = vmul.f32 %v8134_v27, %v13811_v51 }
 0x2c8   :  { %7222 = vmatmul.mubr.f32.vlgmr.msra.gmra.mrb[16].mxu1 %v5306_v44  ;;  %7654 = vmatprep.subr.bf16.mxu0 %v7781_v34  ;;  %v3856_v39 = vmax.f32 %v3840_v2, 0.0  ;;  %v3860_v6 = vmax.f32 %v13869_v20, 0.0  ;;  %v3861_v59 = vmax.f32 %v13870_v36, 0.0  ;;  %v13871_v55 = vld [vmem:[#allocation58_spill] sm:$0xff]  ;;  %v7801_v44 = vpack.c.bf16 %v5643_v13, %v5642_v50  ;;  %v13872_v47 = vld [vmem:[#allocation65_spill] sm:$0xff]  ;;  %v13876_v58 = vld [vmem:[#allocation79_spill] sm:$0xff] }
 0x2c9   :  { %7224 = vmatprep.mubr.f32.mxu1 %v5307_v54  ;;  %7784 = vmatpush3.bf16.msra.mxu1 %v7781_v34  ;;  %v5314_v31 = vmax.f32 %v13871_v55, 0.0  ;;  %v5315_v54 = vmax.f32 %v13872_v47, 0.0  ;;  %v5644_v5 = vld [vmem:[%s12886_s3 + $0x1e0] sm:$0xff]  ;;  %v4052_v17 = vmul.f32 %v8134_v27, %v13814_v38  ;;  %v13877_v51 = vld [vmem:[#allocation68_spill] sm:$0xff]  ;;  %v5647_v32 = vld [vmem:[%s12886_s3 + $0x1f8] sm:$0xff]  ;;  %v4054_v36 = vmul.f32 %v8134_v27, %v13824_v40 }
 0x2ca   :  { %6998 = vmatmul.mubr.f32.vlgmr.msra.gmra.mrb[16].mxu0 %v3854_v62  ;;  %7786 = vmatprep.subr.bf16.mxu1 %v7785_v1  ;;  %v13873_v62 = vld [vmem:[#allocation75_spill] sm:$0xff]  ;;  %v7805_v48 = vpack.c.bf16 %v5645_v33, %v5644_v5  ;;  %v13878_v0 = vld [vmem:[#allocation36_spill] sm:$0xff]  ;;  %v13879_v28 = vld [vmem:[#allocation54_spill] sm:$0xff] }
 0x2cb   :  { %7656 = vmatpush3.bf16.msra.mxu0 %v7781_v34  ;;  %7000 = vmatprep.mubr.f32.mxu0 %v3855_v16  ;;  %v5312_v34 = vmax.f32 %v13867_v21, 0.0  ;;  %v3862_v2 = vmax.f32 %v13873_v62, 0.0  ;;  %v13874_v16 = vld [vmem:[#allocation101_spill] sm:$0xff]  ;;  %v3864_v11 = vmax.f32 %v13879_v28, 0.0  ;;  %v13895_v28 = vld [vmem:[#allocation51_spill] sm:$0xff] }
 0x2cc   :  { %7225 = vmatmul.mubr.f32.gmra.mrb[18].mxu1 %v5308_v18  ;;  %7658 = vmatprep.subr.bf16.mxu0 %v7785_v1  ;;  %v3863_v24 = vmax.f32 %v13874_v16, 0.0  ;;  %v13875_v18 = vld [vmem:[#allocation96_spill] sm:$0xff] }
 0x2cd   :  { %7227 = vmatprep.mubr.f32.mxu1 %v5309_v19  ;;  %7788 = vmatpush3.bf16.msra.mxu1 %v7785_v1  ;;  %v5316_v19 = vmax.f32 %v13876_v58, 0.0  ;;  %v13888_v58 = vld [vmem:[#allocation82_spill] sm:$0xff] }
 0x2ce   :  { %7001 = vmatmul.mubr.f32.gmra.mrb[18].mxu0 %v3856_v39  ;;  %7790 = vmatprep.subr.bf16.mxu1 %v7789_v26  ;;  %v5317_v39 = vmax.f32 %v13877_v51, 0.0 }
 0x2cf   :  { %7660 = vmatpush3.bf16.msra.mxu0 %v7785_v1  ;;  %7003 = vmatprep.mubr.f32.mxu0 %v3857_v30  ;;  %v8135_v1 = vld [vmem:[%s12887_s1 + $0xa] ss:$0 sm:$0xff] }
 0x2d0   :  { %7228 = vmatmul.mubr.f32.gmra.mrb[20].mxu1 %v5310_v15  ;;  %7662 = vmatprep.subr.bf16.mxu0 %v7789_v26  ;;  %v5287_v7 = vmul.f32 %v8135_v1, %v12395_v12  ;;  %v4053_v12 = vmul.f32 %v8134_v27, %v13812_v45  ;;  %v5646_v45 = vld [vmem:[%s12886_s3 + $0x1f0] sm:$0xff]  ;;  %v8136_v15 = vld [vmem:[%s12887_s1 + $0xd] ss:$0 sm:$0xff] }
 0x2d1   :  { %7230 = vmatprep.mubr.f32.mxu1 %v5311_v25  ;;  %7792 = vmatpush3.bf16.msra.mxu1 %v7789_v26  ;;  %v4095_v38 = vmul.f32 %v8136_v15, %v13852_v29  ;;  %v5548_v25 = vmul.f32 %v8136_v15, %v13819_v60  ;;  %v8138_v29 = vld [vmem:[%s12887_s1 + $0xe] ss:$0 sm:$0xff]  ;;  %v4096_v21 = vmul.f32 %v8136_v15, %v13818_v35  ;;  %v13881_v60 = vld [vmem:[#allocation16_spill] sm:$0xff]  ;;  %v13882_v35 = vld [vmem:[#allocation5_spill] sm:$0xff] }
 0x2d2   :  { %7004 = vmatmul.mubr.f32.gmra.mrb[20].mxu0 %v3858_v42  ;;  %7794 = vmatprep.subr.bf16.mxu1 %v7793_v37  ;;  %v5303_v30 = vadd.f32 %v5287_v7, %v13878_v0  ;;  %v13880_v42 = vld [vmem:[#allocation87_spill] sm:$0xff]  ;;  %v7809_v9 = vpack.c.bf16 %v5647_v32, %v5646_v45  ;;  %v4097_v20 = vmul.f32 %v8136_v15, %v13828_v57  ;;  %v13884_v57 = vld [vmem:[#allocation40_spill] sm:$0xff] }
 0x2d3   :  { %7664 = vmatpush3.bf16.msra.mxu0 %v7789_v26  ;;  %7006 = vmatprep.mubr.f32.mxu0 %v3859_v3  ;;  %v4074_v26 = vadd.f32 %v13875_v18, %v4051_v61  ;;  %v3865_v43 = vmax.f32 %v13880_v42, 0.0  ;;  %v4132_v3 = vmul.f32 %v8138_v29, %v13825_v41  ;;  %v4133_v41 = vmul.f32 %v8138_v29, %v13857_v22  ;;  %v13885_v22 = vld [vmem:[#allocation48_spill] sm:$0xff]  ;;  %v13892_v32 = vld [vmem:[#allocation63_spill] sm:$0xff] }
 0x2d4   :  { %7231 = vmatmul.mubr.f32.gmra.mrb[22].mxu1 %v5312_v34  ;;  %7666 = vmatprep.subr.bf16.mxu0 %v7793_v37  ;;  %v5585_v34 = vmul.f32 %v8138_v29, %v13855_v53  ;;  %v5319_v50 = vmax.f32 %v5303_v30, 0.0  ;;  %v3866_v53 = vmax.f32 %v13882_v35, 0.0  ;;  %v5320_v7 = vmax.f32 %v13884_v57, 0.0  ;;  %v13891_v30 = vld [vmem:[#allocation60_spill] sm:$0xff] }
 0x2d5   :  { %7233 = vmatprep.mubr.f32.mxu1 %v5313_v52  ;;  %7796 = vmatpush3.bf16.msra.mxu1 %v7793_v37  ;;  %v4111_v13 = vadd.f32 %v4095_v38, %v4074_v26  ;;  %v4098_v40 = vmul.f32 %v8136_v15, %v13830_v4  ;;  %v5616_v27 = vmax.f32 %v13885_v22, 0.0  ;;  %v4135_v5 = vmul.f32 %v8138_v29, %v13832_v46  ;;  %v13887_v26 = vld [vmem:[#allocation23_spill] sm:$0xff]  ;;  %v13893_v38 = vld [vmem:[#allocation86_spill] sm:$0xff] }
 0x2d6   :  { %7007 = vmatmul.mubr.f32.gmra.mrb[22].mxu0 %v3860_v6  ;;  %7798 = vmatprep.subr.bf16.mxu1 %v7797_v23  ;;  %v5622_v45 = vmax.f32 %v13891_v30, 0.0  ;;  %v4169_v15 = vmax.f32 %v13892_v32, 0.0  ;;  %v13910_v22 = vld [vmem:[#allocation91_spill] sm:$0xff] }
 0x2d7   :  { %7668 = vmatpush3.bf16.msra.mxu0 %v7793_v37  ;;  %7009 = vmatprep.mubr.f32.mxu0 %v3861_v59  ;;  %v8137_v37 = vld [vmem:[%s12888_s2 + $0x3] ss:$0 sm:$0xff]  ;;  %v13883_v59 = vld [vmem:[#allocation64_spill] sm:$0xff]  ;;  %v4148_v55 = vadd.f32 %v4132_v3, %v4111_v13 }
 0x2d8   :  { %7234 = vmatmul.mubr.f32.gmra.mrb[24].mxu1 %v5314_v31  ;;  %7670 = vmatprep.subr.bf16.mxu0 %v7797_v23  ;;  %v5527_v8 = vadd.f32 %v8137_v37, %v5504_v14  ;;  %v4076_v10 = vadd.f32 %v8137_v37, %v4053_v12  ;;  %v4075_v52 = vadd.f32 %v8137_v37, %v4052_v17  ;;  %v3867_v61 = vmax.f32 %v13883_v59, 0.0  ;;  %v13886_v12 = vld [vmem:[#allocation81_spill] sm:$0xff]  ;;  %v13889_v17 = vld [vmem:[#allocation28_spill] sm:$0xff]  ;;  %v13898_v3 = vld [vmem:[#allocation2_spill] sm:$0xff] }
 0x2d9   :  { %7236 = vmatprep.mubr.f32.mxu1 %v5315_v54  ;;  %7800 = vmatpush3.bf16.msra.mxu1 %v7797_v23  ;;  %v4134_v31 = vmul.f32 %v8138_v29, %v13829_v56  ;;  %v3868_v56 = vmax.f32 %v12433_v49, 0.0  ;;  %v4077_v33 = vadd.f32 %v8137_v37, %v4054_v36  ;;  %v4164_v14 = vmax.f32 %v4148_v55, 0.0  ;;  %v13902_v13 = vld [vmem:[#allocation12_spill] sm:$0xff] }
 0x2da   :  { %7010 = vmatmul.mubr.f32.gmra.mrb[24].mxu0 %v3862_v2  ;;  %7802 = vmatprep.subr.bf16.mxu1 %v7801_v44  ;;  %v5564_v6 = vadd.f32 %v5548_v25, %v5527_v8  ;;  %v4113_v47 = vadd.f32 %v4097_v20, %v4076_v10  ;;  %v5618_v16 = vmax.f32 %v13886_v12, 0.0  ;;  %v5619_v49 = vmax.f32 %v13887_v26, 0.0  ;;  %v13894_v8 = vld [vmem:[#allocation103_spill] sm:$0xff]  ;;  %v13896_v10 = vld [vmem:[#allocation41_spill] sm:$0xff] }
 0x2db   :  { %7672 = vmatpush3.bf16.msra.mxu0 %v7797_v23  ;;  %7012 = vmatprep.mubr.f32.mxu0 %v3863_v24  ;;  %v5318_v23 = vmax.f32 %v13881_v60, 0.0  ;;  %v4114_v4 = vadd.f32 %v4098_v40, %v4077_v33  ;;  %v4168_v51 = vmax.f32 %v13889_v17, 0.0  ;;  %v4170_v37 = vmax.f32 %v13893_v38, 0.0 }
 0x2dc   :  { %7237 = vmatmul.mubr.f32.gmra.mrb[26].mxu1 %v5316_v19  ;;  %7674 = vmatprep.subr.bf16.mxu0 %v7801_v44  ;;  %v5601_v1 = vadd.f32 %v5585_v34, %v5564_v6  ;;  %v4150_v62 = vadd.f32 %v4134_v31, %v4113_v47  ;;  %v5620_v19 = vmax.f32 %v13888_v58, 0.0  ;;  %v5623_v25 = vmax.f32 %v13894_v8, 0.0  ;;  %v13899_v34 = vld [vmem:[#allocation3_spill] sm:$0xff]  ;;  %v13903_v6 = vld [vmem:[#allocation84_spill] sm:$0xff] }
 0x2dd   :  { %7239 = vmatprep.mubr.f32.mxu1 %v5317_v39  ;;  %7804 = vmatpush3.bf16.msra.mxu1 %v7801_v44  ;;  %v4151_v18 = vadd.f32 %v4135_v5, %v4114_v4  ;;  %v13890_v39 = vld [vmem:[#allocation35_spill] sm:$0xff]  ;;  %v4171_v42 = vmax.f32 %v13896_v10, 0.0  ;;  %v5626_v60 = vmax.f32 %v13899_v34, 0.0  ;;  %v5627_v20 = vmax.f32 %v13902_v13, 0.0 }
 0x2de   :  { %7013 = vmatmul.mubr.f32.gmra.mrb[26].mxu0 %v3864_v11  ;;  %7806 = vmatprep.subr.bf16.mxu1 %v7805_v48  ;;  %v5617_v2 = vmax.f32 %v5601_v1, 0.0  ;;  %v4166_v46 = vmax.f32 %v4150_v62, 0.0  ;;  %v5621_v0 = vmax.f32 %v13890_v39, 0.0  ;;  %v5624_v11 = vmax.f32 %v13895_v28, 0.0  ;;  %v13907_v31 = vld [vmem:[#allocation11_spill] sm:$0xff]  ;;  %v13908_v1 = vld [vmem:[#allocation25_spill] sm:$0xff] }
 0x2df   :  { %7676 = vmatpush3.bf16.msra.mxu0 %v7801_v44  ;;  %7015 = vmatprep.mubr.f32.mxu0 %v3865_v43  ;;  %v4112_v44 = vadd.f32 %v4096_v21, %v4075_v52  ;;  %v13897_v43 = vld [vmem:[#allocation62_spill] sm:$0xff]  ;;  %v5625_v21 = vmax.f32 %v13898_v3, 0.0  ;;  %v13901_v52 = vld [vmem:[#allocation43_spill] sm:$0xff]  ;;  %v5628_v36 = vmax.f32 %v13903_v6, 0.0  ;;  %v4177_v57 = vmax.f32 %v13908_v1, 0.0 }
 0x2e0   :  { %7240 = vmatmul.mubr.f32.gmra.mrb[28].mxu1 %v5318_v23  ;;  %7678 = vmatprep.subr.bf16.mxu0 %v7805_v48  ;;  %v4172_v29 = vmax.f32 %v13897_v43, 0.0  ;;  %v13900_v23 = vld [vmem:[#allocation53_spill] sm:$0xff]  ;;  %v4179_v47 = vmax.f32 %v12435_v63, 0.0 }
 0x2e1   :  { %7242 = vmatprep.mubr.f32.mxu1 %v5319_v50  ;;  %7808 = vmatpush3.bf16.msra.mxu1 %v7805_v48  ;;  %v4149_v54 = vadd.f32 %v4133_v41, %v4112_v44  ;;  %v4174_v50 = vmax.f32 %v13901_v52, 0.0  ;;  %v13904_v41 = vld [vmem:[#allocation42_spill] sm:$0xff]  ;;  %v5630_v44 = vmax.f32 %v13907_v31, 0.0 }
 0x2e2   :  { %7016 = vmatmul.mubr.f32.gmra.mrb[28].mxu0 %v3866_v53  ;;  %7810 = vmatprep.subr.bf16.mxu1 %v7809_v9  ;;  %v4175_v35 = vmax.f32 %v13904_v41, 0.0  ;;  %v13905_v53 = vld [vmem:[#allocation24_spill] sm:$0xff] }
 0x2e3   :  { %7680 = vmatpush3.bf16.msra.mxu0 %v7805_v48  ;;  %7018 = vmatprep.mubr.f32.mxu0 %v3867_v61  ;;  %v4165_v24 = vmax.f32 %v4149_v54, 0.0  ;;  %v4167_v48 = vmax.f32 %v4151_v18, 0.0  ;;  %v4176_v59 = vmax.f32 %v13905_v53, 0.0  ;;  %v13906_v61 = vld [vmem:[#allocation34_spill] sm:$0xff] }
 0x2e4   :  { %7243 = vmatmul.mubr.f32.gmra.mrb[30].mxu1 %v5320_v7  ;;  %7682 = vmatprep.subr.bf16.mxu0 %v7809_v9  ;;  %v5629_v55 = vmax.f32 %v13906_v61, 0.0  ;;  %v13909_v7 = vld [vmem:[#allocation39_spill] sm:$0xff] }
 0x2e5   :  { %7812 = vmatpush3.bf16.msra.mxu1 %v7809_v9  ;;  %7277 = vmatprep.mubr.f32.mxu1 %v5616_v27  ;;  %v4178_v40 = vmax.f32 %v13909_v7, 0.0  ;;  %v5631_v27 = vmax.f32 %v13910_v22, 0.0 }
 0x2e6   :  { %7019 = vmatmul.mubr.f32.gmra.mrb[30].mxu0 %v3868_v56 }
 0x2e7   :  { %7684 = vmatpush3.bf16.msra.mxu0 %v7809_v9  ;;  %7053 = vmatprep.mubr.f32.mxu0 %v4164_v14  ;;  %v4173_v9 = vmax.f32 %v13900_v23, 0.0 }
 0x2e8   :  { %7278 = vmatmul.mubr.f32.vlgmr.msra.gmra.mrb[16].mxu1 %v5617_v2 }
 0x2e9   :  { %7280 = vmatprep.mubr.f32.mxu1 %v5618_v16 }
 0x2ea   :  { %7054 = vmatmul.mubr.f32.vlgmr.msra.gmra.mrb[16].mxu0 %v4165_v24 }
 0x2eb   :  { %7056 = vmatprep.mubr.f32.mxu0 %v4166_v46 }
 0x2ec   :  { %7281 = vmatmul.mubr.f32.gmra.mrb[18].mxu1 %v5619_v49 }
 0x2ed   :  { %7283 = vmatprep.mubr.f32.mxu1 %v5620_v19 }
 0x2ee   :  { %7057 = vmatmul.mubr.f32.gmra.mrb[18].mxu0 %v4167_v48 }
 0x2ef   :  { %7059 = vmatprep.mubr.f32.mxu0 %v4168_v51 }
 0x2f0   :  { %7284 = vmatmul.mubr.f32.gmra.mrb[20].mxu1 %v5621_v0 }
 0x2f1   :  { %7286 = vmatprep.mubr.f32.mxu1 %v5622_v45 }
 0x2f2   :  { %7060 = vmatmul.mubr.f32.gmra.mrb[20].mxu0 %v4169_v15 }
 0x2f3   :  { %7062 = vmatprep.mubr.f32.mxu0 %v4170_v37 }
 0x2f4   :  { %7287 = vmatmul.mubr.f32.gmra.mrb[22].mxu1 %v5623_v25 }
 0x2f5   :  { %7289 = vmatprep.mubr.f32.mxu1 %v5624_v11 }
 0x2f6   :  { %7063 = vmatmul.mubr.f32.gmra.mrb[22].mxu0 %v4171_v42 }
 0x2f7   :  { %7065 = vmatprep.mubr.f32.mxu0 %v4172_v29 }
 0x2f8   :  { %7290 = vmatmul.mubr.f32.gmra.mrb[24].mxu1 %v5625_v21 }
 0x2f9   :  { %7292 = vmatprep.mubr.f32.mxu1 %v5626_v60 }
 0x2fa   :  { %7066 = vmatmul.mubr.f32.gmra.mrb[24].mxu0 %v4173_v9 }
 0x2fb   :  { %7068 = vmatprep.mubr.f32.mxu0 %v4174_v50 }
 0x2fc   :  { %7293 = vmatmul.mubr.f32.gmra.mrb[26].mxu1 %v5627_v20 }
 0x2fd   :  { %7295 = vmatprep.mubr.f32.mxu1 %v5628_v36 }
 0x2fe   :  { %7069 = vmatmul.mubr.f32.gmra.mrb[26].mxu0 %v4175_v35 }
 0x2ff   :  { %7071 = vmatprep.mubr.f32.mxu0 %v4176_v59 }
 0x300   :  { %7296 = vmatmul.mubr.f32.gmra.mrb[28].mxu1 %v5629_v55 }
 0x301   :  { %7298 = vmatprep.mubr.f32.mxu1 %v5630_v44 }
 0x302   :  { %7072 = vmatmul.mubr.f32.gmra.mrb[28].mxu0 %v4177_v57 }
 0x303   :  { %7074 = vmatprep.mubr.f32.mxu0 %v4178_v40 }
 0x304   :  { %7299 = vmatmul.mubr.f32.gmra.mrb[30].mxu1 %v5631_v27 }
 0x306   :  { %7075 = vmatmul.mubr.f32.gmra.mrb[30].mxu0 %v4179_v47 }
 0x3bb   :  { %v7279_v54 = vpop.f32.mrb[16].mxu1 }
 0x3bc   :  { %5810 = vst [vmem:[%s12889_s4 + $0x188] sm:$0xff] %v7279_v54  ;;  %v5714_v5 = vpop.f32.mrb[17].mxu1 }
 0x3bd   :  { %5809 = vst [vmem:[%s12889_s4 + $0x180] sm:$0xff] %v5714_v5  ;;  %v7055_v56 = vpop.f32.mrb[16].mxu0 }
 0x3be   :  { %4358 = vst [vmem:[%s12889_s4 + $0x108] sm:$0xff] %v7055_v56  ;;  %v4262_v33 = vpop.f32.mrb[17].mxu0 }
 0x3bf   :  { %4357 = vst [vmem:[%s12889_s4 + $0x100] sm:$0xff] %v4262_v33  ;;  %v7282_v63 = vpop.f32.mrb[18].mxu1 }
 0x3c0   :  { %5812 = vst [vmem:[%s12889_s4 + $0x198] sm:$0xff] %v7282_v63  ;;  %v5724_v14 = vpop.f32.mrb[19].mxu1 }
 0x3c1   :  { %5811 = vst [vmem:[%s12889_s4 + $0x190] sm:$0xff] %v5724_v14  ;;  %v7058_v62 = vpop.f32.mrb[18].mxu0 }
 0x3c2   :  { %4360 = vst [vmem:[%s12889_s4 + $0x118] sm:$0xff] %v7058_v62  ;;  %v4272_v2 = vpop.f32.mrb[19].mxu0 }
 0x3c3   :  { %4359 = vst [vmem:[%s12889_s4 + $0x110] sm:$0xff] %v4272_v2  ;;  %v7285_v4 = vpop.f32.mrb[20].mxu1 }
 0x3c4   :  { %5814 = vst [vmem:[%s12889_s4 + $0x1a8] sm:$0xff] %v7285_v4  ;;  %v5734_v12 = vpop.f32.mrb[21].mxu1 }
 0x3c5   :  { %5813 = vst [vmem:[%s12889_s4 + $0x1a0] sm:$0xff] %v5734_v12  ;;  %v7061_v16 = vpop.f32.mrb[20].mxu0 }
 0x3c6   :  { %4362 = vst [vmem:[%s12889_s4 + $0x128] sm:$0xff] %v7061_v16  ;;  %v4282_v24 = vpop.f32.mrb[21].mxu0 }
 0x3c7   :  { %4361 = vst [vmem:[%s12889_s4 + $0x120] sm:$0xff] %v4282_v24  ;;  %v7288_v18 = vpop.f32.mrb[22].mxu1 }
 0x3c8   :  { %5816 = vst [vmem:[%s12889_s4 + $0x1b8] sm:$0xff] %v7288_v18  ;;  %v5744_v46 = vpop.f32.mrb[23].mxu1 }
 0x3c9   :  { %5815 = vst [vmem:[%s12889_s4 + $0x1b0] sm:$0xff] %v5744_v46  ;;  %v7064_v26 = vpop.f32.mrb[22].mxu0 }
 0x3ca   :  { %4364 = vst [vmem:[%s12889_s4 + $0x138] sm:$0xff] %v7064_v26  ;;  %v4292_v49 = vpop.f32.mrb[23].mxu0 }
 0x3cb   :  { %4363 = vst [vmem:[%s12889_s4 + $0x130] sm:$0xff] %v4292_v49  ;;  %v7291_v58 = vpop.f32.mrb[24].mxu1 }
 0x3cc   :  { %5818 = vst [vmem:[%s12889_s4 + $0x1c8] sm:$0xff] %v7291_v58  ;;  %v5754_v19 = vpop.f32.mrb[25].mxu1 }
 0x3cd   :  { %5817 = vst [vmem:[%s12889_s4 + $0x1c0] sm:$0xff] %v5754_v19  ;;  %v7067_v48 = vpop.f32.mrb[24].mxu0 }
 0x3ce   :  { %4366 = vst [vmem:[%s12889_s4 + $0x148] sm:$0xff] %v7067_v48  ;;  %v4302_v17 = vpop.f32.mrb[25].mxu0 }
 0x3cf   :  { %4365 = vst [vmem:[%s12889_s4 + $0x140] sm:$0xff] %v4302_v17  ;;  %v7294_v51 = vpop.f32.mrb[26].mxu1 }
 0x3d0   :  { %5820 = vst [vmem:[%s12889_s4 + $0x1d8] sm:$0xff] %v7294_v51  ;;  %v5764_v39 = vpop.f32.mrb[27].mxu1 }
 0x3d1   :  { %5819 = vst [vmem:[%s12889_s4 + $0x1d0] sm:$0xff] %v5764_v39  ;;  %v7070_v0 = vpop.f32.mrb[26].mxu0 }
 0x3d2   :  { %4368 = vst [vmem:[%s12889_s4 + $0x158] sm:$0xff] %v7070_v0  ;;  %v4312_v30 = vpop.f32.mrb[27].mxu0 }
 0x3d3   :  { %4367 = vst [vmem:[%s12889_s4 + $0x150] sm:$0xff] %v4312_v30  ;;  %v7297_v45 = vpop.f32.mrb[28].mxu1 }
 0x3d4   :  { %5822 = vst [vmem:[%s12889_s4 + $0x1e8] sm:$0xff] %v7297_v45  ;;  %v5774_v32 = vpop.f32.mrb[29].mxu1 }
 0x3d5   :  { %5821 = vst [vmem:[%s12889_s4 + $0x1e0] sm:$0xff] %v5774_v32  ;;  %v7073_v15 = vpop.f32.mrb[28].mxu0 }
 0x3d6   :  { %4370 = vst [vmem:[%s12889_s4 + $0x168] sm:$0xff] %v7073_v15  ;;  %v4322_v38 = vpop.f32.mrb[29].mxu0 }
 0x3d7   :  { %4369 = vst [vmem:[%s12889_s4 + $0x160] sm:$0xff] %v4322_v38  ;;  %v7300_v37 = vpop.f32.mrb[30].mxu1 }
 0x3d8   :  { %5824 = vst [vmem:[%s12889_s4 + $0x1f8] sm:$0xff] %v7300_v37  ;;  %v5784_v8 = vpop.f32.mrb[31].mxu1 }
 0x3d9   :  { %5823 = vst [vmem:[%s12889_s4 + $0x1f0] sm:$0xff] %v5784_v8  ;;  %v7076_v25 = vpop.f32.mrb[30].mxu0 }
 0x3da   :  { %4372 = vst [vmem:[%s12889_s4 + $0x178] sm:$0xff] %v7076_v25  ;;  %v4332_v28 = vpop.f32.mrb[31].mxu0 }
 0x3db   :  { %4371 = vst [vmem:[%s12889_s4 + $0x170] sm:$0xff] %v4332_v28 }

</bundles_post_ra>
